<compile_context>
chip_gen: v6e
topology: v6e:2x2x1
jax: 0.10.0
libtpu: 0.0.40
codegen_flags: <defaults>
</compile_context>

<pallas_src>
import jax
import jax.numpy as jnp
from jax.experimental import pallas as pl
from jax.experimental.pallas import tpu as pltpu

EPS = 1e-3  # matches nn.BatchNorm2d(eps=0.001)


# ----------------------------------------------------------------------------
# Static tiling helpers (all shapes are static under jit)
# ----------------------------------------------------------------------------
def _pick_th(H, row_elems, cap_bytes=2 * 1024 * 1024):
    """Largest divisor of H whose f32 row-block stays under cap_bytes."""
    cap_rows = max(1, cap_bytes // (4 * max(row_elems, 1)))
    for t in range(min(H, cap_rows), 0, -1):
        if H % t == 0:
            return t
    return H


def _pick_tm(M, cap=2048):
    """Largest divisor of M <= cap that keeps (TM, C) blocks sublane-aligned."""
    for t in range(min(M, cap), 0, -1):
        if M % t == 0 and (t % 8 == 0 or t == M):
            return t
    return M


def _h_windows(xp, th, halo):
    """xp: (N, th*nhb + halo, W, C) -> overlapping row windows
    of shape (N*nhb, th+halo, W, C)."""
    N, Hp, W, C = xp.shape
    nhb = (Hp - halo) // th
    rows = th + halo
    if nhb == 1:
        return xp.reshape(N, rows, W, C), 1
    wins = jnp.stack([xp[:, b * th: b * th + rows] for b in range(nhb)], axis=1)
    return wins.reshape(N * nhb, rows, W, C), nhb


def _bn_scale_shift(ssum, ssq, count, gamma, beta):
    """Training-mode BN: fold batch stats + gamma/beta into scale/shift."""
    mean = ssum.reshape(-1) / count
    var = ssq.reshape(-1) / count - mean * mean
    scale = gamma * jax.lax.rsqrt(var + EPS)
    shift = beta - mean * scale
    return scale, shift


# ----------------------------------------------------------------------------
# Kernel 1: fused non_bottleneck_1d conv pair (3x1 + bias + ReLU -> 1x3)
#           producing the pre-BN result + per-channel batch statistics.
# ----------------------------------------------------------------------------
def _nb_pair_pre(x, w31_taps, b31, w13_taps):
    """Returns pre-BN output (N, H, W, C) f32, channel sums (1, C), sq-sums (1, C)."""
    N, H, W, C = x.shape
    th = _pick_th(H, W * C)
    xp = jnp.pad(x, ((0, 0), (1, 1), (0, 0), (0, 0)))          # conv3x1 h-padding
    wins, nhb = _h_windows(xp, th, 2)
    NW = N * nhb
    wins = wins.reshape(NW, (th + 2) * W, C)                   # flat (h, w) rows
    w31b = w31_taps.astype(jnp.bfloat16)                       # (3, C, C)
    w13b = w13_taps.astype(jnp.bfloat16)                       # (3, C, C)
    b31r = b31.reshape(1, C).astype(jnp.float32)
    MT = th * W

    def kernel(xw_ref, w31_ref, b31_ref, w13_ref, y_ref, ss_ref, sq_ref, t_ref):
        i = pl.program_id(0)
        xw = xw_ref[0].astype(jnp.bfloat16)                    # ((th+2)*W, C)
        # conv3x1: 3 row-shifted GEMMs (shift by dh rows == dh*W flat rows)
        acc = jnp.dot(xw[0:MT], w31_ref[0, :, :],
                      preferred_element_type=jnp.float32)
        for dh in (1, 2):
            acc = acc + jnp.dot(xw[dh * W:dh * W + MT], w31_ref[dh, :, :],
                                preferred_element_type=jnp.float32)
        t = jnp.maximum(acc + b31_ref[...], 0.0).astype(jnp.bfloat16)
        # zero-padded (along w) intermediate for the 1x3 conv
        t_ref[:, 1:W + 1, :] = t.reshape(th, W, C)
        t_ref[:, 0:1, :] = jnp.zeros((th, 1, C), jnp.bfloat16)
        t_ref[:, W + 1:W + 2, :] = jnp.zeros((th, 1, C), jnp.bfloat16)
        # conv1x3: 3 col-shifted GEMMs (bias dropped: cancelled by batch-stat BN)
        y = jnp.dot(t_ref[:, 0:W, :].reshape(MT, C), w13_ref[0, :, :],
                    preferred_element_type=jnp.float32)
        for dw in (1, 2):
            y = y + jnp.dot(t_ref[:, dw:dw + W, :].reshape(MT, C),
                            w13_ref[dw, :, :],
                            preferred_element_type=jnp.float32)
        y_ref[...] = y.reshape(1, MT, C)
        # BatchNorm batch statistics accumulated across the whole grid
        @pl.when(i == 0)
        def _():
            ss_ref[...] = jnp.zeros_like(ss_ref)
            sq_ref[...] = jnp.zeros_like(sq_ref)
        ss_ref[...] += jnp.sum(y, axis=0, keepdims=True)
        sq_ref[...] += jnp.sum(y * y, axis=0, keepdims=True)

    y, ss, sq = pl.pallas_call(
        kernel,
        out_shape=(jax.ShapeDtypeStruct((NW, MT, C), jnp.float32),
                   jax.ShapeDtypeStruct((1, C), jnp.float32),
                   jax.ShapeDtypeStruct((1, C), jnp.float32)),
        grid=(NW,),
        in_specs=[
            pl.BlockSpec((1, (th + 2) * W, C), lambda i: (i, 0, 0)),
            pl.BlockSpec((3, C, C), lambda i: (0, 0, 0)),
            pl.BlockSpec((1, C), lambda i: (0, 0)),
            pl.BlockSpec((3, C, C), lambda i: (0, 0, 0)),
        ],
        out_specs=(
            pl.BlockSpec((1, MT, C), lambda i: (i, 0, 0)),
            pl.BlockSpec((1, C), lambda i: (0, 0)),
            pl.BlockSpec((1, C), lambda i: (0, 0)),
        ),
        scratch_shapes=[pltpu.VMEM((th, W + 2, C), jnp.bfloat16)],
        compiler_params=pltpu.CompilerParams(
            dimension_semantics=("arbitrary",)),
        cost_estimate=pl.CostEstimate(
            flops=12 * N * H * W * C * C, transcendentals=0,
            bytes_accessed=4 * (wins.size + 2 * N * H * W * C)),
    )(wins, w31b, b31r, w13b)
    return y.reshape(N, H, W, C), ss, sq


# ----------------------------------------------------------------------------
# Kernel 2: phase-decomposed ConvTranspose2d(k=3, s=2, p=1, op=1)
#           (bias dropped; BN follows) producing pre-BN phases + batch stats.
# ----------------------------------------------------------------------------
def _deconv3x3_s2_pre(x, wt):
    """Returns (N, H, W, 4*Cout) pre-BN phases (packed channel p*Cout+co,
    p = 2*r + c for output pixel (2h+r, 2w+c)) plus packed-channel stats."""
    N, H, W, Cin = x.shape
    Cout = wt.shape[1]
    Cp = 4 * Cout
    th = _pick_th(H, (W + 1) * Cin)
    xp = jnp.pad(x, ((0, 0), (0, 1), (0, 1), (0, 0)))          # +1 halo bottom/right
    wins, nhb = _h_windows(xp, th, 1)                          # (NW, th+1, W+1, Cin)
    NW = N * nhb
    # per-tap (Cin, Cout) matrices, tap index = 3*kh + kw
    wtaps = jnp.transpose(wt, (2, 3, 0, 1)).reshape(9, Cin, Cout)
    wtaps = wtaps.astype(jnp.bfloat16)
    MT = th * W

    def kernel(xw_ref, w_ref, y_ref, ss_ref, sq_ref):
        i = pl.program_id(0)
        xw = xw_ref[0].astype(jnp.bfloat16)                    # (th+1, W+1, Cin)
        x00 = xw[0:th, 0:W, :].reshape(MT, Cin)
        x01 = xw[0:th, 1:W + 1, :].reshape(MT, Cin)            # w+1 shift
        x10 = xw[1:th + 1, 0:W, :].reshape(MT, Cin)            # h+1 shift
        x11 = xw[1:th + 1, 1:W + 1, :].reshape(MT, Cin)

        def mm(a, kh, kw):
            return jnp.dot(a, w_ref[3 * kh + kw, :, :],
                           preferred_element_type=jnp.float32)

        packed = jnp.concatenate([
            mm(x00, 1, 1),                                          # (2h,   2w)
            mm(x00, 1, 2) + mm(x01, 1, 0),                          # (2h,   2w+1)
            mm(x00, 2, 1) + mm(x10, 0, 1),                          # (2h+1, 2w)
            mm(x00, 2, 2) + mm(x01, 2, 0) + mm(x10, 0, 2)
            + mm(x11, 0, 0),                                        # (2h+1, 2w+1)
        ], axis=-1)                                                 # (MT, 4*Cout)
        y_ref[...] = packed.reshape(1, MT, Cp)
        @pl.when(i == 0)
        def _():
            ss_ref[...] = jnp.zeros_like(ss_ref)
            sq_ref[...] = jnp.zeros_like(sq_ref)
        ss_ref[...] += jnp.sum(packed, axis=0, keepdims=True)
        sq_ref[...] += jnp.sum(packed * packed, axis=0, keepdims=True)

    y, ss, sq = pl.pallas_call(
        kernel,
        out_shape=(jax.ShapeDtypeStruct((NW, MT, Cp), jnp.float32),
                   jax.ShapeDtypeStruct((1, Cp), jnp.float32),
                   jax.ShapeDtypeStruct((1, Cp), jnp.float32)),
        grid=(NW,),
        in_specs=[
            pl.BlockSpec((1, th + 1, W + 1, Cin), lambda i: (i, 0, 0, 0)),
            pl.BlockSpec((9, Cin, Cout), lambda i: (0, 0, 0)),
        ],
        out_specs=(
            pl.BlockSpec((1, MT, Cp), lambda i: (i, 0, 0)),
            pl.BlockSpec((1, Cp), lambda i: (0, 0)),
            pl.BlockSpec((1, Cp), lambda i: (0, 0)),
        ),
        compiler_params=pltpu.CompilerParams(
            dimension_semantics=("arbitrary",)),
        cost_estimate=pl.CostEstimate(
            flops=18 * N * H * W * Cin * Cout, transcendentals=0,
            bytes_accessed=4 * (wins.size + N * H * W * Cp)),
    )(wins, wtaps)
    return y.reshape(N, H, W, Cp), ss, sq


# ----------------------------------------------------------------------------
# Kernel 3: tiled BN-apply epilogue:  y*scale + shift [+ residual] -> ReLU
# ----------------------------------------------------------------------------
def _bn_act(y2d, scale, shift, residual=None):
    M, C = y2d.shape
    tm = _pick_tm(M)
    add_res = residual is not None
    inputs = [y2d, scale.reshape(1, C).astype(jnp.float32),
              shift.reshape(1, C).astype(jnp.float32)]
    in_specs = [pl.BlockSpec((tm, C), lambda i: (i, 0)),
                pl.BlockSpec((1, C), lambda i: (0, 0)),
                pl.BlockSpec((1, C), lambda i: (0, 0))]
    if add_res:
        inputs.append(residual)
        in_specs.append(pl.BlockSpec((tm, C), lambda i: (i, 0)))

    def kernel(*refs):
        o_ref = refs[-1]
        v = refs[0][...] * refs[1][...] + refs[2][...]
        if add_res:
            v = v + refs[3][...]
        o_ref[...] = jnp.maximum(v, 0.0)

    return pl.pallas_call(
        kernel,
        out_shape=jax.ShapeDtypeStruct((M, C), jnp.float32),
        grid=(M // tm,),
        in_specs=in_specs,
        out_specs=pl.BlockSpec((tm, C), lambda i: (i, 0)),
        compiler_params=pltpu.CompilerParams(
            dimension_semantics=("parallel",)),
    )(*inputs)


# ----------------------------------------------------------------------------
# Kernel 4: final ConvTranspose2d(k=2, s=2, p=0) = one GEMM + depth-to-space
# ----------------------------------------------------------------------------
def _deconv2x2_s2(x, wt, b):
    N, H, W, Cin = x.shape
    nc = wt.shape[1]
    Cp = 4 * nc
    # packed weight (Cin, 4*nc); packed channel = p*nc + co, p = 2*kh + kw
    wp = jnp.transpose(wt, (2, 3, 0, 1)).reshape(4, Cin, nc)
    wp = jnp.transpose(wp, (1, 0, 2)).reshape(Cin, Cp).astype(jnp.bfloat16)
    bp = jnp.tile(b.astype(jnp.float32), 4).reshape(1, Cp)
    M = N * H * W
    tm = _pick_tm(M)
    x2 = x.reshape(M, Cin)

    def kernel(x_ref, w_ref, b_ref, o_ref):
        a = x_ref[...].astype(jnp.bfloat16)
        o_ref[...] = jnp.dot(a, w_ref[...],
                             preferred_element_type=jnp.float32) + b_ref[...]

    y = pl.pallas_call(
        kernel,
        out_shape=jax.ShapeDtypeStruct((M, Cp), jnp.float32),
        grid=(M // tm,),
        in_specs=[pl.BlockSpec((tm, Cin), lambda i: (i, 0)),
                  pl.BlockSpec((Cin, Cp), lambda i: (0, 0)),
                  pl.BlockSpec((1, Cp), lambda i: (0, 0))],
        out_specs=pl.BlockSpec((tm, Cp), lambda i: (i, 0)),
        compiler_params=pltpu.CompilerParams(
            dimension_semantics=("parallel",)),
    )(x2, wp, bp)
    y = y.reshape(N, H, W, 2, 2, nc)
    return jnp.transpose(y, (0, 1, 3, 2, 4, 5)).reshape(N, 2 * H, 2 * W, nc)


# ----------------------------------------------------------------------------
# Module blocks
# ----------------------------------------------------------------------------
def _upsampler_block(x, p):
    # ConvTranspose2d(3, s=2, p=1, op=1) -> BN(batch stats) -> ReLU.
    # Deconv bias is skipped: it is cancelled exactly by the BN mean.
    N, H, W, _ = x.shape
    Cout = p["w"].shape[1]
    y, ss, sq = _deconv3x3_s2_pre(x, p["w"])
    ssum = ss.reshape(4, Cout).sum(axis=0)            # stats per real channel
    ssq = sq.reshape(4, Cout).sum(axis=0)
    scale, shift = _bn_scale_shift(ssum, ssq, 4.0 * N * H * W, p["g"], p["be"])
    yb = _bn_act(y.reshape(N * H * W, 4 * Cout),
                 jnp.tile(scale, 4), jnp.tile(shift, 4))
    # depth-to-space: packed phase channels -> (2H, 2W) spatial
    yb = yb.reshape(N, H, W, 2, 2, Cout)
    return jnp.transpose(yb, (0, 1, 3, 2, 4, 5)).reshape(N, 2 * H, 2 * W, Cout)


def _non_bottleneck_1d(x, p):
    # dropprob=0, dilated=1 exactly as in the Decoder
    N, H, W, C = x.shape
    M = N * H * W

    def taps(w):  # PyTorch Conv2d (Cout, Cin, kh, kw) -> (kh*kw, Cin, Cout)
        return jnp.transpose(w, (2, 3, 1, 0)).reshape(-1, C, C)

    # 3x1 -> ReLU -> 1x3 -> BN1 -> ReLU    (1x3 bias cancelled by BN)
    y1, ss1, sq1 = _nb_pair_pre(x, taps(p["w31_1"]), p["b31_1"], taps(p["w13_1"]))
    sc1, sh1 = _bn_scale_shift(ss1, sq1, float(M), p["g1"], p["be1"])
    t = _bn_act(y1.reshape(M, C), sc1, sh1).reshape(N, H, W, C)

    # 3x1 -> ReLU -> 1x3 -> BN2 -> (+input) -> ReLU
    y2, ss2, sq2 = _nb_pair_pre(t, taps(p["w31_2"]), p["b31_2"], taps(p["w13_2"]))
    sc2, sh2 = _bn_scale_shift(ss2, sq2, float(M), p["g2"], p["be2"])
    out = _bn_act(y2.reshape(M, C), sc2, sh2, residual=x.reshape(M, C))
    return out.reshape(N, H, W, C)


def decoder_traversability(params, x_nchw, shortcut_1_nchw, shortcut_2_nchw):
    # NCHW -> NHWC
    x = jnp.transpose(x_nchw, (0, 2, 3, 1)).astype(jnp.float32)
    s1 = jnp.transpose(shortcut_1_nchw, (0, 2, 3, 1)).astype(jnp.float32)
    s2 = jnp.transpose(shortcut_2_nchw, (0, 2, 3, 1)).astype(jnp.float32)

    y = _upsampler_block(x, params["up1"])              # 128 -> 64, 2x upsample
    y = _non_bottleneck_1d(y, params["nb1a"])
    y = _non_bottleneck_1d(y, params["nb1b"])
    y = jnp.concatenate([y, s2], axis=-1)               # cat(dim=1) in NCHW

    y = _upsampler_block(y, params["up2"])              # 128 -> 16, 2x upsample
    y = _non_bottleneck_1d(y, params["nb2a"])
    y = _non_bottleneck_1d(y, params["nb2b"])
    y = jnp.concatenate([y, s1], axis=-1)               # cat(dim=1) in NCHW

    y = _deconv2x2_s2(y, params["up3"]["w"], params["up3"]["b"])
    # NHWC -> NCHW
    return jnp.transpose(y, (0, 3, 1, 2))


# ----------------------------------------------------------------------------
# Deterministic parameter construction (synthetic weights, PyTorch layouts)
# ----------------------------------------------------------------------------
def _init_params(key):
    keys = iter(jax.random.split(key, 128))

    def nrm(shape, scale=0.1):
        return scale * jax.random.normal(next(keys), shape, dtype=jnp.float32)

    def nb(c):
        return {
            "w31_1": nrm((c, c, 3, 1)), "b31_1": nrm((c,)),
            "w13_1": nrm((c, c, 1, 3)), "b13_1": nrm((c,)),   # unused: cancelled by BN
            "g1": 1.0 + nrm((c,)), "be1": nrm((c,)),
            "w31_2": nrm((c, c, 3, 1)), "b31_2": nrm((c,)),
            "w13_2": nrm((c, c, 1, 3)), "b13_2": nrm((c,)),   # unused: cancelled by BN
            "g2": 1.0 + nrm((c,)), "be2": nrm((c,)),
        }

    def up(cin, cout):
        return {"w": nrm((cin, cout, 3, 3)), "b": nrm((cout,)),  # "b" cancelled by BN
                "g": 1.0 + nrm((cout,)), "be": nrm((cout,))}

    return {
        "up1": up(128, 64), "nb1a": nb(64), "nb1b": nb(64),
        "up2": up(128, 16), "nb2a": nb(16), "nb2b": nb(16),
        "up3": {"w": nrm((32, 1, 2, 2)), "b": nrm((1,))},
    }


if __name__ == "__main__":
    key = jax.random.PRNGKey(0)
    kp, kx, ks1, ks2 = jax.random.split(key, 4)
    params = _init_params(kp)

    N, H, W = 2, 4, 4
    x = jax.random.normal(kx, (N, 128, H, W), dtype=jnp.float32)
    shortcut_2 = jax.random.normal(ks2, (N, 64, 2 * H, 2 * W), dtype=jnp.float32)
    shortcut_1 = jax.random.normal(ks1, (N, 16, 4 * H, 4 * W), dtype=jnp.float32)

    out = jax.jit(decoder_traversability)(params, x, shortcut_1, shortcut_2)
    out = jax.block_until_ready(out)
    assert out.shape == (N, 1, 8 * H, 8 * W), out.shape
    assert out.dtype == jnp.float32
    print("KERNEL_OK")
</pallas_src>

<mosaic_0001>
module attributes {stable_mosaic.version = 11 : i64} {
  func.func @kernel(%arg0: i32, %arg1: memref<1x5x5x128xf32, #tpu.memory_space<vmem>>, %arg2: memref<9x128x64xbf16, #tpu.memory_space<vmem>>, %arg3: memref<1x16x256xf32, #tpu.memory_space<vmem>>, %arg4: memref<1x256xf32, #tpu.memory_space<vmem>>, %arg5: memref<1x256xf32, #tpu.memory_space<vmem>>) attributes {dimension_semantics = [#tpu.dimension_semantics<arbitrary>], iteration_bounds = array<i64: 2>, scalar_prefetch = 0 : i64, scratch_operands = 0 : i64, tpu.core_type = #tpu.core_type<tc>, window_params = [{transform_indices = @transform_0, window_bounds = array<i64: 1, 5, 5, 128>}, {pipeline_mode = #tpu.pipeline_mode<synchronous>, transform_indices = @transform_1, window_bounds = array<i64: 9, 128, 64>}, {transform_indices = @transform_2, window_bounds = array<i64: 1, 16, 256>}, {pipeline_mode = #tpu.pipeline_mode<synchronous>, transform_indices = @transform_3, window_bounds = array<i64: 1, 256>}, {pipeline_mode = #tpu.pipeline_mode<synchronous>, transform_indices = @transform_4, window_bounds = array<i64: 1, 256>}]} {
    %c0 = arith.constant 0 : index
    %c0_0 = arith.constant 0 : index
    %c0_1 = arith.constant 0 : index
    %c0_2 = arith.constant 0 : index
    %0 = vector.load %arg1[%c0, %c0_0, %c0_1, %c0_2] : memref<1x5x5x128xf32, #tpu.memory_space<vmem>>, vector<1x5x5x128xf32>
    %1 = vector.shape_cast %0 : vector<1x5x5x128xf32> to vector<5x5x128xf32>
    %2 = arith.truncf %1 : vector<5x5x128xf32> to vector<5x5x128xbf16>
    %3 = vector.extract_strided_slice %2 {offsets = [0, 0, 0], sizes = [4, 4, 128], strides = [1, 1, 1]} : vector<5x5x128xbf16> to vector<4x4x128xbf16>
    %4 = vector.shape_cast %3 : vector<4x4x128xbf16> to vector<16x128xbf16>
    %5 = vector.extract_strided_slice %2 {offsets = [0, 1, 0], sizes = [4, 4, 128], strides = [1, 1, 1]} : vector<5x5x128xbf16> to vector<4x4x128xbf16>
    %6 = vector.shape_cast %5 : vector<4x4x128xbf16> to vector<16x128xbf16>
    %7 = vector.extract_strided_slice %2 {offsets = [1, 0, 0], sizes = [4, 4, 128], strides = [1, 1, 1]} : vector<5x5x128xbf16> to vector<4x4x128xbf16>
    %8 = vector.shape_cast %7 : vector<4x4x128xbf16> to vector<16x128xbf16>
    %9 = vector.extract_strided_slice %2 {offsets = [1, 1, 0], sizes = [4, 4, 128], strides = [1, 1, 1]} : vector<5x5x128xbf16> to vector<4x4x128xbf16>
    %10 = vector.shape_cast %9 : vector<4x4x128xbf16> to vector<16x128xbf16>
    %c4 = arith.constant 4 : index
    %c0_3 = arith.constant 0 : index
    %c0_4 = arith.constant 0 : index
    %11 = vector.load %arg2[%c4, %c0_3, %c0_4] : memref<9x128x64xbf16, #tpu.memory_space<vmem>>, vector<1x128x64xbf16>
    %12 = vector.shape_cast %11 : vector<1x128x64xbf16> to vector<128x64xbf16>
    %cst = arith.constant dense<0.000000e+00> : vector<16x64xf32>
    %13 = tpu.matmul %4, %12, %cst {dimension_numbers = #tpu.dot_dimension_numbers<[1], [0], [0], [1], [0, 0, 1, 1], [], []>} : vector<16x128xbf16>, vector<128x64xbf16>, vector<16x64xf32> -> vector<16x64xf32>
    %c5 = arith.constant 5 : index
    %c0_5 = arith.constant 0 : index
    %c0_6 = arith.constant 0 : index
    %14 = vector.load %arg2[%c5, %c0_5, %c0_6] : memref<9x128x64xbf16, #tpu.memory_space<vmem>>, vector<1x128x64xbf16>
    %15 = vector.shape_cast %14 : vector<1x128x64xbf16> to vector<128x64xbf16>
    %cst_7 = arith.constant dense<0.000000e+00> : vector<16x64xf32>
    %16 = tpu.matmul %4, %15, %cst_7 {dimension_numbers = #tpu.dot_dimension_numbers<[1], [0], [0], [1], [0, 0, 1, 1], [], []>} : vector<16x128xbf16>, vector<128x64xbf16>, vector<16x64xf32> -> vector<16x64xf32>
    %c3 = arith.constant 3 : index
    %c0_8 = arith.constant 0 : index
    %c0_9 = arith.constant 0 : index
    %17 = vector.load %arg2[%c3, %c0_8, %c0_9] : memref<9x128x64xbf16, #tpu.memory_space<vmem>>, vector<1x128x64xbf16>
    %18 = vector.shape_cast %17 : vector<1x128x64xbf16> to vector<128x64xbf16>
    %cst_10 = arith.constant dense<0.000000e+00> : vector<16x64xf32>
    %19 = tpu.matmul %6, %18, %cst_10 {dimension_numbers = #tpu.dot_dimension_numbers<[1], [0], [0], [1], [0, 0, 1, 1], [], []>} : vector<16x128xbf16>, vector<128x64xbf16>, vector<16x64xf32> -> vector<16x64xf32>
    %20 = arith.addf %16, %19 : vector<16x64xf32>
    %c7 = arith.constant 7 : index
    %c0_11 = arith.constant 0 : index
    %c0_12 = arith.constant 0 : index
    %21 = vector.load %arg2[%c7, %c0_11, %c0_12] : memref<9x128x64xbf16, #tpu.memory_space<vmem>>, vector<1x128x64xbf16>
    %22 = vector.shape_cast %21 : vector<1x128x64xbf16> to vector<128x64xbf16>
    %cst_13 = arith.constant dense<0.000000e+00> : vector<16x64xf32>
    %23 = tpu.matmul %4, %22, %cst_13 {dimension_numbers = #tpu.dot_dimension_numbers<[1], [0], [0], [1], [0, 0, 1, 1], [], []>} : vector<16x128xbf16>, vector<128x64xbf16>, vector<16x64xf32> -> vector<16x64xf32>
    %c1 = arith.constant 1 : index
    %c0_14 = arith.constant 0 : index
    %c0_15 = arith.constant 0 : index
    %24 = vector.load %arg2[%c1, %c0_14, %c0_15] : memref<9x128x64xbf16, #tpu.memory_space<vmem>>, vector<1x128x64xbf16>
    %25 = vector.shape_cast %24 : vector<1x128x64xbf16> to vector<128x64xbf16>
    %cst_16 = arith.constant dense<0.000000e+00> : vector<16x64xf32>
    %26 = tpu.matmul %8, %25, %cst_16 {dimension_numbers = #tpu.dot_dimension_numbers<[1], [0], [0], [1], [0, 0, 1, 1], [], []>} : vector<16x128xbf16>, vector<128x64xbf16>, vector<16x64xf32> -> vector<16x64xf32>
    %27 = arith.addf %23, %26 : vector<16x64xf32>
    %c8 = arith.constant 8 : index
    %c0_17 = arith.constant 0 : index
    %c0_18 = arith.constant 0 : index
    %28 = vector.load %arg2[%c8, %c0_17, %c0_18] : memref<9x128x64xbf16, #tpu.memory_space<vmem>>, vector<1x128x64xbf16>
    %29 = vector.shape_cast %28 : vector<1x128x64xbf16> to vector<128x64xbf16>
    %cst_19 = arith.constant dense<0.000000e+00> : vector<16x64xf32>
    %30 = tpu.matmul %4, %29, %cst_19 {dimension_numbers = #tpu.dot_dimension_numbers<[1], [0], [0], [1], [0, 0, 1, 1], [], []>} : vector<16x128xbf16>, vector<128x64xbf16>, vector<16x64xf32> -> vector<16x64xf32>
    %c6 = arith.constant 6 : index
    %c0_20 = arith.constant 0 : index
    %c0_21 = arith.constant 0 : index
    %31 = vector.load %arg2[%c6, %c0_20, %c0_21] : memref<9x128x64xbf16, #tpu.memory_space<vmem>>, vector<1x128x64xbf16>
    %32 = vector.shape_cast %31 : vector<1x128x64xbf16> to vector<128x64xbf16>
    %cst_22 = arith.constant dense<0.000000e+00> : vector<16x64xf32>
    %33 = tpu.matmul %6, %32, %cst_22 {dimension_numbers = #tpu.dot_dimension_numbers<[1], [0], [0], [1], [0, 0, 1, 1], [], []>} : vector<16x128xbf16>, vector<128x64xbf16>, vector<16x64xf32> -> vector<16x64xf32>
    %34 = arith.addf %30, %33 : vector<16x64xf32>
    %c2 = arith.constant 2 : index
    %c0_23 = arith.constant 0 : index
    %c0_24 = arith.constant 0 : index
    %35 = vector.load %arg2[%c2, %c0_23, %c0_24] : memref<9x128x64xbf16, #tpu.memory_space<vmem>>, vector<1x128x64xbf16>
    %36 = vector.shape_cast %35 : vector<1x128x64xbf16> to vector<128x64xbf16>
    %cst_25 = arith.constant dense<0.000000e+00> : vector<16x64xf32>
    %37 = tpu.matmul %8, %36, %cst_25 {dimension_numbers = #tpu.dot_dimension_numbers<[1], [0], [0], [1], [0, 0, 1, 1], [], []>} : vector<16x128xbf16>, vector<128x64xbf16>, vector<16x64xf32> -> vector<16x64xf32>
    %38 = arith.addf %34, %37 : vector<16x64xf32>
    %c0_26 = arith.constant 0 : index
    %c0_27 = arith.constant 0 : index
    %c0_28 = arith.constant 0 : index
    %39 = vector.load %arg2[%c0_26, %c0_27, %c0_28] : memref<9x128x64xbf16, #tpu.memory_space<vmem>>, vector<1x128x64xbf16>
    %40 = vector.shape_cast %39 : vector<1x128x64xbf16> to vector<128x64xbf16>
    %cst_29 = arith.constant dense<0.000000e+00> : vector<16x64xf32>
    %41 = tpu.matmul %10, %40, %cst_29 {dimension_numbers = #tpu.dot_dimension_numbers<[1], [0], [0], [1], [0, 0, 1, 1], [], []>} : vector<16x128xbf16>, vector<128x64xbf16>, vector<16x64xf32> -> vector<16x64xf32>
    %42 = arith.addf %38, %41 : vector<16x64xf32>
    %43 = tpu.concatenate %13, %20, %27, %42 in 1 : vector<16x64xf32>, vector<16x64xf32>, vector<16x64xf32>, vector<16x64xf32> -> vector<16x256xf32>
    %44 = vector.shape_cast %43 : vector<16x256xf32> to vector<1x16x256xf32>
    %c0_30 = arith.constant 0 : index
    %c0_31 = arith.constant 0 : index
    %c0_32 = arith.constant 0 : index
    %45 = vector.load %arg3[%c0_30, %c0_31, %c0_32] : memref<1x16x256xf32, #tpu.memory_space<vmem>>, vector<1x16x256xf32>
    tpu.vector_store %arg3[%c0_30, %c0_31, %c0_32], %44 {strides = array<i32>} : memref<1x16x256xf32, #tpu.memory_space<vmem>>, vector<1x16x256xf32>,
    %c0_i32 = arith.constant 0 : i32
    %46 = arith.cmpi eq, %arg0, %c0_i32 : i32
    %47 = arith.extui %46 : i1 to i32
    %c0_i32_33 = arith.constant 0 : i32
    %48 = arith.cmpi ne, %47, %c0_i32_33 : i32
    scf.if %48 {
      %cst_44 = arith.constant 0.000000e+00 : f32
      %60 = vector.broadcast %cst_44 : f32 to vector<1x256xf32>
      %c0_45 = arith.constant 0 : index
      %c0_46 = arith.constant 0 : index
      %61 = vector.load %arg4[%c0_45, %c0_46] : memref<1x256xf32, #tpu.memory_space<vmem>>, vector<1x256xf32>
      tpu.vector_store %arg4[%c0_45, %c0_46], %60 {strides = array<i32>} : memref<1x256xf32, #tpu.memory_space<vmem>>, vector<1x256xf32>,
      %cst_47 = arith.constant 0.000000e+00 : f32
      %62 = vector.broadcast %cst_47 : f32 to vector<1x256xf32>
      %c0_48 = arith.constant 0 : index
      %c0_49 = arith.constant 0 : index
      %63 = vector.load %arg5[%c0_48, %c0_49] : memref<1x256xf32, #tpu.memory_space<vmem>>, vector<1x256xf32>
      tpu.vector_store %arg5[%c0_48, %c0_49], %62 {strides = array<i32>} : memref<1x256xf32, #tpu.memory_space<vmem>>, vector<1x256xf32>,
    } else {
    }
    %c0_34 = arith.constant 0 : index
    %c0_35 = arith.constant 0 : index
    %49 = vector.load %arg4[%c0_34, %c0_35] : memref<1x256xf32, #tpu.memory_space<vmem>>, vector<1x256xf32>
    %cst_36 = arith.constant dense<0.000000e+00> : vector<256xf32>
    %50 = vector.multi_reduction <add>, %43, %cst_36 [0] : vector<16x256xf32> to vector<256xf32>
    %51 = vector.shape_cast %50 : vector<256xf32> to vector<1x256xf32>
    %52 = arith.addf %49, %51 : vector<1x256xf32>
    %c0_37 = arith.constant 0 : index
    %c0_38 = arith.constant 0 : index
    %53 = vector.load %arg4[%c0_37, %c0_38] : memref<1x256xf32, #tpu.memory_space<vmem>>, vector<1x256xf32>
    tpu.vector_store %arg4[%c0_37, %c0_38], %52 {strides = array<i32>} : memref<1x256xf32, #tpu.memory_space<vmem>>, vector<1x256xf32>,
    %c0_39 = arith.constant 0 : index
    %c0_40 = arith.constant 0 : index
    %54 = vector.load %arg5[%c0_39, %c0_40] : memref<1x256xf32, #tpu.memory_space<vmem>>, vector<1x256xf32>
    %55 = arith.mulf %43, %43 : vector<16x256xf32>
    %cst_41 = arith.constant dense<0.000000e+00> : vector<256xf32>
    %56 = vector.multi_reduction <add>, %55, %cst_41 [0] : vector<16x256xf32> to vector<256xf32>
    %57 = vector.shape_cast %56 : vector<256xf32> to vector<1x256xf32>
    %58 = arith.addf %54, %57 : vector<1x256xf32>
    %c0_42 = arith.constant 0 : index
    %c0_43 = arith.constant 0 : index
    %59 = vector.load %arg5[%c0_42, %c0_43] : memref<1x256xf32, #tpu.memory_space<vmem>>, vector<1x256xf32>
    tpu.vector_store %arg5[%c0_42, %c0_43], %58 {strides = array<i32>} : memref<1x256xf32, #tpu.memory_space<vmem>>, vector<1x256xf32>,
    return
  }
  func.func @transform_0(%arg0: i32) -> (i32, i32, i32, i32) {
    %c0_i32 = arith.constant 0 : i32
    %c0_i32_0 = arith.constant 0 : i32
    %c0_i32_1 = arith.constant 0 : i32
    %c0_i32_2 = arith.constant 0 : i32
    return %arg0, %c0_i32, %c0_i32_0, %c0_i32_1 : i32, i32, i32, i32
  }
  func.func @transform_1(%arg0: i32) -> (i32, i32, i32) {
    %c0_i32 = arith.constant 0 : i32
    %c0_i32_0 = arith.constant 0 : i32
    %c0_i32_1 = arith.constant 0 : i32
    %c0_i32_2 = arith.constant 0 : i32
    return %c0_i32, %c0_i32_0, %c0_i32_1 : i32, i32, i32
  }
  func.func @transform_2(%arg0: i32) -> (i32, i32, i32) {
    %c0_i32 = arith.constant 0 : i32
    %c0_i32_0 = arith.constant 0 : i32
    %c0_i32_1 = arith.constant 0 : i32
    return %arg0, %c0_i32, %c0_i32_0 : i32, i32, i32
  }
  func.func @transform_3(%arg0: i32) -> (i32, i32) {
    %c0_i32 = arith.constant 0 : i32
    %c0_i32_0 = arith.constant 0 : i32
    %c0_i32_1 = arith.constant 0 : i32
    return %c0_i32, %c0_i32_0 : i32, i32
  }
  func.func @transform_4(%arg0: i32) -> (i32, i32) {
    %c0_i32 = arith.constant 0 : i32
    %c0_i32_0 = arith.constant 0 : i32
    %c0_i32_1 = arith.constant 0 : i32
    return %c0_i32, %c0_i32_0 : i32, i32
  }
}

module attributes {stable_mosaic.version = 11 : i64} {
  func.func @kernel(%arg0: i32, %arg1: memref<32x256xf32, #tpu.memory_space<vmem>>, %arg2: memref<1x256xf32, #tpu.memory_space<vmem>>, %arg3: memref<1x256xf32, #tpu.memory_space<vmem>>, %arg4: memref<32x256xf32, #tpu.memory_space<vmem>>) attributes {dimension_semantics = [#tpu.dimension_semantics<parallel>], iteration_bounds = array<i64: 1>, scalar_prefetch = 0 : i64, scratch_operands = 0 : i64, tpu.core_type = #tpu.core_type<tc>, window_params = [{transform_indices = @transform_0, window_bounds = array<i64: 32, 256>}, {pipeline_mode = #tpu.pipeline_mode<synchronous>, transform_indices = @transform_1, window_bounds = array<i64: 1, 256>}, {pipeline_mode = #tpu.pipeline_mode<synchronous>, transform_indices = @transform_2, window_bounds = array<i64: 1, 256>}, {transform_indices = @transform_3, window_bounds = array<i64: 32, 256>}]} {
    %c0 = arith.constant 0 : index
    %c0_0 = arith.constant 0 : index
    %0 = vector.load %arg1[%c0, %c0_0] : memref<32x256xf32, #tpu.memory_space<vmem>>, vector<32x256xf32>
    %c0_1 = arith.constant 0 : index
    %c0_2 = arith.constant 0 : index
    %1 = vector.load %arg2[%c0_1, %c0_2] : memref<1x256xf32, #tpu.memory_space<vmem>>, vector<1x256xf32>
    %2 = vector.broadcast %1 : vector<1x256xf32> to vector<32x256xf32>
    %3 = arith.mulf %0, %2 : vector<32x256xf32>
    %c0_3 = arith.constant 0 : index
    %c0_4 = arith.constant 0 : index
    %4 = vector.load %arg3[%c0_3, %c0_4] : memref<1x256xf32, #tpu.memory_space<vmem>>, vector<1x256xf32>
    %5 = vector.broadcast %4 : vector<1x256xf32> to vector<32x256xf32>
    %6 = arith.addf %3, %5 : vector<32x256xf32>
    %cst = arith.constant 0.000000e+00 : f32
    %7 = vector.broadcast %cst : f32 to vector<32x256xf32>
    %8 = arith.maximumf %6, %7 : vector<32x256xf32>
    %c0_5 = arith.constant 0 : index
    %c0_6 = arith.constant 0 : index
    %9 = vector.load %arg4[%c0_5, %c0_6] : memref<32x256xf32, #tpu.memory_space<vmem>>, vector<32x256xf32>
    tpu.vector_store %arg4[%c0_5, %c0_6], %8 {strides = array<i32>} : memref<32x256xf32, #tpu.memory_space<vmem>>, vector<32x256xf32>,
    return
  }
  func.func @transform_0(%arg0: i32) -> (i32, i32) {
    %c0_i32 = arith.constant 0 : i32
    %c0_i32_0 = arith.constant 0 : i32
    return %arg0, %c0_i32 : i32, i32
  }
  func.func @transform_1(%arg0: i32) -> (i32, i32) {
    %c0_i32 = arith.constant 0 : i32
    %c0_i32_0 = arith.constant 0 : i32
    %c0_i32_1 = arith.constant 0 : i32
    return %c0_i32, %c0_i32_0 : i32, i32
  }
  func.func @transform_2(%arg0: i32) -> (i32, i32) {
    %c0_i32 = arith.constant 0 : i32
    %c0_i32_0 = arith.constant 0 : i32
    %c0_i32_1 = arith.constant 0 : i32
    return %c0_i32, %c0_i32_0 : i32, i32
  }
  func.func @transform_3(%arg0: i32) -> (i32, i32) {
    %c0_i32 = arith.constant 0 : i32
    %c0_i32_0 = arith.constant 0 : i32
    return %arg0, %c0_i32 : i32, i32
  }
}

module attributes {stable_mosaic.version = 11 : i64} {
  func.func @kernel(%arg0: i32, %arg1: memref<1x80x64xf32, #tpu.memory_space<vmem>>, %arg2: memref<3x64x64xbf16, #tpu.memory_space<vmem>>, %arg3: memref<1x64xf32, #tpu.memory_space<vmem>>, %arg4: memref<3x64x64xbf16, #tpu.memory_space<vmem>>, %arg5: memref<1x64x64xf32, #tpu.memory_space<vmem>>, %arg6: memref<1x64xf32, #tpu.memory_space<vmem>>, %arg7: memref<1x64xf32, #tpu.memory_space<vmem>>, %arg8: memref<8x10x64xbf16, #tpu.memory_space<vmem>>) attributes {dimension_semantics = [#tpu.dimension_semantics<arbitrary>], iteration_bounds = array<i64: 2>, scalar_prefetch = 0 : i64, scratch_operands = 1 : i64, tpu.core_type = #tpu.core_type<tc>, window_params = [{transform_indices = @transform_0, window_bounds = array<i64: 1, 80, 64>}, {pipeline_mode = #tpu.pipeline_mode<synchronous>, transform_indices = @transform_1, window_bounds = array<i64: 3, 64, 64>}, {pipeline_mode = #tpu.pipeline_mode<synchronous>, transform_indices = @transform_2, window_bounds = array<i64: 1, 64>}, {pipeline_mode = #tpu.pipeline_mode<synchronous>, transform_indices = @transform_3, window_bounds = array<i64: 3, 64, 64>}, {transform_indices = @transform_4, window_bounds = array<i64: 1, 64, 64>}, {pipeline_mode = #tpu.pipeline_mode<synchronous>, transform_indices = @transform_5, window_bounds = array<i64: 1, 64>}, {pipeline_mode = #tpu.pipeline_mode<synchronous>, transform_indices = @transform_6, window_bounds = array<i64: 1, 64>}]} {
    %c0 = arith.constant 0 : index
    %c0_0 = arith.constant 0 : index
    %c0_1 = arith.constant 0 : index
    %0 = vector.load %arg1[%c0, %c0_0, %c0_1] : memref<1x80x64xf32, #tpu.memory_space<vmem>>, vector<1x80x64xf32>
    %1 = vector.shape_cast %0 : vector<1x80x64xf32> to vector<80x64xf32>
    %2 = arith.truncf %1 : vector<80x64xf32> to vector<80x64xbf16>
    %3 = vector.extract_strided_slice %2 {offsets = [0, 0], sizes = [64, 64], strides = [1, 1]} : vector<80x64xbf16> to vector<64x64xbf16>
    %c0_2 = arith.constant 0 : index
    %c0_3 = arith.constant 0 : index
    %c0_4 = arith.constant 0 : index
    %4 = vector.load %arg2[%c0_2, %c0_3, %c0_4] : memref<3x64x64xbf16, #tpu.memory_space<vmem>>, vector<1x64x64xbf16>
    %5 = vector.shape_cast %4 : vector<1x64x64xbf16> to vector<64x64xbf16>
    %cst = arith.constant dense<0.000000e+00> : vector<64x64xf32>
    %6 = tpu.matmul %3, %5, %cst {dimension_numbers = #tpu.dot_dimension_numbers<[1], [0], [0], [1], [0, 0, 1, 1], [], []>} : vector<64x64xbf16>, vector<64x64xbf16>, vector<64x64xf32> -> vector<64x64xf32>
    %7 = vector.extract_strided_slice %2 {offsets = [8, 0], sizes = [64, 64], strides = [1, 1]} : vector<80x64xbf16> to vector<64x64xbf16>
    %c1 = arith.constant 1 : index
    %c0_5 = arith.constant 0 : index
    %c0_6 = arith.constant 0 : index
    %8 = vector.load %arg2[%c1, %c0_5, %c0_6] : memref<3x64x64xbf16, #tpu.memory_space<vmem>>, vector<1x64x64xbf16>
    %9 = vector.shape_cast %8 : vector<1x64x64xbf16> to vector<64x64xbf16>
    %cst_7 = arith.constant dense<0.000000e+00> : vector<64x64xf32>
    %10 = tpu.matmul %7, %9, %cst_7 {dimension_numbers = #tpu.dot_dimension_numbers<[1], [0], [0], [1], [0, 0, 1, 1], [], []>} : vector<64x64xbf16>, vector<64x64xbf16>, vector<64x64xf32> -> vector<64x64xf32>
    %11 = arith.addf %6, %10 : vector<64x64xf32>
    %12 = vector.extract_strided_slice %2 {offsets = [16, 0], sizes = [64, 64], strides = [1, 1]} : vector<80x64xbf16> to vector<64x64xbf16>
    %c2 = arith.constant 2 : index
    %c0_8 = arith.constant 0 : index
    %c0_9 = arith.constant 0 : index
    %13 = vector.load %arg2[%c2, %c0_8, %c0_9] : memref<3x64x64xbf16, #tpu.memory_space<vmem>>, vector<1x64x64xbf16>
    %14 = vector.shape_cast %13 : vector<1x64x64xbf16> to vector<64x64xbf16>
    %cst_10 = arith.constant dense<0.000000e+00> : vector<64x64xf32>
    %15 = tpu.matmul %12, %14, %cst_10 {dimension_numbers = #tpu.dot_dimension_numbers<[1], [0], [0], [1], [0, 0, 1, 1], [], []>} : vector<64x64xbf16>, vector<64x64xbf16>, vector<64x64xf32> -> vector<64x64xf32>
    %16 = arith.addf %11, %15 : vector<64x64xf32>
    %c0_11 = arith.constant 0 : index
    %c0_12 = arith.constant 0 : index
    %17 = vector.load %arg3[%c0_11, %c0_12] : memref<1x64xf32, #tpu.memory_space<vmem>>, vector<1x64xf32>
    %18 = vector.broadcast %17 : vector<1x64xf32> to vector<64x64xf32>
    %19 = arith.addf %16, %18 : vector<64x64xf32>
    %cst_13 = arith.constant 0.000000e+00 : f32
    %20 = vector.broadcast %cst_13 : f32 to vector<64x64xf32>
    %21 = arith.maximumf %19, %20 : vector<64x64xf32>
    %22 = arith.truncf %21 : vector<64x64xf32> to vector<64x64xbf16>
    %23 = vector.shape_cast %22 : vector<64x64xbf16> to vector<8x8x64xbf16>
    %c0_14 = arith.constant 0 : index
    %c1_15 = arith.constant 1 : index
    %c0_16 = arith.constant 0 : index
    %24 = vector.load %arg8[%c0_14, %c1_15, %c0_16] : memref<8x10x64xbf16, #tpu.memory_space<vmem>>, vector<8x8x64xbf16>
    tpu.vector_store %arg8[%c0_14, %c1_15, %c0_16], %23 {strides = array<i32>} : memref<8x10x64xbf16, #tpu.memory_space<vmem>>, vector<8x8x64xbf16>,
    %cst_17 = arith.constant 0.000000e+00 : bf16
    %25 = vector.broadcast %cst_17 : bf16 to vector<8x1x64xbf16>
    %c0_18 = arith.constant 0 : index
    %c0_19 = arith.constant 0 : index
    %c0_20 = arith.constant 0 : index
    %26 = vector.load %arg8[%c0_18, %c0_19, %c0_20] : memref<8x10x64xbf16, #tpu.memory_space<vmem>>, vector<8x1x64xbf16>
    tpu.vector_store %arg8[%c0_18, %c0_19, %c0_20], %25 {strides = array<i32>} : memref<8x10x64xbf16, #tpu.memory_space<vmem>>, vector<8x1x64xbf16>,
    %cst_21 = arith.constant 0.000000e+00 : bf16
    %27 = vector.broadcast %cst_21 : bf16 to vector<8x1x64xbf16>
    %c0_22 = arith.constant 0 : index
    %c9 = arith.constant 9 : index
    %c0_23 = arith.constant 0 : index
    %28 = vector.load %arg8[%c0_22, %c9, %c0_23] : memref<8x10x64xbf16, #tpu.memory_space<vmem>>, vector<8x1x64xbf16>
    tpu.vector_store %arg8[%c0_22, %c9, %c0_23], %27 {strides = array<i32>} : memref<8x10x64xbf16, #tpu.memory_space<vmem>>, vector<8x1x64xbf16>,
    %c0_24 = arith.constant 0 : index
    %c0_25 = arith.constant 0 : index
    %c0_26 = arith.constant 0 : index
    %29 = vector.load %arg8[%c0_24, %c0_25, %c0_26] : memref<8x10x64xbf16, #tpu.memory_space<vmem>>, vector<8x8x64xbf16>
    %30 = vector.shape_cast %29 : vector<8x8x64xbf16> to vector<64x64xbf16>
    %c0_27 = arith.constant 0 : index
    %c0_28 = arith.constant 0 : index
    %c0_29 = arith.constant 0 : index
    %31 = vector.load %arg4[%c0_27, %c0_28, %c0_29] : memref<3x64x64xbf16, #tpu.memory_space<vmem>>, vector<1x64x64xbf16>
    %32 = vector.shape_cast %31 : vector<1x64x64xbf16> to vector<64x64xbf16>
    %cst_30 = arith.constant dense<0.000000e+00> : vector<64x64xf32>
    %33 = tpu.matmul %30, %32, %cst_30 {dimension_numbers = #tpu.dot_dimension_numbers<[1], [0], [0], [1], [0, 0, 1, 1], [], []>} : vector<64x64xbf16>, vector<64x64xbf16>, vector<64x64xf32> -> vector<64x64xf32>
    %c0_31 = arith.constant 0 : index
    %c1_32 = arith.constant 1 : index
    %c0_33 = arith.constant 0 : index
    %34 = vector.load %arg8[%c0_31, %c1_32, %c0_33] : memref<8x10x64xbf16, #tpu.memory_space<vmem>>, vector<8x8x64xbf16>
    %35 = vector.shape_cast %34 : vector<8x8x64xbf16> to vector<64x64xbf16>
    %c1_34 = arith.constant 1 : index
    %c0_35 = arith.constant 0 : index
    %c0_36 = arith.constant 0 : index
    %36 = vector.load %arg4[%c1_34, %c0_35, %c0_36] : memref<3x64x64xbf16, #tpu.memory_space<vmem>>, vector<1x64x64xbf16>
    %37 = vector.shape_cast %36 : vector<1x64x64xbf16> to vector<64x64xbf16>
    %cst_37 = arith.constant dense<0.000000e+00> : vector<64x64xf32>
    %38 = tpu.matmul %35, %37, %cst_37 {dimension_numbers = #tpu.dot_dimension_numbers<[1], [0], [0], [1], [0, 0, 1, 1], [], []>} : vector<64x64xbf16>, vector<64x64xbf16>, vector<64x64xf32> -> vector<64x64xf32>
    %39 = arith.addf %33, %38 : vector<64x64xf32>
    %c0_38 = arith.constant 0 : index
    %c2_39 = arith.constant 2 : index
    %c0_40 = arith.constant 0 : index
    %40 = vector.load %arg8[%c0_38, %c2_39, %c0_40] : memref<8x10x64xbf16, #tpu.memory_space<vmem>>, vector<8x8x64xbf16>
    %41 = vector.shape_cast %40 : vector<8x8x64xbf16> to vector<64x64xbf16>
    %c2_41 = arith.constant 2 : index
    %c0_42 = arith.constant 0 : index
    %c0_43 = arith.constant 0 : index
    %42 = vector.load %arg4[%c2_41, %c0_42, %c0_43] : memref<3x64x64xbf16, #tpu.memory_space<vmem>>, vector<1x64x64xbf16>
    %43 = vector.shape_cast %42 : vector<1x64x64xbf16> to vector<64x64xbf16>
    %cst_44 = arith.constant dense<0.000000e+00> : vector<64x64xf32>
    %44 = tpu.matmul %41, %43, %cst_44 {dimension_numbers = #tpu.dot_dimension_numbers<[1], [0], [0], [1], [0, 0, 1, 1], [], []>} : vector<64x64xbf16>, vector<64x64xbf16>, vector<64x64xf32> -> vector<64x64xf32>
    %45 = arith.addf %39, %44 : vector<64x64xf32>
    %46 = vector.shape_cast %45 : vector<64x64xf32> to vector<1x64x64xf32>
    %c0_45 = arith.constant 0 : index
    %c0_46 = arith.constant 0 : index
    %c0_47 = arith.constant 0 : index
    %47 = vector.load %arg5[%c0_45, %c0_46, %c0_47] : memref<1x64x64xf32, #tpu.memory_space<vmem>>, vector<1x64x64xf32>
    tpu.vector_store %arg5[%c0_45, %c0_46, %c0_47], %46 {strides = array<i32>} : memref<1x64x64xf32, #tpu.memory_space<vmem>>, vector<1x64x64xf32>,
    %c0_i32 = arith.constant 0 : i32
    %48 = arith.cmpi eq, %arg0, %c0_i32 : i32
    %49 = arith.extui %48 : i1 to i32
    %c0_i32_48 = arith.constant 0 : i32
    %50 = arith.cmpi ne, %49, %c0_i32_48 : i32
    scf.if %50 {
      %cst_59 = arith.constant 0.000000e+00 : f32
      %62 = vector.broadcast %cst_59 : f32 to vector<1x64xf32>
      %c0_60 = arith.constant 0 : index
      %c0_61 = arith.constant 0 : index
      %63 = vector.load %arg6[%c0_60, %c0_61] : memref<1x64xf32, #tpu.memory_space<vmem>>, vector<1x64xf32>
      tpu.vector_store %arg6[%c0_60, %c0_61], %62 {strides = array<i32>} : memref<1x64xf32, #tpu.memory_space<vmem>>, vector<1x64xf32>,
      %cst_62 = arith.constant 0.000000e+00 : f32
      %64 = vector.broadcast %cst_62 : f32 to vector<1x64xf32>
      %c0_63 = arith.constant 0 : index
      %c0_64 = arith.constant 0 : index
      %65 = vector.load %arg7[%c0_63, %c0_64] : memref<1x64xf32, #tpu.memory_space<vmem>>, vector<1x64xf32>
      tpu.vector_store %arg7[%c0_63, %c0_64], %64 {strides = array<i32>} : memref<1x64xf32, #tpu.memory_space<vmem>>, vector<1x64xf32>,
    } else {
    }
    %c0_49 = arith.constant 0 : index
    %c0_50 = arith.constant 0 : index
    %51 = vector.load %arg6[%c0_49, %c0_50] : memref<1x64xf32, #tpu.memory_space<vmem>>, vector<1x64xf32>
    %cst_51 = arith.constant dense<0.000000e+00> : vector<64xf32>
    %52 = vector.multi_reduction <add>, %45, %cst_51 [0] : vector<64x64xf32> to vector<64xf32>
    %53 = vector.shape_cast %52 : vector<64xf32> to vector<1x64xf32>
    %54 = arith.addf %51, %53 : vector<1x64xf32>
    %c0_52 = arith.constant 0 : index
    %c0_53 = arith.constant 0 : index
    %55 = vector.load %arg6[%c0_52, %c0_53] : memref<1x64xf32, #tpu.memory_space<vmem>>, vector<1x64xf32>
    tpu.vector_store %arg6[%c0_52, %c0_53], %54 {strides = array<i32>} : memref<1x64xf32, #tpu.memory_space<vmem>>, vector<1x64xf32>,
    %c0_54 = arith.constant 0 : index
    %c0_55 = arith.constant 0 : index
    %56 = vector.load %arg7[%c0_54, %c0_55] : memref<1x64xf32, #tpu.memory_space<vmem>>, vector<1x64xf32>
    %57 = arith.mulf %45, %45 : vector<64x64xf32>
    %cst_56 = arith.constant dense<0.000000e+00> : vector<64xf32>
    %58 = vector.multi_reduction <add>, %57, %cst_56 [0] : vector<64x64xf32> to vector<64xf32>
    %59 = vector.shape_cast %58 : vector<64xf32> to vector<1x64xf32>
    %60 = arith.addf %56, %59 : vector<1x64xf32>
    %c0_57 = arith.constant 0 : index
    %c0_58 = arith.constant 0 : index
    %61 = vector.load %arg7[%c0_57, %c0_58] : memref<1x64xf32, #tpu.memory_space<vmem>>, vector<1x64xf32>
    tpu.vector_store %arg7[%c0_57, %c0_58], %60 {strides = array<i32>} : memref<1x64xf32, #tpu.memory_space<vmem>>, vector<1x64xf32>,
    return
  }
  func.func @transform_0(%arg0: i32) -> (i32, i32, i32) {
    %c0_i32 = arith.constant 0 : i32
    %c0_i32_0 = arith.constant 0 : i32
    %c0_i32_1 = arith.constant 0 : i32
    return %arg0, %c0_i32, %c0_i32_0 : i32, i32, i32
  }
  func.func @transform_1(%arg0: i32) -> (i32, i32, i32) {
    %c0_i32 = arith.constant 0 : i32
    %c0_i32_0 = arith.constant 0 : i32
    %c0_i32_1 = arith.constant 0 : i32
    %c0_i32_2 = arith.constant 0 : i32
    return %c0_i32, %c0_i32_0, %c0_i32_1 : i32, i32, i32
  }
  func.func @transform_2(%arg0: i32) -> (i32, i32) {
    %c0_i32 = arith.constant 0 : i32
    %c0_i32_0 = arith.constant 0 : i32
    %c0_i32_1 = arith.constant 0 : i32
    return %c0_i32, %c0_i32_0 : i32, i32
  }
  func.func @transform_3(%arg0: i32) -> (i32, i32, i32) {
    %c0_i32 = arith.constant 0 : i32
    %c0_i32_0 = arith.constant 0 : i32
    %c0_i32_1 = arith.constant 0 : i32
    %c0_i32_2 = arith.constant 0 : i32
    return %c0_i32, %c0_i32_0, %c0_i32_1 : i32, i32, i32
  }
  func.func @transform_4(%arg0: i32) -> (i32, i32, i32) {
    %c0_i32 = arith.constant 0 : i32
    %c0_i32_0 = arith.constant 0 : i32
    %c0_i32_1 = arith.constant 0 : i32
    return %arg0, %c0_i32, %c0_i32_0 : i32, i32, i32
  }
  func.func @transform_5(%arg0: i32) -> (i32, i32) {
    %c0_i32 = arith.constant 0 : i32
    %c0_i32_0 = arith.constant 0 : i32
    %c0_i32_1 = arith.constant 0 : i32
    return %c0_i32, %c0_i32_0 : i32, i32
  }
  func.func @transform_6(%arg0: i32) -> (i32, i32) {
    %c0_i32 = arith.constant 0 : i32
    %c0_i32_0 = arith.constant 0 : i32
    %c0_i32_1 = arith.constant 0 : i32
    return %c0_i32, %c0_i32_0 : i32, i32
  }
}

module attributes {stable_mosaic.version = 11 : i64} {
  func.func @kernel(%arg0: i32, %arg1: memref<128x64xf32, #tpu.memory_space<vmem>>, %arg2: memref<1x64xf32, #tpu.memory_space<vmem>>, %arg3: memref<1x64xf32, #tpu.memory_space<vmem>>, %arg4: memref<128x64xf32, #tpu.memory_space<vmem>>) attributes {dimension_semantics = [#tpu.dimension_semantics<parallel>], iteration_bounds = array<i64: 1>, scalar_prefetch = 0 : i64, scratch_operands = 0 : i64, tpu.core_type = #tpu.core_type<tc>, window_params = [{transform_indices = @transform_0, window_bounds = array<i64: 128, 64>}, {pipeline_mode = #tpu.pipeline_mode<synchronous>, transform_indices = @transform_1, window_bounds = array<i64: 1, 64>}, {pipeline_mode = #tpu.pipeline_mode<synchronous>, transform_indices = @transform_2, window_bounds = array<i64: 1, 64>}, {transform_indices = @transform_3, window_bounds = array<i64: 128, 64>}]} {
    %c0 = arith.constant 0 : index
    %c0_0 = arith.constant 0 : index
    %0 = vector.load %arg1[%c0, %c0_0] : memref<128x64xf32, #tpu.memory_space<vmem>>, vector<128x64xf32>
    %c0_1 = arith.constant 0 : index
    %c0_2 = arith.constant 0 : index
    %1 = vector.load %arg2[%c0_1, %c0_2] : memref<1x64xf32, #tpu.memory_space<vmem>>, vector<1x64xf32>
    %2 = vector.broadcast %1 : vector<1x64xf32> to vector<128x64xf32>
    %3 = arith.mulf %0, %2 : vector<128x64xf32>
    %c0_3 = arith.constant 0 : index
    %c0_4 = arith.constant 0 : index
    %4 = vector.load %arg3[%c0_3, %c0_4] : memref<1x64xf32, #tpu.memory_space<vmem>>, vector<1x64xf32>
    %5 = vector.broadcast %4 : vector<1x64xf32> to vector<128x64xf32>
    %6 = arith.addf %3, %5 : vector<128x64xf32>
    %cst = arith.constant 0.000000e+00 : f32
    %7 = vector.broadcast %cst : f32 to vector<128x64xf32>
    %8 = arith.maximumf %6, %7 : vector<128x64xf32>
    %c0_5 = arith.constant 0 : index
    %c0_6 = arith.constant 0 : index
    %9 = vector.load %arg4[%c0_5, %c0_6] : memref<128x64xf32, #tpu.memory_space<vmem>>, vector<128x64xf32>
    tpu.vector_store %arg4[%c0_5, %c0_6], %8 {strides = array<i32>} : memref<128x64xf32, #tpu.memory_space<vmem>>, vector<128x64xf32>,
    return
  }
  func.func @transform_0(%arg0: i32) -> (i32, i32) {
    %c0_i32 = arith.constant 0 : i32
    %c0_i32_0 = arith.constant 0 : i32
    return %arg0, %c0_i32 : i32, i32
  }
  func.func @transform_1(%arg0: i32) -> (i32, i32) {
    %c0_i32 = arith.constant 0 : i32
    %c0_i32_0 = arith.constant 0 : i32
    %c0_i32_1 = arith.constant 0 : i32
    return %c0_i32, %c0_i32_0 : i32, i32
  }
  func.func @transform_2(%arg0: i32) -> (i32, i32) {
    %c0_i32 = arith.constant 0 : i32
    %c0_i32_0 = arith.constant 0 : i32
    %c0_i32_1 = arith.constant 0 : i32
    return %c0_i32, %c0_i32_0 : i32, i32
  }
  func.func @transform_3(%arg0: i32) -> (i32, i32) {
    %c0_i32 = arith.constant 0 : i32
    %c0_i32_0 = arith.constant 0 : i32
    return %arg0, %c0_i32 : i32, i32
  }
}

module attributes {stable_mosaic.version = 11 : i64} {
  func.func @kernel(%arg0: i32, %arg1: memref<128x64xf32, #tpu.memory_space<vmem>>, %arg2: memref<1x64xf32, #tpu.memory_space<vmem>>, %arg3: memref<1x64xf32, #tpu.memory_space<vmem>>, %arg4: memref<128x64xf32, #tpu.memory_space<vmem>>, %arg5: memref<128x64xf32, #tpu.memory_space<vmem>>) attributes {dimension_semantics = [#tpu.dimension_semantics<parallel>], iteration_bounds = array<i64: 1>, scalar_prefetch = 0 : i64, scratch_operands = 0 : i64, tpu.core_type = #tpu.core_type<tc>, window_params = [{transform_indices = @transform_0, window_bounds = array<i64: 128, 64>}, {pipeline_mode = #tpu.pipeline_mode<synchronous>, transform_indices = @transform_1, window_bounds = array<i64: 1, 64>}, {pipeline_mode = #tpu.pipeline_mode<synchronous>, transform_indices = @transform_2, window_bounds = array<i64: 1, 64>}, {transform_indices = @transform_3, window_bounds = array<i64: 128, 64>}, {transform_indices = @transform_4, window_bounds = array<i64: 128, 64>}]} {
    %c0 = arith.constant 0 : index
    %c0_0 = arith.constant 0 : index
    %0 = vector.load %arg1[%c0, %c0_0] : memref<128x64xf32, #tpu.memory_space<vmem>>, vector<128x64xf32>
    %c0_1 = arith.constant 0 : index
    %c0_2 = arith.constant 0 : index
    %1 = vector.load %arg2[%c0_1, %c0_2] : memref<1x64xf32, #tpu.memory_space<vmem>>, vector<1x64xf32>
    %2 = vector.broadcast %1 : vector<1x64xf32> to vector<128x64xf32>
    %3 = arith.mulf %0, %2 : vector<128x64xf32>
    %c0_3 = arith.constant 0 : index
    %c0_4 = arith.constant 0 : index
    %4 = vector.load %arg3[%c0_3, %c0_4] : memref<1x64xf32, #tpu.memory_space<vmem>>, vector<1x64xf32>
    %5 = vector.broadcast %4 : vector<1x64xf32> to vector<128x64xf32>
    %6 = arith.addf %3, %5 : vector<128x64xf32>
    %c0_5 = arith.constant 0 : index
    %c0_6 = arith.constant 0 : index
    %7 = vector.load %arg4[%c0_5, %c0_6] : memref<128x64xf32, #tpu.memory_space<vmem>>, vector<128x64xf32>
    %8 = arith.addf %6, %7 : vector<128x64xf32>
    %cst = arith.constant 0.000000e+00 : f32
    %9 = vector.broadcast %cst : f32 to vector<128x64xf32>
    %10 = arith.maximumf %8, %9 : vector<128x64xf32>
    %c0_7 = arith.constant 0 : index
    %c0_8 = arith.constant 0 : index
    %11 = vector.load %arg5[%c0_7, %c0_8] : memref<128x64xf32, #tpu.memory_space<vmem>>, vector<128x64xf32>
    tpu.vector_store %arg5[%c0_7, %c0_8], %10 {strides = array<i32>} : memref<128x64xf32, #tpu.memory_space<vmem>>, vector<128x64xf32>,
    return
  }
  func.func @transform_0(%arg0: i32) -> (i32, i32) {
    %c0_i32 = arith.constant 0 : i32
    %c0_i32_0 = arith.constant 0 : i32
    return %arg0, %c0_i32 : i32, i32
  }
  func.func @transform_1(%arg0: i32) -> (i32, i32) {
    %c0_i32 = arith.constant 0 : i32
    %c0_i32_0 = arith.constant 0 : i32
    %c0_i32_1 = arith.constant 0 : i32
    return %c0_i32, %c0_i32_0 : i32, i32
  }
  func.func @transform_2(%arg0: i32) -> (i32, i32) {
    %c0_i32 = arith.constant 0 : i32
    %c0_i32_0 = arith.constant 0 : i32
    %c0_i32_1 = arith.constant 0 : i32
    return %c0_i32, %c0_i32_0 : i32, i32
  }
  func.func @transform_3(%arg0: i32) -> (i32, i32) {
    %c0_i32 = arith.constant 0 : i32
    %c0_i32_0 = arith.constant 0 : i32
    return %arg0, %c0_i32 : i32, i32
  }
  func.func @transform_4(%arg0: i32) -> (i32, i32) {
    %c0_i32 = arith.constant 0 : i32
    %c0_i32_0 = arith.constant 0 : i32
    return %arg0, %c0_i32 : i32, i32
  }
}

module attributes {stable_mosaic.version = 11 : i64} {
  func.func @kernel(%arg0: i32, %arg1: memref<1x9x9x128xf32, #tpu.memory_space<vmem>>, %arg2: memref<9x128x16xbf16, #tpu.memory_space<vmem>>, %arg3: memref<1x64x64xf32, #tpu.memory_space<vmem>>, %arg4: memref<1x64xf32, #tpu.memory_space<vmem>>, %arg5: memref<1x64xf32, #tpu.memory_space<vmem>>) attributes {dimension_semantics = [#tpu.dimension_semantics<arbitrary>], iteration_bounds = array<i64: 2>, scalar_prefetch = 0 : i64, scratch_operands = 0 : i64, tpu.core_type = #tpu.core_type<tc>, window_params = [{transform_indices = @transform_0, window_bounds = array<i64: 1, 9, 9, 128>}, {pipeline_mode = #tpu.pipeline_mode<synchronous>, transform_indices = @transform_1, window_bounds = array<i64: 9, 128, 16>}, {transform_indices = @transform_2, window_bounds = array<i64: 1, 64, 64>}, {pipeline_mode = #tpu.pipeline_mode<synchronous>, transform_indices = @transform_3, window_bounds = array<i64: 1, 64>}, {pipeline_mode = #tpu.pipeline_mode<synchronous>, transform_indices = @transform_4, window_bounds = array<i64: 1, 64>}]} {
    %c0 = arith.constant 0 : index
    %c0_0 = arith.constant 0 : index
    %c0_1 = arith.constant 0 : index
    %c0_2 = arith.constant 0 : index
    %0 = vector.load %arg1[%c0, %c0_0, %c0_1, %c0_2] : memref<1x9x9x128xf32, #tpu.memory_space<vmem>>, vector<1x9x9x128xf32>
    %1 = vector.shape_cast %0 : vector<1x9x9x128xf32> to vector<9x9x128xf32>
    %2 = arith.truncf %1 : vector<9x9x128xf32> to vector<9x9x128xbf16>
    %3 = vector.extract_strided_slice %2 {offsets = [0, 0, 0], sizes = [8, 8, 128], strides = [1, 1, 1]} : vector<9x9x128xbf16> to vector<8x8x128xbf16>
    %4 = vector.shape_cast %3 : vector<8x8x128xbf16> to vector<64x128xbf16>
    %5 = vector.extract_strided_slice %2 {offsets = [0, 1, 0], sizes = [8, 8, 128], strides = [1, 1, 1]} : vector<9x9x128xbf16> to vector<8x8x128xbf16>
    %6 = vector.shape_cast %5 : vector<8x8x128xbf16> to vector<64x128xbf16>
    %7 = vector.extract_strided_slice %2 {offsets = [1, 0, 0], sizes = [8, 8, 128], strides = [1, 1, 1]} : vector<9x9x128xbf16> to vector<8x8x128xbf16>
    %8 = vector.shape_cast %7 : vector<8x8x128xbf16> to vector<64x128xbf16>
    %9 = vector.extract_strided_slice %2 {offsets = [1, 1, 0], sizes = [8, 8, 128], strides = [1, 1, 1]} : vector<9x9x128xbf16> to vector<8x8x128xbf16>
    %10 = vector.shape_cast %9 : vector<8x8x128xbf16> to vector<64x128xbf16>
    %c4 = arith.constant 4 : index
    %c0_3 = arith.constant 0 : index
    %c0_4 = arith.constant 0 : index
    %11 = vector.load %arg2[%c4, %c0_3, %c0_4] : memref<9x128x16xbf16, #tpu.memory_space<vmem>>, vector<1x128x16xbf16>
    %12 = vector.shape_cast %11 : vector<1x128x16xbf16> to vector<128x16xbf16>
    %cst = arith.constant dense<0.000000e+00> : vector<64x16xf32>
    %13 = tpu.matmul %4, %12, %cst {dimension_numbers = #tpu.dot_dimension_numbers<[1], [0], [0], [1], [0, 0, 1, 1], [], []>} : vector<64x128xbf16>, vector<128x16xbf16>, vector<64x16xf32> -> vector<64x16xf32>
    %c5 = arith.constant 5 : index
    %c0_5 = arith.constant 0 : index
    %c0_6 = arith.constant 0 : index
    %14 = vector.load %arg2[%c5, %c0_5, %c0_6] : memref<9x128x16xbf16, #tpu.memory_space<vmem>>, vector<1x128x16xbf16>
    %15 = vector.shape_cast %14 : vector<1x128x16xbf16> to vector<128x16xbf16>
    %cst_7 = arith.constant dense<0.000000e+00> : vector<64x16xf32>
    %16 = tpu.matmul %4, %15, %cst_7 {dimension_numbers = #tpu.dot_dimension_numbers<[1], [0], [0], [1], [0, 0, 1, 1], [], []>} : vector<64x128xbf16>, vector<128x16xbf16>, vector<64x16xf32> -> vector<64x16xf32>
    %c3 = arith.constant 3 : index
    %c0_8 = arith.constant 0 : index
    %c0_9 = arith.constant 0 : index
    %17 = vector.load %arg2[%c3, %c0_8, %c0_9] : memref<9x128x16xbf16, #tpu.memory_space<vmem>>, vector<1x128x16xbf16>
    %18 = vector.shape_cast %17 : vector<1x128x16xbf16> to vector<128x16xbf16>
    %cst_10 = arith.constant dense<0.000000e+00> : vector<64x16xf32>
    %19 = tpu.matmul %6, %18, %cst_10 {dimension_numbers = #tpu.dot_dimension_numbers<[1], [0], [0], [1], [0, 0, 1, 1], [], []>} : vector<64x128xbf16>, vector<128x16xbf16>, vector<64x16xf32> -> vector<64x16xf32>
    %20 = arith.addf %16, %19 : vector<64x16xf32>
    %c7 = arith.constant 7 : index
    %c0_11 = arith.constant 0 : index
    %c0_12 = arith.constant 0 : index
    %21 = vector.load %arg2[%c7, %c0_11, %c0_12] : memref<9x128x16xbf16, #tpu.memory_space<vmem>>, vector<1x128x16xbf16>
    %22 = vector.shape_cast %21 : vector<1x128x16xbf16> to vector<128x16xbf16>
    %cst_13 = arith.constant dense<0.000000e+00> : vector<64x16xf32>
    %23 = tpu.matmul %4, %22, %cst_13 {dimension_numbers = #tpu.dot_dimension_numbers<[1], [0], [0], [1], [0, 0, 1, 1], [], []>} : vector<64x128xbf16>, vector<128x16xbf16>, vector<64x16xf32> -> vector<64x16xf32>
    %c1 = arith.constant 1 : index
    %c0_14 = arith.constant 0 : index
    %c0_15 = arith.constant 0 : index
    %24 = vector.load %arg2[%c1, %c0_14, %c0_15] : memref<9x128x16xbf16, #tpu.memory_space<vmem>>, vector<1x128x16xbf16>
    %25 = vector.shape_cast %24 : vector<1x128x16xbf16> to vector<128x16xbf16>
    %cst_16 = arith.constant dense<0.000000e+00> : vector<64x16xf32>
    %26 = tpu.matmul %8, %25, %cst_16 {dimension_numbers = #tpu.dot_dimension_numbers<[1], [0], [0], [1], [0, 0, 1, 1], [], []>} : vector<64x128xbf16>, vector<128x16xbf16>, vector<64x16xf32> -> vector<64x16xf32>
    %27 = arith.addf %23, %26 : vector<64x16xf32>
    %c8 = arith.constant 8 : index
    %c0_17 = arith.constant 0 : index
    %c0_18 = arith.constant 0 : index
    %28 = vector.load %arg2[%c8, %c0_17, %c0_18] : memref<9x128x16xbf16, #tpu.memory_space<vmem>>, vector<1x128x16xbf16>
    %29 = vector.shape_cast %28 : vector<1x128x16xbf16> to vector<128x16xbf16>
    %cst_19 = arith.constant dense<0.000000e+00> : vector<64x16xf32>
    %30 = tpu.matmul %4, %29, %cst_19 {dimension_numbers = #tpu.dot_dimension_numbers<[1], [0], [0], [1], [0, 0, 1, 1], [], []>} : vector<64x128xbf16>, vector<128x16xbf16>, vector<64x16xf32> -> vector<64x16xf32>
    %c6 = arith.constant 6 : index
    %c0_20 = arith.constant 0 : index
    %c0_21 = arith.constant 0 : index
    %31 = vector.load %arg2[%c6, %c0_20, %c0_21] : memref<9x128x16xbf16, #tpu.memory_space<vmem>>, vector<1x128x16xbf16>
    %32 = vector.shape_cast %31 : vector<1x128x16xbf16> to vector<128x16xbf16>
    %cst_22 = arith.constant dense<0.000000e+00> : vector<64x16xf32>
    %33 = tpu.matmul %6, %32, %cst_22 {dimension_numbers = #tpu.dot_dimension_numbers<[1], [0], [0], [1], [0, 0, 1, 1], [], []>} : vector<64x128xbf16>, vector<128x16xbf16>, vector<64x16xf32> -> vector<64x16xf32>
    %34 = arith.addf %30, %33 : vector<64x16xf32>
    %c2 = arith.constant 2 : index
    %c0_23 = arith.constant 0 : index
    %c0_24 = arith.constant 0 : index
    %35 = vector.load %arg2[%c2, %c0_23, %c0_24] : memref<9x128x16xbf16, #tpu.memory_space<vmem>>, vector<1x128x16xbf16>
    %36 = vector.shape_cast %35 : vector<1x128x16xbf16> to vector<128x16xbf16>
    %cst_25 = arith.constant dense<0.000000e+00> : vector<64x16xf32>
    %37 = tpu.matmul %8, %36, %cst_25 {dimension_numbers = #tpu.dot_dimension_numbers<[1], [0], [0], [1], [0, 0, 1, 1], [], []>} : vector<64x128xbf16>, vector<128x16xbf16>, vector<64x16xf32> -> vector<64x16xf32>
    %38 = arith.addf %34, %37 : vector<64x16xf32>
    %c0_26 = arith.constant 0 : index
    %c0_27 = arith.constant 0 : index
    %c0_28 = arith.constant 0 : index
    %39 = vector.load %arg2[%c0_26, %c0_27, %c0_28] : memref<9x128x16xbf16, #tpu.memory_space<vmem>>, vector<1x128x16xbf16>
    %40 = vector.shape_cast %39 : vector<1x128x16xbf16> to vector<128x16xbf16>
    %cst_29 = arith.constant dense<0.000000e+00> : vector<64x16xf32>
    %41 = tpu.matmul %10, %40, %cst_29 {dimension_numbers = #tpu.dot_dimension_numbers<[1], [0], [0], [1], [0, 0, 1, 1], [], []>} : vector<64x128xbf16>, vector<128x16xbf16>, vector<64x16xf32> -> vector<64x16xf32>
    %42 = arith.addf %38, %41 : vector<64x16xf32>
    %43 = tpu.concatenate %13, %20, %27, %42 in 1 : vector<64x16xf32>, vector<64x16xf32>, vector<64x16xf32>, vector<64x16xf32> -> vector<64x64xf32>
    %44 = vector.shape_cast %43 : vector<64x64xf32> to vector<1x64x64xf32>
    %c0_30 = arith.constant 0 : index
    %c0_31 = arith.constant 0 : index
    %c0_32 = arith.constant 0 : index
    %45 = vector.load %arg3[%c0_30, %c0_31, %c0_32] : memref<1x64x64xf32, #tpu.memory_space<vmem>>, vector<1x64x64xf32>
    tpu.vector_store %arg3[%c0_30, %c0_31, %c0_32], %44 {strides = array<i32>} : memref<1x64x64xf32, #tpu.memory_space<vmem>>, vector<1x64x64xf32>,
    %c0_i32 = arith.constant 0 : i32
    %46 = arith.cmpi eq, %arg0, %c0_i32 : i32
    %47 = arith.extui %46 : i1 to i32
    %c0_i32_33 = arith.constant 0 : i32
    %48 = arith.cmpi ne, %47, %c0_i32_33 : i32
    scf.if %48 {
      %cst_44 = arith.constant 0.000000e+00 : f32
      %60 = vector.broadcast %cst_44 : f32 to vector<1x64xf32>
      %c0_45 = arith.constant 0 : index
      %c0_46 = arith.constant 0 : index
      %61 = vector.load %arg4[%c0_45, %c0_46] : memref<1x64xf32, #tpu.memory_space<vmem>>, vector<1x64xf32>
      tpu.vector_store %arg4[%c0_45, %c0_46], %60 {strides = array<i32>} : memref<1x64xf32, #tpu.memory_space<vmem>>, vector<1x64xf32>,
      %cst_47 = arith.constant 0.000000e+00 : f32
      %62 = vector.broadcast %cst_47 : f32 to vector<1x64xf32>
      %c0_48 = arith.constant 0 : index
      %c0_49 = arith.constant 0 : index
      %63 = vector.load %arg5[%c0_48, %c0_49] : memref<1x64xf32, #tpu.memory_space<vmem>>, vector<1x64xf32>
      tpu.vector_store %arg5[%c0_48, %c0_49], %62 {strides = array<i32>} : memref<1x64xf32, #tpu.memory_space<vmem>>, vector<1x64xf32>,
    } else {
    }
    %c0_34 = arith.constant 0 : index
    %c0_35 = arith.constant 0 : index
    %49 = vector.load %arg4[%c0_34, %c0_35] : memref<1x64xf32, #tpu.memory_space<vmem>>, vector<1x64xf32>
    %cst_36 = arith.constant dense<0.000000e+00> : vector<64xf32>
    %50 = vector.multi_reduction <add>, %43, %cst_36 [0] : vector<64x64xf32> to vector<64xf32>
    %51 = vector.shape_cast %50 : vector<64xf32> to vector<1x64xf32>
    %52 = arith.addf %49, %51 : vector<1x64xf32>
    %c0_37 = arith.constant 0 : index
    %c0_38 = arith.constant 0 : index
    %53 = vector.load %arg4[%c0_37, %c0_38] : memref<1x64xf32, #tpu.memory_space<vmem>>, vector<1x64xf32>
    tpu.vector_store %arg4[%c0_37, %c0_38], %52 {strides = array<i32>} : memref<1x64xf32, #tpu.memory_space<vmem>>, vector<1x64xf32>,
    %c0_39 = arith.constant 0 : index
    %c0_40 = arith.constant 0 : index
    %54 = vector.load %arg5[%c0_39, %c0_40] : memref<1x64xf32, #tpu.memory_space<vmem>>, vector<1x64xf32>
    %55 = arith.mulf %43, %43 : vector<64x64xf32>
    %cst_41 = arith.constant dense<0.000000e+00> : vector<64xf32>
    %56 = vector.multi_reduction <add>, %55, %cst_41 [0] : vector<64x64xf32> to vector<64xf32>
    %57 = vector.shape_cast %56 : vector<64xf32> to vector<1x64xf32>
    %58 = arith.addf %54, %57 : vector<1x64xf32>
    %c0_42 = arith.constant 0 : index
    %c0_43 = arith.constant 0 : index
    %59 = vector.load %arg5[%c0_42, %c0_43] : memref<1x64xf32, #tpu.memory_space<vmem>>, vector<1x64xf32>
    tpu.vector_store %arg5[%c0_42, %c0_43], %58 {strides = array<i32>} : memref<1x64xf32, #tpu.memory_space<vmem>>, vector<1x64xf32>,
    return
  }
  func.func @transform_0(%arg0: i32) -> (i32, i32, i32, i32) {
    %c0_i32 = arith.constant 0 : i32
    %c0_i32_0 = arith.constant 0 : i32
    %c0_i32_1 = arith.constant 0 : i32
    %c0_i32_2 = arith.constant 0 : i32
    return %arg0, %c0_i32, %c0_i32_0, %c0_i32_1 : i32, i32, i32, i32
  }
  func.func @transform_1(%arg0: i32) -> (i32, i32, i32) {
    %c0_i32 = arith.constant 0 : i32
    %c0_i32_0 = arith.constant 0 : i32
    %c0_i32_1 = arith.constant 0 : i32
    %c0_i32_2 = arith.constant 0 : i32
    return %c0_i32, %c0_i32_0, %c0_i32_1 : i32, i32, i32
  }
  func.func @transform_2(%arg0: i32) -> (i32, i32, i32) {
    %c0_i32 = arith.constant 0 : i32
    %c0_i32_0 = arith.constant 0 : i32
    %c0_i32_1 = arith.constant 0 : i32
    return %arg0, %c0_i32, %c0_i32_0 : i32, i32, i32
  }
  func.func @transform_3(%arg0: i32) -> (i32, i32) {
    %c0_i32 = arith.constant 0 : i32
    %c0_i32_0 = arith.constant 0 : i32
    %c0_i32_1 = arith.constant 0 : i32
    return %c0_i32, %c0_i32_0 : i32, i32
  }
  func.func @transform_4(%arg0: i32) -> (i32, i32) {
    %c0_i32 = arith.constant 0 : i32
    %c0_i32_0 = arith.constant 0 : i32
    %c0_i32_1 = arith.constant 0 : i32
    return %c0_i32, %c0_i32_0 : i32, i32
  }
}

module attributes {stable_mosaic.version = 11 : i64} {
  func.func @kernel(%arg0: i32, %arg1: memref<1x288x16xf32, #tpu.memory_space<vmem>>, %arg2: memref<3x16x16xbf16, #tpu.memory_space<vmem>>, %arg3: memref<1x16xf32, #tpu.memory_space<vmem>>, %arg4: memref<3x16x16xbf16, #tpu.memory_space<vmem>>, %arg5: memref<1x256x16xf32, #tpu.memory_space<vmem>>, %arg6: memref<1x16xf32, #tpu.memory_space<vmem>>, %arg7: memref<1x16xf32, #tpu.memory_space<vmem>>, %arg8: memref<16x18x16xbf16, #tpu.memory_space<vmem>>) attributes {dimension_semantics = [#tpu.dimension_semantics<arbitrary>], iteration_bounds = array<i64: 2>, scalar_prefetch = 0 : i64, scratch_operands = 1 : i64, tpu.core_type = #tpu.core_type<tc>, window_params = [{transform_indices = @transform_0, window_bounds = array<i64: 1, 288, 16>}, {pipeline_mode = #tpu.pipeline_mode<synchronous>, transform_indices = @transform_1, window_bounds = array<i64: 3, 16, 16>}, {pipeline_mode = #tpu.pipeline_mode<synchronous>, transform_indices = @transform_2, window_bounds = array<i64: 1, 16>}, {pipeline_mode = #tpu.pipeline_mode<synchronous>, transform_indices = @transform_3, window_bounds = array<i64: 3, 16, 16>}, {transform_indices = @transform_4, window_bounds = array<i64: 1, 256, 16>}, {pipeline_mode = #tpu.pipeline_mode<synchronous>, transform_indices = @transform_5, window_bounds = array<i64: 1, 16>}, {pipeline_mode = #tpu.pipeline_mode<synchronous>, transform_indices = @transform_6, window_bounds = array<i64: 1, 16>}]} {
    %c0 = arith.constant 0 : index
    %c0_0 = arith.constant 0 : index
    %c0_1 = arith.constant 0 : index
    %0 = vector.load %arg1[%c0, %c0_0, %c0_1] : memref<1x288x16xf32, #tpu.memory_space<vmem>>, vector<1x288x16xf32>
    %1 = vector.shape_cast %0 : vector<1x288x16xf32> to vector<288x16xf32>
    %2 = arith.truncf %1 : vector<288x16xf32> to vector<288x16xbf16>
    %3 = vector.extract_strided_slice %2 {offsets = [0, 0], sizes = [256, 16], strides = [1, 1]} : vector<288x16xbf16> to vector<256x16xbf16>
    %c0_2 = arith.constant 0 : index
    %c0_3 = arith.constant 0 : index
    %c0_4 = arith.constant 0 : index
    %4 = vector.load %arg2[%c0_2, %c0_3, %c0_4] : memref<3x16x16xbf16, #tpu.memory_space<vmem>>, vector<1x16x16xbf16>
    %5 = vector.shape_cast %4 : vector<1x16x16xbf16> to vector<16x16xbf16>
    %cst = arith.constant dense<0.000000e+00> : vector<256x16xf32>
    %6 = tpu.matmul %3, %5, %cst {dimension_numbers = #tpu.dot_dimension_numbers<[1], [0], [0], [1], [0, 0, 1, 1], [], []>} : vector<256x16xbf16>, vector<16x16xbf16>, vector<256x16xf32> -> vector<256x16xf32>
    %7 = vector.extract_strided_slice %2 {offsets = [16, 0], sizes = [256, 16], strides = [1, 1]} : vector<288x16xbf16> to vector<256x16xbf16>
    %c1 = arith.constant 1 : index
    %c0_5 = arith.constant 0 : index
    %c0_6 = arith.constant 0 : index
    %8 = vector.load %arg2[%c1, %c0_5, %c0_6] : memref<3x16x16xbf16, #tpu.memory_space<vmem>>, vector<1x16x16xbf16>
    %9 = vector.shape_cast %8 : vector<1x16x16xbf16> to vector<16x16xbf16>
    %cst_7 = arith.constant dense<0.000000e+00> : vector<256x16xf32>
    %10 = tpu.matmul %7, %9, %cst_7 {dimension_numbers = #tpu.dot_dimension_numbers<[1], [0], [0], [1], [0, 0, 1, 1], [], []>} : vector<256x16xbf16>, vector<16x16xbf16>, vector<256x16xf32> -> vector<256x16xf32>
    %11 = arith.addf %6, %10 : vector<256x16xf32>
    %12 = vector.extract_strided_slice %2 {offsets = [32, 0], sizes = [256, 16], strides = [1, 1]} : vector<288x16xbf16> to vector<256x16xbf16>
    %c2 = arith.constant 2 : index
    %c0_8 = arith.constant 0 : index
    %c0_9 = arith.constant 0 : index
    %13 = vector.load %arg2[%c2, %c0_8, %c0_9] : memref<3x16x16xbf16, #tpu.memory_space<vmem>>, vector<1x16x16xbf16>
    %14 = vector.shape_cast %13 : vector<1x16x16xbf16> to vector<16x16xbf16>
    %cst_10 = arith.constant dense<0.000000e+00> : vector<256x16xf32>
    %15 = tpu.matmul %12, %14, %cst_10 {dimension_numbers = #tpu.dot_dimension_numbers<[1], [0], [0], [1], [0, 0, 1, 1], [], []>} : vector<256x16xbf16>, vector<16x16xbf16>, vector<256x16xf32> -> vector<256x16xf32>
    %16 = arith.addf %11, %15 : vector<256x16xf32>
    %c0_11 = arith.constant 0 : index
    %c0_12 = arith.constant 0 : index
    %17 = vector.load %arg3[%c0_11, %c0_12] : memref<1x16xf32, #tpu.memory_space<vmem>>, vector<1x16xf32>
    %18 = vector.broadcast %17 : vector<1x16xf32> to vector<256x16xf32>
    %19 = arith.addf %16, %18 : vector<256x16xf32>
    %cst_13 = arith.constant 0.000000e+00 : f32
    %20 = vector.broadcast %cst_13 : f32 to vector<256x16xf32>
    %21 = arith.maximumf %19, %20 : vector<256x16xf32>
    %22 = arith.truncf %21 : vector<256x16xf32> to vector<256x16xbf16>
    %23 = vector.shape_cast %22 : vector<256x16xbf16> to vector<16x16x16xbf16>
    %c0_14 = arith.constant 0 : index
    %c1_15 = arith.constant 1 : index
    %c0_16 = arith.constant 0 : index
    %24 = vector.load %arg8[%c0_14, %c1_15, %c0_16] : memref<16x18x16xbf16, #tpu.memory_space<vmem>>, vector<16x16x16xbf16>
    tpu.vector_store %arg8[%c0_14, %c1_15, %c0_16], %23 {strides = array<i32>} : memref<16x18x16xbf16, #tpu.memory_space<vmem>>, vector<16x16x16xbf16>,
    %cst_17 = arith.constant 0.000000e+00 : bf16
    %25 = vector.broadcast %cst_17 : bf16 to vector<16x1x16xbf16>
    %c0_18 = arith.constant 0 : index
    %c0_19 = arith.constant 0 : index
    %c0_20 = arith.constant 0 : index
    %26 = vector.load %arg8[%c0_18, %c0_19, %c0_20] : memref<16x18x16xbf16, #tpu.memory_space<vmem>>, vector<16x1x16xbf16>
    tpu.vector_store %arg8[%c0_18, %c0_19, %c0_20], %25 {strides = array<i32>} : memref<16x18x16xbf16, #tpu.memory_space<vmem>>, vector<16x1x16xbf16>,
    %cst_21 = arith.constant 0.000000e+00 : bf16
    %27 = vector.broadcast %cst_21 : bf16 to vector<16x1x16xbf16>
    %c0_22 = arith.constant 0 : index
    %c17 = arith.constant 17 : index
    %c0_23 = arith.constant 0 : index
    %28 = vector.load %arg8[%c0_22, %c17, %c0_23] : memref<16x18x16xbf16, #tpu.memory_space<vmem>>, vector<16x1x16xbf16>
    tpu.vector_store %arg8[%c0_22, %c17, %c0_23], %27 {strides = array<i32>} : memref<16x18x16xbf16, #tpu.memory_space<vmem>>, vector<16x1x16xbf16>,
    %c0_24 = arith.constant 0 : index
    %c0_25 = arith.constant 0 : index
    %c0_26 = arith.constant 0 : index
    %29 = vector.load %arg8[%c0_24, %c0_25, %c0_26] : memref<16x18x16xbf16, #tpu.memory_space<vmem>>, vector<16x16x16xbf16>
    %30 = vector.shape_cast %29 : vector<16x16x16xbf16> to vector<256x16xbf16>
    %c0_27 = arith.constant 0 : index
    %c0_28 = arith.constant 0 : index
    %c0_29 = arith.constant 0 : index
    %31 = vector.load %arg4[%c0_27, %c0_28, %c0_29] : memref<3x16x16xbf16, #tpu.memory_space<vmem>>, vector<1x16x16xbf16>
    %32 = vector.shape_cast %31 : vector<1x16x16xbf16> to vector<16x16xbf16>
    %cst_30 = arith.constant dense<0.000000e+00> : vector<256x16xf32>
    %33 = tpu.matmul %30, %32, %cst_30 {dimension_numbers = #tpu.dot_dimension_numbers<[1], [0], [0], [1], [0, 0, 1, 1], [], []>} : vector<256x16xbf16>, vector<16x16xbf16>, vector<256x16xf32> -> vector<256x16xf32>
    %c0_31 = arith.constant 0 : index
    %c1_32 = arith.constant 1 : index
    %c0_33 = arith.constant 0 : index
    %34 = vector.load %arg8[%c0_31, %c1_32, %c0_33] : memref<16x18x16xbf16, #tpu.memory_space<vmem>>, vector<16x16x16xbf16>
    %35 = vector.shape_cast %34 : vector<16x16x16xbf16> to vector<256x16xbf16>
    %c1_34 = arith.constant 1 : index
    %c0_35 = arith.constant 0 : index
    %c0_36 = arith.constant 0 : index
    %36 = vector.load %arg4[%c1_34, %c0_35, %c0_36] : memref<3x16x16xbf16, #tpu.memory_space<vmem>>, vector<1x16x16xbf16>
    %37 = vector.shape_cast %36 : vector<1x16x16xbf16> to vector<16x16xbf16>
    %cst_37 = arith.constant dense<0.000000e+00> : vector<256x16xf32>
    %38 = tpu.matmul %35, %37, %cst_37 {dimension_numbers = #tpu.dot_dimension_numbers<[1], [0], [0], [1], [0, 0, 1, 1], [], []>} : vector<256x16xbf16>, vector<16x16xbf16>, vector<256x16xf32> -> vector<256x16xf32>
    %39 = arith.addf %33, %38 : vector<256x16xf32>
    %c0_38 = arith.constant 0 : index
    %c2_39 = arith.constant 2 : index
    %c0_40 = arith.constant 0 : index
    %40 = vector.load %arg8[%c0_38, %c2_39, %c0_40] : memref<16x18x16xbf16, #tpu.memory_space<vmem>>, vector<16x16x16xbf16>
    %41 = vector.shape_cast %40 : vector<16x16x16xbf16> to vector<256x16xbf16>
    %c2_41 = arith.constant 2 : index
    %c0_42 = arith.constant 0 : index
    %c0_43 = arith.constant 0 : index
    %42 = vector.load %arg4[%c2_41, %c0_42, %c0_43] : memref<3x16x16xbf16, #tpu.memory_space<vmem>>, vector<1x16x16xbf16>
    %43 = vector.shape_cast %42 : vector<1x16x16xbf16> to vector<16x16xbf16>
    %cst_44 = arith.constant dense<0.000000e+00> : vector<256x16xf32>
    %44 = tpu.matmul %41, %43, %cst_44 {dimension_numbers = #tpu.dot_dimension_numbers<[1], [0], [0], [1], [0, 0, 1, 1], [], []>} : vector<256x16xbf16>, vector<16x16xbf16>, vector<256x16xf32> -> vector<256x16xf32>
    %45 = arith.addf %39, %44 : vector<256x16xf32>
    %46 = vector.shape_cast %45 : vector<256x16xf32> to vector<1x256x16xf32>
    %c0_45 = arith.constant 0 : index
    %c0_46 = arith.constant 0 : index
    %c0_47 = arith.constant 0 : index
    %47 = vector.load %arg5[%c0_45, %c0_46, %c0_47] : memref<1x256x16xf32, #tpu.memory_space<vmem>>, vector<1x256x16xf32>
    tpu.vector_store %arg5[%c0_45, %c0_46, %c0_47], %46 {strides = array<i32>} : memref<1x256x16xf32, #tpu.memory_space<vmem>>, vector<1x256x16xf32>,
    %c0_i32 = arith.constant 0 : i32
    %48 = arith.cmpi eq, %arg0, %c0_i32 : i32
    %49 = arith.extui %48 : i1 to i32
    %c0_i32_48 = arith.constant 0 : i32
    %50 = arith.cmpi ne, %49, %c0_i32_48 : i32
    scf.if %50 {
      %cst_59 = arith.constant 0.000000e+00 : f32
      %62 = vector.broadcast %cst_59 : f32 to vector<1x16xf32>
      %c0_60 = arith.constant 0 : index
      %c0_61 = arith.constant 0 : index
      %63 = vector.load %arg6[%c0_60, %c0_61] : memref<1x16xf32, #tpu.memory_space<vmem>>, vector<1x16xf32>
      tpu.vector_store %arg6[%c0_60, %c0_61], %62 {strides = array<i32>} : memref<1x16xf32, #tpu.memory_space<vmem>>, vector<1x16xf32>,
      %cst_62 = arith.constant 0.000000e+00 : f32
      %64 = vector.broadcast %cst_62 : f32 to vector<1x16xf32>
      %c0_63 = arith.constant 0 : index
      %c0_64 = arith.constant 0 : index
      %65 = vector.load %arg7[%c0_63, %c0_64] : memref<1x16xf32, #tpu.memory_space<vmem>>, vector<1x16xf32>
      tpu.vector_store %arg7[%c0_63, %c0_64], %64 {strides = array<i32>} : memref<1x16xf32, #tpu.memory_space<vmem>>, vector<1x16xf32>,
    } else {
    }
    %c0_49 = arith.constant 0 : index
    %c0_50 = arith.constant 0 : index
    %51 = vector.load %arg6[%c0_49, %c0_50] : memref<1x16xf32, #tpu.memory_space<vmem>>, vector<1x16xf32>
    %cst_51 = arith.constant dense<0.000000e+00> : vector<16xf32>
    %52 = vector.multi_reduction <add>, %45, %cst_51 [0] : vector<256x16xf32> to vector<16xf32>
    %53 = vector.shape_cast %52 : vector<16xf32> to vector<1x16xf32>
    %54 = arith.addf %51, %53 : vector<1x16xf32>
    %c0_52 = arith.constant 0 : index
    %c0_53 = arith.constant 0 : index
    %55 = vector.load %arg6[%c0_52, %c0_53] : memref<1x16xf32, #tpu.memory_space<vmem>>, vector<1x16xf32>
    tpu.vector_store %arg6[%c0_52, %c0_53], %54 {strides = array<i32>} : memref<1x16xf32, #tpu.memory_space<vmem>>, vector<1x16xf32>,
    %c0_54 = arith.constant 0 : index
    %c0_55 = arith.constant 0 : index
    %56 = vector.load %arg7[%c0_54, %c0_55] : memref<1x16xf32, #tpu.memory_space<vmem>>, vector<1x16xf32>
    %57 = arith.mulf %45, %45 : vector<256x16xf32>
    %cst_56 = arith.constant dense<0.000000e+00> : vector<16xf32>
    %58 = vector.multi_reduction <add>, %57, %cst_56 [0] : vector<256x16xf32> to vector<16xf32>
    %59 = vector.shape_cast %58 : vector<16xf32> to vector<1x16xf32>
    %60 = arith.addf %56, %59 : vector<1x16xf32>
    %c0_57 = arith.constant 0 : index
    %c0_58 = arith.constant 0 : index
    %61 = vector.load %arg7[%c0_57, %c0_58] : memref<1x16xf32, #tpu.memory_space<vmem>>, vector<1x16xf32>
    tpu.vector_store %arg7[%c0_57, %c0_58], %60 {strides = array<i32>} : memref<1x16xf32, #tpu.memory_space<vmem>>, vector<1x16xf32>,
    return
  }
  func.func @transform_0(%arg0: i32) -> (i32, i32, i32) {
    %c0_i32 = arith.constant 0 : i32
    %c0_i32_0 = arith.constant 0 : i32
    %c0_i32_1 = arith.constant 0 : i32
    return %arg0, %c0_i32, %c0_i32_0 : i32, i32, i32
  }
  func.func @transform_1(%arg0: i32) -> (i32, i32, i32) {
    %c0_i32 = arith.constant 0 : i32
    %c0_i32_0 = arith.constant 0 : i32
    %c0_i32_1 = arith.constant 0 : i32
    %c0_i32_2 = arith.constant 0 : i32
    return %c0_i32, %c0_i32_0, %c0_i32_1 : i32, i32, i32
  }
  func.func @transform_2(%arg0: i32) -> (i32, i32) {
    %c0_i32 = arith.constant 0 : i32
    %c0_i32_0 = arith.constant 0 : i32
    %c0_i32_1 = arith.constant 0 : i32
    return %c0_i32, %c0_i32_0 : i32, i32
  }
  func.func @transform_3(%arg0: i32) -> (i32, i32, i32) {
    %c0_i32 = arith.constant 0 : i32
    %c0_i32_0 = arith.constant 0 : i32
    %c0_i32_1 = arith.constant 0 : i32
    %c0_i32_2 = arith.constant 0 : i32
    return %c0_i32, %c0_i32_0, %c0_i32_1 : i32, i32, i32
  }
  func.func @transform_4(%arg0: i32) -> (i32, i32, i32) {
    %c0_i32 = arith.constant 0 : i32
    %c0_i32_0 = arith.constant 0 : i32
    %c0_i32_1 = arith.constant 0 : i32
    return %arg0, %c0_i32, %c0_i32_0 : i32, i32, i32
  }
  func.func @transform_5(%arg0: i32) -> (i32, i32) {
    %c0_i32 = arith.constant 0 : i32
    %c0_i32_0 = arith.constant 0 : i32
    %c0_i32_1 = arith.constant 0 : i32
    return %c0_i32, %c0_i32_0 : i32, i32
  }
  func.func @transform_6(%arg0: i32) -> (i32, i32) {
    %c0_i32 = arith.constant 0 : i32
    %c0_i32_0 = arith.constant 0 : i32
    %c0_i32_1 = arith.constant 0 : i32
    return %c0_i32, %c0_i32_0 : i32, i32
  }
}

module attributes {stable_mosaic.version = 11 : i64} {
  func.func @kernel(%arg0: i32, %arg1: memref<512x16xf32, #tpu.memory_space<vmem>>, %arg2: memref<1x16xf32, #tpu.memory_space<vmem>>, %arg3: memref<1x16xf32, #tpu.memory_space<vmem>>, %arg4: memref<512x16xf32, #tpu.memory_space<vmem>>) attributes {dimension_semantics = [#tpu.dimension_semantics<parallel>], iteration_bounds = array<i64: 1>, scalar_prefetch = 0 : i64, scratch_operands = 0 : i64, tpu.core_type = #tpu.core_type<tc>, window_params = [{transform_indices = @transform_0, window_bounds = array<i64: 512, 16>}, {pipeline_mode = #tpu.pipeline_mode<synchronous>, transform_indices = @transform_1, window_bounds = array<i64: 1, 16>}, {pipeline_mode = #tpu.pipeline_mode<synchronous>, transform_indices = @transform_2, window_bounds = array<i64: 1, 16>}, {transform_indices = @transform_3, window_bounds = array<i64: 512, 16>}]} {
    %c0 = arith.constant 0 : index
    %c0_0 = arith.constant 0 : index
    %0 = vector.load %arg1[%c0, %c0_0] : memref<512x16xf32, #tpu.memory_space<vmem>>, vector<512x16xf32>
    %c0_1 = arith.constant 0 : index
    %c0_2 = arith.constant 0 : index
    %1 = vector.load %arg2[%c0_1, %c0_2] : memref<1x16xf32, #tpu.memory_space<vmem>>, vector<1x16xf32>
    %2 = vector.broadcast %1 : vector<1x16xf32> to vector<512x16xf32>
    %3 = arith.mulf %0, %2 : vector<512x16xf32>
    %c0_3 = arith.constant 0 : index
    %c0_4 = arith.constant 0 : index
    %4 = vector.load %arg3[%c0_3, %c0_4] : memref<1x16xf32, #tpu.memory_space<vmem>>, vector<1x16xf32>
    %5 = vector.broadcast %4 : vector<1x16xf32> to vector<512x16xf32>
    %6 = arith.addf %3, %5 : vector<512x16xf32>
    %cst = arith.constant 0.000000e+00 : f32
    %7 = vector.broadcast %cst : f32 to vector<512x16xf32>
    %8 = arith.maximumf %6, %7 : vector<512x16xf32>
    %c0_5 = arith.constant 0 : index
    %c0_6 = arith.constant 0 : index
    %9 = vector.load %arg4[%c0_5, %c0_6] : memref<512x16xf32, #tpu.memory_space<vmem>>, vector<512x16xf32>
    tpu.vector_store %arg4[%c0_5, %c0_6], %8 {strides = array<i32>} : memref<512x16xf32, #tpu.memory_space<vmem>>, vector<512x16xf32>,
    return
  }
  func.func @transform_0(%arg0: i32) -> (i32, i32) {
    %c0_i32 = arith.constant 0 : i32
    %c0_i32_0 = arith.constant 0 : i32
    return %arg0, %c0_i32 : i32, i32
  }
  func.func @transform_1(%arg0: i32) -> (i32, i32) {
    %c0_i32 = arith.constant 0 : i32
    %c0_i32_0 = arith.constant 0 : i32
    %c0_i32_1 = arith.constant 0 : i32
    return %c0_i32, %c0_i32_0 : i32, i32
  }
  func.func @transform_2(%arg0: i32) -> (i32, i32) {
    %c0_i32 = arith.constant 0 : i32
    %c0_i32_0 = arith.constant 0 : i32
    %c0_i32_1 = arith.constant 0 : i32
    return %c0_i32, %c0_i32_0 : i32, i32
  }
  func.func @transform_3(%arg0: i32) -> (i32, i32) {
    %c0_i32 = arith.constant 0 : i32
    %c0_i32_0 = arith.constant 0 : i32
    return %arg0, %c0_i32 : i32, i32
  }
}

module attributes {stable_mosaic.version = 11 : i64} {
  func.func @kernel(%arg0: i32, %arg1: memref<512x16xf32, #tpu.memory_space<vmem>>, %arg2: memref<1x16xf32, #tpu.memory_space<vmem>>, %arg3: memref<1x16xf32, #tpu.memory_space<vmem>>, %arg4: memref<512x16xf32, #tpu.memory_space<vmem>>, %arg5: memref<512x16xf32, #tpu.memory_space<vmem>>) attributes {dimension_semantics = [#tpu.dimension_semantics<parallel>], iteration_bounds = array<i64: 1>, scalar_prefetch = 0 : i64, scratch_operands = 0 : i64, tpu.core_type = #tpu.core_type<tc>, window_params = [{transform_indices = @transform_0, window_bounds = array<i64: 512, 16>}, {pipeline_mode = #tpu.pipeline_mode<synchronous>, transform_indices = @transform_1, window_bounds = array<i64: 1, 16>}, {pipeline_mode = #tpu.pipeline_mode<synchronous>, transform_indices = @transform_2, window_bounds = array<i64: 1, 16>}, {transform_indices = @transform_3, window_bounds = array<i64: 512, 16>}, {transform_indices = @transform_4, window_bounds = array<i64: 512, 16>}]} {
    %c0 = arith.constant 0 : index
    %c0_0 = arith.constant 0 : index
    %0 = vector.load %arg1[%c0, %c0_0] : memref<512x16xf32, #tpu.memory_space<vmem>>, vector<512x16xf32>
    %c0_1 = arith.constant 0 : index
    %c0_2 = arith.constant 0 : index
    %1 = vector.load %arg2[%c0_1, %c0_2] : memref<1x16xf32, #tpu.memory_space<vmem>>, vector<1x16xf32>
    %2 = vector.broadcast %1 : vector<1x16xf32> to vector<512x16xf32>
    %3 = arith.mulf %0, %2 : vector<512x16xf32>
    %c0_3 = arith.constant 0 : index
    %c0_4 = arith.constant 0 : index
    %4 = vector.load %arg3[%c0_3, %c0_4] : memref<1x16xf32, #tpu.memory_space<vmem>>, vector<1x16xf32>
    %5 = vector.broadcast %4 : vector<1x16xf32> to vector<512x16xf32>
    %6 = arith.addf %3, %5 : vector<512x16xf32>
    %c0_5 = arith.constant 0 : index
    %c0_6 = arith.constant 0 : index
    %7 = vector.load %arg4[%c0_5, %c0_6] : memref<512x16xf32, #tpu.memory_space<vmem>>, vector<512x16xf32>
    %8 = arith.addf %6, %7 : vector<512x16xf32>
    %cst = arith.constant 0.000000e+00 : f32
    %9 = vector.broadcast %cst : f32 to vector<512x16xf32>
    %10 = arith.maximumf %8, %9 : vector<512x16xf32>
    %c0_7 = arith.constant 0 : index
    %c0_8 = arith.constant 0 : index
    %11 = vector.load %arg5[%c0_7, %c0_8] : memref<512x16xf32, #tpu.memory_space<vmem>>, vector<512x16xf32>
    tpu.vector_store %arg5[%c0_7, %c0_8], %10 {strides = array<i32>} : memref<512x16xf32, #tpu.memory_space<vmem>>, vector<512x16xf32>,
    return
  }
  func.func @transform_0(%arg0: i32) -> (i32, i32) {
    %c0_i32 = arith.constant 0 : i32
    %c0_i32_0 = arith.constant 0 : i32
    return %arg0, %c0_i32 : i32, i32
  }
  func.func @transform_1(%arg0: i32) -> (i32, i32) {
    %c0_i32 = arith.constant 0 : i32
    %c0_i32_0 = arith.constant 0 : i32
    %c0_i32_1 = arith.constant 0 : i32
    return %c0_i32, %c0_i32_0 : i32, i32
  }
  func.func @transform_2(%arg0: i32) -> (i32, i32) {
    %c0_i32 = arith.constant 0 : i32
    %c0_i32_0 = arith.constant 0 : i32
    %c0_i32_1 = arith.constant 0 : i32
    return %c0_i32, %c0_i32_0 : i32, i32
  }
  func.func @transform_3(%arg0: i32) -> (i32, i32) {
    %c0_i32 = arith.constant 0 : i32
    %c0_i32_0 = arith.constant 0 : i32
    return %arg0, %c0_i32 : i32, i32
  }
  func.func @transform_4(%arg0: i32) -> (i32, i32) {
    %c0_i32 = arith.constant 0 : i32
    %c0_i32_0 = arith.constant 0 : i32
    return %arg0, %c0_i32 : i32, i32
  }
}

module attributes {stable_mosaic.version = 11 : i64} {
  func.func @kernel(%arg0: i32, %arg1: memref<512x32xf32, #tpu.memory_space<vmem>>, %arg2: memref<32x4xbf16, #tpu.memory_space<vmem>>, %arg3: memref<1x4xf32, #tpu.memory_space<vmem>>, %arg4: memref<512x4xf32, #tpu.memory_space<vmem>>) attributes {dimension_semantics = [#tpu.dimension_semantics<parallel>], iteration_bounds = array<i64: 1>, scalar_prefetch = 0 : i64, scratch_operands = 0 : i64, tpu.core_type = #tpu.core_type<tc>, window_params = [{transform_indices = @transform_0, window_bounds = array<i64: 512, 32>}, {pipeline_mode = #tpu.pipeline_mode<synchronous>, transform_indices = @transform_1, window_bounds = array<i64: 32, 4>}, {pipeline_mode = #tpu.pipeline_mode<synchronous>, transform_indices = @transform_2, window_bounds = array<i64: 1, 4>}, {transform_indices = @transform_3, window_bounds = array<i64: 512, 4>}]} {
    %c0 = arith.constant 0 : index
    %c0_0 = arith.constant 0 : index
    %0 = vector.load %arg1[%c0, %c0_0] : memref<512x32xf32, #tpu.memory_space<vmem>>, vector<512x32xf32>
    %1 = arith.truncf %0 : vector<512x32xf32> to vector<512x32xbf16>
    %c0_1 = arith.constant 0 : index
    %c0_2 = arith.constant 0 : index
    %2 = vector.load %arg2[%c0_1, %c0_2] : memref<32x4xbf16, #tpu.memory_space<vmem>>, vector<32x4xbf16>
    %cst = arith.constant dense<0.000000e+00> : vector<512x4xf32>
    %3 = tpu.matmul %1, %2, %cst {dimension_numbers = #tpu.dot_dimension_numbers<[1], [0], [0], [1], [0, 0, 1, 1], [], []>} : vector<512x32xbf16>, vector<32x4xbf16>, vector<512x4xf32> -> vector<512x4xf32>
    %c0_3 = arith.constant 0 : index
    %c0_4 = arith.constant 0 : index
    %4 = vector.load %arg3[%c0_3, %c0_4] : memref<1x4xf32, #tpu.memory_space<vmem>>, vector<1x4xf32>
    %5 = vector.broadcast %4 : vector<1x4xf32> to vector<512x4xf32>
    %6 = arith.addf %3, %5 : vector<512x4xf32>
    %c0_5 = arith.constant 0 : index
    %c0_6 = arith.constant 0 : index
    %7 = vector.load %arg4[%c0_5, %c0_6] : memref<512x4xf32, #tpu.memory_space<vmem>>, vector<512x4xf32>
    tpu.vector_store %arg4[%c0_5, %c0_6], %6 {strides = array<i32>} : memref<512x4xf32, #tpu.memory_space<vmem>>, vector<512x4xf32>,
    return
  }
  func.func @transform_0(%arg0: i32) -> (i32, i32) {
    %c0_i32 = arith.constant 0 : i32
    %c0_i32_0 = arith.constant 0 : i32
    return %arg0, %c0_i32 : i32, i32
  }
  func.func @transform_1(%arg0: i32) -> (i32, i32) {
    %c0_i32 = arith.constant 0 : i32
    %c0_i32_0 = arith.constant 0 : i32
    %c0_i32_1 = arith.constant 0 : i32
    return %c0_i32, %c0_i32_0 : i32, i32
  }
  func.func @transform_2(%arg0: i32) -> (i32, i32) {
    %c0_i32 = arith.constant 0 : i32
    %c0_i32_0 = arith.constant 0 : i32
    %c0_i32_1 = arith.constant 0 : i32
    return %c0_i32, %c0_i32_0 : i32, i32
  }
  func.func @transform_3(%arg0: i32) -> (i32, i32) {
    %c0_i32 = arith.constant 0 : i32
    %c0_i32_0 = arith.constant 0 : i32
    return %arg0, %c0_i32 : i32, i32
  }
}

</mosaic_0001>

<bundles_post_ra>
// kernel: tile.28
= control target key start
LH: loop header
LB: loop body
LE: loop exit
PB: predicated region body
PF: predicated region fallthrough
CT: control target
= control target key end

     0   :  { %s22_s0 = inlined_call_operand.vmem [shape: f32[64], index: 0, kind: input, shape index: {}]   ;;  %s23_s1 = inlined_call_operand.vmem [shape: f32[4,64], index: 1, kind: output, shape index: {}]  }
   0x1   :  { %v4_v0 = vld [vmem:[%s22_s0] ss:$0 sm:$0xff] }
   0x2   :  { %5 = vst [vmem:[%s23_s1] sm:$0xf] %v4_v0 }

// kernel: tile.33
= control target key start
LH: loop header
LB: loop body
LE: loop exit
PB: predicated region body
PF: predicated region fallthrough
CT: control target
= control target key end

     0   :  { %s7_s8 = smov 3  ;;  %vm9_vm0 = vcmask 523264   ;;  %s34_s9 = smov 64   ;;  %vm16_vm1 = vcmask 1048064   ;;  %s54_s0 = inlined_call_operand.vmem [shape: f32[4,64], index: 0, kind: input, shape index: {}]   ;;  %s55_s1 = inlined_call_operand.vmem [shape: f32[1,256], index: 1, kind: output, shape index: {}]  }
   0x1   :  { %v5_v0 = vld [vmem:[%s54_s0] sm:$0xf]  ;;  %s12_s0 = smov 3 }
   0x2   :  { %6 = vst [vmem:[#allocation1] sm:$0xf] %v5_v0 }
   0x9   :  { %v13_v1 = vld [vmem:[#allocation1 + $0x1] ss:$2 sm:%s12_s0]   ;;  %v8_v2 = vld [vmem:[#allocation1] ss:$2 sm:%s7_s8]  }
   0xa   :  { %14 = vrot.lane.b32.xlu0 %v13_v1, %s34_s9  ;;  %10 = vst.msk [vmem:[#allocation0] ss:$8 sm:$0x3] %vm9_vm0, %v8_v2  }
  0x7c   :  { %v15_v3 = vpop.permute.xlu0 %14  }
  0x7d   :  { %17 = vst.msk [vmem:[#allocation0] ss:$8 sm:$0x3] %vm16_vm1, %v15_v3  }
  0x84   :  { %v22_v4 = vld [vmem:[#allocation0] sm:$0x1]  ;;  %v27_v5 = vld [vmem:[#allocation0 + $0x8] sm:$0x1] }
  0x85   :  { %25 = vst [vmem:[%s55_s1] sm:$0x1] %v22_v4  ;;  %32 = vst [vmem:[%s55_s1 + $0x1] sm:$0x1] %v27_v5 }

// kernel: decoder_traversability.22
= control target key start
LH: loop header
LB: loop body
LE: loop exit
PB: predicated region body
PF: predicated region fallthrough
CT: control target
= control target key end

     0   :  { %v24_v0 = vlaneseq  ;;  %s156_s1 = inlined_call_operand.vmem [shape: f32[1,256], index: 1, kind: input, shape index: {}]   ;;  %s157_s2 = inlined_call_operand.vmem [shape: f32[1,256], index: 2, kind: input, shape index: {}]   ;;  %s158_s0 = inlined_call_operand.vmem [shape: f32[32,256], index: 0, kind: input, shape index: {}]   ;;  %s159_s3 = inlined_call_operand.vmem [shape: f32[32,256], index: 3, kind: output, shape index: {}]  }
   0x1   :  { %v22_v2 = vld [vmem:[%s156_s1] sm:$0x3]  ;;  %v15_v6 = vld [vmem:[%s158_s0 + $0x8] sm:$0xff]  ;;  %v16_v8 = vld [vmem:[%s158_s0 + $0x10] sm:$0xff] }
   0x2   :  { %v25_v1 = vshrl.u32 %v24_v0, 7  ;;  %v42_v3 = vld [vmem:[%s157_s2] sm:$0x3]  ;;  %v17_v9 = vld [vmem:[%s158_s0 + $0x18] sm:$0xff]  ;;  %v19_v15 = vld [vmem:[%s158_s0 + $0x28] sm:$0xff] }
   0x3   :  { %v14_v4 = vld [vmem:[%s158_s0] sm:$0xff]  ;;  %v20_v16 = vld [vmem:[%s158_s0 + $0x30] sm:$0xff]  ;;  %v21_v17 = vld [vmem:[%s158_s0 + $0x38] sm:$0xff] }
   0x4   :  { %v26_v5 = vsub.s32 0, %v25_v1  ;;  %v30_v7 = vsub.s32 1, %v25_v1  ;;  %v18_v10 = vld [vmem:[%s158_s0 + $0x20] sm:$0xff] }
   0x6   :  { %v27_v11 = vrot.slane %v22_v2, %v26_v5  ;;  %v47_v12 = vrot.slane %v42_v3, %v26_v5  ;;  %v31_v13 = vrot.slane %v22_v2, %v30_v7  ;;  %v51_v14 = vrot.slane %v42_v3, %v30_v7 }
   0x8   :  { %v34_v18 = vmul.f32 %v27_v11, %v14_v4  ;;  %v35_v19 = vmul.f32 %v31_v13, %v15_v6  ;;  %v36_v20 = vmul.f32 %v27_v11, %v16_v8  ;;  %v37_v21 = vmul.f32 %v31_v13, %v17_v9 }
   0x9   :  { %v38_v22 = vmul.f32 %v27_v11, %v18_v10  ;;  %v39_v23 = vmul.f32 %v31_v13, %v19_v15  ;;  %v40_v24 = vmul.f32 %v27_v11, %v20_v16  ;;  %v41_v25 = vmul.f32 %v31_v13, %v21_v17 }
   0xa   :  { %v54_v26 = vadd.f32 %v47_v12, %v34_v18  ;;  %v55_v27 = vadd.f32 %v51_v14, %v35_v19  ;;  %v56_v28 = vadd.f32 %v47_v12, %v36_v20  ;;  %v57_v29 = vadd.f32 %v51_v14, %v37_v21 }
   0xb   :  { %v58_v30 = vadd.f32 %v47_v12, %v38_v22  ;;  %v59_v31 = vadd.f32 %v51_v14, %v39_v23  ;;  %v60_v32 = vadd.f32 %v47_v12, %v40_v24  ;;  %v61_v33 = vadd.f32 %v51_v14, %v41_v25 }
   0xc   :  { %v62_v34 = vmax.f32 %v54_v26, 0.0  ;;  %v63_v35 = vmax.f32 %v55_v27, 0.0  ;;  %v64_v36 = vmax.f32 %v56_v28, 0.0  ;;  %v65_v37 = vmax.f32 %v57_v29, 0.0 }
   0xd   :  { %v66_v38 = vmax.f32 %v58_v30, 0.0  ;;  %v67_v39 = vmax.f32 %v59_v31, 0.0  ;;  %v68_v40 = vmax.f32 %v60_v32, 0.0  ;;  %v69_v41 = vmax.f32 %v61_v33, 0.0 }
   0xe   :  { %70 = vst [vmem:[%s159_s3] sm:$0xff] %v62_v34  ;;  %71 = vst [vmem:[%s159_s3 + $0x8] sm:$0xff] %v63_v35 }
   0xf   :  { %72 = vst [vmem:[%s159_s3 + $0x10] sm:$0xff] %v64_v36  ;;  %73 = vst [vmem:[%s159_s3 + $0x18] sm:$0xff] %v65_v37 }
  0x10   :  { %74 = vst [vmem:[%s159_s3 + $0x20] sm:$0xff] %v66_v38  ;;  %75 = vst [vmem:[%s159_s3 + $0x28] sm:$0xff] %v67_v39 }
  0x11   :  { %76 = vst [vmem:[%s159_s3 + $0x30] sm:$0xff] %v68_v40  ;;  %77 = vst [vmem:[%s159_s3 + $0x38] sm:$0xff] %v69_v41 }

// kernel: decoder_traversability.24
= control target key start
LH: loop header
LB: loop body
LE: loop exit
PB: predicated region body
PF: predicated region fallthrough
CT: control target
= control target key end

     0   :  { %vm92_vm0 = vcmask 523264   ;;  %s271_s0 = inlined_call_operand.vmem [shape: f32[128,64], index: 0, kind: input, shape index: {}]   ;;  %s272_s1 = inlined_call_operand.vmem [shape: f32[1,64], index: 1, kind: input, shape index: {}]   ;;  %s273_s2 = inlined_call_operand.vmem [shape: f32[1,64], index: 2, kind: input, shape index: {}]   ;;  %s274_s3 = inlined_call_operand.vmem [shape: f32[128,64], index: 3, kind: output, shape index: {}]  }
   0x1   :  { %v14_v0 = vld [vmem:[%s271_s0] sm:$0xff]  ;;  %v15_v4 = vld [vmem:[%s271_s0 + $0x8] sm:$0xff]  ;;  %v16_v5 = vld [vmem:[%s271_s0 + $0x10] sm:$0xff] }
   0x2   :  { %v113_v1 = vld [vmem:[%s272_s1] ss:$0 sm:$0xff]  ;;  %v17_v6 = vld [vmem:[%s271_s0 + $0x18] sm:$0xff]  ;;  %v19_v11 = vld [vmem:[%s271_s0 + $0x28] sm:$0xff] }
   0x3   :  { %v144_v2 = vld [vmem:[%s273_s2] ss:$0 sm:$0xff]  ;;  %v37_v3 = vmul.f32 %v113_v1, %v14_v0  ;;  %v38_v7 = vmul.f32 %v113_v1, %v15_v4  ;;  %v39_v8 = vmul.f32 %v113_v1, %v16_v5  ;;  %v40_v9 = vmul.f32 %v113_v1, %v17_v6  ;;  %v20_v12 = vld [vmem:[%s271_s0 + $0x30] sm:$0xff]  ;;  %v21_v17 = vld [vmem:[%s271_s0 + $0x38] sm:$0xff] }
   0x4   :  { %v18_v10 = vld [vmem:[%s271_s0 + $0x20] sm:$0xff]  ;;  %v42_v15 = vmul.f32 %v113_v1, %v19_v11  ;;  %v43_v16 = vmul.f32 %v113_v1, %v20_v12  ;;  %v44_v21 = vmul.f32 %v113_v1, %v21_v17  ;;  %v23_v27 = vld [vmem:[%s271_s0 + $0x48] sm:$0xff]  ;;  %v24_v28 = vld [vmem:[%s271_s0 + $0x50] sm:$0xff] }
   0x5   :  { %v60_v13 = vadd.f32 %v144_v2, %v37_v3  ;;  %v41_v14 = vmul.f32 %v113_v1, %v18_v10  ;;  %v61_v18 = vadd.f32 %v144_v2, %v38_v7  ;;  %v62_v19 = vadd.f32 %v144_v2, %v39_v8  ;;  %v22_v22 = vld [vmem:[%s271_s0 + $0x40] sm:$0xff]  ;;  %v25_v29 = vld [vmem:[%s271_s0 + $0x58] sm:$0xff]  ;;  %v27_v35 = vld [vmem:[%s271_s0 + $0x68] sm:$0xff] }
   0x6   :  { %v63_v20 = vadd.f32 %v144_v2, %v40_v9  ;;  %v65_v25 = vadd.f32 %v144_v2, %v42_v15  ;;  %v66_v26 = vadd.f32 %v144_v2, %v43_v16  ;;  %v67_v33 = vadd.f32 %v144_v2, %v44_v21  ;;  %v26_v34 = vld [vmem:[%s271_s0 + $0x60] sm:$0xff]  ;;  %v28_v36 = vld [vmem:[%s271_s0 + $0x70] sm:$0xff]  ;;  %v29_v41 = vld [vmem:[%s271_s0 + $0x78] sm:$0xff] }
   0x7   :  { %v76_v23 = vmax.f32 %v60_v13, 0.0  ;;  %v64_v24 = vadd.f32 %v144_v2, %v41_v14  ;;  %v77_v30 = vmax.f32 %v61_v18, 0.0  ;;  %v78_v31 = vmax.f32 %v62_v19, 0.0 }
   0x8   :  { %v79_v32 = vmax.f32 %v63_v20, 0.0  ;;  %v81_v38 = vmax.f32 %v65_v25, 0.0  ;;  %v82_v39 = vmax.f32 %v66_v26, 0.0  ;;  %v45_v40 = vmul.f32 %v113_v1, %v22_v22 }
   0x9   :  { %93 = vst.msk [vmem:[%s274_s3] sm:$0xff] %vm92_vm0, %v76_v23  ;;  %v80_v37 = vmax.f32 %v64_v24, 0.0  ;;  %94 = vst.msk [vmem:[%s274_s3 + $0x8] sm:$0xff] %vm92_vm0, %v77_v30  ;;  %v83_v42 = vmax.f32 %v67_v33, 0.0  ;;  %v46_v43 = vmul.f32 %v113_v1, %v23_v27  ;;  %v47_v44 = vmul.f32 %v113_v1, %v24_v28 }
   0xa   :  { %95 = vst.msk [vmem:[%s274_s3 + $0x10] sm:$0xff] %vm92_vm0, %v78_v31  ;;  %96 = vst.msk [vmem:[%s274_s3 + $0x18] sm:$0xff] %vm92_vm0, %v79_v32  ;;  %v48_v45 = vmul.f32 %v113_v1, %v25_v29  ;;  %v68_v46 = vadd.f32 %v144_v2, %v45_v40  ;;  %v49_v47 = vmul.f32 %v113_v1, %v26_v34 }
   0xb   :  { %97 = vst.msk [vmem:[%s274_s3 + $0x20] sm:$0xff] %vm92_vm0, %v80_v37  ;;  %98 = vst.msk [vmem:[%s274_s3 + $0x28] sm:$0xff] %vm92_vm0, %v81_v38  ;;  %v50_v48 = vmul.f32 %v113_v1, %v27_v35  ;;  %v51_v49 = vmul.f32 %v113_v1, %v28_v36  ;;  %v69_v50 = vadd.f32 %v144_v2, %v46_v43 }
   0xc   :  { %99 = vst.msk [vmem:[%s274_s3 + $0x30] sm:$0xff] %vm92_vm0, %v82_v39  ;;  %100 = vst.msk [vmem:[%s274_s3 + $0x38] sm:$0xff] %vm92_vm0, %v83_v42  ;;  %v70_v51 = vadd.f32 %v144_v2, %v47_v44  ;;  %v71_v52 = vadd.f32 %v144_v2, %v48_v45  ;;  %v52_v53 = vmul.f32 %v113_v1, %v29_v41  ;;  %v84_v54 = vmax.f32 %v68_v46, 0.0 }
   0xd   :  { %v72_v55 = vadd.f32 %v144_v2, %v49_v47  ;;  %v73_v56 = vadd.f32 %v144_v2, %v50_v48  ;;  %v74_v57 = vadd.f32 %v144_v2, %v51_v49  ;;  %v85_v58 = vmax.f32 %v69_v50, 0.0 }
   0xe   :  { %v86_v59 = vmax.f32 %v70_v51, 0.0  ;;  %v87_v60 = vmax.f32 %v71_v52, 0.0  ;;  %v75_v61 = vadd.f32 %v144_v2, %v52_v53  ;;  %101 = vst.msk [vmem:[%s274_s3 + $0x40] sm:$0xff] %vm92_vm0, %v84_v54 }
   0xf   :  { %v88_v62 = vmax.f32 %v72_v55, 0.0  ;;  %v89_v63 = vmax.f32 %v73_v56, 0.0  ;;  %v90_v0 = vmax.f32 %v74_v57, 0.0  ;;  %102 = vst.msk [vmem:[%s274_s3 + $0x48] sm:$0xff] %vm92_vm0, %v85_v58 }
  0x10   :  { %103 = vst.msk [vmem:[%s274_s3 + $0x50] sm:$0xff] %vm92_vm0, %v86_v59  ;;  %104 = vst.msk [vmem:[%s274_s3 + $0x58] sm:$0xff] %vm92_vm0, %v87_v60  ;;  %v91_v1 = vmax.f32 %v75_v61, 0.0 }
  0x11   :  { %105 = vst.msk [vmem:[%s274_s3 + $0x60] sm:$0xff] %vm92_vm0, %v88_v62  ;;  %106 = vst.msk [vmem:[%s274_s3 + $0x68] sm:$0xff] %vm92_vm0, %v89_v63 }
  0x12   :  { %107 = vst.msk [vmem:[%s274_s3 + $0x70] sm:$0xff] %vm92_vm0, %v90_v0  ;;  %108 = vst.msk [vmem:[%s274_s3 + $0x78] sm:$0xff] %vm92_vm0, %v91_v1 }

// kernel: decoder_traversability.21
= control target key start
LH: loop header
LB: loop body
LE: loop exit
PB: predicated region body
PF: predicated region fallthrough
CT: control target
= control target key end

     0   :  { %s2138_s15 = smov 0   ;;  %s2590_s0 = inlined_call_operand.vmem [shape: f32[2,5,5,128], index: 0, kind: input, shape index: {}]   ;;  %s2591_s1 = inlined_call_operand.vmem [shape: bf16[9,128,64], index: 1, kind: input, shape index: {}]   ;;  %s2592_s2 = inlined_call_operand.vmem [shape: f32[2,16,256], index: 2, kind: output, shape index: {0}]   ;;  %s2593_s3 = inlined_call_operand.vmem [shape: f32[1,256], index: 3, kind: output, shape index: {1}]   ;;  %s2594_s4 = inlined_call_operand.vmem [shape: f32[1,256], index: 4, kind: output, shape index: {2}]  }
   0x1 LB: > { %s2144_s16 = sadd.s32 4294967295, %s2105_s15   ;;  %p1539_p0 = scmp.ge.s32.totalorder %s2105_s15, 1  ;;  %s2105_s15 = sphi %s2138_s15, %s15_s15  }
   0x2   : > { %p157_p1 = scmp.lt.s32.totalorder %s2105_s15, 3 }
   0x4   : > { %p158_p2 = pnand %p1539_p0, %p157_p1 }
   0x5   : > { %p183_p3 = scmp.lt.s32.totalorder (!%p158_p2), %s2144_s16, 1  ;;  %s2110_s28 = smov (!%p158_p2), 64  }
   0x6   : > { %161 = sbr.rel (%p158_p2) target bundleno = 516 (0x204), region = 28  ;;  %p1747_p4 = scmp.ne.s32.totalorder (!%p158_p2), %s2144_s16, 0 }
   0xb   : > { %v2027_v0 = vld [vmem:[%s2591_s1 + $0x138] sm:$0xff]   ;;  %v2107_v1 = vmov 0.0   ;;  %v2029_v3 = vld [vmem:[%s2591_s1 + $0x130] sm:$0xff]   ;;  %vm2108_vm0 = vmmov 0   ;;  %s2170_s25 = scalar_select %p183_p3, %s2144_s16, 1  ;;  %v2031_v5 = vld [vmem:[%s2591_s1 + $0x128] sm:$0xff]   ;;  %v211_v10 = vlaneseq }
   0xc   : > { %1832 = vmatprep.subr.bf16.mxu0 %v2107_v1  ;;  %1852 = vmatprep.subr.bf16.mxu1 %v2107_v1  ;;  %v2028_v2 = vld [vmem:[%s2591_s1 + $0xf8] sm:$0xff]   ;;  %v2030_v4 = vld [vmem:[%s2591_s1 + $0xf0] sm:$0xff]   ;;  %v2032_v6 = vld [vmem:[%s2591_s1 + $0xe8] sm:$0xff]   ;;  %v2109_v17 = vmov 1983009808   ;;  %vm1371_vm8 = vcmask 523264  }
   0xd   : > { %1833 = vmatpush3.bf16.msra.mxu0 %v2027_v0  ;;  %1848 = vmatprep.mubr.msk.bf16.mxu0 %vm2108_vm0, %v2107_v1  ;;  %s2012_s30 = smul.u32 40, %s2170_s25  ;;  %v2033_v7 = vld [vmem:[%s2591_s1 + $0x120] sm:$0xff]   ;;  %v2035_v9 = vld [vmem:[%s2591_s1 + $0x118] sm:$0xff]   ;;  %v2037_v16 = vld [vmem:[%s2591_s1 + $0x110] sm:$0xff]   ;;  %v209_v18 = vunpack.c.l.s4 %v2109_v17  ;;  %v2210_v19 = vshrl.u32 %v211_v10, 7  ;;  %s1750_s29 = sshll.u32 %s2170_s25, 5 }
   0xe   : > { %1853 = vmatpush3.bf16.msra.mxu1 %v2028_v2  ;;  %1834 = vmatprep.subr.bf16.mxu0 %v2107_v1  ;;  %v2034_v8 = vld [vmem:[%s2591_s1 + $0xe0] sm:$0xff]   ;;  %v2036_v11 = vld [vmem:[%s2591_s1 + $0xd8] sm:$0xff]   ;;  %v2038_v20 = vld [vmem:[%s2591_s1 + $0xd0] sm:$0xff]   ;;  %vm240_vm1 = vsmask.f32 1280  ;;  %s192_s6 = scalar_lea.vmem %s2592_s2, %s1750_s29 }
   0xf   : > { %1854 = vmatprep.subr.bf16.mxu1 %v2107_v1  ;;  %1868 = vmatprep.mubr.msk.bf16.mxu1 %vm2108_vm0, %v2107_v1  ;;  %s187_s11 = scalar_lea.vmem %s2590_s0, %s2012_s30  ;;  %v210_v25 = vunpack.c.0.s8 %v209_v18  ;;  %v2039_v27 = vld [vmem:[%s2591_s1 + $0x108] sm:$0xff]   ;;  %vm241_vm2 = vsmask.f32 3336  ;;  %vm243_vm3 = vsmask.f32 5392  ;;  %v2041_v33 = vld [vmem:[%s2591_s1 + $0x100] sm:$0xff]  }
  0x10   : > { %v194_v12 = vld [vmem:[%s187_s11] sm:$0x1f]  ;;  %v2200_v13 = vld [vmem:[%s187_s11 + $0x8] sm:$0x1f]  ;;  %v2202_v14 = vld [vmem:[%s187_s11 + $0x10] sm:$0x1f] }
  0x11   : > { %1835 = vmatpush3.bf16.msra.mxu0 %v2029_v3  ;;  %v2204_v15 = vld [vmem:[%s187_s11 + $0x18] sm:$0x1f]  ;;  %v199_v21 = vpack.c.bf16 %v194_v12, %v194_v12  ;;  %v200_v22 = vpack.c.bf16 %v2200_v13, %v2200_v13  ;;  %v201_v23 = vpack.c.bf16 %v2202_v14, %v2202_v14  ;;  %v2223_v26 = vld [vmem:[%s187_s11 + $0x20] sm:$0x1f]  ;;  %v2040_v28 = vld [vmem:[%s2591_s1 + $0xc8] sm:$0xff]   ;;  %v1559_v29 = vpack.c.bf16 %v2200_v13, %v194_v12 }
  0x12   : > { %1855 = vmatpush3.bf16.msra.mxu1 %v2030_v4  ;;  %1836 = vmatprep.subr.bf16.mxu0 %v2107_v1  ;;  %v202_v24 = vpack.c.bf16 %v2204_v15, %v2204_v15  ;;  %v1560_v30 = vpack.c.bf16 %v2204_v15, %v2202_v14  ;;  %v203_v31 = vpack.c.bf16 %v2223_v26, %v2223_v26  ;;  %vm245_vm4 = vsmask.f32 7448  ;;  %vm242_vm5 = vmor %vm240_vm1, %vm241_vm2  ;;  %v2042_v45 = vld [vmem:[%s2591_s1 + $0xc0] sm:$0xff]   ;;  %v2043_v50 = vld [vmem:[%s2591_s1 + $0x178] sm:$0xff]  }
  0x13   : > { %1856 = vmatprep.subr.bf16.mxu1 %v2107_v1  ;;  %v2237_v32 = vsub.s32 %v210_v25, %v2210_v19  ;;  %vm2266_vm6 = vmor %vm242_vm5, %vm243_vm3  ;;  %v2046_v55 = vld [vmem:[%s2591_s1 + $0x70] sm:$0xff]  }
  0x14   : > { %vm2275_vm7 = vmor %vm2266_vm6, %vm245_vm4 }
  0x15   : > { %1837 = vmatpush3.bf16.msra.mxu0 %v2031_v5  ;;  %v214_v34 = vrot.slane %v199_v21, %v2237_v32  ;;  %v222_v35 = vrot.slane %v200_v22, %v2237_v32  ;;  %v230_v36 = vrot.slane %v201_v23, %v2237_v32  ;;  %v238_v37 = vrot.slane %v202_v24, %v2237_v32  ;;  %v2045_v22 = vld [vmem:[%s2591_s1 + $0x170] sm:$0xff]   ;;  %v2056_v5 = vld [vmem:[%s2591_s1 + $0x48] sm:$0xff]  }
  0x16   : > { %1857 = vmatpush3.bf16.msra.mxu1 %v2032_v6  ;;  %1838 = vmatprep.subr.bf16.mxu0 %v2107_v1  ;;  %v351_v38 = vrot.slane %v1559_v29, %v2237_v32  ;;  %v358_v39 = vrot.slane %v1560_v30, %v2237_v32  ;;  %v2251_v40 = vrot.slane %v203_v31, %v2237_v32 }
  0x17   : > { %1858 = vmatprep.subr.bf16.mxu1 %v2107_v1  ;;  %v215_v41 = vcombine.high %v214_v34, %v214_v34  ;;  %v223_v42 = vcombine.high %v222_v35, %v222_v35  ;;  %v231_v43 = vcombine.high %v230_v36, %v230_v36  ;;  %v239_v44 = vcombine.high %v238_v37, %v238_v37 }
  0x18   : > { %v2259_v46 = vcombine.low %v351_v38, %v358_v39  ;;  %v248_v47 = vshrl.u32 %v214_v34, 16  ;;  %v251_v48 = vshll.u32 %v214_v34, 16  ;;  %v262_v49 = vshrl.u32 %v222_v35, 16 }
  0x19   : > { %1839 = vmatpush3.bf16.msra.mxu0 %v2033_v7  ;;  %v257_v51 = vshll.u32 %v215_v41, 16  ;;  %v265_v52 = vshll.u32 %v222_v35, 16  ;;  %v271_v53 = vshll.u32 %v223_v42, 16  ;;  %v276_v54 = vshrl.u32 %v230_v36, 16 }
  0x1a   : > { %1859 = vmatpush3.bf16.msra.mxu1 %v2034_v8  ;;  %1840 = vmatprep.subr.bf16.mxu0 %v2107_v1  ;;  %v250_v56 = vrot.slane %v248_v47, 6  ;;  %v253_v57 = vrot.slane %v251_v48, 7  ;;  %v264_v58 = vrot.slane %v262_v49, 6  ;;  %v279_v59 = vshll.u32 %v230_v36, 16  ;;  %v2047_v36 = vld [vmem:[%s2591_s1 + $0x168] sm:$0xff]   ;;  %v2049_v47 = vld [vmem:[%s2591_s1 + $0x160] sm:$0xff]  }
  0x1b   : > { %1860 = vmatprep.subr.bf16.mxu1 %v2107_v1  ;;  %v259_v60 = vrot.slane %v257_v51, 7  ;;  %v267_v61 = vrot.slane %v265_v52, 7  ;;  %v273_v62 = vrot.slane %v271_v53, 7  ;;  %v278_v63 = vrot.slane %v276_v54, 6  ;;  %v2044_v51 = vld [vmem:[%s2591_s1 + $0x78] sm:$0xff]  }
  0x1c   : > { %v254_v0 = vor.u32 %v253_v57, %v250_v56  ;;  %v281_v2 = vrot.slane %v279_v59, 7  ;;  %v285_v3 = vshll.u32 %v231_v43, 16  ;;  %v290_v4 = vshrl.u32 %v238_v37, 16  ;;  %v2051_v53 = vld [vmem:[%s2591_s1 + $0x158] sm:$0xff]   ;;  %v2053_v57 = vld [vmem:[%s2591_s1 + $0x150] sm:$0xff]   ;;  %v2055_v59 = vld [vmem:[%s2591_s1 + $0x148] sm:$0xff]  }
  0x1d   : > { %1841 = vmatpush3.bf16.msra.mxu0 %v2035_v9  ;;  %v268_v6 = vor.u32 %v267_v61, %v264_v58  ;;  %v293_v7 = vshll.u32 %v238_v37, 16  ;;  %v299_v8 = vshll.u32 %v239_v44, 16  ;;  %v311_v9 = vcombine.high %v2251_v40, %v2251_v40  ;;  %v2048_v58 = vld [vmem:[%s2591_s1 + $0x68] sm:$0xff]   ;;  %v2057_v61 = vld [vmem:[%s2591_s1 + $0x140] sm:$0xff]  }
  0x1e   : > { %1861 = vmatpush3.bf16.msra.mxu1 %v2036_v11  ;;  %1842 = vmatprep.subr.bf16.mxu0 %v2107_v1  ;;  %v255_v11 = vrot.slane %v254_v0, 2  ;;  %v282_v12 = vor.u32 %v281_v2, %v278_v63  ;;  %v292_v17 = vrot.slane %v290_v4, 6  ;;  %v313_v21 = vshrl.u32 %v2251_v40, 16  ;;  %v2059_v63 = vld [vmem:[%s2591_s1 + $0x1f8] sm:$0xff]   ;;  %v2054_v0 = vld [vmem:[%s2591_s1 + $0x50] sm:$0xff]  }
  0x1f   : > { %1862 = vmatprep.subr.bf16.mxu1 %v2107_v1  ;;  %v269_v18 = vrot.slane %v268_v6, 2  ;;  %v316_v25 = vshll.u32 %v2251_v40, 16  ;;  %v301_v30 = vrot.slane %v299_v8, 7  ;;  %v2061_v2 = vld [vmem:[%s2591_s1 + $0x1f0] sm:$0xff]   ;;  %v1650_v4 = vpack.c.bf16 %v2223_v26, %v2204_v15  ;;  %v2063_v6 = vld [vmem:[%s2591_s1 + $0x1e8] sm:$0xff]   ;;  %v2065_v15 = vld [vmem:[%s2591_s1 + $0x1e0] sm:$0xff]  }
  0x20   : > { %v260_v23 = vsel %vm2275_vm7, %v255_v11, %v259_v60  ;;  %v283_v24 = vrot.slane %v282_v12, 2  ;;  %v315_v31 = vrot.slane %v313_v21, 6  ;;  %v2050_v60 = vld [vmem:[%s2591_s1 + $0x60] sm:$0xff]   ;;  %v2067_v8 = vld [vmem:[%s2591_s1 + $0x1d8] sm:$0xff]   ;;  %v2069_v11 = vld [vmem:[%s2591_s1 + $0x1d0] sm:$0xff]  }
  0x21   : > { %1843 = vmatpush3.bf16.msra.mxu0 %v2037_v16  ;;  %v287_v16 = vrot.slane %v285_v3, 7  ;;  %v318_v34 = vrot.slane %v316_v25, 7  ;;  %v1649_v3 = vpack.c.bf16 %v2202_v14, %v2200_v13  ;;  %v729_v13 = vrot.slane %v1650_v4, %v2237_v32  ;;  %v2058_v14 = vld [vmem:[%s2591_s1 + $0x40] sm:$0xff]   ;;  %v2064_v12 = vld [vmem:[%s2591_s1 + $0x1a8] sm:$0xff]   ;;  %v2075_v21 = vld [vmem:[%s2591_s1 + $0x238] sm:$0xff]  }
  0x22   : > { %1863 = vmatpush3.bf16.msra.mxu1 %v2038_v20  ;;  %1844 = vmatprep.subr.bf16.mxu0 %v2107_v1  ;;  %v295_v20 = vrot.slane %v293_v7, 7  ;;  %v2079_v25 = vld [vmem:[%s2591_s1 + $0x228] sm:$0xff]  }
  0x23   : > { %1864 = vmatprep.subr.bf16.mxu1 %v2107_v1  ;;  %v319_v40 = vor.u32 %v318_v34, %v315_v31  ;;  %v722_v7 = vrot.slane %v1649_v3, %v2237_v32  ;;  %v2078_v31 = vld [vmem:[%s2591_s1 + $0xb0] sm:$0xff]   ;;  %v2080_v34 = vld [vmem:[%s2591_s1 + $0xa8] sm:$0xff]  }
  0x24   : > { %v296_v29 = vor.u32 %v295_v20, %v292_v17  ;;  %v2066_v17 = vld [vmem:[%s2591_s1 + $0x1a0] sm:$0xff]   ;;  %v2068_v20 = vld [vmem:[%s2591_s1 + $0x198] sm:$0xff]  }
  0x25   : > { %1845 = vmatpush3.bf16.msra.mxu0 %v2039_v27  ;;  %v322_v27 = vshll.u32 %v311_v9, 16  ;;  %v320_v43 = vrot.slane %v319_v40, 2  ;;  %v2394_v26 = vcombine.low %v722_v7, %v729_v13  ;;  %v2062_v9 = vld [vmem:[%s2591_s1 + $0x1b0] sm:$0xff]  }
  0x26   : > { %1865 = vmatpush3.bf16.msra.mxu1 %v2040_v28  ;;  %1846 = vmatprep.subr.bf16.mxu0 %v2107_v1  ;;  %v274_v28 = vsel %vm2275_vm7, %v269_v18, %v273_v62  ;;  %v297_v37 = vrot.slane %v296_v29, 2  ;;  %v2052_v62 = vld [vmem:[%s2591_s1 + $0x58] sm:$0xff]   ;;  %v2073_v18 = vld [vmem:[%s2591_s1 + $0x1c0] sm:$0xff]   ;;  %v2086_v40 = vld [vmem:[%s2591_s1 + $0x90] sm:$0xff]  }
  0x27   : > { %1866 = vmatprep.subr.bf16.mxu1 %v2107_v1  ;;  %v484_v35 = vcombine.low %v260_v23, %v274_v28  ;;  %v324_v38 = vrot.slane %v322_v27, 7  ;;  %v2077_v23 = vld [vmem:[%s2591_s1 + $0x230] sm:$0xff]   ;;  %v2074_v27 = vld [vmem:[%s2591_s1 + $0x180] sm:$0xff]   ;;  %v2076_v29 = vld [vmem:[%s2591_s1 + $0xb8] sm:$0xff]  }
  0x28   : > { %v302_v41 = vsel %vm2275_vm7, %v297_v37, %v301_v30  ;;  %v2083_v30 = vld [vmem:[%s2591_s1 + $0x218] sm:$0xff]   ;;  %v2089_v37 = vld [vmem:[%s2591_s1 + $0x200] sm:$0xff]  }
  0x29   : > { %1847 = vmatpush3.bf16.msra.mxu0 %v2041_v33  ;;  %v288_v33 = vsel %vm2275_vm7, %v283_v24, %v287_v16  ;;  %v325_v48 = vsel %vm2275_vm7, %v320_v43, %v324_v38  ;;  %v2071_v16 = vld [vmem:[%s2591_s1 + $0x1c8] sm:$0xff]   ;;  %v2084_v38 = vld [vmem:[%s2591_s1 + $0x98] sm:$0xff]  }
  0x2a   : > { %1867 = vmatpush3.bf16.msra.mxu1 %v2042_v45  ;;  %1872 = vmatprep.subr.bf16.mxu0 %v2107_v1  ;;  %v1246_v39 = vcombine.low %v274_v28, %v288_v33  ;;  %v485_v44 = vcombine.low %v288_v33, %v302_v41  ;;  %v492_v45 = vrot.slane %v484_v35, %v2237_v32  ;;  %v2072_v24 = vld [vmem:[%s2591_s1 + $0x188] sm:$0xff]   ;;  %v2081_v28 = vld [vmem:[%s2591_s1 + $0x220] sm:$0xff]   ;;  %v2085_v33 = vld [vmem:[%s2591_s1 + $0x210] sm:$0xff]  }
  0x2b   : > { %1892 = vmatprep.subr.bf16.mxu1 %v2107_v1  ;;  %v2087_v35 = vld [vmem:[%s2591_s1 + $0x208] sm:$0xff]  }
  0x2c   : > { %1849 = vmatmul.mubr.bf16.vlgmr.msra.gmra.mxu0 %v2259_v46  ;;  %v2303_v42 = vrot.slane %v1246_v39, %v2237_v32  ;;  %v499_v49 = vrot.slane %v485_v44, %v2237_v32  ;;  %v2091_v39 = vld [vmem:[%s2591_s1 + $0x38] sm:$0xff]   ;;  %v2088_v43 = vld [vmem:[%s2591_s1 + $0x88] sm:$0xff]   ;;  %v2090_v44 = vld [vmem:[%s2591_s1 + $0x80] sm:$0xff]  }
  0x2d   : > { %1873 = vmatpush3.bf16.msra.mxu0 %v2043_v50  ;;  %1888 = vmatprep.mubr.msk.bf16.mxu0 %vm2108_vm0, %v2107_v1  ;;  %v1247_v50 = vcombine.low %v302_v41, %v325_v48  ;;  %v2092_v41 = vld [vmem:[%s2591_s1 + $0x30] sm:$0xff]  }
  0x2e   : > { %1874 = vmatprep.subr.bf16.mxu0 %v2107_v1  ;;  %v2316_v52 = vcombine.low %v492_v45, %v499_v49  ;;  %v2094_v45 = vld [vmem:[%s2591_s1 + $0x20] sm:$0xff]   ;;  %v2096_v48 = vld [vmem:[%s2591_s1 + $0x10] sm:$0xff]   ;;  %v2097_v49 = vld [vmem:[%s2591_s1 + $0x8] sm:$0xff]  }
  0x2f   : > { %v2322_v54 = vrot.slane %v1247_v50, %v2237_v32  ;;  %v2060_v32 = vld [vmem:[%s2591_s1 + $0x1b8] sm:$0xff]   ;;  %v2098_v50 = vld [vmem:[%s2591_s1] sm:$0xff]  }
  0x30   : > { %1869 = vmatmul.mubr.bf16.vlgmr.msra.gmra.mxu1 %v2316_v52 }
  0x31   : > { %1875 = vmatpush3.bf16.msra.mxu0 %v2045_v22  ;;  %1893 = vmatpush3.bf16.msra.mxu1 %v2044_v51  ;;  %v1262_v56 = vcombine.low %v2303_v42, %v2322_v54  ;;  %v2070_v22 = vld [vmem:[%s2591_s1 + $0x190] sm:$0xff]  }
  0x32   : > { %1876 = vmatprep.subr.bf16.mxu0 %v2107_v1  ;;  %1908 = vmatprep.mubr.msk.bf16.mxu1 %vm2108_vm0, %v2107_v1 }
  0x33   : > { %1894 = vmatprep.subr.bf16.mxu1 %v2107_v1 }
  0x35   : > { %1877 = vmatpush3.bf16.msra.mxu0 %v2047_v36  ;;  %1895 = vmatpush3.bf16.msra.mxu1 %v2046_v55  ;;  %v2082_v36 = vld [vmem:[%s2591_s1 + $0xa0] sm:$0xff]  }
  0x36   : > { %1878 = vmatprep.subr.bf16.mxu0 %v2107_v1  ;;  %1896 = vmatprep.subr.bf16.mxu1 %v2107_v1 }
  0x39   : > { %1879 = vmatpush3.bf16.msra.mxu0 %v2049_v47  ;;  %1897 = vmatpush3.bf16.msra.mxu1 %v2048_v58  ;;  %v2095_v47 = vld [vmem:[%s2591_s1 + $0x18] sm:$0xff]  }
  0x3a   : > { %1880 = vmatprep.subr.bf16.mxu0 %v2107_v1  ;;  %1898 = vmatprep.subr.bf16.mxu1 %v2107_v1 }
  0x3d   : > { %1881 = vmatpush3.bf16.msra.mxu0 %v2051_v53  ;;  %1899 = vmatpush3.bf16.msra.mxu1 %v2050_v60 }
  0x3e   : > { %1882 = vmatprep.subr.bf16.mxu0 %v2107_v1  ;;  %1900 = vmatprep.subr.bf16.mxu1 %v2107_v1 }
  0x41   : > { %1883 = vmatpush3.bf16.msra.mxu0 %v2053_v57  ;;  %1901 = vmatpush3.bf16.msra.mxu1 %v2052_v62 }
  0x42   : > { %1884 = vmatprep.subr.bf16.mxu0 %v2107_v1  ;;  %1902 = vmatprep.subr.bf16.mxu1 %v2107_v1 }
  0x45   : > { %1885 = vmatpush3.bf16.msra.mxu0 %v2055_v59  ;;  %1903 = vmatpush3.bf16.msra.mxu1 %v2054_v0 }
  0x46   : > { %1886 = vmatprep.subr.bf16.mxu0 %v2107_v1  ;;  %1904 = vmatprep.subr.bf16.mxu1 %v2107_v1 }
  0x49   : > { %1887 = vmatpush3.bf16.msra.mxu0 %v2057_v61  ;;  %1905 = vmatpush3.bf16.msra.mxu1 %v2056_v5 }
  0x4a   : > { %1912 = vmatprep.subr.bf16.mxu0 %v2107_v1  ;;  %1906 = vmatprep.subr.bf16.mxu1 %v2107_v1 }
  0x4c   : > { %1889 = vmatmul.mubr.bf16.vlgmr.msra.gmra.mxu0 %v2259_v46 }
  0x4d   : > { %1913 = vmatpush3.bf16.msra.mxu0 %v2059_v63  ;;  %1928 = vmatprep.mubr.msk.bf16.mxu0 %vm2108_vm0, %v2107_v1 }
  0x4e   : > { %1914 = vmatprep.subr.bf16.mxu0 %v2107_v1  ;;  %1907 = vmatpush3.bf16.msra.mxu1 %v2058_v14 }
  0x4f   : > { %1932 = vmatprep.subr.bf16.mxu1 %v2107_v1 }
  0x51   : > { %1915 = vmatpush3.bf16.msra.mxu0 %v2061_v2  ;;  %1909 = vmatmul.mubr.bf16.vlgmr.msra.gmra.mxu1 %v2394_v26 }
  0x52   : > { %1916 = vmatprep.subr.bf16.mxu0 %v2107_v1  ;;  %1933 = vmatpush3.bf16.msra.mxu1 %v2060_v32 }
  0x53   : > { %1948 = vmatprep.mubr.msk.bf16.mxu1 %vm2108_vm0, %v2107_v1  ;;  %1934 = vmatprep.subr.bf16.mxu1 %v2107_v1 }
  0x55   : > { %1917 = vmatpush3.bf16.msra.mxu0 %v2063_v6 }
  0x56   : > { %1918 = vmatprep.subr.bf16.mxu0 %v2107_v1  ;;  %1935 = vmatpush3.bf16.msra.mxu1 %v2062_v9 }
  0x57   : > { %1936 = vmatprep.subr.bf16.mxu1 %v2107_v1 }
  0x59   : > { %1919 = vmatpush3.bf16.msra.mxu0 %v2065_v15 }
  0x5a   : > { %1920 = vmatprep.subr.bf16.mxu0 %v2107_v1  ;;  %1937 = vmatpush3.bf16.msra.mxu1 %v2064_v12 }
  0x5b   : > { %1938 = vmatprep.subr.bf16.mxu1 %v2107_v1 }
  0x5d   : > { %1921 = vmatpush3.bf16.msra.mxu0 %v2067_v8 }
  0x5e   : > { %1922 = vmatprep.subr.bf16.mxu0 %v2107_v1  ;;  %1939 = vmatpush3.bf16.msra.mxu1 %v2066_v17 }
  0x5f   : > { %1940 = vmatprep.subr.bf16.mxu1 %v2107_v1 }
  0x61   : > { %1923 = vmatpush3.bf16.msra.mxu0 %v2069_v11 }
  0x62   : > { %1924 = vmatprep.subr.bf16.mxu0 %v2107_v1  ;;  %1941 = vmatpush3.bf16.msra.mxu1 %v2068_v20 }
  0x63   : > { %1942 = vmatprep.subr.bf16.mxu1 %v2107_v1 }
  0x65   : > { %1925 = vmatpush3.bf16.msra.mxu0 %v2071_v16 }
  0x66   : > { %1926 = vmatprep.subr.bf16.mxu0 %v2107_v1  ;;  %1943 = vmatpush3.bf16.msra.mxu1 %v2070_v22 }
  0x67   : > { %1944 = vmatprep.subr.bf16.mxu1 %v2107_v1 }
  0x69   : > { %1927 = vmatpush3.bf16.msra.mxu0 %v2073_v18 }
  0x6a   : > { %1952 = vmatprep.subr.bf16.mxu0 %v2107_v1  ;;  %1945 = vmatpush3.bf16.msra.mxu1 %v2072_v24 }
  0x6b   : > { %1946 = vmatprep.subr.bf16.mxu1 %v2107_v1 }
  0x6c   : > { %1929 = vmatmul.mubr.bf16.vlgmr.msra.gmra.mxu0 %v2259_v46 }
  0x6d   : > { %1953 = vmatpush3.bf16.msra.mxu0 %v2075_v21  ;;  %1968 = vmatprep.mubr.msk.bf16.mxu0 %vm2108_vm0, %v2107_v1 }
  0x6e   : > { %1954 = vmatprep.subr.bf16.mxu0 %v2107_v1  ;;  %1947 = vmatpush3.bf16.msra.mxu1 %v2074_v27 }
  0x6f   : > { %1972 = vmatprep.subr.bf16.mxu1 %v2107_v1 }
  0x71   : > { %1955 = vmatpush3.bf16.msra.mxu0 %v2077_v23  ;;  %1949 = vmatmul.mubr.bf16.vlgmr.msra.gmra.mxu1 %v2316_v52 }
  0x72   : > { %1956 = vmatprep.subr.bf16.mxu0 %v2107_v1  ;;  %1973 = vmatpush3.bf16.msra.mxu1 %v2076_v29 }
  0x73   : > { %1988 = vmatprep.mubr.msk.bf16.mxu1 %vm2108_vm0, %v2107_v1  ;;  %1974 = vmatprep.subr.bf16.mxu1 %v2107_v1 }
  0x75   : > { %1957 = vmatpush3.bf16.msra.mxu0 %v2079_v25 }
  0x76   : > { %1958 = vmatprep.subr.bf16.mxu0 %v2107_v1  ;;  %1975 = vmatpush3.bf16.msra.mxu1 %v2078_v31 }
  0x77   : > { %1976 = vmatprep.subr.bf16.mxu1 %v2107_v1 }
  0x79   : > { %1959 = vmatpush3.bf16.msra.mxu0 %v2081_v28 }
  0x7a   : > { %1960 = vmatprep.subr.bf16.mxu0 %v2107_v1  ;;  %1977 = vmatpush3.bf16.msra.mxu1 %v2080_v34 }
  0x7b   : > { %1978 = vmatprep.subr.bf16.mxu1 %v2107_v1 }
  0x7d   : > { %1961 = vmatpush3.bf16.msra.mxu0 %v2083_v30 }
  0x7e   : > { %1962 = vmatprep.subr.bf16.mxu0 %v2107_v1  ;;  %1979 = vmatpush3.bf16.msra.mxu1 %v2082_v36 }
  0x7f   : > { %1980 = vmatprep.subr.bf16.mxu1 %v2107_v1 }
  0x81   : > { %1963 = vmatpush3.bf16.msra.mxu0 %v2085_v33 }
  0x82   : > { %1964 = vmatprep.subr.bf16.mxu0 %v2107_v1  ;;  %1981 = vmatpush3.bf16.msra.mxu1 %v2084_v38 }
  0x83   : > { %1982 = vmatprep.subr.bf16.mxu1 %v2107_v1 }
  0x85   : > { %1965 = vmatpush3.bf16.msra.mxu0 %v2087_v35 }
  0x86   : > { %1966 = vmatprep.subr.bf16.mxu0 %v2107_v1  ;;  %1983 = vmatpush3.bf16.msra.mxu1 %v2086_v40 }
  0x87   : > { %1984 = vmatprep.subr.bf16.mxu1 %v2107_v1 }
  0x89   : > { %1967 = vmatpush3.bf16.msra.mxu0 %v2089_v37 }
  0x8a   : > { %1992 = vmatprep.subr.bf16.mxu0 %v2107_v1  ;;  %1985 = vmatpush3.bf16.msra.mxu1 %v2088_v43 }
  0x8b   : > { %1986 = vmatprep.subr.bf16.mxu1 %v2107_v1 }
  0x8c   : > { %1969 = vmatmul.mubr.bf16.vlgmr.msra.gmra.mxu0 %v2259_v46  ;;  %v2093_v46 = vld [vmem:[%s2591_s1 + $0x28] sm:$0xff]  }
  0x8d   : > { %1993 = vmatpush3.bf16.msra.mxu0 %v2091_v39  ;;  %2008 = vmatprep.mubr.msk.bf16.mxu0 %vm2108_vm0, %v2107_v1 }
  0x8e   : > { %1994 = vmatprep.subr.bf16.mxu0 %v2107_v1  ;;  %1987 = vmatpush3.bf16.msra.mxu1 %v2090_v44 }
  0x91   : > { %1995 = vmatpush3.bf16.msra.mxu0 %v2092_v41  ;;  %1989 = vmatmul.mubr.bf16.vlgmr.msra.gmra.mxu1 %v2394_v26 }
  0x92   : > { %1996 = vmatprep.subr.bf16.mxu0 %v2107_v1 }
  0x95   : > { %1997 = vmatpush3.bf16.msra.mxu0 %v2093_v46 }
  0x96   : > { %1998 = vmatprep.subr.bf16.mxu0 %v2107_v1 }
  0x99   : > { %1999 = vmatpush3.bf16.msra.mxu0 %v2094_v45 }
  0x9a   : > { %2000 = vmatprep.subr.bf16.mxu0 %v2107_v1 }
  0x9d   : > { %2001 = vmatpush3.bf16.msra.mxu0 %v2095_v47 }
  0x9e   : > { %2002 = vmatprep.subr.bf16.mxu0 %v2107_v1 }
  0xa1   : > { %2003 = vmatpush3.bf16.msra.mxu0 %v2096_v48 }
  0xa2   : > { %2004 = vmatprep.subr.bf16.mxu0 %v2107_v1 }
  0xa5   : > { %2005 = vmatpush3.bf16.msra.mxu0 %v2097_v49 }
  0xa6   : > { %2006 = vmatprep.subr.bf16.mxu0 %v2107_v1 }
  0xa9   : > { %2007 = vmatpush3.bf16.msra.mxu0 %v2098_v50 }
  0xac   : > { %2009 = vmatmul.mubr.bf16.vlgmr.msra.gmra.mxu0 %v1262_v56 }
  0xec   : > { %v443_v51 = vpop.f32.mrf.mxu0 }
  0xee   : > { %v1850_v52 = vpop.f32.mrf.mxu0 }
  0xf0   : > { %v446_v53 = vpop.f32.mrf.mxu0  ;;  %v584_v57 = vpop.f32.mrf.mxu1 }
  0xf2   : > { %v1851_v55 = vpop.f32.mrf.mxu0  ;;  %v1870_v58 = vpop.f32.mrf.mxu1 }
  0xf4   : > { %v587_v59 = vpop.f32.mrf.mxu1 }
  0xf6   : > { %v1871_v60 = vpop.f32.mrf.mxu1 }
 0x10c   : > { %v673_v61 = vpop.f32.mrf.mxu0 }
 0x10d   : > { %v674_v62 = vadd.f32 %v673_v61, %v584_v57 }
 0x10e   : > { %v1890_v63 = vpop.f32.mrf.mxu0 }
 0x10f   : > { %1357 = vrot.lane.b32.xlu0 %v674_v62, %s2110_s28 }
 0x110   : > { %v676_v1 = vpop.f32.mrf.mxu0 }
 0x111   : > { %v677_v0 = vadd.f32 %v676_v1, %v587_v59  ;;  %v814_v42 = vpop.f32.mrf.mxu1 }
 0x112   : > { %v1891_v2 = vpop.f32.mrf.mxu0 }
 0x113   : > { %1359 = vrot.lane.b32.xlu0 %v677_v0, %s2110_s28  ;;  %v1910_v54 = vpop.f32.mrf.mxu1 }
 0x115   : > { %v817_v56 = vpop.f32.mrf.mxu1 }
 0x117   : > { %v1911_v3 = vpop.f32.mrf.mxu1 }
 0x12c   : > { %v903_v4 = vpop.f32.mrf.mxu0 }
 0x12d   : > { %v904_v5 = vadd.f32 %v903_v4, %v814_v42 }
 0x12e   : > { %v1930_v6 = vpop.f32.mrf.mxu0 }
 0x130   : > { %v906_v7 = vpop.f32.mrf.mxu0 }
 0x131   : > { %v907_v13 = vadd.f32 %v906_v7, %v817_v56  ;;  %v1026_v15 = vpop.f32.mrf.mxu1 }
 0x132   : > { %v1931_v14 = vpop.f32.mrf.mxu0 }
 0x133   : > { %v1950_v26 = vpop.f32.mrf.mxu1 }
 0x135   : > { %v1029_v32 = vpop.f32.mrf.mxu1 }
 0x137   : > { %v1951_v8 = vpop.f32.mrf.mxu1 }
 0x14c   : > { %v1115_v9 = vpop.f32.mrf.mxu0 }
 0x14d   : > { %v1116_v22 = vadd.f32 %v1115_v9, %v1026_v15 }
 0x14e   : > { %v1970_v11 = vpop.f32.mrf.mxu0 }
 0x150   : > { %v1118_v12 = vpop.f32.mrf.mxu0 }
 0x151   : > { %v1221_v17 = vpop.f32.mrf.mxu1  ;;  %v1119_v24 = vadd.f32 %v1118_v12, %v1029_v32 }
 0x152   : > { %v1971_v16 = vpop.f32.mrf.mxu0  ;;  %v1228_v23 = vadd.f32 %v1221_v17, %v1116_v22 }
 0x153   : > { %v1990_v18 = vpop.f32.mrf.mxu1 }
 0x155   : > { %v1224_v20 = vpop.f32.mrf.mxu1 }
 0x156   : > { %v1229_v29 = vadd.f32 %v1224_v20, %v1119_v24 }
 0x157   : > { %v1991_v21 = vpop.f32.mrf.mxu1 }
 0x16c   : > { %v1346_v25 = vpop.f32.mrf.mxu0 }
 0x16d   : > { %v1353_v27 = vadd.f32 %v1346_v25, %v1228_v23 }
 0x16e   : > { %v2010_v28 = vpop.f32.mrf.mxu0 }
 0x16f   : > { %1365 = vrot.lane.b32.xlu1 %v1353_v27, %s2110_s28 }
 0x170   : > { %v1349_v30 = vpop.f32.mrf.mxu0 }
 0x171   : > { %v1354_v31 = vadd.f32 %v1349_v30, %v1229_v29 }
 0x172   : > { %v2011_v33 = vpop.f32.mrf.mxu0 }
 0x173   : > { %1367 = vrot.lane.b32.xlu1 %v1354_v31, %s2110_s28 }
 0x181   : > { %v1358_v34 = vpop.permute.xlu0 %1357 }
 0x182   : > { %v1372_v35 = vsel %vm1371_vm8, %v443_v51, %v1358_v34 }
 0x183   : > { %1376 = vst [vmem:[%s192_s6] sm:$0xff] %v1372_v35 }
 0x185   : > { %v1360_v36 = vpop.permute.xlu0 %1359 }
 0x186   : > { %v1373_v37 = vsel %vm1371_vm8, %v446_v53, %v1360_v36 }
 0x187   : > { %1378 = vst [vmem:[%s192_s6 + $0x10] sm:$0xff] %v1373_v37 }
 0x1e1   : > { %v1366_v38 = vpop.permute.xlu1 %1365 }
 0x1e2   : > { %v1374_v39 = vsel %vm1371_vm8, %v904_v5, %v1366_v38 }
 0x1e3   : > { %1377 = vst [vmem:[%s192_s6 + $0x8] sm:$0xff] %v1374_v39  ;;  %1383 = sbr.rel (%p1747_p4) target bundleno = 490 (0x1ea), region = 32 }
 0x1e5   : > { %v1368_v40 = vpop.permute.xlu1 %1367 }
 0x1e6   : > { %v1375_v41 = vsel %vm1371_vm8, %v907_v13, %v1368_v40 }
 0x1e7   : > { %1379 = vst [vmem:[%s192_s6 + $0x18] sm:$0xff] %v1375_v41 }
 0x1e8   : > { %vm1386_vm9 = vcmp.lt.s32.totalorder %v211_v10, 256  ;;  %v2111_v43 = vmov 0.0  }
 0x1e9   : > { %1388 = vst.msk [vmem:[%s2593_s3] sm:$0x3] %vm1386_vm9, %v2111_v43  ;;  %1389 = vst.msk [vmem:[%s2594_s4] sm:$0x3] %vm1386_vm9, %v2111_v43 }
 0x1ea PF: > { %v1391_v46 = vadd.f32 %v1373_v37, %v1372_v35  ;;  %v1398_v44 = vadd.f32 %v1375_v41, %v1374_v39  ;;  %v1430_v45 = vmul.f32 %v1372_v35, %v1372_v35  ;;  %v1431_v47 = vmul.f32 %v1374_v39, %v1374_v39 }
 0x1eb   : > { %v1432_v48 = vmul.f32 %v1373_v37, %v1373_v37  ;;  %v1433_v51 = vmul.f32 %v1375_v41, %v1375_v41  ;;  %v2112_v57 = vmov 1966171168   ;;  %vm1426_vm10 = vcmp.lt.s32.totalorder %v211_v10, 256 }
 0x1ec   : > { %v1392_v49 = vrot.slane %v1391_v46, 4  ;;  %v1399_v50 = vrot.slane %v1398_v44, 4  ;;  %v1409_v58 = vunpack.c.l.s4 %v2112_v57 }
 0x1ed   : > { %v1434_v52 = vadd.f32 %v1432_v48, %v1430_v45  ;;  %v1441_v59 = vadd.f32 %v1433_v51, %v1431_v47 }
 0x1ee   : > { %v1393_v53 = vadd.f32 %v1392_v49, %v1391_v46  ;;  %v1400_v55 = vadd.f32 %v1399_v50, %v1398_v44  ;;  %v1410_v42 = vunpack.c.0.s8 %v1409_v58 }
 0x1ef   : > { %v1435_v60 = vrot.slane %v1434_v52, 4  ;;  %v1442_v63 = vrot.slane %v1441_v59, 4 }
 0x1f0   : > { %v1394_v61 = vrot.slane %v1393_v53, 2  ;;  %v1401_v62 = vrot.slane %v1400_v55, 2  ;;  %v1413_v14 = vsub.s32 %v1410_v42, %v2210_v19  ;;  %v1390_v16 = vld [vmem:[%s2593_s3] sm:$0x3] }
 0x1f1   : > { %v1436_v1 = vadd.f32 %v1435_v60, %v1434_v52  ;;  %v1443_v54 = vadd.f32 %v1442_v63, %v1441_v59  ;;  %v1429_v19 = vld [vmem:[%s2594_s4] sm:$0x3] }
 0x1f2   : > { %v1395_v0 = vadd.f32 %v1394_v61, %v1393_v53  ;;  %v1402_v2 = vadd.f32 %v1401_v62, %v1400_v55 }
 0x1f3   : > { %v1437_v56 = vrot.slane %v1436_v1, 2  ;;  %v1444_v5 = vrot.slane %v1443_v54, 2 }
 0x1f4   : > { %v1396_v3 = vrot.slane %v1395_v0, 1  ;;  %v1403_v4 = vrot.slane %v1402_v2, 1 }
 0x1f5   : > { %v1438_v6 = vadd.f32 %v1437_v56, %v1436_v1  ;;  %v1445_v15 = vadd.f32 %v1444_v5, %v1443_v54 }
 0x1f6   : > { %v1397_v7 = vadd.f32 %v1396_v3, %v1395_v0  ;;  %v1404_v13 = vadd.f32 %v1403_v4, %v1402_v2 }
 0x1f7   : > { %v1439_v26 = vrot.slane %v1438_v6, 1  ;;  %v1446_v8 = vrot.slane %v1445_v15, 1 }
 0x1f8   : > { %v1407_v32 = vcombine.low %v1397_v7, %v1404_v13 }
 0x1f9   : > { %v1440_v9 = vadd.f32 %v1439_v26, %v1438_v6  ;;  %v1447_v12 = vadd.f32 %v1446_v8, %v1445_v15 }
 0x1fa   : > { %v1414_v11 = vrot.slane %v1407_v32, %v1413_v14 }
 0x1fb   : > { %v1450_v18 = vcombine.low %v1440_v9, %v1447_v12 }
 0x1fc   : > { %v1421_v17 = vrot.slane %v1414_v11, %v1413_v14 }
 0x1fd   : > { %v1457_v21 = vrot.slane %v1450_v18, %v1413_v14 }
 0x1fe   : > { %v1423_v20 = vadd.f32 %v1421_v17, %v1390_v16 }
 0x1ff   : > { %v1464_v22 = vrot.slane %v1457_v21, %v1413_v14 }
 0x200   : > { %1428 = vst.msk [vmem:[%s2593_s3] sm:$0x3] %vm1426_vm10, %v1423_v20 }
 0x201   : > { %v1466_v23 = vadd.f32 %v1464_v22, %v1429_v19 }
 0x203   : > { %1467 = vst.msk [vmem:[%s2594_s4] sm:$0x3] %vm1426_vm10, %v1466_v23 }
 0x204 PF: > { %s15_s15 = sadd.s32 1, %s2105_s15  }
 0x205   : > { %p12_p5 = scmp.ge.s32.totalorder %s15_s15, 4  }
 0x207   :  { %14 = sbr.rel (!%p12_p5) target bundleno = 1 (0x1), region = 86 }

// kernel: decoder_traversability.26
= control target key start
LH: loop header
LB: loop body
LE: loop exit
PB: predicated region body
PF: predicated region fallthrough
CT: control target
= control target key end

     0   :  { %vm127_vm0 = vcmask 523264   ;;  %s377_s0 = inlined_call_operand.vmem [shape: f32[128,64], index: 0, kind: input, shape index: {}]   ;;  %s378_s1 = inlined_call_operand.vmem [shape: f32[1,64], index: 1, kind: input, shape index: {}]   ;;  %s379_s2 = inlined_call_operand.vmem [shape: f32[1,64], index: 2, kind: input, shape index: {}]   ;;  %s380_s3 = inlined_call_operand.vmem [shape: f32[128,64], index: 3, kind: input, shape index: {}]   ;;  %s381_s4 = inlined_call_operand.vmem [shape: f32[128,64], index: 4, kind: output, shape index: {}]  }
   0x1   :  { %v17_v0 = vld [vmem:[%s377_s0] sm:$0xff]  ;;  %v18_v4 = vld [vmem:[%s377_s0 + $0x8] sm:$0xff]  ;;  %v19_v7 = vld [vmem:[%s377_s0 + $0x10] sm:$0xff] }
   0x2   :  { %v181_v1 = vld [vmem:[%s378_s1] ss:$0 sm:$0xff]  ;;  %v20_v8 = vld [vmem:[%s377_s0 + $0x18] sm:$0xff]  ;;  %v80_v10 = vld [vmem:[%s380_s3 + $0x8] sm:$0xff] }
   0x3   :  { %v186_v2 = vld [vmem:[%s379_s2] ss:$0 sm:$0xff]  ;;  %v40_v3 = vmul.f32 %v181_v1, %v17_v0  ;;  %v41_v6 = vmul.f32 %v181_v1, %v18_v4  ;;  %v42_v11 = vmul.f32 %v181_v1, %v19_v7  ;;  %v81_v12 = vld [vmem:[%s380_s3 + $0x10] sm:$0xff]  ;;  %v43_v13 = vmul.f32 %v181_v1, %v20_v8  ;;  %v82_v16 = vld [vmem:[%s380_s3 + $0x18] sm:$0xff] }
   0x4   :  { %v79_v5 = vld [vmem:[%s380_s3] sm:$0xff]  ;;  %v22_v18 = vld [vmem:[%s377_s0 + $0x28] sm:$0xff]  ;;  %v23_v19 = vld [vmem:[%s377_s0 + $0x30] sm:$0xff] }
   0x5   :  { %v63_v9 = vadd.f32 %v186_v2, %v40_v3  ;;  %v21_v14 = vld [vmem:[%s377_s0 + $0x20] sm:$0xff]  ;;  %v64_v15 = vadd.f32 %v186_v2, %v41_v6  ;;  %v65_v21 = vadd.f32 %v186_v2, %v42_v11  ;;  %v66_v22 = vadd.f32 %v186_v2, %v43_v13  ;;  %v24_v25 = vld [vmem:[%s377_s0 + $0x38] sm:$0xff]  ;;  %v84_v28 = vld [vmem:[%s380_s3 + $0x28] sm:$0xff] }
   0x6   :  { %v44_v17 = vmul.f32 %v181_v1, %v21_v14  ;;  %v83_v23 = vld [vmem:[%s380_s3 + $0x20] sm:$0xff]  ;;  %v45_v24 = vmul.f32 %v181_v1, %v22_v18  ;;  %v46_v29 = vmul.f32 %v181_v1, %v23_v19  ;;  %v47_v30 = vmul.f32 %v181_v1, %v24_v25  ;;  %v85_v36 = vld [vmem:[%s380_s3 + $0x30] sm:$0xff]  ;;  %v86_v37 = vld [vmem:[%s380_s3 + $0x38] sm:$0xff] }
   0x7   :  { %v95_v20 = vadd.f32 %v79_v5, %v63_v9  ;;  %v96_v26 = vadd.f32 %v80_v10, %v64_v15  ;;  %v25_v31 = vld [vmem:[%s377_s0 + $0x40] sm:$0xff]  ;;  %v97_v33 = vadd.f32 %v81_v12, %v65_v21  ;;  %v98_v34 = vadd.f32 %v82_v16, %v66_v22  ;;  %v26_v38 = vld [vmem:[%s377_s0 + $0x48] sm:$0xff]  ;;  %v27_v43 = vld [vmem:[%s377_s0 + $0x50] sm:$0xff] }
   0x8   :  { %v67_v27 = vadd.f32 %v186_v2, %v44_v17  ;;  %v68_v35 = vadd.f32 %v186_v2, %v45_v24  ;;  %v69_v41 = vadd.f32 %v186_v2, %v46_v29  ;;  %v70_v42 = vadd.f32 %v186_v2, %v47_v30  ;;  %v28_v44 = vld [vmem:[%s377_s0 + $0x58] sm:$0xff]  ;;  %v29_v49 = vld [vmem:[%s377_s0 + $0x60] sm:$0xff]  ;;  %v30_v55 = vld [vmem:[%s377_s0 + $0x68] sm:$0xff] }
   0x9   :  { %v111_v32 = vmax.f32 %v95_v20, 0.0  ;;  %v112_v39 = vmax.f32 %v96_v26, 0.0  ;;  %v113_v45 = vmax.f32 %v97_v33, 0.0  ;;  %v114_v46 = vmax.f32 %v98_v34, 0.0  ;;  %v87_v53 = vld [vmem:[%s380_s3 + $0x40] sm:$0xff]  ;;  %v88_v58 = vld [vmem:[%s380_s3 + $0x48] sm:$0xff] }
   0xa   :  { %v99_v40 = vadd.f32 %v83_v23, %v67_v27  ;;  %v100_v47 = vadd.f32 %v84_v28, %v68_v35  ;;  %v48_v48 = vmul.f32 %v181_v1, %v25_v31  ;;  %v101_v51 = vadd.f32 %v85_v36, %v69_v41  ;;  %v31_v61 = vld [vmem:[%s377_s0 + $0x70] sm:$0xff]  ;;  %v32_v62 = vld [vmem:[%s377_s0 + $0x78] sm:$0xff]  ;;  %v91_v10 = vld [vmem:[%s380_s3 + $0x60] sm:$0xff] }
   0xb   :  { %128 = vst.msk [vmem:[%s381_s4] sm:$0xff] %vm127_vm0, %v111_v32  ;;  %129 = vst.msk [vmem:[%s381_s4 + $0x8] sm:$0xff] %vm127_vm0, %v112_v39  ;;  %v102_v52 = vadd.f32 %v86_v37, %v70_v42  ;;  %v49_v54 = vmul.f32 %v181_v1, %v26_v38  ;;  %v50_v59 = vmul.f32 %v181_v1, %v27_v43  ;;  %v89_v4 = vld [vmem:[%s380_s3 + $0x50] sm:$0xff]  ;;  %v90_v5 = vld [vmem:[%s380_s3 + $0x58] sm:$0xff] }
   0xc   :  { %v115_v50 = vmax.f32 %v99_v40, 0.0  ;;  %130 = vst.msk [vmem:[%s381_s4 + $0x10] sm:$0xff] %vm127_vm0, %v113_v45  ;;  %131 = vst.msk [vmem:[%s381_s4 + $0x18] sm:$0xff] %vm127_vm0, %v114_v46  ;;  %v116_v56 = vmax.f32 %v100_v47, 0.0  ;;  %v71_v57 = vadd.f32 %v186_v2, %v48_v48  ;;  %v51_v60 = vmul.f32 %v181_v1, %v28_v44  ;;  %v92_v14 = vld [vmem:[%s380_s3 + $0x68] sm:$0xff]  ;;  %v93_v21 = vld [vmem:[%s380_s3 + $0x70] sm:$0xff] }
   0xd   :  { %v117_v63 = vmax.f32 %v101_v51, 0.0  ;;  %v118_v0 = vmax.f32 %v102_v52, 0.0  ;;  %v72_v3 = vadd.f32 %v186_v2, %v49_v54  ;;  %v52_v6 = vmul.f32 %v181_v1, %v29_v49  ;;  %v94_v22 = vld [vmem:[%s380_s3 + $0x78] sm:$0xff] }
   0xe   :  { %132 = vst.msk [vmem:[%s381_s4 + $0x20] sm:$0xff] %vm127_vm0, %v115_v50  ;;  %133 = vst.msk [vmem:[%s381_s4 + $0x28] sm:$0xff] %vm127_vm0, %v116_v56  ;;  %v103_v7 = vadd.f32 %v87_v53, %v71_v57  ;;  %v73_v8 = vadd.f32 %v186_v2, %v50_v59  ;;  %v74_v9 = vadd.f32 %v186_v2, %v51_v60 }
   0xf   :  { %v53_v11 = vmul.f32 %v181_v1, %v30_v55  ;;  %134 = vst.msk [vmem:[%s381_s4 + $0x30] sm:$0xff] %vm127_vm0, %v117_v63  ;;  %135 = vst.msk [vmem:[%s381_s4 + $0x38] sm:$0xff] %vm127_vm0, %v118_v0  ;;  %v104_v12 = vadd.f32 %v88_v58, %v72_v3  ;;  %v75_v13 = vadd.f32 %v186_v2, %v52_v6 }
  0x10   :  { %v54_v15 = vmul.f32 %v181_v1, %v31_v61  ;;  %v55_v16 = vmul.f32 %v181_v1, %v32_v62  ;;  %v119_v17 = vmax.f32 %v103_v7, 0.0  ;;  %v105_v18 = vadd.f32 %v89_v4, %v73_v8 }
  0x11   :  { %v106_v19 = vadd.f32 %v90_v5, %v74_v9  ;;  %v76_v20 = vadd.f32 %v186_v2, %v53_v11  ;;  %v120_v23 = vmax.f32 %v104_v12, 0.0  ;;  %v107_v24 = vadd.f32 %v91_v10, %v75_v13 }
  0x12   :  { %v77_v25 = vadd.f32 %v186_v2, %v54_v15  ;;  %v78_v26 = vadd.f32 %v186_v2, %v55_v16  ;;  %136 = vst.msk [vmem:[%s381_s4 + $0x40] sm:$0xff] %vm127_vm0, %v119_v17  ;;  %v121_v1 = vmax.f32 %v105_v18, 0.0 }
  0x13   :  { %v122_v27 = vmax.f32 %v106_v19, 0.0  ;;  %v108_v28 = vadd.f32 %v92_v14, %v76_v20  ;;  %137 = vst.msk [vmem:[%s381_s4 + $0x48] sm:$0xff] %vm127_vm0, %v120_v23  ;;  %v123_v29 = vmax.f32 %v107_v24, 0.0 }
  0x14   :  { %v109_v30 = vadd.f32 %v93_v21, %v77_v25  ;;  %v110_v31 = vadd.f32 %v94_v22, %v78_v26  ;;  %138 = vst.msk [vmem:[%s381_s4 + $0x50] sm:$0xff] %vm127_vm0, %v121_v1 }
  0x15   :  { %139 = vst.msk [vmem:[%s381_s4 + $0x58] sm:$0xff] %vm127_vm0, %v122_v27  ;;  %v124_v2 = vmax.f32 %v108_v28, 0.0  ;;  %140 = vst.msk [vmem:[%s381_s4 + $0x60] sm:$0xff] %vm127_vm0, %v123_v29 }
  0x16   :  { %v125_v32 = vmax.f32 %v109_v30, 0.0  ;;  %v126_v33 = vmax.f32 %v110_v31, 0.0 }
  0x17   :  { %141 = vst.msk [vmem:[%s381_s4 + $0x68] sm:$0xff] %vm127_vm0, %v124_v2 }
  0x18   :  { %142 = vst.msk [vmem:[%s381_s4 + $0x70] sm:$0xff] %vm127_vm0, %v125_v32  ;;  %143 = vst.msk [vmem:[%s381_s4 + $0x78] sm:$0xff] %vm127_vm0, %v126_v33 }

// kernel: decoder_traversability.23
= control target key start
LH: loop header
LB: loop body
LE: loop exit
PB: predicated region body
PF: predicated region fallthrough
CT: control target
= control target key end

     0   :  { %s1902_s21 = smov 0   ;;  %s2268_s0 = inlined_call_operand.vmem [shape: f32[2,80,64], index: 0, kind: input, shape index: {}]   ;;  %s2269_s1 = inlined_call_operand.vmem [shape: bf16[3,64,64], index: 1, kind: input, shape index: {}]   ;;  %s2270_s2 = inlined_call_operand.vmem [shape: f32[1,64], index: 2, kind: input, shape index: {}]   ;;  %s2271_s3 = inlined_call_operand.vmem [shape: bf16[3,64,64], index: 3, kind: input, shape index: {}]   ;;  %s2272_s4 = inlined_call_operand.vmem [shape: f32[2,64,64], index: 4, kind: output, shape index: {0}]   ;;  %s2273_s5 = inlined_call_operand.vmem [shape: f32[1,64], index: 5, kind: output, shape index: {1}]   ;;  %s2274_s6 = inlined_call_operand.vmem [shape: f32[1,64], index: 6, kind: output, shape index: {2}]  }
   0x1 LB: > { %s1908_s22 = sadd.s32 4294967295, %s1864_s21   ;;  %p1551_p0 = scmp.ge.s32.totalorder %s1864_s21, 1  ;;  %s1864_s21 = sphi %s1902_s21, %s17_s21  }
   0x2   : > { %p207_p1 = scmp.lt.s32.totalorder %s1864_s21, 3 }
   0x4   : > { %p208_p2 = pnand %p1551_p0, %p207_p1 }
   0x5   : > { %p237_p3 = scmp.lt.s32.totalorder (!%p208_p2), %s1908_s22, 1  ;;  %p1664_p4 = scmp.ne.s32.totalorder (!%p208_p2), %s1908_s22, 0 }
   0x6   : > { %211 = sbr.rel (%p208_p2) target bundleno = 557 (0x22d), region = 36 }
   0xb   : > { %v1830_v0 = vld [vmem:[%s2269_s1 + $0x38] sm:$0xff]   ;;  %v1832_v2 = vld [vmem:[%s2269_s1 + $0x30] sm:$0xff]   ;;  %s1923_s29 = scalar_select %p237_p3, %s1908_s22, 1  ;;  %v1834_v4 = vld [vmem:[%s2269_s1 + $0x28] sm:$0xff]   ;;  %vm319_vm0 = vcmask 523264   ;;  %vm285_vm1 = vcmask 1043456  }
   0xc   : > { %v1831_v1 = vld [vmem:[%s2269_s1 + $0x18] sm:$0xff]   ;;  %1724 = vmatprep.subr.bf16.mxu0 %v1830_v0  ;;  %v1833_v3 = vld [vmem:[%s2269_s1 + $0x10] sm:$0xff]   ;;  %v1835_v5 = vld [vmem:[%s2269_s1 + $0x8] sm:$0xff]   ;;  %vm734_vm2 = vcmask 519168   ;;  %vm735_vm3 = vsmask.f32 7938 }
   0xd   : > { %1740 = vmatprep.subr.bf16.mxu1 %v1831_v1  ;;  %1725 = vmatpush3.bf16.msra.mxu0 %v1830_v0  ;;  %s1820_s10 = smul.u32 80, %s1923_s29  ;;  %v1836_v6 = vld [vmem:[%s2269_s1 + $0x20] sm:$0xff]   ;;  %v1838_v18 = vld [vmem:[%s2269_s1 + $0x58] sm:$0xff]   ;;  %v1839_v30 = vld [vmem:[%s2269_s1 + $0x50] sm:$0xff]   ;;  %vm740_vm4 = vcmask 516096   ;;  %vm1243_vm12 = vcmask 1042432  }
   0xe   : > { %1741 = vmatpush3.bf16.msra.mxu1 %v1831_v1  ;;  %1726 = vmatprep.subr.bf16.mxu0 %v1832_v2  ;;  %v1837_v7 = vld [vmem:[%s2269_s1] sm:$0xff]   ;;  %v1840_v33 = vld [vmem:[%s2269_s1 + $0x48] sm:$0xff]   ;;  %v1842_v36 = vld [vmem:[%s2271_s3 + $0x18] sm:$0xff]   ;;  %vm741_vm5 = vsmask.f32 256  ;;  %vm1244_vm13 = vcmask 1046532  }
   0xf   : > { %1742 = vmatprep.subr.bf16.mxu1 %v1833_v3  ;;  %s241_s17 = scalar_lea.vmem %s2268_s0, %s1820_s10  ;;  %v1841_v35 = vld [vmem:[%s2269_s1 + $0x40] sm:$0xff]   ;;  %v1843_v37 = vld [vmem:[%s2271_s3 + $0x10] sm:$0xff]   ;;  %v1844_v38 = vld [vmem:[%s2271_s3 + $0x8] sm:$0xff]   ;;  %vm861_vm9 = vsmask.f32 3328  ;;  %s1667_s12 = sshll.u32 %s1923_s29, 6 }
  0x10   : > { %v248_v8 = vld [vmem:[%s241_s17] sm:$0xff]  ;;  %v249_v9 = vld [vmem:[%s241_s17 + $0x8] sm:$0xff]  ;;  %v250_v10 = vld [vmem:[%s241_s17 + $0x10] sm:$0xff]  ;;  %vm862_vm10 = vsmask.f32 7440  ;;  %s2208_s15 = scalar_lea.vmem %s2272_s4, %s1667_s12 }
  0x11   : > { %1727 = vmatpush3.bf16.msra.mxu0 %v1832_v2  ;;  %v251_v11 = vld [vmem:[%s241_s17 + $0x18] sm:$0xff]  ;;  %v258_v12 = vpack.c.bf16 %v249_v9, %v248_v8  ;;  %v252_v13 = vld [vmem:[%s241_s17 + $0x20] sm:$0xff]  ;;  %v253_v14 = vld [vmem:[%s241_s17 + $0x28] sm:$0xff] }
  0x12   : > { %1743 = vmatpush3.bf16.msra.mxu1 %v1833_v3  ;;  %1728 = vmatprep.subr.bf16.mxu0 %v1834_v4  ;;  %v259_v15 = vpack.c.bf16 %v251_v11, %v250_v10  ;;  %v260_v16 = vpack.c.bf16 %v253_v14, %v252_v13  ;;  %v254_v21 = vld [vmem:[%s241_s17 + $0x30] sm:$0xff]  ;;  %v255_v22 = vld [vmem:[%s241_s17 + $0x38] sm:$0xff]  ;;  %v256_v23 = vld [vmem:[%s241_s17 + $0x40] sm:$0xff] }
  0x13   : > { %1744 = vmatprep.subr.bf16.mxu1 %v1835_v5  ;;  %v286_v17 = vrot.slane %v258_v12, 4  ;;  %1748 = vmatprep.mubr.msk.bf16.mxu1 %vm319_vm0, %v258_v12  ;;  %v261_v24 = vpack.c.bf16 %v255_v22, %v254_v21  ;;  %v257_v25 = vld [vmem:[%s241_s17 + $0x48] sm:$0xff]  ;;  %v1845_v39 = vld [vmem:[%s2271_s3 + $0x38] sm:$0xff]   ;;  %v1846_v40 = vld [vmem:[%s2271_s3] sm:$0xff]  }
  0x14   : > { %v287_v19 = vrot.slane %v259_v15, 4  ;;  %v289_v20 = vrot.slane %v260_v16, 4  ;;  %v262_v27 = vpack.c.bf16 %v257_v25, %v256_v23  ;;  %v1847_v41 = vld [vmem:[%s2271_s3 + $0x30] sm:$0xff]   ;;  %v1850_v42 = vld [vmem:[%s2271_s3 + $0x28] sm:$0xff]   ;;  %v1851_v43 = vld [vmem:[%s2271_s3 + $0x20] sm:$0xff]  }
  0x15   : > { %1729 = vmatpush3.bf16.msra.mxu0 %v1834_v4  ;;  %v291_v29 = vrot.slane %v261_v24, 4  ;;  %v1999_v44 = vld [vmem:[%s2271_s3 + $0x58] sm:$0xff]   ;;  %v2005_v61 = vld [vmem:[%s2270_s2] ss:$0 sm:$0xff]  ;;  %vm2013_vm6 = vmand %vm734_vm2, %vm735_vm3 }
  0x16   : > { %1745 = vmatpush3.bf16.msra.mxu1 %v1835_v5  ;;  %1730 = vmatprep.subr.bf16.mxu0 %v1836_v6  ;;  %v288_v26 = vsel %vm285_vm1, %v286_v17, %v287_v19  ;;  %v290_v28 = vsel %vm285_vm1, %v287_v19, %v289_v20  ;;  %v293_v31 = vrot.slane %v262_v27, 4  ;;  %vm2019_vm7 = vmand %vm740_vm4, %vm741_vm5 }
  0x17   : > { %1746 = vmatprep.subr.bf16.mxu1 %v1837_v7  ;;  %1732 = vmatprep.mubr.msk.bf16.mxu0 %vm319_vm0, %v288_v26  ;;  %v292_v32 = vsel %vm285_vm1, %v289_v20, %v291_v29  ;;  %vm2040_vm8 = vmand %vm740_vm4, %vm735_vm3 }
  0x18   : > { %v294_v34 = vsel %vm285_vm1, %v291_v29, %v293_v31  ;;  %vm2122_vm11 = vmor %vm861_vm9, %vm862_vm10 }
  0x19   : > { %1731 = vmatpush3.bf16.msra.mxu0 %v1836_v6  ;;  %vm2166_vm14 = vmor %vm1243_vm12, %vm1244_vm13 }
  0x1a   : > { %1747 = vmatpush3.bf16.msra.mxu1 %v1837_v7  ;;  %1756 = vmatprep.subr.bf16.mxu0 %v1838_v18 }
  0x1b   : > { %1772 = vmatprep.subr.bf16.mxu1 %v1845_v39 }
  0x1c   : > { %1733 = vmatmul.mubr.msk.bf16.vlgmr.msra.gmra.mxu0 %vm319_vm0, %v290_v28 }
  0x1d   : > { %1749 = vmatmul.mubr.msk.bf16.vlgmr.msra.gmra.mxu1 %vm319_vm0, %v259_v15  ;;  %1757 = vmatpush3.bf16.msra.mxu0 %v1838_v18 }
  0x1e   : > { %1758 = vmatprep.subr.bf16.mxu0 %v1839_v30  ;;  %1736 = vmatprep.mubr.msk.bf16.mxu0 %vm319_vm0, %v292_v32 }
  0x1f   : > { %1752 = vmatprep.mubr.msk.bf16.mxu1 %vm319_vm0, %v260_v16  ;;  %1773 = vmatpush3.bf16.msra.mxu1 %v1845_v39 }
  0x20   : > { %1774 = vmatprep.subr.bf16.mxu1 %v1847_v41 }
  0x21   : > { %1759 = vmatpush3.bf16.msra.mxu0 %v1839_v30 }
  0x22   : > { %1760 = vmatprep.subr.bf16.mxu0 %v1840_v33 }
  0x23   : > { %1775 = vmatpush3.bf16.msra.mxu1 %v1847_v41 }
  0x24   : > { %1737 = vmatmul.mubr.msk.bf16.gmra.mxu0 %vm319_vm0, %v294_v34  ;;  %1776 = vmatprep.subr.bf16.mxu1 %v1850_v42  ;;  %v755_v34 = vld [vmem:[#allocation2 + $0x14] sm:$0x1] }
  0x25   : > { %1753 = vmatmul.mubr.msk.bf16.gmra.mxu1 %vm319_vm0, %v261_v24  ;;  %1761 = vmatpush3.bf16.msra.mxu0 %v1840_v33  ;;  %v752_v33 = vld [vmem:[#allocation2 + $0x10] sm:$0xf] }
  0x26   : > { %1762 = vmatprep.subr.bf16.mxu0 %v1841_v35  ;;  %1764 = vmatprep.mubr.msk.bf16.mxu0 %vm319_vm0, %v259_v15 }
  0x27   : > { %1777 = vmatpush3.bf16.msra.mxu1 %v1850_v42 }
  0x28   : > { %1778 = vmatprep.subr.bf16.mxu1 %v1851_v43 }
  0x29   : > { %1763 = vmatpush3.bf16.msra.mxu0 %v1841_v35 }
  0x2a   : > { %1788 = vmatprep.subr.bf16.mxu0 %v1842_v36 }
  0x2b   : > { %1779 = vmatpush3.bf16.msra.mxu1 %v1851_v43 }
  0x2c   : > { %1765 = vmatmul.mubr.msk.bf16.vlgmr.msra.gmra.mxu0 %vm319_vm0, %v260_v16  ;;  %1804 = vmatprep.subr.bf16.mxu1 %v1999_v44 }
  0x2d   : > { %1768 = vmatprep.mubr.msk.bf16.mxu0 %vm319_vm0, %v261_v24  ;;  %1789 = vmatpush3.bf16.msra.mxu0 %v1842_v36 }
  0x2e   : > { %1790 = vmatprep.subr.bf16.mxu0 %v1843_v37 }
  0x31   : > { %1791 = vmatpush3.bf16.msra.mxu0 %v1843_v37 }
  0x32   : > { %1792 = vmatprep.subr.bf16.mxu0 %v1844_v38 }
  0x34   : > { %1769 = vmatmul.mubr.msk.bf16.gmra.mxu0 %vm319_vm0, %v262_v27 }
  0x35   : > { %1793 = vmatpush3.bf16.msra.mxu0 %v1844_v38 }
  0x36   : > { %1794 = vmatprep.subr.bf16.mxu0 %v1846_v40 }
  0x39   : > { %1795 = vmatpush3.bf16.msra.mxu0 %v1846_v40 }
  0xdc   : > { %v1734_v45 = vpop.f32.mrf.mxu0 }
  0xdd   : > { %v1750_v46 = vpop.f32.mrf.mxu1 }
  0xde   : > { %v366_v47 = vpop.f32.mrf.mxu0  ;;  %v476_v58 = vadd.f32 %v1750_v46, %v1734_v45  ;;  %v737_v45 = vld [vmem:[#allocation2] sm:$0xf]  ;;  %v743_v46 = vld [vmem:[#allocation2 + $0x4] sm:$0x1] }
  0xdf   : > { %v467_v48 = vpop.f32.mrf.mxu1 }
  0xe0   : > { %v1735_v49 = vpop.f32.mrf.mxu0  ;;  %v468_v62 = vadd.f32 %v467_v48, %v366_v47 }
  0xe1   : > { %v1751_v50 = vpop.f32.mrf.mxu1 }
  0xe2   : > { %v369_v51 = vpop.f32.mrf.mxu0  ;;  %v479_v1 = vadd.f32 %v1751_v50, %v1735_v49 }
  0xe3   : > { %v470_v52 = vpop.f32.mrf.mxu1 }
  0xe4   : > { %v1738_v53 = vpop.f32.mrf.mxu0  ;;  %v471_v6 = vadd.f32 %v470_v52, %v369_v51 }
  0xe5   : > { %v1754_v55 = vpop.f32.mrf.mxu1 }
  0xe6   : > { %v382_v54 = vpop.f32.mrf.mxu0  ;;  %v492_v16 = vadd.f32 %v1754_v55, %v1738_v53 }
  0xe7   : > { %v483_v59 = vpop.f32.mrf.mxu1 }
  0xe8   : > { %v1739_v56 = vpop.f32.mrf.mxu0  ;;  %v484_v18 = vadd.f32 %v483_v59, %v382_v54 }
  0xe9   : > { %v1755_v2 = vpop.f32.mrf.mxu1 }
  0xea   : > { %v385_v57 = vpop.f32.mrf.mxu0  ;;  %v495_v22 = vadd.f32 %v1755_v2, %v1739_v56 }
  0xeb   : > { %v486_v11 = vpop.f32.mrf.mxu1 }
  0xec   : > { %v1766_v60 = vpop.f32.mrf.mxu0  ;;  %v487_v23 = vadd.f32 %v486_v11, %v385_v57 }
  0xed   : > { %v601_v63 = vadd.f32 %v1766_v60, %v476_v58 }
  0xee   : > { %v568_v0 = vpop.f32.mrf.mxu0 }
  0xef   : > { %v616_v3 = vadd.f32 %v2005_v61, %v601_v63  ;;  %v599_v4 = vadd.f32 %v568_v0, %v468_v62  ;;  %v758_v63 = vld [vmem:[#allocation2 + $0x18] sm:$0xf]  ;;  %v761_v0 = vld [vmem:[#allocation2 + $0x1c] sm:$0x1] }
  0xf0   : > { %v1767_v5 = vpop.f32.mrf.mxu0 }
  0xf1   : > { %v624_v7 = vmax.f32 %v616_v3, 0.0  ;;  %v614_v8 = vadd.f32 %v2005_v61, %v599_v4  ;;  %v602_v9 = vadd.f32 %v1767_v5, %v479_v1 }
  0xf2   : > { %v571_v10 = vpop.f32.mrf.mxu0 }
  0xf3   : > { %v1670_v12 = vpack.c.bf16 %v624_v7, %v624_v7  ;;  %v622_v13 = vmax.f32 %v614_v8, 0.0  ;;  %v617_v14 = vadd.f32 %v2005_v61, %v602_v9  ;;  %v600_v15 = vadd.f32 %v571_v10, %v471_v6  ;;  %v746_v7 = vld [vmem:[#allocation2 + $0x8] sm:$0xf]  ;;  %v749_v8 = vld [vmem:[#allocation2 + $0xc] sm:$0x1] }
  0xf4   : > { %v1770_v17 = vpop.f32.mrf.mxu0 }
  0xf5   : > { %v671_v19 = vshrl.u32 %v1670_v12, 16  ;;  %v1668_v20 = vpack.c.bf16 %v622_v13, %v622_v13  ;;  %v625_v21 = vmax.f32 %v617_v14, 0.0  ;;  %v615_v24 = vadd.f32 %v2005_v61, %v600_v15 }
  0xf6   : > { %v605_v25 = vadd.f32 %v1770_v17, %v492_v16  ;;  %v584_v26 = vpop.f32.mrf.mxu0  ;;  %v674_v28 = vshll.u32 %v1670_v12, 16 }
  0xf7   : > { %v673_v27 = vrot.slane %v671_v19, 7  ;;  %v655_v30 = vshrl.u32 %v1668_v20, 16  ;;  %v1671_v31 = vpack.c.bf16 %v625_v21, %v625_v21  ;;  %v658_v35 = vshll.u32 %v1668_v20, 16  ;;  %v776_v19 = vld [vmem:[#allocation2 + $0x30] sm:$0xf] }
  0xf8   : > { %v623_v36 = vmax.f32 %v615_v24, 0.0  ;;  %v620_v37 = vadd.f32 %v2005_v61, %v605_v25  ;;  %v603_v38 = vadd.f32 %v584_v26, %v484_v18  ;;  %v1771_v39 = vpop.f32.mrf.mxu0  ;;  %v779_v24 = vld [vmem:[#allocation2 + $0x34] sm:$0x1]  ;;  %v764_v26 = vld [vmem:[#allocation2 + $0x20] sm:$0xf] }
  0xf9   : > { %v676_v40 = vor.u32 %v674_v28, %v673_v27  ;;  %v677_v41 = vrot.slane %v673_v27, 4  ;;  %v657_v42 = vrot.slane %v655_v30, 7  ;;  %v679_v43 = vshrl.u32 %v1671_v31, 16 }
  0xfa   : > { %v682_v47 = vshll.u32 %v1671_v31, 16  ;;  %v1669_v48 = vpack.c.bf16 %v623_v36, %v623_v36  ;;  %v628_v49 = vmax.f32 %v620_v37, 0.0  ;;  %v618_v50 = vadd.f32 %v2005_v61, %v603_v38  ;;  %v587_v59 = vpop.f32.mrf.mxu0  ;;  %v767_v38 = vld [vmem:[#allocation2 + $0x24] sm:$0x1] }
  0xfb   : > { %v753_v51 = vsel %vm2013_vm6, %v676_v40, %v752_v33  ;;  %v756_v52 = vsel %vm2019_vm7, %v677_v41, %v755_v34  ;;  %v660_v53 = vor.u32 %v658_v35, %v657_v42  ;;  %v661_v54 = vrot.slane %v657_v42, 4 }
  0xfc   : > { %754 = vst [vmem:[#allocation2 + $0x10] sm:$0xf] %v753_v51  ;;  %757 = vst [vmem:[#allocation2 + $0x14] sm:$0x1] %v756_v52  ;;  %v681_v55 = vrot.slane %v679_v43, 7  ;;  %v663_v56 = vshrl.u32 %v1669_v48, 16  ;;  %v1674_v58 = vpack.c.bf16 %v628_v49, %v628_v49  ;;  %v606_v2 = vadd.f32 %v1771_v39, %v495_v22 }
  0xfd   : > { %v666_v57 = vshll.u32 %v1669_v48, 16  ;;  %v738_v60 = vsel %vm2013_vm6, %v660_v53, %v737_v45  ;;  %v744_v62 = vsel %vm2019_vm7, %v661_v54, %v743_v46  ;;  %v626_v1 = vmax.f32 %v618_v50, 0.0  ;;  %v782_v51 = vld [vmem:[#allocation2 + $0x38] sm:$0xf] }
  0xfe   : > { %739 = vst [vmem:[#allocation2] sm:$0xf] %v738_v60  ;;  %745 = vst [vmem:[#allocation2 + $0x4] sm:$0x1] %v744_v62  ;;  %v684_v3 = vor.u32 %v682_v47, %v681_v55  ;;  %v685_v4 = vrot.slane %v681_v55, 4  ;;  %v665_v5 = vrot.slane %v663_v56, 7  ;;  %v621_v10 = vadd.f32 %v2005_v61, %v606_v2 }
  0xff   : > { %v703_v6 = vshrl.u32 %v1674_v58, 16  ;;  %v1672_v9 = vpack.c.bf16 %v626_v1, %v626_v1  ;;  %v604_v11 = vadd.f32 %v587_v59, %v487_v23  ;;  %v706_v18 = vshll.u32 %v1674_v58, 16  ;;  %v785_v59 = vld [vmem:[#allocation2 + $0x3c] sm:$0x1] }
 0x100   : > { %v759_v12 = vsel %vm2013_vm6, %v684_v3, %v758_v63  ;;  %v762_v13 = vsel %vm2019_vm7, %v685_v4, %v761_v0  ;;  %v668_v14 = vor.u32 %v666_v57, %v665_v5  ;;  %v669_v15 = vrot.slane %v665_v5, 4 }
 0x101   : > { %760 = vst [vmem:[#allocation2 + $0x18] sm:$0xf] %v759_v12  ;;  %763 = vst [vmem:[#allocation2 + $0x1c] sm:$0x1] %v762_v13  ;;  %v705_v17 = vrot.slane %v703_v6, 7  ;;  %v687_v20 = vshrl.u32 %v1672_v9, 16  ;;  %v619_v27 = vadd.f32 %v2005_v61, %v604_v11 }
 0x102   : > { %v629_v21 = vmax.f32 %v621_v10, 0.0  ;;  %v747_v22 = vsel %vm2013_vm6, %v668_v14, %v746_v7  ;;  %v750_v23 = vsel %vm2019_vm7, %v669_v15, %v749_v8  ;;  %v690_v25 = vshll.u32 %v1672_v9, 16  ;;  %v770_v6 = vld [vmem:[#allocation2 + $0x28] sm:$0xf]  ;;  %v773_v9 = vld [vmem:[#allocation2 + $0x2c] sm:$0x1] }
 0x103   : > { %v794_v28 = vld [vmem:[#allocation2 + $0x10] sm:$0x1]  ;;  %v819_v30 = vld [vmem:[#allocation2 + $0x14] sm:$0x1]  ;;  %748 = vst [vmem:[#allocation2 + $0x8] sm:$0xf] %v747_v22  ;;  %v708_v31 = vor.u32 %v706_v18, %v705_v17 }
 0x104   : > { %751 = vst [vmem:[#allocation2 + $0xc] sm:$0x1] %v750_v23  ;;  %v709_v33 = vrot.slane %v705_v17, 4  ;;  %v689_v34 = vrot.slane %v687_v20, 7  ;;  %v1675_v35 = vpack.c.bf16 %v629_v21, %v629_v21  ;;  %v795_v36 = vsel %vm2019_vm7, 0, %v794_v28 }
 0x105   : > { %v820_v37 = vsel %vm2040_vm8, 0, %v819_v30  ;;  %v627_v39 = vmax.f32 %v619_v27, 0.0  ;;  %796 = vst [vmem:[#allocation2 + $0x10] sm:$0x1] %v795_v36  ;;  %v788_v40 = vld [vmem:[#allocation2] sm:$0x1]  ;;  %v777_v41 = vsel %vm2013_vm6, %v708_v31, %v776_v19 }
 0x106   : > { %821 = vst [vmem:[#allocation2 + $0x14] sm:$0x1] %v820_v37  ;;  %v813_v61 = vld [vmem:[#allocation2 + $0x4] sm:$0x1]  ;;  %v780_v42 = vsel %vm2019_vm7, %v709_v33, %v779_v24  ;;  %v692_v43 = vor.u32 %v690_v25, %v689_v34  ;;  %v693_v45 = vrot.slane %v689_v34, 4  ;;  %v789_v46 = vsel %vm2019_vm7, 0, %v788_v40 }
 0x107   : > { %v814_v47 = vsel %vm2040_vm8, 0, %v813_v61  ;;  %778 = vst [vmem:[#allocation2 + $0x30] sm:$0xf] %v777_v41  ;;  %781 = vst [vmem:[#allocation2 + $0x34] sm:$0x1] %v780_v42  ;;  %v711_v48 = vshrl.u32 %v1675_v35, 16  ;;  %v1673_v52 = vpack.c.bf16 %v627_v39, %v627_v39 }
 0x108   : > { %790 = vst [vmem:[#allocation2] sm:$0x1] %v789_v46  ;;  %815 = vst [vmem:[#allocation2 + $0x4] sm:$0x1] %v814_v47  ;;  %v765_v49 = vsel %vm2013_vm6, %v692_v43, %v764_v26  ;;  %v768_v50 = vsel %vm2019_vm7, %v693_v45, %v767_v38  ;;  %v797_v53 = vld [vmem:[#allocation2 + $0x18] sm:$0x1] }
 0x109   : > { %v822_v54 = vld [vmem:[#allocation2 + $0x1c] sm:$0x1]  ;;  %766 = vst [vmem:[#allocation2 + $0x20] sm:$0xf] %v765_v49  ;;  %769 = vst [vmem:[#allocation2 + $0x24] sm:$0x1] %v768_v50 }
 0x10a   : > { %v713_v55 = vrot.slane %v711_v48, 7  ;;  %v714_v56 = vshll.u32 %v1675_v35, 16  ;;  %v798_v57 = vsel %vm2019_vm7, 0, %v797_v53  ;;  %v823_v58 = vsel %vm2040_vm8, 0, %v822_v54  ;;  %v791_v62 = vld [vmem:[#allocation2 + $0x8] sm:$0x1] }
 0x10b   : > { %v695_v60 = vshrl.u32 %v1673_v52, 16  ;;  %799 = vst [vmem:[#allocation2 + $0x18] sm:$0x1] %v798_v57  ;;  %824 = vst [vmem:[#allocation2 + $0x1c] sm:$0x1] %v823_v58  ;;  %v792_v2 = vsel %vm2019_vm7, 0, %v791_v62 }
 0x10c   : > { %v816_v63 = vld [vmem:[#allocation2 + $0xc] sm:$0x1]  ;;  %v716_v0 = vor.u32 %v714_v56, %v713_v55  ;;  %v717_v1 = vrot.slane %v713_v55, 4  ;;  %v698_v5 = vshll.u32 %v1673_v52, 16  ;;  %793 = vst [vmem:[#allocation2 + $0x8] sm:$0x1] %v792_v2 }
 0x10d   : > { %v817_v3 = vsel %vm2040_vm8, 0, %v816_v63  ;;  %v697_v4 = vrot.slane %v695_v60, 7  ;;  %v2077_v10 = vld [vmem:[#allocation2 + $0x10] sm:$0xf]  ;;  %v2079_v11 = vld [vmem:[#allocation2 + $0x14] sm:$0x1] }
 0x10e   : > { %818 = vst [vmem:[#allocation2 + $0xc] sm:$0x1] %v817_v3  ;;  %v783_v7 = vsel %vm2013_vm6, %v716_v0, %v782_v51  ;;  %v786_v8 = vsel %vm2019_vm7, %v717_v1, %v785_v59  ;;  %v806_v12 = vld [vmem:[#allocation2 + $0x30] sm:$0x1]  ;;  %v831_v13 = vld [vmem:[#allocation2 + $0x34] sm:$0x1] }
 0x10f   : > { %784 = vst [vmem:[#allocation2 + $0x38] sm:$0xf] %v783_v7  ;;  %787 = vst [vmem:[#allocation2 + $0x3c] sm:$0x1] %v786_v8  ;;  %v700_v14 = vor.u32 %v698_v5, %v697_v4  ;;  %v701_v15 = vrot.slane %v697_v4, 4  ;;  %v893_v17 = vshrl.u32 %v2077_v10, 16 }
 0x110   : > { %v807_v18 = vsel %vm2019_vm7, 0, %v806_v12  ;;  %v832_v19 = vsel %vm2040_vm8, 0, %v831_v13  ;;  %v837_v20 = vld [vmem:[#allocation2] sm:$0xf]  ;;  %v896_v21 = vshll.u32 %v2077_v10, 16  ;;  %v902_v36 = vshll.u32 %v2079_v11, 16 }
 0x111   : > { %808 = vst [vmem:[#allocation2 + $0x30] sm:$0x1] %v807_v18  ;;  %833 = vst [vmem:[#allocation2 + $0x34] sm:$0x1] %v832_v19  ;;  %v800_v22 = vld [vmem:[#allocation2 + $0x20] sm:$0x1]  ;;  %v771_v24 = vsel %vm2013_vm6, %v700_v14, %v770_v6  ;;  %v774_v25 = vsel %vm2019_vm7, %v701_v15, %v773_v9 }
 0x112   : > { %v825_v23 = vld [vmem:[#allocation2 + $0x24] sm:$0x1]  ;;  %v865_v26 = vshrl.u32 %v837_v20, 16  ;;  %v868_v27 = vshll.u32 %v837_v20, 16  ;;  %v801_v28 = vsel %vm2019_vm7, 0, %v800_v22  ;;  %v895_v35 = vrot.slane %v893_v17, 4 }
 0x113   : > { %v826_v30 = vsel %vm2040_vm8, 0, %v825_v23  ;;  %772 = vst [vmem:[#allocation2 + $0x28] sm:$0xf] %v771_v24  ;;  %775 = vst [vmem:[#allocation2 + $0x2c] sm:$0x1] %v774_v25  ;;  %v898_v37 = vrot.slane %v896_v21, 5 }
 0x114   : > { %v2095_v31 = vld [vmem:[#allocation2 + $0x4] sm:$0x1]  ;;  %802 = vst [vmem:[#allocation2 + $0x20] sm:$0x1] %v801_v28  ;;  %827 = vst [vmem:[#allocation2 + $0x24] sm:$0x1] %v826_v30 }
 0x115   : > { %v867_v29 = vrot.slane %v865_v26, 4  ;;  %v870_v33 = vrot.slane %v868_v27, 5  ;;  %v840_v34 = vld [vmem:[#allocation2 + $0x18] sm:$0xf]  ;;  %v874_v40 = vshll.u32 %v2095_v31, 16  ;;  %v899_v59 = vor.u32 %v898_v37, %v895_v35 }
 0x116   : > { %v907_v38 = vshrl.u32 %v840_v34, 16  ;;  %v910_v39 = vshll.u32 %v840_v34, 16  ;;  %v838_v61 = vld [vmem:[#allocation2 + $0x8] sm:$0xf]  ;;  %v2099_v41 = vld [vmem:[#allocation2 + $0xc] sm:$0x1]  ;;  %v1625_v50 = vcombine.low %v2077_v10, %v840_v34 }
 0x117   : > { %v871_v42 = vor.u32 %v870_v33, %v867_v29  ;;  %v2101_v43 = vld [vmem:[#allocation2 + $0x1c] sm:$0x1]  ;;  %v809_v45 = vld [vmem:[#allocation2 + $0x38] sm:$0x1]  ;;  %v879_v47 = vshrl.u32 %v838_v61, 16  ;;  %v882_v48 = vshll.u32 %v838_v61, 16  ;;  %v1624_v49 = vcombine.low %v837_v20, %v838_v61 }
 0x118   : > { %v834_v46 = vld [vmem:[#allocation2 + $0x3c] sm:$0x1]  ;;  %v810_v51 = vsel %vm2019_vm7, 0, %v809_v45  ;;  %v909_v53 = vrot.slane %v907_v38, 4  ;;  %v912_v54 = vrot.slane %v910_v39, 5  ;;  %v888_v57 = vshll.u32 %v2099_v41, 16 }
 0x119   : > { %v835_v52 = vsel %vm2040_vm8, 0, %v834_v46  ;;  %811 = vst [vmem:[#allocation2 + $0x38] sm:$0x1] %v810_v51  ;;  %v881_v55 = vrot.slane %v879_v47, 4  ;;  %v884_v56 = vrot.slane %v882_v48, 5  ;;  %1796 = vmatprep.mubr.msk.bf16.mxu0 %vm319_vm0, %v1624_v49  ;;  %v872_v63 = vrot.slane %v871_v42, 4 }
 0x11a   : > { %836 = vst [vmem:[#allocation2 + $0x3c] sm:$0x1] %v835_v52  ;;  %v2110_v58 = vld [vmem:[#allocation2 + $0x30] sm:$0xf]  ;;  %v803_v60 = vld [vmem:[#allocation2 + $0x28] sm:$0x1]  ;;  %1797 = vmatmul.mubr.msk.bf16.vlgmr.msra.gmra.mxu0 %vm319_vm0, %v1625_v50  ;;  %v913_v0 = vor.u32 %v912_v54, %v909_v53 }
 0x11b   : > { %v828_v62 = vld [vmem:[#allocation2 + $0x2c] sm:$0x1]  ;;  %v916_v1 = vshll.u32 %v2101_v43, 16  ;;  %v804_v2 = vsel %vm2019_vm7, 0, %v803_v60  ;;  %v841_v4 = vld [vmem:[#allocation2 + $0x20] sm:$0xf]  ;;  %v885_v5 = vor.u32 %v884_v56, %v881_v55 }
 0x11c   : > { %v829_v3 = vsel %vm2040_vm8, 0, %v828_v62  ;;  %v949_v6 = vshrl.u32 %v2110_v58, 16  ;;  %805 = vst [vmem:[#allocation2 + $0x28] sm:$0x1] %v804_v2  ;;  %v921_v7 = vshrl.u32 %v841_v4, 16  ;;  %v924_v8 = vshll.u32 %v841_v4, 16 }
 0x11d   : > { %830 = vst [vmem:[#allocation2 + $0x2c] sm:$0x1] %v829_v3  ;;  %v876_v9 = vrot.slane %v874_v40, 5  ;;  %v952_v10 = vshll.u32 %v2110_v58, 16  ;;  %v886_v32 = vrot.slane %v885_v5, 4  ;;  %v890_v16 = vrot.slane %v888_v57, 5 }
 0x11e   : > { %v900_v13 = vrot.slane %v899_v59, 4  ;;  %v914_v14 = vrot.slane %v913_v0, 4  ;;  %v904_v15 = vrot.slane %v902_v36, 5  ;;  %v918_v17 = vrot.slane %v916_v1, 5  ;;  %v1855_v33 = vld [vmem:[%s2271_s3 + $0x50] sm:$0xff]   ;;  %v1856_v51 = vld [vmem:[%s2271_s3 + $0x48] sm:$0xff]  }
 0x11f   : > { %v923_v18 = vrot.slane %v921_v7, 4  ;;  %v877_v19 = vsel %vm2122_vm11, %v872_v63, %v876_v9  ;;  %v891_v20 = vsel %vm2122_vm11, %v886_v32, %v890_v16  ;;  %v951_v21 = vrot.slane %v949_v6, 4  ;;  %v2138_v34 = vld [vmem:[#allocation2 + $0x24] sm:$0x1]  ;;  %v2146_v46 = vld [vmem:[#allocation2 + $0x34] sm:$0x1] }
 0x120   : > { %v926_v22 = vrot.slane %v924_v8, 5  ;;  %v1612_v23 = vcombine.low %v877_v19, %v891_v20  ;;  %v844_v24 = vld [vmem:[#allocation2 + $0x38] sm:$0xf]  ;;  %v905_v25 = vsel %vm2122_vm11, %v900_v13, %v904_v15  ;;  %v919_v26 = vsel %vm2122_vm11, %v914_v14, %v918_v17  ;;  %v1220_v55 = vld [vmem:[#allocation2 + $0x8] sm:$0xe]  ;;  %v1857_v2 = vld [vmem:[%s2271_s3 + $0x40] sm:$0xff]  }
 0x121   : > { %v954_v27 = vrot.slane %v952_v10, 5  ;;  %v963_v28 = vshrl.u32 %v844_v24, 16  ;;  %v966_v30 = vshll.u32 %v844_v24, 16  ;;  %v1613_v29 = vcombine.low %v905_v25, %v919_v26  ;;  %v2140_v35 = vld [vmem:[#allocation2 + $0x3c] sm:$0x1] }
 0x122   : > { %1780 = vmatprep.mubr.msk.bf16.mxu1 %vm319_vm0, %v1612_v23  ;;  %v927_v45 = vor.u32 %v926_v22, %v923_v18  ;;  %v1627_v47 = vcombine.low %v2110_v58, %v844_v24  ;;  %v972_v50 = vshll.u32 %v2140_v35, 16  ;;  %v958_v56 = vshll.u32 %v2146_v46, 16  ;;  %v1219_v0 = vld [vmem:[#allocation2] sm:$0xe]  ;;  %v1222_v17 = vld [vmem:[#allocation2 + $0x18] sm:$0xe] }
 0x123   : > { %v842_v36 = vld [vmem:[#allocation2 + $0x28] sm:$0xf]  ;;  %v965_v37 = vrot.slane %v963_v28, 4  ;;  %v968_v38 = vrot.slane %v966_v30, 5  ;;  %1781 = vmatmul.mubr.msk.bf16.vlgmr.msra.gmra.mxu1 %vm319_vm0, %v1613_v29  ;;  %v955_v48 = vor.u32 %v954_v27, %v951_v21  ;;  %v1252_v60 = vrot.slane %v2099_v41, 5 }
 0x124   : > { %v2143_v39 = vld [vmem:[#allocation2 + $0x2c] sm:$0x1]  ;;  %v935_v40 = vshrl.u32 %v842_v36, 16  ;;  %v938_v61 = vshll.u32 %v842_v36, 16  ;;  %v1626_v42 = vcombine.low %v841_v4, %v842_v36  ;;  %1805 = vmatpush3.bf16.msra.mxu1 %v1999_v44  ;;  %v930_v44 = vshll.u32 %v2138_v34, 16 }
 0x125   : > { %1806 = vmatprep.subr.bf16.mxu1 %v1855_v33  ;;  %v969_v49 = vor.u32 %v968_v38, %v965_v37  ;;  %v944_v54 = vshll.u32 %v2143_v39, 16  ;;  %v928_v58 = vrot.slane %v927_v45, 4  ;;  %v956_v62 = vrot.slane %v955_v48, 4  ;;  %v1224_v20 = vld [vmem:[#allocation2 + $0x28] sm:$0xe] }
 0x126   : > { %v937_v52 = vrot.slane %v935_v40, 4  ;;  %v940_v53 = vrot.slane %v938_v61, 5  ;;  %1800 = vmatprep.mubr.msk.bf16.mxu0 %vm319_vm0, %v1626_v42  ;;  %v974_v63 = vrot.slane %v972_v50, 5  ;;  %v1637_v1 = vrot.slane %v1220_v55, 9  ;;  %v1221_v21 = vld [vmem:[#allocation2 + $0x10] sm:$0xe] }
 0x127   : > { %1801 = vmatmul.mubr.msk.bf16.gmra.mxu0 %vm319_vm0, %v1627_v47  ;;  %v970_v57 = vrot.slane %v969_v49, 4  ;;  %v932_v3 = vrot.slane %v930_v44, 5  ;;  %v946_v5 = vrot.slane %v944_v54, 5  ;;  %v1248_v6 = vrot.slane %v2095_v31, 5  ;;  %v1223_v24 = vld [vmem:[#allocation2 + $0x20] sm:$0xe] }
 0x128   : > { %1807 = vmatpush3.bf16.msra.mxu1 %v1855_v33  ;;  %v941_v59 = vor.u32 %v940_v53, %v937_v52  ;;  %v960_v7 = vrot.slane %v958_v56, 5  ;;  %v1636_v32 = vrot.slane %v1219_v0, 9  ;;  %v1253_v31 = vsel %vm2166_vm14, %v1637_v1, %v1252_v60  ;;  %v1226_v36 = vld [vmem:[#allocation2 + $0x38] sm:$0xe]  ;;  %v1225_v38 = vld [vmem:[#allocation2 + $0x30] sm:$0xe] }
 0x129   : > { %1808 = vmatprep.subr.bf16.mxu1 %v1856_v51  ;;  %v975_v8 = vsel %vm2122_vm11, %v970_v57, %v974_v63  ;;  %v933_v9 = vsel %vm2122_vm11, %v928_v58, %v932_v3  ;;  %v1260_v19 = vrot.slane %v2101_v43, 5  ;;  %v1268_v22 = vrot.slane %v2143_v39, 5 }
 0x12a   : > { %v942_v4 = vrot.slane %v941_v59, 4  ;;  %v961_v13 = vsel %vm2122_vm11, %v956_v62, %v960_v7  ;;  %v1249_v15 = vsel %vm2166_vm14, %v1636_v32, %v1248_v6  ;;  %v1256_v12 = vrot.slane %v2079_v11, 5 }
 0x12b   : > { %v1615_v14 = vcombine.low %v961_v13, %v975_v8  ;;  %v1652_v18 = vcombine.low %v1249_v15, %v1253_v31  ;;  %v1639_v23 = vrot.slane %v1222_v17, 9  ;;  %v1264_v25 = vrot.slane %v2138_v34, 5 }
 0x12c   : > { %v947_v10 = vsel %vm2122_vm11, %v942_v4, %v946_v5  ;;  %1809 = vmatpush3.bf16.msra.mxu1 %v1856_v51  ;;  %v1641_v26 = vrot.slane %v1224_v20, 9  ;;  %v1638_v27 = vrot.slane %v1221_v21, 9  ;;  %v1640_v28 = vrot.slane %v1223_v24, 9 }
 0x12d   : > { %v1614_v16 = vcombine.low %v933_v9, %v947_v10  ;;  %1810 = vmatprep.subr.bf16.mxu1 %v1857_v2  ;;  %v1261_v43 = vsel %vm2166_vm14, %v1639_v23, %v1260_v19  ;;  %v1276_v34 = vrot.slane %v2140_v35, 5  ;;  %v1272_v39 = vrot.slane %v2146_v46, 5 }
 0x12e   : > { %v1269_v30 = vsel %vm2166_vm14, %v1641_v26, %v1268_v22  ;;  %v1257_v29 = vsel %vm2166_vm14, %v1638_v27, %v1256_v12  ;;  %v1265_v11 = vsel %vm2166_vm14, %v1640_v28, %v1264_v25  ;;  %v1643_v40 = vrot.slane %v1226_v36, 9 }
 0x12f   : > { %1784 = vmatprep.mubr.msk.bf16.mxu1 %vm319_vm0, %v1614_v16  ;;  %v1653_v33 = vcombine.low %v1257_v29, %v1261_v43  ;;  %v1654_v37 = vcombine.low %v1265_v11, %v1269_v30  ;;  %v1642_v61 = vrot.slane %v1225_v38, 9 }
 0x130   : > { %1785 = vmatmul.mubr.msk.bf16.gmra.mxu1 %vm319_vm0, %v1615_v14  ;;  %v1277_v42 = vsel %vm2166_vm14, %v1643_v40, %v1276_v34 }
 0x131   : > { %1812 = vmatprep.mubr.msk.bf16.mxu1 %vm319_vm0, %v1652_v18  ;;  %1811 = vmatpush3.bf16.msra.mxu1 %v1857_v2  ;;  %v1273_v45 = vsel %vm2166_vm14, %v1642_v61, %v1272_v39 }
 0x132   : > { %v1655_v47 = vcombine.low %v1273_v45, %v1277_v42 }
 0x138   : > { %1813 = vmatmul.mubr.msk.bf16.vlgmr.msra.gmra.mxu1 %vm319_vm0, %v1653_v33 }
 0x139   : > { %1816 = vmatprep.mubr.msk.bf16.mxu1 %vm319_vm0, %v1654_v37 }
 0x140   : > { %1817 = vmatmul.mubr.msk.bf16.gmra.mxu1 %vm319_vm0, %v1655_v47 }
 0x1da   : > { %v1798_v49 = vpop.f32.mrf.mxu0 }
 0x1dc   : > { %v1188_v51 = vpop.f32.mrf.mxu0 }
 0x1de   : > { %v1799_v53 = vpop.f32.mrf.mxu0 }
 0x1e0   : > { %v1191_v54 = vpop.f32.mrf.mxu0 }
 0x1e3   : > { %v1782_v35 = vpop.f32.mrf.mxu1 }
 0x1e4   : > { %v1197_v57 = vadd.f32 %v1798_v49, %v1782_v35 }
 0x1e5   : > { %v1067_v48 = vpop.f32.mrf.mxu1 }
 0x1e6   : > { %v1189_v60 = vadd.f32 %v1188_v51, %v1067_v48 }
 0x1e7   : > { %v1783_v50 = vpop.f32.mrf.mxu1  ;;  %v1802_v58 = vpop.f32.mrf.mxu0 }
 0x1e8   : > { %v1200_v0 = vadd.f32 %v1799_v53, %v1783_v50 }
 0x1e9   : > { %v1070_v52 = vpop.f32.mrf.mxu1  ;;  %v1204_v2 = vpop.f32.mrf.mxu0 }
 0x1ea   : > { %v1192_v4 = vadd.f32 %v1191_v54, %v1070_v52 }
 0x1eb   : > { %v1803_v41 = vpop.f32.mrf.mxu0 }
 0x1ed   : > { %v1207_v14 = vpop.f32.mrf.mxu0 }
 0x1f0   : > { %v1786_v46 = vpop.f32.mrf.mxu1 }
 0x1f1   : > { %v1213_v7 = vadd.f32 %v1802_v58, %v1786_v46 }
 0x1f2   : > { %v1083_v44 = vpop.f32.mrf.mxu1 }
 0x1f3   : > { %v1205_v10 = vadd.f32 %v1204_v2, %v1083_v44 }
 0x1f4   : > { %v1787_v55 = vpop.f32.mrf.mxu1 }
 0x1f5   : > { %v1216_v16 = vadd.f32 %v1803_v41, %v1787_v55 }
 0x1f6   : > { %v1086_v56 = vpop.f32.mrf.mxu1 }
 0x1f7   : > { %v1208_v17 = vadd.f32 %v1207_v14, %v1086_v56 }
 0x1f8   : > { %v1814_v59 = vpop.f32.mrf.mxu1 }
 0x1f9   : > { %v1402_v62 = vadd.f32 %v1814_v59, %v1197_v57 }
 0x1fa   : > { %v1369_v63 = vpop.f32.mrf.mxu1 }
 0x1fb   : > { %1410 = vst.msk [vmem:[%s2208_s15 + $0x10] sm:$0xff] %vm319_vm0, %v1402_v62  ;;  %v1400_v1 = vadd.f32 %v1369_v63, %v1189_v60 }
 0x1fc   : > { %v1815_v3 = vpop.f32.mrf.mxu1 }
 0x1fd   : > { %1408 = vst.msk [vmem:[%s2208_s15] sm:$0xff] %vm319_vm0, %v1400_v1  ;;  %v1403_v5 = vadd.f32 %v1815_v3, %v1200_v0 }
 0x1fe   : > { %v1372_v6 = vpop.f32.mrf.mxu1 }
 0x1ff   : > { %1411 = vst.msk [vmem:[%s2208_s15 + $0x18] sm:$0xff] %vm319_vm0, %v1403_v5  ;;  %v1401_v8 = vadd.f32 %v1372_v6, %v1192_v4 }
 0x200   : > { %v1818_v9 = vpop.f32.mrf.mxu1 }
 0x201   : > { %1409 = vst.msk [vmem:[%s2208_s15 + $0x8] sm:$0xff] %vm319_vm0, %v1401_v8  ;;  %v1406_v32 = vadd.f32 %v1818_v9, %v1213_v7 }
 0x202   : > { %v1385_v31 = vpop.f32.mrf.mxu1 }
 0x203   : > { %1414 = vst.msk [vmem:[%s2208_s15 + $0x30] sm:$0xff] %vm319_vm0, %v1406_v32  ;;  %v1404_v13 = vadd.f32 %v1385_v31, %v1205_v10 }
 0x204   : > { %v1819_v15 = vpop.f32.mrf.mxu1 }
 0x205   : > { %1412 = vst.msk [vmem:[%s2208_s15 + $0x20] sm:$0xff] %vm319_vm0, %v1404_v13  ;;  %v1407_v18 = vadd.f32 %v1819_v15, %v1216_v16  ;;  %1419 = sbr.rel (%p1664_p4) target bundleno = 524 (0x20c), region = 40 }
 0x206   : > { %v1388_v19 = vpop.f32.mrf.mxu1 }
 0x207   : > { %1415 = vst.msk [vmem:[%s2208_s15 + $0x38] sm:$0xff] %vm319_vm0, %v1407_v18  ;;  %v1405_v20 = vadd.f32 %v1388_v19, %v1208_v17 }
 0x209   : > { %1413 = vst.msk [vmem:[%s2208_s15 + $0x28] sm:$0xff] %vm319_vm0, %v1405_v20 }
 0x20a   : > { %v1866_v21 = vmov 0.0  }
 0x20b   : > { %1421 = vst.msk [vmem:[%s2273_s5] sm:$0x1] %vm740_vm4, %v1866_v21  ;;  %1422 = vst.msk [vmem:[%s2274_s6] sm:$0x1] %vm740_vm4, %v1866_v21 }
 0x20c PF: > { %v1424_v22 = vsel %vm319_vm0, %v1400_v1, 0.0  ;;  %v1425_v12 = vsel %vm319_vm0, %v1401_v8, 0.0  ;;  %v1427_v23 = vsel %vm319_vm0, %v1402_v62, 0.0  ;;  %v1429_v25 = vsel %vm319_vm0, %v1403_v5, 0.0 }
 0x20d   : > { %v1426_v24 = vadd.f32 %v1425_v12, %v1424_v22  ;;  %v1449_v26 = vmul.f32 %v1400_v1, %v1400_v1  ;;  %v1450_v27 = vmul.f32 %v1401_v8, %v1401_v8  ;;  %v1451_v43 = vmul.f32 %v1402_v62, %v1402_v62 }
 0x20e   : > { %v1452_v30 = vmul.f32 %v1403_v5, %v1403_v5  ;;  %v1431_v29 = vsel %vm319_vm0, %v1404_v13, 0.0  ;;  %v1453_v33 = vmul.f32 %v1404_v13, %v1404_v13  ;;  %v1433_v39 = vsel %vm319_vm0, %v1405_v20, 0.0 }
 0x20f   : > { %v1428_v28 = vadd.f32 %v1427_v23, %v1426_v24  ;;  %v1457_v11 = vsel %vm319_vm0, %v1449_v26, 0.0  ;;  %v1458_v36 = vsel %vm319_vm0, %v1450_v27, 0.0  ;;  %v1460_v38 = vsel %vm319_vm0, %v1451_v43, 0.0 }
 0x210   : > { %v1459_v34 = vadd.f32 %v1458_v36, %v1457_v11  ;;  %v1454_v40 = vmul.f32 %v1405_v20, %v1405_v20  ;;  %v1462_v61 = vsel %vm319_vm0, %v1452_v30, 0.0  ;;  %v1435_v47 = vsel %vm319_vm0, %v1406_v32, 0.0 }
 0x211   : > { %v1430_v37 = vadd.f32 %v1429_v25, %v1428_v28  ;;  %v1455_v35 = vmul.f32 %v1406_v32, %v1406_v32  ;;  %v1464_v48 = vsel %vm319_vm0, %v1453_v33, 0.0  ;;  %v1437_v51 = vsel %vm319_vm0, %v1407_v18, 0.0 }
 0x212   : > { %v1461_v45 = vadd.f32 %v1460_v38, %v1459_v34  ;;  %v1456_v52 = vmul.f32 %v1407_v18, %v1407_v18  ;;  %v1466_v53 = vsel %vm319_vm0, %v1454_v40, 0.0  ;;  %v1423_v5 = vld [vmem:[%s2273_s5] sm:$0x1] }
 0x213   : > { %v1432_v42 = vadd.f32 %v1431_v29, %v1430_v37  ;;  %v1468_v54 = vsel %vm319_vm0, %v1455_v35, 0.0  ;;  %v1448_v9 = vld [vmem:[%s2274_s6] sm:$0x1] }
 0x214   : > { %v1463_v50 = vadd.f32 %v1462_v61, %v1461_v45  ;;  %v1470_v57 = vsel %vm319_vm0, %v1456_v52, 0.0 }
 0x215   : > { %v1434_v49 = vadd.f32 %v1433_v39, %v1432_v42 }
 0x216   : > { %v1465_v44 = vadd.f32 %v1464_v48, %v1463_v50 }
 0x217   : > { %v1436_v46 = vadd.f32 %v1435_v47, %v1434_v49 }
 0x218   : > { %v1467_v56 = vadd.f32 %v1466_v53, %v1465_v44 }
 0x219   : > { %v1438_v55 = vadd.f32 %v1437_v51, %v1436_v46 }
 0x21a   : > { %v1469_v59 = vadd.f32 %v1468_v54, %v1467_v56 }
 0x21b   : > { %v1439_v58 = vrot.slane %v1438_v55, 4 }
 0x21c   : > { %v1471_v62 = vadd.f32 %v1470_v57, %v1469_v59 }
 0x21d   : > { %v1440_v60 = vadd.f32 %v1439_v58, %v1438_v55 }
 0x21e   : > { %v1472_v0 = vrot.slane %v1471_v62, 4 }
 0x21f   : > { %v1441_v63 = vrot.slane %v1440_v60, 2 }
 0x220   : > { %v1473_v2 = vadd.f32 %v1472_v0, %v1471_v62 }
 0x221   : > { %v1442_v1 = vadd.f32 %v1441_v63, %v1440_v60 }
 0x222   : > { %v1474_v4 = vrot.slane %v1473_v2, 2 }
 0x223   : > { %v1443_v3 = vrot.slane %v1442_v1, 1 }
 0x224   : > { %v1475_v7 = vadd.f32 %v1474_v4, %v1473_v2 }
 0x225   : > { %v1444_v6 = vadd.f32 %v1443_v3, %v1442_v1 }
 0x226   : > { %v1476_v41 = vrot.slane %v1475_v7, 1 }
 0x227   : > { %v1445_v8 = vadd.f32 %v1444_v6, %v1423_v5 }
 0x228   : > { %v1477_v10 = vadd.f32 %v1476_v41, %v1475_v7 }
 0x229   : > { %1447 = vst.msk [vmem:[%s2273_s5] sm:$0x1] %vm740_vm4, %v1445_v8 }
 0x22a   : > { %v1478_v32 = vadd.f32 %v1477_v10, %v1448_v9 }
 0x22c   : > { %1479 = vst.msk [vmem:[%s2274_s6] sm:$0x1] %vm740_vm4, %v1478_v32 }
 0x22d PF: > { %s17_s21 = sadd.s32 1, %s1864_s21  }
 0x22e   : > { %p14_p5 = scmp.ge.s32.totalorder %s17_s21, 4  }
 0x230   :  { %16 = sbr.rel (!%p14_p5) target bundleno = 1 (0x1), region = 90 }

// kernel: tile.38
= control target key start
LH: loop header
LB: loop body
LE: loop exit
PB: predicated region body
PF: predicated region fallthrough
CT: control target
= control target key end

     0   :  { %s22_s0 = inlined_call_operand.vmem [shape: f32[16], index: 0, kind: input, shape index: {}]   ;;  %s23_s1 = inlined_call_operand.vmem [shape: f32[4,16], index: 1, kind: output, shape index: {}]  }
   0x1   :  { %v4_v0 = vld [vmem:[%s22_s0] ss:$0 sm:$0xff] }
   0x2   :  { %5 = vst [vmem:[%s23_s1] sm:$0xf] %v4_v0 }

// kernel: tile.43
= control target key start
LH: loop header
LB: loop body
LE: loop exit
PB: predicated region body
PF: predicated region fallthrough
CT: control target
= control target key end

     0   :  { %vm8_vm0 = vcmask 130048   ;;  %s40_s8 = smov 16   ;;  %s41_s9 = smov 32   ;;  %vm14_vm1 = vcmask 523648   ;;  %vm20_vm2 = vcmask 392448   ;;  %vm26_vm3 = vcmask 261248   ;;  %s58_s0 = inlined_call_operand.vmem [shape: f32[4,16], index: 0, kind: input, shape index: {}]   ;;  %s59_s1 = inlined_call_operand.vmem [shape: f32[1,64], index: 1, kind: output, shape index: {}]  }
   0x1   :  { %v5_v0 = vld [vmem:[%s58_s0] sm:$0xf]  ;;  %s39_s0 = smov 48  }
   0x2   :  { %6 = vst [vmem:[#allocation1] sm:$0xf] %v5_v0 }
   0x9   :  { %v11_v1 = vld [vmem:[#allocation1 + $0x3] sm:$0x1]   ;;  %v23_v2 = vld [vmem:[#allocation1 + $0x1] sm:$0x1]   ;;  %v7_v3 = vld [vmem:[#allocation1] sm:$0x1]  }
   0xa   :  { %12 = vrot.lane.b32.xlu0 %v11_v1, %s39_s0  ;;  %24 = vrot.lane.b32.xlu1 %v23_v2, %s40_s8  ;;  %v17_v4 = vld [vmem:[#allocation1 + $0x2] sm:$0x1]   ;;  %9 = vst.msk [vmem:[#allocation0] sm:$0x1] %vm8_vm0, %v7_v3  }
   0xe   :  { %18 = vrot.lane.b32.xlu0 %v17_v4, %s41_s9 }
  0x7c   :  { %v13_v5 = vpop.permute.xlu0 %12   ;;  %v25_v6 = vpop.permute.xlu1 %24  }
  0x7d   :  { %15 = vst.msk [vmem:[#allocation0] sm:$0x1] %vm14_vm1, %v13_v5  }
  0x80   :  { %v19_v7 = vpop.permute.xlu0 %18  }
  0x81   :  { %21 = vst.msk [vmem:[#allocation0] sm:$0x1] %vm20_vm2, %v19_v7  }
  0x82   :  { %27 = vst.msk [vmem:[#allocation0] sm:$0x1] %vm26_vm3, %v25_v6  }
  0x89   :  { %v32_v8 = vld [vmem:[#allocation0] sm:$0x1] }
  0x8a   :  { %35 = vst [vmem:[%s59_s1] sm:$0x1] %v32_v8 }

// kernel: decoder_traversability.31
= control target key start
LH: loop header
LB: loop body
LE: loop exit
PB: predicated region body
PF: predicated region fallthrough
CT: control target
= control target key end

     0   :  { %s2618_s15 = smov 0   ;;  %s3145_s0 = inlined_call_operand.vmem [shape: f32[2,9,9,128], index: 0, kind: input, shape index: {}]   ;;  %s3146_s1 = inlined_call_operand.vmem [shape: bf16[9,128,16], index: 1, kind: input, shape index: {}]   ;;  %s3147_s2 = inlined_call_operand.vmem [shape: f32[2,64,64], index: 2, kind: output, shape index: {0}]   ;;  %s3148_s3 = inlined_call_operand.vmem [shape: f32[1,64], index: 3, kind: output, shape index: {1}]   ;;  %s3149_s4 = inlined_call_operand.vmem [shape: f32[1,64], index: 4, kind: output, shape index: {2}]  }
   0x1 LB: > { %s2624_s16 = sadd.s32 4294967295, %s2587_s15   ;;  %p1888_p0 = scmp.ge.s32.totalorder %s2587_s15, 1  ;;  %s2587_s15 = sphi %s2618_s15, %s15_s15  }
   0x2   : > { %p157_p1 = scmp.lt.s32.totalorder %s2587_s15, 3 }
   0x4   : > { %p158_p2 = pnand %p1888_p0, %p157_p1 }
   0x5   : > { %p183_p3 = scmp.lt.s32.totalorder (!%p158_p2), %s2624_s16, 1  ;;  %s2589_s30 = smov (!%p158_p2), 16  }
   0x6   : > { %161 = sbr.rel (%p158_p2) target bundleno = 535 (0x217), region = 28  ;;  %s2590_s5 = smov (!%p158_p2), 32  }
   0x7   : > { %s2591_s6 = smov (!%p158_p2), 48   ;;  %p2126_p4 = scmp.ne.s32.totalorder (!%p158_p2), %s2624_s16, 0 }
   0xb   : > { %v2509_v0 = vld [vmem:[%s3146_s1 + $0x138] sm:$0xff]   ;;  %v2511_v2 = vld [vmem:[%s3146_s1 + $0x130] sm:$0xff]   ;;  %v2513_v4 = vld [vmem:[%s3146_s1 + $0x128] sm:$0xff]   ;;  %s2648_s29 = scalar_select %p183_p3, %s2624_s16, 1  ;;  %vm261_vm0 = vsmask.f32 3328 }
   0xc   : > { %v2510_v1 = vld [vmem:[%s3146_s1 + $0xf8] sm:$0xff]   ;;  %2264 = vmatprep.subr.bf16.mxu0 %v2509_v0  ;;  %v2512_v3 = vld [vmem:[%s3146_s1 + $0xf0] sm:$0xff]   ;;  %v2514_v5 = vld [vmem:[%s3146_s1 + $0xe8] sm:$0xff]   ;;  %vm262_vm1 = vsmask.f32 7440  ;;  %vm1717_vm3 = vcmask 130048  }
   0xd   : > { %2288 = vmatprep.subr.bf16.mxu1 %v2510_v1  ;;  %2265 = vmatpush3.bf16.msra.mxu0 %v2509_v0  ;;  %v2515_v6 = vld [vmem:[%s3146_s1 + $0x120] sm:$0xff]   ;;  %s2496_s8 = smul.u32 144, %s2648_s29  ;;  %v2517_v8 = vld [vmem:[%s3146_s1 + $0x118] sm:$0xff]   ;;  %v2519_v10 = vld [vmem:[%s3146_s1 + $0x110] sm:$0xff]   ;;  %s2129_s7 = sshll.u32 %s2648_s29, 6  ;;  %vm1726_vm4 = vcmask 261120  }
   0xe   : > { %2289 = vmatpush3.bf16.msra.mxu1 %v2510_v1  ;;  %2266 = vmatprep.subr.bf16.mxu0 %v2511_v2  ;;  %v2516_v7 = vld [vmem:[%s3146_s1 + $0xe0] sm:$0xff]   ;;  %v2518_v9 = vld [vmem:[%s3146_s1 + $0xd8] sm:$0xff]   ;;  %v2520_v11 = vld [vmem:[%s3146_s1 + $0xd0] sm:$0xff]   ;;  %vm1735_vm5 = vcmask 392192   ;;  %s3059_s10 = scalar_lea.vmem %s3147_s2, %s2129_s7  ;;  %vm1744_vm6 = vcmask 523264  }
   0xf   : > { %2290 = vmatprep.subr.bf16.mxu1 %v2512_v3  ;;  %s2666_s17 = scalar_lea.vmem %s3145_s0, %s2496_s8  ;;  %v2521_v26 = vld [vmem:[%s3146_s1 + $0x108] sm:$0xff]   ;;  %v2523_v44 = vld [vmem:[%s3146_s1 + $0x100] sm:$0xff]   ;;  %vm2709_vm2 = vmor %vm261_vm0, %vm262_vm1 }
  0x10   : > { %v194_v12 = vld [vmem:[%s2666_s17] sm:$0xff]  ;;  %v2676_v13 = vld [vmem:[%s2666_s17 + $0x10] sm:$0xff]  ;;  %v195_v19 = vld [vmem:[%s2666_s17 + $0x8] sm:$0x1] }
  0x11   : > { %2267 = vmatpush3.bf16.msra.mxu0 %v2511_v2  ;;  %v2679_v14 = vld [vmem:[%s2666_s17 + $0x20] sm:$0xff]  ;;  %v2130_v15 = vpack.c.bf16 %v194_v12, %v194_v12  ;;  %v2682_v16 = vpack.c.bf16 %v2676_v13, %v194_v12  ;;  %v2685_v17 = vld [vmem:[%s2666_s17 + $0x30] sm:$0xff]  ;;  %v197_v20 = vld [vmem:[%s2666_s17 + $0x18] sm:$0x1]  ;;  %v2132_v21 = vpack.c.bf16 %v2676_v13, %v2676_v13  ;;  %v2131_v24 = vpack.c.bf16 %v195_v19, %v195_v19 }
  0x12   : > { %2291 = vmatpush3.bf16.msra.mxu1 %v2512_v3  ;;  %2268 = vmatprep.subr.bf16.mxu0 %v2513_v4  ;;  %v2134_v18 = vpack.c.bf16 %v2679_v14, %v2679_v14  ;;  %v2136_v22 = vpack.c.bf16 %v2685_v17, %v2685_v17  ;;  %v199_v23 = vld [vmem:[%s2666_s17 + $0x28] sm:$0x1]  ;;  %v2133_v25 = vpack.c.bf16 %v197_v20, %v197_v20  ;;  %v201_v43 = vld [vmem:[%s2666_s17 + $0x38] sm:$0x1]  ;;  %v2524_v54 = vld [vmem:[%s3146_s1 + $0xc0] sm:$0xff]  }
  0x13   : > { %2292 = vmatprep.subr.bf16.mxu1 %v2514_v5  ;;  %v2522_v27 = vld [vmem:[%s3146_s1 + $0xc8] sm:$0xff]   ;;  %2280 = vmatprep.mubr.bf16.mxu0 %v2682_v16  ;;  %v2135_v28 = vpack.c.bf16 %v199_v23, %v199_v23  ;;  %v265_v29 = vshrl.u32 %v2130_v15, 16  ;;  %v268_v30 = vshll.u32 %v2130_v15, 16  ;;  %v274_v31 = vshll.u32 %v2131_v24, 16  ;;  %v2525_v0 = vld [vmem:[%s3146_s1 + $0x178] sm:$0xff]   ;;  %v2750_v12 = vld [vmem:[%s2666_s17 + $0x40] sm:$0xff] }
  0x14   : > { %v279_v32 = vshrl.u32 %v2132_v21, 16  ;;  %v282_v33 = vshll.u32 %v2132_v21, 16  ;;  %v288_v34 = vshll.u32 %v2133_v25, 16  ;;  %v293_v37 = vshrl.u32 %v2134_v18, 16  ;;  %v2526_v2 = vld [vmem:[%s3146_s1 + $0x78] sm:$0xff]   ;;  %v2753_v15 = vld [vmem:[%s2666_s17 + $0x50] sm:$0xff] }
  0x15   : > { %2269 = vmatpush3.bf16.msra.mxu0 %v2513_v4  ;;  %v267_v35 = vrot.slane %v265_v29, 4  ;;  %v270_v36 = vrot.slane %v268_v30, 5  ;;  %v296_v38 = vshll.u32 %v2134_v18, 16  ;;  %v276_v39 = vrot.slane %v274_v31, 5  ;;  %v2528_v19 = vld [vmem:[%s3146_s1 + $0x70] sm:$0xff]   ;;  %v2771_v23 = vld [vmem:[%s2666_s17 + $0x60] sm:$0xff] }
  0x16   : > { %2293 = vmatpush3.bf16.msra.mxu1 %v2514_v5  ;;  %2270 = vmatprep.subr.bf16.mxu0 %v2515_v6  ;;  %v281_v40 = vrot.slane %v279_v32, 4  ;;  %v284_v41 = vrot.slane %v282_v33, 5  ;;  %v290_v42 = vrot.slane %v288_v34, 5  ;;  %v295_v46 = vrot.slane %v293_v37, 4  ;;  %v2775_v24 = vld [vmem:[%s2666_s17 + $0x70] sm:$0xff]  ;;  %v2530_v34 = vld [vmem:[%s3146_s1 + $0x68] sm:$0xff]  }
  0x17   : > { %2294 = vmatprep.subr.bf16.mxu1 %v2516_v7  ;;  %v271_v45 = vor.u32 %v270_v36, %v267_v35  ;;  %v298_v47 = vrot.slane %v296_v38, 5  ;;  %v302_v48 = vshll.u32 %v2135_v28, 16  ;;  %v2137_v51 = vpack.c.bf16 %v201_v43, %v201_v43  ;;  %v2529_v28 = vld [vmem:[%s3146_s1 + $0x168] sm:$0xff]   ;;  %v205_v29 = vld [vmem:[%s2666_s17 + $0x58] sm:$0x1]  ;;  %v2559_v49 = vld [vmem:[%s3146_s1 + $0x230] sm:$0xff]  }
  0x18   : > { %v285_v50 = vor.u32 %v284_v41, %v281_v40  ;;  %v307_v52 = vshrl.u32 %v2136_v22, 16  ;;  %v310_v53 = vshll.u32 %v2136_v22, 16  ;;  %v2138_v20 = vpack.c.bf16 %v2750_v12, %v2750_v12 }
  0x19   : > { %2271 = vmatpush3.bf16.msra.mxu0 %v2515_v6  ;;  %v272_v55 = vrot.slane %v271_v45, 4  ;;  %v299_v56 = vor.u32 %v298_v47, %v295_v46  ;;  %v304_v57 = vrot.slane %v302_v48, 5  ;;  %v316_v61 = vshll.u32 %v2137_v51, 16  ;;  %v2531_v46 = vld [vmem:[%s3146_s1 + $0x160] sm:$0xff]   ;;  %v209_v51 = vld [vmem:[%s2666_s17 + $0x78] sm:$0x1] }
  0x1a   : > { %2295 = vmatpush3.bf16.msra.mxu1 %v2516_v7  ;;  %2272 = vmatprep.subr.bf16.mxu0 %v2517_v8  ;;  %v286_v58 = vrot.slane %v285_v50, 4  ;;  %v309_v59 = vrot.slane %v307_v52, 4  ;;  %v312_v60 = vrot.slane %v310_v53, 5  ;;  %v2737_v7 = vpack.c.bf16 %v2685_v17, %v2679_v14  ;;  %v2532_v53 = vld [vmem:[%s3146_s1 + $0x60] sm:$0xff]  }
  0x1b   : > { %2296 = vmatprep.subr.bf16.mxu1 %v2518_v9  ;;  %v277_v62 = vsel %vm2709_vm2, %v272_v55, %v276_v39  ;;  %v300_v63 = vrot.slane %v299_v56, 4  ;;  %v318_v4 = vrot.slane %v316_v61, 5  ;;  %v2140_v21 = vpack.c.bf16 %v2753_v15, %v2753_v15 }
  0x1c   : > { %v2723_v1 = vsel %vm2709_vm2, %v286_v58, %v290_v42  ;;  %v313_v3 = vor.u32 %v312_v60, %v309_v59  ;;  %v2768_v22 = vpack.c.bf16 %v2753_v15, %v2750_v12  ;;  %v2142_v25 = vpack.c.bf16 %v2771_v23, %v2771_v23 }
  0x1d   : > { %2273 = vmatpush3.bf16.msra.mxu0 %v2517_v8  ;;  %v2730_v5 = vsel %vm2709_vm2, %v300_v63, %v304_v57  ;;  %v2733_v6 = vcombine.low %v277_v62, %v2723_v1  ;;  %v324_v31 = vshll.u32 %v2138_v20, 16  ;;  %v335_v32 = vshrl.u32 %v2140_v21, 16  ;;  %v2533_v62 = vld [vmem:[%s3146_s1 + $0x158] sm:$0xff]  }
  0x1e   : > { %2297 = vmatpush3.bf16.msra.mxu1 %v2518_v9  ;;  %2274 = vmatprep.subr.bf16.mxu0 %v2519_v10  ;;  %v2114_v8 = vcombine.low %v2723_v1, %v2730_v5  ;;  %v314_v9 = vrot.slane %v313_v3, 4  ;;  %v338_v33 = vshll.u32 %v2140_v21, 16  ;;  %v2144_v35 = vpack.c.bf16 %v2775_v24, %v2775_v24  ;;  %v2579_v1 = vld [vmem:[%s3146_s1 + $0x8] sm:$0xff]  }
  0x1f   : > { %2298 = vmatprep.subr.bf16.mxu1 %v2520_v11  ;;  %2304 = vmatprep.mubr.bf16.mxu1 %v2733_v6  ;;  %v2793_v36 = vpack.c.bf16 %v2775_v24, %v2771_v23  ;;  %v2141_v37 = vpack.c.bf16 %v205_v29, %v205_v29  ;;  %v326_v39 = vrot.slane %v324_v31, 5  ;;  %v337_v41 = vrot.slane %v335_v32, 4  ;;  %v2536_v31 = vld [vmem:[%s3146_s1 + $0x50] sm:$0xff]  }
  0x20   : > { %v340_v42 = vrot.slane %v338_v33, 5  ;;  %v349_v45 = vshrl.u32 %v2142_v25, 16  ;;  %v2145_v55 = vpack.c.bf16 %v209_v51, %v209_v51  ;;  %v352_v57 = vshll.u32 %v2142_v25, 16 }
  0x21   : > { %2275 = vmatpush3.bf16.msra.mxu0 %v2519_v10  ;;  %v2744_v10 = vsel %vm2709_vm2, %v314_v9, %v318_v4  ;;  %v344_v43 = vshll.u32 %v2141_v37, 16  ;;  %v363_v61 = vshrl.u32 %v2144_v35, 16  ;;  %v2844_v37 = vpack.c.bf16 %v2679_v14, %v2676_v13  ;;  %v2539_v13 = vld [vmem:[%s3146_s1 + $0x140] sm:$0xff]  }
  0x22   : > { %2299 = vmatpush3.bf16.msra.mxu1 %v2520_v11  ;;  %2276 = vmatprep.subr.bf16.mxu0 %v2521_v26  ;;  %v2527_v11 = vld [vmem:[%s3146_s1 + $0x170] sm:$0xff]   ;;  %v2757_v18 = vcombine.low %v2730_v5, %v2744_v10  ;;  %v341_v50 = vor.u32 %v340_v42, %v337_v41  ;;  %v351_v56 = vrot.slane %v349_v45, 4  ;;  %v354_v63 = vrot.slane %v352_v57, 5  ;;  %v2540_v14 = vld [vmem:[%s3146_s1 + $0x40] sm:$0xff]   ;;  %v2541_v41 = vld [vmem:[%s3146_s1 + $0x1f8] sm:$0xff]  }
  0x23   : > { %2300 = vmatprep.subr.bf16.mxu1 %v2522_v27  ;;  %v2542_v42 = vld [vmem:[%s3146_s1 + $0x1b8] sm:$0xff]   ;;  %v2544_v45 = vld [vmem:[%s3146_s1 + $0x1b0] sm:$0xff]   ;;  %v2580_v5 = vld [vmem:[%s3146_s1] sm:$0xff]  }
  0x24   : > { %v342_v59 = vrot.slane %v341_v50, 4  ;;  %v355_v25 = vor.u32 %v354_v63, %v351_v56  ;;  %v2548_v50 = vld [vmem:[%s3146_s1 + $0x1a0] sm:$0xff]   ;;  %v2551_v56 = vld [vmem:[%s3146_s1 + $0x1d0] sm:$0xff]  }
  0x25   : > { %2277 = vmatpush3.bf16.msra.mxu0 %v2521_v26  ;;  %v203_v26 = vld [vmem:[%s2666_s17 + $0x48] sm:$0x1]  ;;  %v2552_v57 = vld [vmem:[%s3146_s1 + $0x190] sm:$0xff]  }
  0x26   : > { %2301 = vmatpush3.bf16.msra.mxu1 %v2522_v27  ;;  %2278 = vmatprep.subr.bf16.mxu0 %v2523_v44  ;;  %v321_v27 = vshrl.u32 %v2138_v20, 16  ;;  %v2139_v30 = vpack.c.bf16 %v203_v26, %v203_v26 }
  0x27   : > { %2302 = vmatprep.subr.bf16.mxu1 %v2524_v54 }
  0x28   : > { %v323_v38 = vrot.slane %v321_v27, 4  ;;  %v330_v40 = vshll.u32 %v2139_v30, 16  ;;  %v356_v27 = vrot.slane %v355_v25, 4  ;;  %v2535_v30 = vld [vmem:[%s3146_s1 + $0x150] sm:$0xff]  }
  0x29   : > { %2279 = vmatpush3.bf16.msra.mxu0 %v2523_v44  ;;  %v207_v44 = vld [vmem:[%s2666_s17 + $0x68] sm:$0x1] }
  0x2a   : > { %2303 = vmatpush3.bf16.msra.mxu1 %v2524_v54  ;;  %2312 = vmatprep.subr.bf16.mxu0 %v2525_v0  ;;  %v327_v47 = vor.u32 %v326_v39, %v323_v38  ;;  %v332_v48 = vrot.slane %v330_v40, 5  ;;  %v2143_v52 = vpack.c.bf16 %v207_v44, %v207_v44  ;;  %v346_v54 = vrot.slane %v344_v43, 5  ;;  %v2537_v38 = vld [vmem:[%s3146_s1 + $0x148] sm:$0xff]   ;;  %v2543_v44 = vld [vmem:[%s3146_s1 + $0x1f0] sm:$0xff]  }
  0x2b   : > { %2336 = vmatprep.subr.bf16.mxu1 %v2526_v2  ;;  %v2538_v40 = vld [vmem:[%s3146_s1 + $0x48] sm:$0xff]   ;;  %v2872_v43 = vpack.c.bf16 %v2750_v12, %v2685_v17  ;;  %v210_v12 = vld [vmem:[%s2666_s17 + $0x80] sm:$0xff] }
  0x2c   : > { %2281 = vmatmul.mubr.bf16.vlgmr.msra.gmra.mxu0 %v2737_v7  ;;  %v328_v58 = vrot.slane %v327_v47, 4  ;;  %v358_v60 = vshll.u32 %v2143_v52, 16  ;;  %v2814_v4 = vsel %vm2709_vm2, %v342_v59, %v346_v54  ;;  %v2545_v17 = vld [vmem:[%s3146_s1 + $0x1e8] sm:$0xff]  }
  0x2d   : > { %2305 = vmatmul.mubr.bf16.vlgmr.msra.gmra.mxu1 %v2757_v18  ;;  %2313 = vmatpush3.bf16.msra.mxu0 %v2525_v0  ;;  %v366_v0 = vshll.u32 %v2144_v35, 16  ;;  %v2546_v47 = vld [vmem:[%s3146_s1 + $0x1a8] sm:$0xff]  }
  0x2e   : > { %2337 = vmatpush3.bf16.msra.mxu1 %v2526_v2  ;;  %2314 = vmatprep.subr.bf16.mxu0 %v2527_v11  ;;  %v372_v2 = vshll.u32 %v2145_v55, 16  ;;  %v2810_v3 = vsel %vm2709_vm2, %v328_v58, %v332_v48  ;;  %v360_v9 = vrot.slane %v358_v60, 5  ;;  %v2547_v48 = vld [vmem:[%s3146_s1 + $0x1e0] sm:$0xff]   ;;  %v211_v59 = vld [vmem:[%s2666_s17 + $0x88] sm:$0x1] }
  0x2f   : > { %2338 = vmatprep.subr.bf16.mxu1 %v2528_v19  ;;  %2284 = vmatprep.mubr.bf16.mxu0 %v2768_v22  ;;  %v2821_v20 = vcombine.low %v2810_v3, %v2814_v4  ;;  %v2115_v21 = vcombine.low %v2744_v10, %v2810_v3  ;;  %v368_v26 = vrot.slane %v366_v0, 5  ;;  %v2554_v60 = vld [vmem:[%s3146_s1 + $0x188] sm:$0xff]   ;;  %v2555_v0 = vld [vmem:[%s3146_s1 + $0x1c0] sm:$0xff]  }
  0x30   : > { %v374_v29 = vrot.slane %v372_v2, 5  ;;  %v2834_v32 = vsel %vm2709_vm2, %v356_v27, %v360_v9  ;;  %v2556_v2 = vld [vmem:[%s3146_s1 + $0x180] sm:$0xff]   ;;  %v2560_v27 = vld [vmem:[%s3146_s1 + $0xb0] sm:$0xff]  }
  0x31   : > { %2315 = vmatpush3.bf16.msra.mxu0 %v2527_v11  ;;  %v365_v11 = vrot.slane %v363_v61, 4  ;;  %2308 = vmatprep.mubr.bf16.mxu1 %v2821_v20  ;;  %v2147_v61 = vpack.c.bf16 %v211_v59, %v211_v59 }
  0x32   : > { %2339 = vmatpush3.bf16.msra.mxu1 %v2528_v19  ;;  %2316 = vmatprep.subr.bf16.mxu0 %v2529_v28  ;;  %v2534_v19 = vld [vmem:[%s3146_s1 + $0x58] sm:$0xff]  }
  0x33   : > { %2340 = vmatprep.subr.bf16.mxu1 %v2530_v34  ;;  %v391_v63 = vshll.u32 %v2147_v61, 16 }
  0x34   : > { %2285 = vmatmul.mubr.bf16.gmra.mxu0 %v2793_v36 }
  0x35   : > { %2317 = vmatpush3.bf16.msra.mxu0 %v2529_v28  ;;  %2328 = vmatprep.mubr.bf16.mxu0 %v2682_v16  ;;  %v369_v28 = vor.u32 %v368_v26, %v365_v11  ;;  %v393_v9 = vrot.slane %v391_v63, 5  ;;  %v2558_v26 = vld [vmem:[%s3146_s1 + $0xb8] sm:$0xff]  }
  0x36   : > { %2341 = vmatpush3.bf16.msra.mxu1 %v2530_v34  ;;  %2318 = vmatprep.subr.bf16.mxu0 %v2531_v46  ;;  %v2116_v34 = vcombine.low %v2814_v4, %v2834_v32 }
  0x37   : > { %2342 = vmatprep.subr.bf16.mxu1 %v2532_v53  ;;  %v370_v33 = vrot.slane %v369_v28, 4  ;;  %v2561_v28 = vld [vmem:[%s3146_s1 + $0x228] sm:$0xff]  }
  0x39   : > { %2319 = vmatpush3.bf16.msra.mxu0 %v2531_v46  ;;  %v2840_v35 = vsel %vm2709_vm2, %v370_v33, %v374_v29  ;;  %v2883_v46 = vpack.c.bf16 %v2771_v23, %v2753_v15  ;;  %v2146_v15 = vpack.c.bf16 %v210_v12, %v210_v12  ;;  %v2896_v23 = vpack.c.bf16 %v210_v12, %v2775_v24  ;;  %v2549_v24 = vld [vmem:[%s3146_s1 + $0x1d8] sm:$0xff]   ;;  %v2562_v29 = vld [vmem:[%s3146_s1 + $0xa8] sm:$0xff]   ;;  %v2567_v33 = vld [vmem:[%s3146_s1 + $0x210] sm:$0xff]  }
  0x3a   : > { %2343 = vmatpush3.bf16.msra.mxu1 %v2532_v53  ;;  %2320 = vmatprep.subr.bf16.mxu0 %v2533_v62  ;;  %v2851_v39 = vcombine.low %v2834_v32, %v2840_v35  ;;  %v2550_v53 = vld [vmem:[%s3146_s1 + $0x198] sm:$0xff]  }
  0x3b   : > { %2344 = vmatprep.subr.bf16.mxu1 %v2534_v19  ;;  %v382_v51 = vshrl.u32 %v2146_v15, 16  ;;  %v385_v52 = vshll.u32 %v2146_v15, 16 }
  0x3c   : > { %2309 = vmatmul.mubr.bf16.gmra.mxu1 %v2851_v39 }
  0x3d   : > { %2321 = vmatpush3.bf16.msra.mxu0 %v2533_v62  ;;  %2352 = vmatprep.mubr.bf16.mxu1 %v2844_v37  ;;  %v384_v54 = vrot.slane %v382_v51, 4  ;;  %v387_v55 = vrot.slane %v385_v52, 5 }
  0x3e   : > { %2345 = vmatpush3.bf16.msra.mxu1 %v2534_v19  ;;  %2322 = vmatprep.subr.bf16.mxu0 %v2535_v30  ;;  %v2557_v19 = vld [vmem:[%s3146_s1 + $0x238] sm:$0xff]  }
  0x3f   : > { %2346 = vmatprep.subr.bf16.mxu1 %v2536_v31  ;;  %v388_v58 = vor.u32 %v387_v55, %v384_v54 }
  0x41   : > { %2323 = vmatpush3.bf16.msra.mxu0 %v2535_v30  ;;  %v389_v62 = vrot.slane %v388_v58, 4  ;;  %v2564_v30 = vld [vmem:[%s3146_s1 + $0xa0] sm:$0xff]  }
  0x42   : > { %2347 = vmatpush3.bf16.msra.mxu1 %v2536_v31  ;;  %2324 = vmatprep.subr.bf16.mxu0 %v2537_v38  ;;  %v2566_v31 = vld [vmem:[%s3146_s1 + $0x98] sm:$0xff]  }
  0x43   : > { %2348 = vmatprep.subr.bf16.mxu1 %v2538_v40  ;;  %v2935_v11 = vsel %vm2709_vm2, %v389_v62, %v393_v9 }
  0x44   : > { %v2117_v25 = vcombine.low %v2840_v35, %v2935_v11 }
  0x45   : > { %2325 = vmatpush3.bf16.msra.mxu0 %v2537_v38  ;;  %v2568_v38 = vld [vmem:[%s3146_s1 + $0x90] sm:$0xff]  }
  0x46   : > { %2349 = vmatpush3.bf16.msra.mxu1 %v2538_v40  ;;  %2326 = vmatprep.subr.bf16.mxu0 %v2539_v13  ;;  %v2572_v40 = vld [vmem:[%s3146_s1 + $0x80] sm:$0xff]  }
  0x47   : > { %2350 = vmatprep.subr.bf16.mxu1 %v2540_v14 }
  0x49   : > { %2327 = vmatpush3.bf16.msra.mxu0 %v2539_v13  ;;  %v2573_v13 = vld [vmem:[%s3146_s1 + $0x38] sm:$0xff]  }
  0x4a   : > { %2351 = vmatpush3.bf16.msra.mxu1 %v2540_v14  ;;  %2360 = vmatprep.subr.bf16.mxu0 %v2541_v41  ;;  %v2574_v14 = vld [vmem:[%s3146_s1 + $0x30] sm:$0xff]  }
  0x4b   : > { %2384 = vmatprep.subr.bf16.mxu1 %v2542_v42 }
  0x4c   : > { %2329 = vmatmul.mubr.bf16.vlgmr.msra.gmra.mxu0 %v2737_v7 }
  0x4d   : > { %2353 = vmatmul.mubr.bf16.vlgmr.msra.gmra.mxu1 %v2872_v43  ;;  %2361 = vmatpush3.bf16.msra.mxu0 %v2541_v41  ;;  %v2575_v41 = vld [vmem:[%s3146_s1 + $0x28] sm:$0xff]  }
  0x4e   : > { %2385 = vmatpush3.bf16.msra.mxu1 %v2542_v42  ;;  %2362 = vmatprep.subr.bf16.mxu0 %v2543_v44 }
  0x4f   : > { %2386 = vmatprep.subr.bf16.mxu1 %v2544_v45  ;;  %2332 = vmatprep.mubr.bf16.mxu0 %v2768_v22 }
  0x50   : > { %2356 = vmatprep.mubr.bf16.mxu1 %v2883_v46 }
  0x51   : > { %2363 = vmatpush3.bf16.msra.mxu0 %v2543_v44 }
  0x52   : > { %2387 = vmatpush3.bf16.msra.mxu1 %v2544_v45  ;;  %2364 = vmatprep.subr.bf16.mxu0 %v2545_v17 }
  0x53   : > { %2388 = vmatprep.subr.bf16.mxu1 %v2546_v47 }
  0x54   : > { %2333 = vmatmul.mubr.bf16.gmra.mxu0 %v2793_v36 }
  0x55   : > { %2365 = vmatpush3.bf16.msra.mxu0 %v2545_v17  ;;  %2357 = vmatmul.mubr.bf16.gmra.mxu1 %v2896_v23 }
  0x56   : > { %2389 = vmatpush3.bf16.msra.mxu1 %v2546_v47  ;;  %2366 = vmatprep.subr.bf16.mxu0 %v2547_v48 }
  0x57   : > { %2390 = vmatprep.subr.bf16.mxu1 %v2548_v50  ;;  %2376 = vmatprep.mubr.bf16.mxu0 %v2682_v16 }
  0x58   : > { %2400 = vmatprep.mubr.bf16.mxu1 %v2733_v6  ;;  %v2553_v6 = vld [vmem:[%s3146_s1 + $0x1c8] sm:$0xff]  }
  0x59   : > { %2367 = vmatpush3.bf16.msra.mxu0 %v2547_v48 }
  0x5a   : > { %2391 = vmatpush3.bf16.msra.mxu1 %v2548_v50  ;;  %2368 = vmatprep.subr.bf16.mxu0 %v2549_v24 }
  0x5b   : > { %2392 = vmatprep.subr.bf16.mxu1 %v2550_v53 }
  0x5d   : > { %2369 = vmatpush3.bf16.msra.mxu0 %v2549_v24 }
  0x5e   : > { %2393 = vmatpush3.bf16.msra.mxu1 %v2550_v53  ;;  %2370 = vmatprep.subr.bf16.mxu0 %v2551_v56 }
  0x5f   : > { %2394 = vmatprep.subr.bf16.mxu1 %v2552_v57 }
  0x61   : > { %2371 = vmatpush3.bf16.msra.mxu0 %v2551_v56 }
  0x62   : > { %2395 = vmatpush3.bf16.msra.mxu1 %v2552_v57  ;;  %2372 = vmatprep.subr.bf16.mxu0 %v2553_v6 }
  0x63   : > { %2396 = vmatprep.subr.bf16.mxu1 %v2554_v60 }
  0x65   : > { %2373 = vmatpush3.bf16.msra.mxu0 %v2553_v6 }
  0x66   : > { %2397 = vmatpush3.bf16.msra.mxu1 %v2554_v60  ;;  %2374 = vmatprep.subr.bf16.mxu0 %v2555_v0 }
  0x67   : > { %2398 = vmatprep.subr.bf16.mxu1 %v2556_v2 }
  0x69   : > { %2375 = vmatpush3.bf16.msra.mxu0 %v2555_v0 }
  0x6a   : > { %2399 = vmatpush3.bf16.msra.mxu1 %v2556_v2  ;;  %2408 = vmatprep.subr.bf16.mxu0 %v2557_v19 }
  0x6b   : > { %2432 = vmatprep.subr.bf16.mxu1 %v2558_v26 }
  0x6c   : > { %2377 = vmatmul.mubr.bf16.vlgmr.msra.gmra.mxu0 %v2737_v7 }
  0x6d   : > { %2401 = vmatmul.mubr.bf16.vlgmr.msra.gmra.mxu1 %v2757_v18  ;;  %2409 = vmatpush3.bf16.msra.mxu0 %v2557_v19  ;;  %v2563_v18 = vld [vmem:[%s3146_s1 + $0x220] sm:$0xff]  }
  0x6e   : > { %2433 = vmatpush3.bf16.msra.mxu1 %v2558_v26  ;;  %2410 = vmatprep.subr.bf16.mxu0 %v2559_v49 }
  0x6f   : > { %2434 = vmatprep.subr.bf16.mxu1 %v2560_v27  ;;  %2380 = vmatprep.mubr.bf16.mxu0 %v2768_v22 }
  0x70   : > { %2404 = vmatprep.mubr.bf16.mxu1 %v2821_v20  ;;  %v2565_v20 = vld [vmem:[%s3146_s1 + $0x218] sm:$0xff]  }
  0x71   : > { %2411 = vmatpush3.bf16.msra.mxu0 %v2559_v49 }
  0x72   : > { %2435 = vmatpush3.bf16.msra.mxu1 %v2560_v27  ;;  %2412 = vmatprep.subr.bf16.mxu0 %v2561_v28 }
  0x73   : > { %2436 = vmatprep.subr.bf16.mxu1 %v2562_v29 }
  0x74   : > { %2381 = vmatmul.mubr.bf16.gmra.mxu0 %v2793_v36 }
  0x75   : > { %2413 = vmatpush3.bf16.msra.mxu0 %v2561_v28  ;;  %2405 = vmatmul.mubr.bf16.gmra.mxu1 %v2851_v39  ;;  %v2571_v39 = vld [vmem:[%s3146_s1 + $0x200] sm:$0xff]  }
  0x76   : > { %2437 = vmatpush3.bf16.msra.mxu1 %v2562_v29  ;;  %2414 = vmatprep.subr.bf16.mxu0 %v2563_v18 }
  0x77   : > { %2438 = vmatprep.subr.bf16.mxu1 %v2564_v30  ;;  %2424 = vmatprep.mubr.bf16.mxu0 %v2682_v16  ;;  %v2569_v16 = vld [vmem:[%s3146_s1 + $0x208] sm:$0xff]  }
  0x78   : > { %2448 = vmatprep.mubr.bf16.mxu1 %v2844_v37  ;;  %v2570_v37 = vld [vmem:[%s3146_s1 + $0x88] sm:$0xff]  }
  0x79   : > { %2415 = vmatpush3.bf16.msra.mxu0 %v2563_v18 }
  0x7a   : > { %2439 = vmatpush3.bf16.msra.mxu1 %v2564_v30  ;;  %2416 = vmatprep.subr.bf16.mxu0 %v2565_v20 }
  0x7b   : > { %2440 = vmatprep.subr.bf16.mxu1 %v2566_v31 }
  0x7d   : > { %2417 = vmatpush3.bf16.msra.mxu0 %v2565_v20 }
  0x7e   : > { %2441 = vmatpush3.bf16.msra.mxu1 %v2566_v31  ;;  %2418 = vmatprep.subr.bf16.mxu0 %v2567_v33 }
  0x7f   : > { %2442 = vmatprep.subr.bf16.mxu1 %v2568_v38 }
  0x81   : > { %2419 = vmatpush3.bf16.msra.mxu0 %v2567_v33 }
  0x82   : > { %2443 = vmatpush3.bf16.msra.mxu1 %v2568_v38  ;;  %2420 = vmatprep.subr.bf16.mxu0 %v2569_v16 }
  0x83   : > { %2444 = vmatprep.subr.bf16.mxu1 %v2570_v37 }
  0x85   : > { %2421 = vmatpush3.bf16.msra.mxu0 %v2569_v16 }
  0x86   : > { %2445 = vmatpush3.bf16.msra.mxu1 %v2570_v37  ;;  %2422 = vmatprep.subr.bf16.mxu0 %v2571_v39 }
  0x87   : > { %2446 = vmatprep.subr.bf16.mxu1 %v2572_v40 }
  0x89   : > { %2423 = vmatpush3.bf16.msra.mxu0 %v2571_v39 }
  0x8a   : > { %2447 = vmatpush3.bf16.msra.mxu1 %v2572_v40  ;;  %2456 = vmatprep.subr.bf16.mxu0 %v2573_v13 }
  0x8b   : > { %2480 = vmatprep.subr.bf16.mxu1 %v2573_v13 }
  0x8c   : > { %2425 = vmatmul.mubr.bf16.vlgmr.msra.gmra.mxu0 %v2737_v7  ;;  %v2576_v7 = vld [vmem:[%s3146_s1 + $0x20] sm:$0xff]  }
  0x8d   : > { %2449 = vmatmul.mubr.bf16.vlgmr.msra.gmra.mxu1 %v2872_v43  ;;  %2457 = vmatpush3.bf16.msra.mxu0 %v2573_v13 }
  0x8e   : > { %2488 = vmatpush3.bf16.msra.mxu1 %v2573_v13  ;;  %2458 = vmatprep.subr.bf16.mxu0 %v2574_v14 }
  0x8f   : > { %2481 = vmatprep.subr.bf16.mxu1 %v2574_v14  ;;  %2428 = vmatprep.mubr.bf16.mxu0 %v2768_v22  ;;  %v2577_v22 = vld [vmem:[%s3146_s1 + $0x18] sm:$0xff]  }
  0x90   : > { %2452 = vmatprep.mubr.bf16.mxu1 %v2883_v46 }
  0x91   : > { %2459 = vmatpush3.bf16.msra.mxu0 %v2574_v14 }
  0x92   : > { %2489 = vmatpush3.bf16.msra.mxu1 %v2574_v14  ;;  %2460 = vmatprep.subr.bf16.mxu0 %v2575_v41 }
  0x93   : > { %2482 = vmatprep.subr.bf16.mxu1 %v2575_v41 }
  0x94   : > { %2429 = vmatmul.mubr.bf16.gmra.mxu0 %v2793_v36  ;;  %v2578_v36 = vld [vmem:[%s3146_s1 + $0x10] sm:$0xff]  }
  0x95   : > { %2461 = vmatpush3.bf16.msra.mxu0 %v2575_v41  ;;  %2453 = vmatmul.mubr.bf16.gmra.mxu1 %v2896_v23 }
  0x96   : > { %2490 = vmatpush3.bf16.msra.mxu1 %v2575_v41  ;;  %2462 = vmatprep.subr.bf16.mxu0 %v2576_v7 }
  0x97   : > { %2483 = vmatprep.subr.bf16.mxu1 %v2576_v7  ;;  %2472 = vmatprep.mubr.bf16.mxu0 %v2114_v8 }
  0x98   : > { %2476 = vmatprep.mubr.bf16.mxu1 %v2116_v34 }
  0x99   : > { %2463 = vmatpush3.bf16.msra.mxu0 %v2576_v7 }
  0x9a   : > { %2491 = vmatpush3.bf16.msra.mxu1 %v2576_v7  ;;  %2464 = vmatprep.subr.bf16.mxu0 %v2577_v22 }
  0x9b   : > { %2484 = vmatprep.subr.bf16.mxu1 %v2577_v22 }
  0x9d   : > { %2465 = vmatpush3.bf16.msra.mxu0 %v2577_v22 }
  0x9e   : > { %2492 = vmatpush3.bf16.msra.mxu1 %v2577_v22  ;;  %2466 = vmatprep.subr.bf16.mxu0 %v2578_v36 }
  0x9f   : > { %2485 = vmatprep.subr.bf16.mxu1 %v2578_v36 }
  0xa1   : > { %2467 = vmatpush3.bf16.msra.mxu0 %v2578_v36 }
  0xa2   : > { %2493 = vmatpush3.bf16.msra.mxu1 %v2578_v36  ;;  %2468 = vmatprep.subr.bf16.mxu0 %v2579_v1 }
  0xa3   : > { %2486 = vmatprep.subr.bf16.mxu1 %v2579_v1 }
  0xa5   : > { %2469 = vmatpush3.bf16.msra.mxu0 %v2579_v1 }
  0xa6   : > { %2494 = vmatpush3.bf16.msra.mxu1 %v2579_v1  ;;  %2470 = vmatprep.subr.bf16.mxu0 %v2580_v5 }
  0xa7   : > { %2487 = vmatprep.subr.bf16.mxu1 %v2580_v5 }
  0xa9   : > { %2471 = vmatpush3.bf16.msra.mxu0 %v2580_v5 }
  0xaa   : > { %2495 = vmatpush3.bf16.msra.mxu1 %v2580_v5 }
  0xac   : > { %2473 = vmatmul.mubr.bf16.vlgmr.msra.gmra.mxu0 %v2115_v21 }
  0xad   : > { %2477 = vmatmul.mubr.bf16.vlgmr.msra.gmra.mxu1 %v2117_v25 }
  0xec   : > { %v3037_v8 = vpop.f32.mrf.mxu0 }
  0xed   : > { %v2306_v32 = vpop.f32.mrf.mxu1 }
  0xee   : > { %v3039_v4 = vpop.f32.mrf.mxu0 }
  0xef   : > { %v665_v42 = vpop.f32.mrf.mxu1 }
  0xf0   : > { %v3041_v34 = vpop.f32.mrf.mxu0 }
  0xf1   : > { %v2307_v44 = vpop.f32.mrf.mxu1 }
  0xf2   : > { %v3043_v43 = vpop.f32.mrf.mxu0 }
  0xf3   : > { %v668_v46 = vpop.f32.mrf.mxu1 }
  0xf4   : > { %v3045_v45 = vpop.f32.mrf.mxu0 }
  0xf6   : > { %v3047_v10 = vpop.f32.mrf.mxu0 }
  0xf8   : > { %v3049_v21 = vpop.f32.mrf.mxu0 }
  0xfa   : > { %v3051_v17 = vpop.f32.mrf.mxu0 }
  0xfc   : > { %v2310_v3 = vpop.f32.mrf.mxu1 }
  0xfe   : > { %v681_v35 = vpop.f32.mrf.mxu1 }
 0x100   : > { %v2311_v12 = vpop.f32.mrf.mxu1 }
 0x102   : > { %v684_v48 = vpop.f32.mrf.mxu1 }
 0x10c   : > { %v2330_v47 = vpop.f32.mrf.mxu0 }
 0x10d   : > { %v787_v15 = vadd.f32 %v2330_v47, %v2306_v32  ;;  %v2354_v53 = vpop.f32.mrf.mxu1 }
 0x10e   : > { %v778_v23 = vpop.f32.mrf.mxu0 }
 0x10f   : > { %v779_v50 = vadd.f32 %v778_v23, %v665_v42  ;;  %1633 = vrot.lane.b32.xlu1 %v787_v15, %s2589_s30  ;;  %v933_v57 = vpop.f32.mrf.mxu1 }
 0x110   : > { %v2331_v51 = vpop.f32.mrf.mxu0 }
 0x111   : > { %v790_v52 = vadd.f32 %v2331_v51, %v2307_v44  ;;  %1629 = vrot.lane.b32.xlu0 %v779_v50, %s2589_s30  ;;  %v2355_v61 = vpop.f32.mrf.mxu1 }
 0x112   : > { %v781_v24 = vpop.f32.mrf.mxu0 }
 0x113   : > { %v782_v54 = vadd.f32 %v781_v24, %v668_v46  ;;  %1635 = vrot.lane.b32.xlu1 %v790_v52, %s2589_s30  ;;  %v936_v0 = vpop.f32.mrf.mxu1 }
 0x114   : > { %v2334_v55 = vpop.f32.mrf.mxu0 }
 0x115   : > { %1631 = vrot.lane.b32.xlu0 %v782_v54, %s2589_s30  ;;  %v803_v58 = vadd.f32 %v2334_v55, %v2310_v3  ;;  %v2358_v2 = vpop.f32.mrf.mxu1 }
 0x116   : > { %v794_v56 = vpop.f32.mrf.mxu0 }
 0x117   : > { %v795_v62 = vadd.f32 %v794_v56, %v681_v35  ;;  %v949_v9 = vpop.f32.mrf.mxu1 }
 0x118   : > { %v2335_v6 = vpop.f32.mrf.mxu0 }
 0x119   : > { %v806_v59 = vadd.f32 %v2335_v6, %v2311_v12  ;;  %1641 = vrot.lane.b32.xlu0 %v803_v58, %s2589_s30  ;;  %v2359_v11 = vpop.f32.mrf.mxu1 }
 0x11a   : > { %v797_v60 = vpop.f32.mrf.mxu0 }
 0x11b   : > { %1643 = vrot.lane.b32.xlu1 %v806_v59, %s2589_s30  ;;  %v798_v63 = vadd.f32 %v797_v60, %v684_v48  ;;  %v952_v25 = vpop.f32.mrf.mxu1 }
 0x11d   : > { %1637 = vrot.lane.b32.xlu0 %v795_v62, %s2589_s30 }
 0x11f   : > { %1639 = vrot.lane.b32.xlu1 %v798_v63, %s2589_s30 }
 0x12c   : > { %v2378_v19 = vpop.f32.mrf.mxu0 }
 0x12d   : > { %v1055_v26 = vadd.f32 %v2378_v19, %v2354_v53  ;;  %v2402_v28 = vpop.f32.mrf.mxu1 }
 0x12e   : > { %v1046_v49 = vpop.f32.mrf.mxu0 }
 0x12f   : > { %1665 = vrot.lane.b32.xlu0 %v1055_v26, %s2590_s5  ;;  %v1047_v29 = vadd.f32 %v1046_v49, %v933_v57  ;;  %v1193_v31 = vpop.f32.mrf.mxu1 }
 0x130   : > { %v2379_v27 = vpop.f32.mrf.mxu0 }
 0x131   : > { %v1058_v18 = vadd.f32 %v2379_v27, %v2355_v61  ;;  %v2403_v39 = vpop.f32.mrf.mxu1 }
 0x132   : > { %v1049_v30 = vpop.f32.mrf.mxu0 }
 0x133   : > { %1661 = vrot.lane.b32.xlu0 %v1047_v29, %s2590_s5  ;;  %1667 = vrot.lane.b32.xlu1 %v1058_v18, %s2590_s5  ;;  %v1050_v33 = vadd.f32 %v1049_v30, %v936_v0  ;;  %v1196_v41 = vpop.f32.mrf.mxu1 }
 0x134   : > { %v2382_v20 = vpop.f32.mrf.mxu0 }
 0x135   : > { %v1071_v38 = vadd.f32 %v2382_v20, %v2358_v2  ;;  %v2406_v22 = vpop.f32.mrf.mxu1 }
 0x136   : > { %v1062_v16 = vpop.f32.mrf.mxu0 }
 0x137   : > { %1673 = vrot.lane.b32.xlu0 %v1071_v38, %s2590_s5  ;;  %1663 = vrot.lane.b32.xlu1 %v1050_v33, %s2590_s5  ;;  %v1063_v40 = vadd.f32 %v1062_v16, %v949_v9  ;;  %v1209_v36 = vpop.f32.mrf.mxu1 }
 0x138   : > { %v2383_v37 = vpop.f32.mrf.mxu0 }
 0x139   : > { %v1074_v13 = vadd.f32 %v2383_v37, %v2359_v11  ;;  %v2407_v1 = vpop.f32.mrf.mxu1 }
 0x13a   : > { %v1065_v14 = vpop.f32.mrf.mxu0 }
 0x13b   : > { %1669 = vrot.lane.b32.xlu0 %v1063_v40, %s2590_s5  ;;  %1675 = vrot.lane.b32.xlu1 %v1074_v13, %s2590_s5  ;;  %v1066_v7 = vadd.f32 %v1065_v14, %v952_v25  ;;  %v1212_v5 = vpop.f32.mrf.mxu1 }
 0x13f   : > { %1671 = vrot.lane.b32.xlu1 %v1066_v7, %s2590_s5 }
 0x14c   : > { %v2426_v32 = vpop.f32.mrf.mxu0 }
 0x14d   : > { %v2450_v42 = vpop.f32.mrf.mxu1  ;;  %v1315_v52 = vadd.f32 %v2426_v32, %v2402_v28 }
 0x14e   : > { %v1306_v44 = vpop.f32.mrf.mxu0 }
 0x14f   : > { %v1436_v46 = vpop.f32.mrf.mxu1  ;;  %v1469_v54 = vadd.f32 %v2450_v42, %v1315_v52  ;;  %v1307_v55 = vadd.f32 %v1306_v44, %v1193_v31 }
 0x150   : > { %v2427_v3 = vpop.f32.mrf.mxu0 }
 0x151   : > { %v2451_v35 = vpop.f32.mrf.mxu1  ;;  %v1318_v56 = vadd.f32 %v2427_v3, %v2403_v39  ;;  %v1467_v62 = vadd.f32 %v1436_v46, %v1307_v55 }
 0x152   : > { %v1309_v12 = vpop.f32.mrf.mxu0 }
 0x153   : > { %v1439_v47 = vpop.f32.mrf.mxu1  ;;  %v1310_v60 = vadd.f32 %v1309_v12, %v1196_v41  ;;  %v1470_v63 = vadd.f32 %v2451_v35, %v1318_v56 }
 0x154   : > { %v2430_v15 = vpop.f32.mrf.mxu0 }
 0x155   : > { %v2454_v23 = vpop.f32.mrf.mxu1  ;;  %v1468_v25 = vadd.f32 %v1439_v47, %v1310_v60  ;;  %v1331_v27 = vadd.f32 %v2430_v15, %v2406_v22 }
 0x156   : > { %v1322_v48 = vpop.f32.mrf.mxu0 }
 0x157   : > { %v1452_v50 = vpop.f32.mrf.mxu1  ;;  %v1323_v0 = vadd.f32 %v1322_v48, %v1209_v36  ;;  %v1473_v31 = vadd.f32 %v2454_v23, %v1331_v27 }
 0x158   : > { %v2431_v51 = vpop.f32.mrf.mxu0 }
 0x159   : > { %v2455_v24 = vpop.f32.mrf.mxu1  ;;  %v1471_v28 = vadd.f32 %v1452_v50, %v1323_v0  ;;  %v1334_v33 = vadd.f32 %v2431_v51, %v2407_v1 }
 0x15a   : > { %v1325_v53 = vpop.f32.mrf.mxu0 }
 0x15b   : > { %v1455_v57 = vpop.f32.mrf.mxu1  ;;  %v1326_v29 = vadd.f32 %v1325_v53, %v1212_v5  ;;  %v1474_v39 = vadd.f32 %v2455_v24, %v1334_v33 }
 0x15d   : > { %v1472_v38 = vadd.f32 %v1455_v57, %v1326_v29 }
 0x16c   : > { %v2474_v58 = vpop.f32.mrf.mxu0 }
 0x16d   : > { %v1615_v6 = vadd.f32 %v2474_v58, %v1469_v54  ;;  %v2478_v59 = vpop.f32.mrf.mxu1 }
 0x16e   : > { %v1582_v61 = vpop.f32.mrf.mxu0  ;;  %v1619_v16 = vadd.f32 %v2478_v59, %v1473_v31 }
 0x16f   : > { %v1598_v2 = vpop.f32.mrf.mxu1  ;;  %1697 = vrot.lane.b32.xlu0 %v1615_v6, %s2591_s6  ;;  %v1613_v11 = vadd.f32 %v1582_v61, %v1467_v62 }
 0x170   : > { %v2475_v9 = vpop.f32.mrf.mxu0  ;;  %v1617_v18 = vadd.f32 %v1598_v2, %v1471_v28 }
 0x171   : > { %v1616_v19 = vadd.f32 %v2475_v9, %v1470_v63  ;;  %v2479_v26 = vpop.f32.mrf.mxu1 }
 0x172   : > { %v1585_v49 = vpop.f32.mrf.mxu0  ;;  %v1620_v40 = vadd.f32 %v2479_v26, %v1474_v39 }
 0x173   : > { %1693 = vrot.lane.b32.xlu0 %v1613_v11, %s2591_s6  ;;  %1699 = vrot.lane.b32.xlu1 %v1616_v19, %s2591_s6  ;;  %v1614_v30 = vadd.f32 %v1585_v49, %v1468_v25  ;;  %v1601_v20 = vpop.f32.mrf.mxu1 }
 0x174   : > { %v1618_v37 = vadd.f32 %v1601_v20, %v1472_v38 }
 0x177   : > { %1701 = vrot.lane.b32.xlu0 %v1617_v18, %s2591_s6  ;;  %1695 = vrot.lane.b32.xlu1 %v1614_v30, %s2591_s6 }
 0x17b   : > { %1705 = vrot.lane.b32.xlu0 %v1619_v16, %s2591_s6  ;;  %1703 = vrot.lane.b32.xlu1 %v1618_v37, %s2591_s6 }
 0x17f   : > { %1707 = vrot.lane.b32.xlu1 %v1620_v40, %s2591_s6 }
 0x181   : > { %v1634_v14 = vpop.permute.xlu1 %1633 }
 0x182   : > { %v1720_v47 = vsel %vm1717_vm3, %v3037_v8, %v1634_v14 }
 0x183   : > { %v1630_v13 = vpop.permute.xlu0 %1629 }
 0x184   : > { %v1718_v8 = vsel %vm1717_vm3, %v3039_v4, %v1630_v13 }
 0x185   : > { %v1636_v7 = vpop.permute.xlu1 %1635 }
 0x186   : > { %v1721_v51 = vsel %vm1717_vm3, %v3041_v34, %v1636_v7 }
 0x187   : > { %v1632_v41 = vpop.permute.xlu0 %1631 }
 0x188   : > { %v1719_v4 = vsel %vm1717_vm3, %v3043_v43, %v1632_v41 }
 0x18b   : > { %v1642_v22 = vpop.permute.xlu0 %1641 }
 0x18c   : > { %v1724_v43 = vsel %vm1717_vm3, %v3045_v45, %v1642_v22 }
 0x18d   : > { %v1644_v36 = vpop.permute.xlu1 %1643 }
 0x18e   : > { %v1725_v45 = vsel %vm1717_vm3, %v3049_v21, %v1644_v36 }
 0x18f   : > { %v1638_v5 = vpop.permute.xlu0 %1637 }
 0x190   : > { %v1722_v34 = vsel %vm1717_vm3, %v3047_v10, %v1638_v5 }
 0x191   : > { %v1640_v32 = vpop.permute.xlu1 %1639 }
 0x192   : > { %v1723_v10 = vsel %vm1717_vm3, %v3051_v17, %v1640_v32 }
 0x1a1   : > { %v1666_v1 = vpop.permute.xlu0 %1665 }
 0x1a2   : > { %v1729_v15 = vsel %vm1726_vm4, %v1720_v47, %v1666_v1 }
 0x1a5   : > { %v1668_v42 = vpop.permute.xlu1 %1667  ;;  %v1662_v44 = vpop.permute.xlu0 %1661 }
 0x1a6   : > { %v1727_v52 = vsel %vm1726_vm4, %v1718_v8, %v1662_v44  ;;  %v1730_v24 = vsel %vm1726_vm4, %v1721_v51, %v1668_v42 }
 0x1a9   : > { %v1664_v46 = vpop.permute.xlu1 %1663  ;;  %v1674_v3 = vpop.permute.xlu0 %1673 }
 0x1aa   : > { %v1728_v57 = vsel %vm1726_vm4, %v1719_v4, %v1664_v46  ;;  %v1733_v62 = vsel %vm1726_vm4, %v1724_v43, %v1674_v3 }
 0x1ad   : > { %v1676_v35 = vpop.permute.xlu1 %1675  ;;  %v1670_v12 = vpop.permute.xlu0 %1669 }
 0x1ae   : > { %v1731_v58 = vsel %vm1726_vm4, %v1722_v34, %v1670_v12  ;;  %v1734_v19 = vsel %vm1726_vm4, %v1725_v45, %v1676_v35 }
 0x1b1   : > { %v1672_v23 = vpop.permute.xlu1 %1671 }
 0x1b2   : > { %v1732_v63 = vsel %vm1726_vm4, %v1723_v10, %v1672_v23 }
 0x1e1   : > { %v1698_v48 = vpop.permute.xlu0 %1697 }
 0x1e2   : > { %v1738_v50 = vsel %vm1735_vm5, %v1729_v15, %v1698_v48 }
 0x1e3   : > { %1747 = vst.msk [vmem:[%s3059_s10 + $0x10] sm:$0xff] %vm1744_vm6, %v1738_v50 }
 0x1e5   : > { %v1694_v53 = vpop.permute.xlu0 %1693  ;;  %v1700_v54 = vpop.permute.xlu1 %1699 }
 0x1e6   : > { %v1736_v55 = vsel %vm1735_vm5, %v1727_v52, %v1694_v53  ;;  %v1739_v56 = vsel %vm1735_vm5, %v1730_v24, %v1700_v54 }
 0x1e7   : > { %1745 = vst.msk [vmem:[%s3059_s10] sm:$0xff] %vm1744_vm6, %v1736_v55  ;;  %1748 = vst.msk [vmem:[%s3059_s10 + $0x18] sm:$0xff] %vm1744_vm6, %v1739_v56 }
 0x1e9   : > { %v1702_v6 = vpop.permute.xlu0 %1701  ;;  %v1696_v59 = vpop.permute.xlu1 %1695 }
 0x1ea   : > { %v1740_v60 = vsel %vm1735_vm5, %v1731_v58, %v1702_v6  ;;  %v1737_v61 = vsel %vm1735_vm5, %v1728_v57, %v1696_v59 }
 0x1eb   : > { %1749 = vst.msk [vmem:[%s3059_s10 + $0x20] sm:$0xff] %vm1744_vm6, %v1740_v60  ;;  %1746 = vst.msk [vmem:[%s3059_s10 + $0x8] sm:$0xff] %vm1744_vm6, %v1737_v61 }
 0x1ed   : > { %v1706_v0 = vpop.permute.xlu0 %1705  ;;  %v1704_v2 = vpop.permute.xlu1 %1703 }
 0x1ee   : > { %v1742_v9 = vsel %vm1735_vm5, %v1733_v62, %v1706_v0  ;;  %v1741_v11 = vsel %vm1735_vm5, %v1732_v63, %v1704_v2 }
 0x1ef   : > { %1751 = vst.msk [vmem:[%s3059_s10 + $0x30] sm:$0xff] %vm1744_vm6, %v1742_v9  ;;  %1750 = vst.msk [vmem:[%s3059_s10 + $0x28] sm:$0xff] %vm1744_vm6, %v1741_v11  ;;  %1756 = sbr.rel (%p2126_p4) target bundleno = 502 (0x1f6), region = 32 }
 0x1f1   : > { %v1708_v17 = vpop.permute.xlu1 %1707 }
 0x1f2   : > { %v1743_v25 = vsel %vm1735_vm5, %v1734_v19, %v1708_v17 }
 0x1f3   : > { %1752 = vst.msk [vmem:[%s3059_s10 + $0x38] sm:$0xff] %vm1744_vm6, %v1743_v25 }
 0x1f4   : > { %vm1757_vm7 = vcmask 516096   ;;  %v2592_v26 = vmov 0.0  }
 0x1f5   : > { %1758 = vst.msk [vmem:[%s3148_s3] sm:$0x1] %vm1757_vm7, %v2592_v26  ;;  %1759 = vst.msk [vmem:[%s3149_s4] sm:$0x1] %vm1757_vm7, %v2592_v26 }
 0x1f6 PF: > { %v1761_v21 = vsel %vm1744_vm6, %v1736_v55, 0.0  ;;  %v1762_v49 = vsel %vm1744_vm6, %v1737_v61, 0.0  ;;  %v1764_v27 = vsel %vm1744_vm6, %v1738_v50, 0.0  ;;  %v1766_v29 = vsel %vm1744_vm6, %v1739_v56, 0.0 }
 0x1f7   : > { %v1763_v28 = vadd.f32 %v1762_v49, %v1761_v21  ;;  %v1786_v18 = vmul.f32 %v1736_v55, %v1736_v55  ;;  %v1787_v30 = vmul.f32 %v1737_v61, %v1737_v61  ;;  %v1788_v31 = vmul.f32 %v1738_v50, %v1738_v50 }
 0x1f8   : > { %v1789_v33 = vmul.f32 %v1739_v56, %v1739_v56  ;;  %v1768_v38 = vsel %vm1744_vm6, %v1740_v60, 0.0  ;;  %v1790_v39 = vmul.f32 %v1740_v60, %v1740_v60  ;;  %v1770_v14 = vsel %vm1744_vm6, %v1741_v11, 0.0 }
 0x1f9   : > { %v1765_v20 = vadd.f32 %v1764_v27, %v1763_v28  ;;  %v1794_v16 = vsel %vm1744_vm6, %v1786_v18, 0.0  ;;  %v1795_v40 = vsel %vm1744_vm6, %v1787_v30, 0.0  ;;  %v1797_v13 = vsel %vm1744_vm6, %v1788_v31, 0.0 }
 0x1fa   : > { %v1796_v41 = vadd.f32 %v1795_v40, %v1794_v16  ;;  %v1791_v22 = vmul.f32 %v1741_v11, %v1741_v11  ;;  %v1799_v36 = vsel %vm1744_vm6, %v1789_v33, 0.0  ;;  %v1772_v5 = vsel %vm1744_vm6, %v1742_v9, 0.0 }
 0x1fb   : > { %v1767_v37 = vadd.f32 %v1766_v29, %v1765_v20  ;;  %v1792_v42 = vmul.f32 %v1742_v9, %v1742_v9  ;;  %v1801_v44 = vsel %vm1744_vm6, %v1790_v39, 0.0  ;;  %v1774_v46 = vsel %vm1744_vm6, %v1743_v25, 0.0 }
 0x1fc   : > { %v1798_v32 = vadd.f32 %v1797_v13, %v1796_v41  ;;  %v1793_v12 = vmul.f32 %v1743_v25, %v1743_v25  ;;  %v1803_v47 = vsel %vm1744_vm6, %v1791_v22, 0.0  ;;  %v1760_v57 = vld [vmem:[%s3148_s3] sm:$0x1]  ;;  %vm1783_vm8 = vcmask 516096  }
 0x1fd   : > { %v1769_v7 = vadd.f32 %v1768_v38, %v1767_v37  ;;  %v1805_v48 = vsel %vm1744_vm6, %v1792_v42, 0.0  ;;  %v1785_v43 = vld [vmem:[%s3149_s4] sm:$0x1] }
 0x1fe   : > { %v1800_v3 = vadd.f32 %v1799_v36, %v1798_v32  ;;  %v1807_v51 = vsel %vm1744_vm6, %v1793_v12, 0.0 }
 0x1ff   : > { %v1771_v1 = vadd.f32 %v1770_v14, %v1769_v7 }
 0x200   : > { %v1802_v15 = vadd.f32 %v1801_v44, %v1800_v3 }
 0x201   : > { %v1773_v35 = vadd.f32 %v1772_v5, %v1771_v1 }
 0x202   : > { %v1804_v50 = vadd.f32 %v1803_v47, %v1802_v15 }
 0x203   : > { %v1775_v23 = vadd.f32 %v1774_v46, %v1773_v35 }
 0x204   : > { %v1806_v52 = vadd.f32 %v1805_v48, %v1804_v50 }
 0x205   : > { %v1776_v8 = vrot.slane %v1775_v23, 4 }
 0x206   : > { %v1808_v53 = vadd.f32 %v1807_v51, %v1806_v52 }
 0x207   : > { %v1777_v24 = vadd.f32 %v1776_v8, %v1775_v23 }
 0x208   : > { %v1809_v55 = vrot.slane %v1808_v53, 4 }
 0x209   : > { %v1778_v54 = vrot.slane %v1777_v24, 2 }
 0x20a   : > { %v1810_v4 = vadd.f32 %v1809_v55, %v1808_v53 }
 0x20b   : > { %v1779_v56 = vadd.f32 %v1778_v54, %v1777_v24 }
 0x20c   : > { %v1811_v58 = vrot.slane %v1810_v4, 2 }
 0x20d   : > { %v1780_v34 = vrot.slane %v1779_v56, 1 }
 0x20e   : > { %v1812_v59 = vadd.f32 %v1811_v58, %v1810_v4 }
 0x20f   : > { %v1781_v6 = vadd.f32 %v1780_v34, %v1779_v56 }
 0x210   : > { %v1813_v61 = vrot.slane %v1812_v59, 1 }
 0x211   : > { %v1782_v60 = vadd.f32 %v1781_v6, %v1760_v57 }
 0x212   : > { %v1814_v10 = vadd.f32 %v1813_v61, %v1812_v59 }
 0x213   : > { %1784 = vst.msk [vmem:[%s3148_s3] sm:$0x1] %vm1783_vm8, %v1782_v60 }
 0x214   : > { %v1815_v62 = vadd.f32 %v1814_v10, %v1785_v43 }
 0x216   : > { %1816 = vst.msk [vmem:[%s3149_s4] sm:$0x1] %vm1783_vm8, %v1815_v62 }
 0x217 PF: > { %s15_s15 = sadd.s32 1, %s2587_s15  }
 0x218   : > { %p12_p5 = scmp.ge.s32.totalorder %s15_s15, 4  }
 0x21a   :  { %14 = sbr.rel (!%p12_p5) target bundleno = 1 (0x1), region = 86 }

// kernel: decoder_traversability.34
= control target key start
LH: loop header
LB: loop body
LE: loop exit
PB: predicated region body
PF: predicated region fallthrough
CT: control target
= control target key end

     0   :  { %vm284_vm0 = vcmask 130048   ;;  %s961_s0 = inlined_call_operand.vmem [shape: f32[512,16], index: 0, kind: input, shape index: {}]   ;;  %s962_s1 = inlined_call_operand.vmem [shape: f32[1,16], index: 1, kind: input, shape index: {}]   ;;  %s963_s2 = inlined_call_operand.vmem [shape: f32[1,16], index: 2, kind: input, shape index: {}]   ;;  %s964_s3 = inlined_call_operand.vmem [shape: f32[512,16], index: 3, kind: output, shape index: {}]  }
   0x1   :  { %v14_v0 = vld [vmem:[%s961_s0] sm:$0xff]  ;;  %v15_v4 = vld [vmem:[%s961_s0 + $0x8] sm:$0xff]  ;;  %v16_v5 = vld [vmem:[%s961_s0 + $0x10] sm:$0xff] }
   0x2   :  { %v381_v1 = vld [vmem:[%s962_s1] ss:$0 sm:$0xff]  ;;  %v17_v6 = vld [vmem:[%s961_s0 + $0x18] sm:$0xff]  ;;  %v19_v11 = vld [vmem:[%s961_s0 + $0x28] sm:$0xff] }
   0x3   :  { %v386_v2 = vld [vmem:[%s963_s2] ss:$0 sm:$0xff]  ;;  %v85_v3 = vmul.f32 %v381_v1, %v14_v0  ;;  %v86_v7 = vmul.f32 %v381_v1, %v15_v4  ;;  %v87_v8 = vmul.f32 %v381_v1, %v16_v5  ;;  %v88_v9 = vmul.f32 %v381_v1, %v17_v6  ;;  %v20_v12 = vld [vmem:[%s961_s0 + $0x30] sm:$0xff]  ;;  %v21_v17 = vld [vmem:[%s961_s0 + $0x38] sm:$0xff] }
   0x4   :  { %v18_v10 = vld [vmem:[%s961_s0 + $0x20] sm:$0xff]  ;;  %v90_v15 = vmul.f32 %v381_v1, %v19_v11  ;;  %v91_v16 = vmul.f32 %v381_v1, %v20_v12  ;;  %v92_v21 = vmul.f32 %v381_v1, %v21_v17  ;;  %v23_v27 = vld [vmem:[%s961_s0 + $0x48] sm:$0xff]  ;;  %v24_v28 = vld [vmem:[%s961_s0 + $0x50] sm:$0xff] }
   0x5   :  { %v156_v13 = vadd.f32 %v386_v2, %v85_v3  ;;  %v89_v14 = vmul.f32 %v381_v1, %v18_v10  ;;  %v157_v18 = vadd.f32 %v386_v2, %v86_v7  ;;  %v158_v19 = vadd.f32 %v386_v2, %v87_v8  ;;  %v22_v22 = vld [vmem:[%s961_s0 + $0x40] sm:$0xff]  ;;  %v25_v29 = vld [vmem:[%s961_s0 + $0x58] sm:$0xff]  ;;  %v27_v35 = vld [vmem:[%s961_s0 + $0x68] sm:$0xff] }
   0x6   :  { %v159_v20 = vadd.f32 %v386_v2, %v88_v9  ;;  %v161_v25 = vadd.f32 %v386_v2, %v90_v15  ;;  %v162_v26 = vadd.f32 %v386_v2, %v91_v16  ;;  %v163_v33 = vadd.f32 %v386_v2, %v92_v21  ;;  %v26_v34 = vld [vmem:[%s961_s0 + $0x60] sm:$0xff]  ;;  %v28_v36 = vld [vmem:[%s961_s0 + $0x70] sm:$0xff]  ;;  %v29_v41 = vld [vmem:[%s961_s0 + $0x78] sm:$0xff] }
   0x7   :  { %v220_v23 = vmax.f32 %v156_v13, 0.0  ;;  %v160_v24 = vadd.f32 %v386_v2, %v89_v14  ;;  %v221_v30 = vmax.f32 %v157_v18, 0.0  ;;  %v222_v31 = vmax.f32 %v158_v19, 0.0  ;;  %v30_v54 = vld [vmem:[%s961_s0 + $0x80] sm:$0xff]  ;;  %v31_v59 = vld [vmem:[%s961_s0 + $0x88] sm:$0xff]  ;;  %v32_v60 = vld [vmem:[%s961_s0 + $0x90] sm:$0xff] }
   0x8   :  { %v223_v32 = vmax.f32 %v159_v20, 0.0  ;;  %v225_v38 = vmax.f32 %v161_v25, 0.0  ;;  %v226_v39 = vmax.f32 %v162_v26, 0.0  ;;  %v93_v40 = vmul.f32 %v381_v1, %v22_v22  ;;  %v33_v61 = vld [vmem:[%s961_s0 + $0x98] sm:$0xff]  ;;  %v34_v4 = vld [vmem:[%s961_s0 + $0xa0] sm:$0xff]  ;;  %v35_v5 = vld [vmem:[%s961_s0 + $0xa8] sm:$0xff] }
   0x9   :  { %285 = vst.msk [vmem:[%s964_s3] sm:$0xff] %vm284_vm0, %v220_v23  ;;  %v224_v37 = vmax.f32 %v160_v24, 0.0  ;;  %286 = vst.msk [vmem:[%s964_s3 + $0x8] sm:$0xff] %vm284_vm0, %v221_v30  ;;  %v227_v42 = vmax.f32 %v163_v33, 0.0  ;;  %v94_v43 = vmul.f32 %v381_v1, %v23_v27  ;;  %v95_v44 = vmul.f32 %v381_v1, %v24_v28  ;;  %v36_v6 = vld [vmem:[%s961_s0 + $0xb0] sm:$0xff]  ;;  %v37_v11 = vld [vmem:[%s961_s0 + $0xb8] sm:$0xff] }
   0xa   :  { %287 = vst.msk [vmem:[%s964_s3 + $0x10] sm:$0xff] %vm284_vm0, %v222_v31  ;;  %288 = vst.msk [vmem:[%s964_s3 + $0x18] sm:$0xff] %vm284_vm0, %v223_v32  ;;  %v96_v45 = vmul.f32 %v381_v1, %v25_v29  ;;  %v164_v46 = vadd.f32 %v386_v2, %v93_v40  ;;  %v97_v47 = vmul.f32 %v381_v1, %v26_v34  ;;  %v38_v24 = vld [vmem:[%s961_s0 + $0xc0] sm:$0xff]  ;;  %v39_v29 = vld [vmem:[%s961_s0 + $0xc8] sm:$0xff] }
   0xb   :  { %289 = vst.msk [vmem:[%s964_s3 + $0x20] sm:$0xff] %vm284_vm0, %v224_v37  ;;  %290 = vst.msk [vmem:[%s964_s3 + $0x28] sm:$0xff] %vm284_vm0, %v225_v38  ;;  %v98_v48 = vmul.f32 %v381_v1, %v27_v35  ;;  %v99_v49 = vmul.f32 %v381_v1, %v28_v36  ;;  %v165_v50 = vadd.f32 %v386_v2, %v94_v43  ;;  %v40_v30 = vld [vmem:[%s961_s0 + $0xd0] sm:$0xff]  ;;  %v41_v31 = vld [vmem:[%s961_s0 + $0xd8] sm:$0xff] }
   0xc   :  { %291 = vst.msk [vmem:[%s964_s3 + $0x30] sm:$0xff] %vm284_vm0, %v226_v39  ;;  %292 = vst.msk [vmem:[%s964_s3 + $0x38] sm:$0xff] %vm284_vm0, %v227_v42  ;;  %v166_v51 = vadd.f32 %v386_v2, %v95_v44  ;;  %v167_v52 = vadd.f32 %v386_v2, %v96_v45  ;;  %v100_v53 = vmul.f32 %v381_v1, %v29_v41  ;;  %v228_v55 = vmax.f32 %v164_v46, 0.0  ;;  %v42_v36 = vld [vmem:[%s961_s0 + $0xe0] sm:$0xff]  ;;  %v43_v37 = vld [vmem:[%s961_s0 + $0xe8] sm:$0xff] }
   0xd   :  { %v168_v56 = vadd.f32 %v386_v2, %v97_v47  ;;  %v169_v57 = vadd.f32 %v386_v2, %v98_v48  ;;  %v170_v58 = vadd.f32 %v386_v2, %v99_v49  ;;  %v229_v62 = vmax.f32 %v165_v50, 0.0  ;;  %v44_v38 = vld [vmem:[%s961_s0 + $0xf0] sm:$0xff]  ;;  %v45_v43 = vld [vmem:[%s961_s0 + $0xf8] sm:$0xff] }
   0xe   :  { %v230_v63 = vmax.f32 %v166_v51, 0.0  ;;  %v231_v0 = vmax.f32 %v167_v52, 0.0  ;;  %v171_v3 = vadd.f32 %v386_v2, %v100_v53  ;;  %293 = vst.msk [vmem:[%s964_s3 + $0x40] sm:$0xff] %vm284_vm0, %v228_v55  ;;  %v101_v10 = vmul.f32 %v381_v1, %v30_v54 }
   0xf   :  { %v232_v7 = vmax.f32 %v168_v56, 0.0  ;;  %v233_v8 = vmax.f32 %v169_v57, 0.0  ;;  %v234_v9 = vmax.f32 %v170_v58, 0.0  ;;  %294 = vst.msk [vmem:[%s964_s3 + $0x48] sm:$0xff] %vm284_vm0, %v229_v62  ;;  %v102_v13 = vmul.f32 %v381_v1, %v31_v59  ;;  %v46_v56 = vld [vmem:[%s961_s0 + $0x100] sm:$0xff]  ;;  %v48_v62 = vld [vmem:[%s961_s0 + $0x110] sm:$0xff] }
  0x10   :  { %295 = vst.msk [vmem:[%s964_s3 + $0x50] sm:$0xff] %vm284_vm0, %v230_v63  ;;  %296 = vst.msk [vmem:[%s964_s3 + $0x58] sm:$0xff] %vm284_vm0, %v231_v0  ;;  %v235_v12 = vmax.f32 %v171_v3, 0.0  ;;  %v103_v14 = vmul.f32 %v381_v1, %v32_v60  ;;  %v104_v15 = vmul.f32 %v381_v1, %v33_v61  ;;  %v172_v16 = vadd.f32 %v386_v2, %v101_v10  ;;  %v47_v61 = vld [vmem:[%s961_s0 + $0x108] sm:$0xff]  ;;  %v49_v63 = vld [vmem:[%s961_s0 + $0x118] sm:$0xff] }
  0x11   :  { %297 = vst.msk [vmem:[%s964_s3 + $0x60] sm:$0xff] %vm284_vm0, %v232_v7  ;;  %298 = vst.msk [vmem:[%s964_s3 + $0x68] sm:$0xff] %vm284_vm0, %v233_v8  ;;  %v105_v17 = vmul.f32 %v381_v1, %v34_v4  ;;  %v106_v18 = vmul.f32 %v381_v1, %v35_v5  ;;  %v107_v19 = vmul.f32 %v381_v1, %v36_v6  ;;  %v50_v6 = vld [vmem:[%s961_s0 + $0x120] sm:$0xff]  ;;  %v51_v7 = vld [vmem:[%s961_s0 + $0x128] sm:$0xff] }
  0x12   :  { %299 = vst.msk [vmem:[%s964_s3 + $0x70] sm:$0xff] %vm284_vm0, %v234_v9  ;;  %300 = vst.msk [vmem:[%s964_s3 + $0x78] sm:$0xff] %vm284_vm0, %v235_v12  ;;  %v173_v20 = vadd.f32 %v386_v2, %v102_v13  ;;  %v174_v21 = vadd.f32 %v386_v2, %v103_v14  ;;  %v175_v22 = vadd.f32 %v386_v2, %v104_v15  ;;  %v236_v25 = vmax.f32 %v172_v16, 0.0  ;;  %v52_v8 = vld [vmem:[%s961_s0 + $0x130] sm:$0xff]  ;;  %v53_v13 = vld [vmem:[%s961_s0 + $0x138] sm:$0xff] }
  0x13   :  { %v108_v23 = vmul.f32 %v381_v1, %v37_v11  ;;  %v176_v26 = vadd.f32 %v386_v2, %v105_v17  ;;  %v177_v27 = vadd.f32 %v386_v2, %v106_v18  ;;  %v178_v28 = vadd.f32 %v386_v2, %v107_v19 }
  0x14   :  { %v237_v32 = vmax.f32 %v173_v20, 0.0  ;;  %v238_v33 = vmax.f32 %v174_v21, 0.0  ;;  %v239_v34 = vmax.f32 %v175_v22, 0.0  ;;  %301 = vst.msk [vmem:[%s964_s3 + $0x80] sm:$0xff] %vm284_vm0, %v236_v25  ;;  %v109_v42 = vmul.f32 %v381_v1, %v38_v24 }
  0x15   :  { %v179_v35 = vadd.f32 %v386_v2, %v108_v23  ;;  %v240_v39 = vmax.f32 %v176_v26, 0.0  ;;  %v241_v40 = vmax.f32 %v177_v27, 0.0  ;;  %v242_v41 = vmax.f32 %v178_v28, 0.0  ;;  %v54_v26 = vld [vmem:[%s961_s0 + $0x140] sm:$0xff] }
  0x16   :  { %302 = vst.msk [vmem:[%s964_s3 + $0x88] sm:$0xff] %vm284_vm0, %v237_v32  ;;  %303 = vst.msk [vmem:[%s964_s3 + $0x90] sm:$0xff] %vm284_vm0, %v238_v33  ;;  %v110_v45 = vmul.f32 %v381_v1, %v39_v29  ;;  %v111_v46 = vmul.f32 %v381_v1, %v40_v30  ;;  %v112_v47 = vmul.f32 %v381_v1, %v41_v31  ;;  %v55_v31 = vld [vmem:[%s961_s0 + $0x148] sm:$0xff]  ;;  %v56_v32 = vld [vmem:[%s961_s0 + $0x150] sm:$0xff] }
  0x17   :  { %304 = vst.msk [vmem:[%s964_s3 + $0x98] sm:$0xff] %vm284_vm0, %v239_v34  ;;  %v243_v44 = vmax.f32 %v179_v35, 0.0  ;;  %305 = vst.msk [vmem:[%s964_s3 + $0xa0] sm:$0xff] %vm284_vm0, %v240_v39  ;;  %v180_v48 = vadd.f32 %v386_v2, %v109_v42  ;;  %v113_v49 = vmul.f32 %v381_v1, %v42_v36  ;;  %v114_v50 = vmul.f32 %v381_v1, %v43_v37  ;;  %v57_v33 = vld [vmem:[%s961_s0 + $0x158] sm:$0xff]  ;;  %v59_v39 = vld [vmem:[%s961_s0 + $0x168] sm:$0xff] }
  0x18   :  { %306 = vst.msk [vmem:[%s964_s3 + $0xa8] sm:$0xff] %vm284_vm0, %v241_v40  ;;  %307 = vst.msk [vmem:[%s964_s3 + $0xb0] sm:$0xff] %vm284_vm0, %v242_v41  ;;  %v115_v51 = vmul.f32 %v381_v1, %v44_v38  ;;  %v181_v52 = vadd.f32 %v386_v2, %v110_v45  ;;  %v182_v53 = vadd.f32 %v386_v2, %v111_v46  ;;  %v58_v38 = vld [vmem:[%s961_s0 + $0x160] sm:$0xff]  ;;  %v60_v40 = vld [vmem:[%s961_s0 + $0x170] sm:$0xff] }
  0x19   :  { %308 = vst.msk [vmem:[%s964_s3 + $0xb8] sm:$0xff] %vm284_vm0, %v243_v44  ;;  %v183_v54 = vadd.f32 %v386_v2, %v112_v47  ;;  %v116_v55 = vmul.f32 %v381_v1, %v45_v43  ;;  %v244_v57 = vmax.f32 %v180_v48, 0.0  ;;  %v184_v58 = vadd.f32 %v386_v2, %v113_v49  ;;  %v61_v45 = vld [vmem:[%s961_s0 + $0x178] sm:$0xff] }
  0x1a   :  { %v185_v59 = vadd.f32 %v386_v2, %v114_v50  ;;  %v186_v60 = vadd.f32 %v386_v2, %v115_v51  ;;  %v245_v0 = vmax.f32 %v181_v52, 0.0  ;;  %v246_v3 = vmax.f32 %v182_v53, 0.0 }
  0x1b   :  { %v247_v4 = vmax.f32 %v183_v54, 0.0  ;;  %v187_v5 = vadd.f32 %v386_v2, %v116_v55  ;;  %309 = vst.msk [vmem:[%s964_s3 + $0xc0] sm:$0xff] %vm284_vm0, %v244_v57  ;;  %v248_v9 = vmax.f32 %v184_v58, 0.0  ;;  %v117_v12 = vmul.f32 %v381_v1, %v46_v56  ;;  %v62_v58 = vld [vmem:[%s961_s0 + $0x180] sm:$0xff] }
  0x1c   :  { %v249_v10 = vmax.f32 %v185_v59, 0.0  ;;  %v250_v11 = vmax.f32 %v186_v60, 0.0  ;;  %310 = vst.msk [vmem:[%s964_s3 + $0xc8] sm:$0xff] %vm284_vm0, %v245_v0  ;;  %311 = vst.msk [vmem:[%s964_s3 + $0xd0] sm:$0xff] %vm284_vm0, %v246_v3  ;;  %v118_v15 = vmul.f32 %v381_v1, %v47_v61  ;;  %v119_v16 = vmul.f32 %v381_v1, %v48_v62  ;;  %v64_v0 = vld [vmem:[%s961_s0 + $0x190] sm:$0xff]  ;;  %v65_v3 = vld [vmem:[%s961_s0 + $0x198] sm:$0xff] }
  0x1d   :  { %312 = vst.msk [vmem:[%s964_s3 + $0xd8] sm:$0xff] %vm284_vm0, %v247_v4  ;;  %v251_v14 = vmax.f32 %v187_v5, 0.0  ;;  %v120_v17 = vmul.f32 %v381_v1, %v49_v63  ;;  %313 = vst.msk [vmem:[%s964_s3 + $0xe0] sm:$0xff] %vm284_vm0, %v248_v9  ;;  %v188_v18 = vadd.f32 %v386_v2, %v117_v12  ;;  %v121_v19 = vmul.f32 %v381_v1, %v50_v6  ;;  %v63_v63 = vld [vmem:[%s961_s0 + $0x188] sm:$0xff] }
  0x1e   :  { %314 = vst.msk [vmem:[%s964_s3 + $0xe8] sm:$0xff] %vm284_vm0, %v249_v10  ;;  %315 = vst.msk [vmem:[%s964_s3 + $0xf0] sm:$0xff] %vm284_vm0, %v250_v11  ;;  %v122_v20 = vmul.f32 %v381_v1, %v51_v7  ;;  %v123_v21 = vmul.f32 %v381_v1, %v52_v8  ;;  %v189_v22 = vadd.f32 %v386_v2, %v118_v15  ;;  %v66_v8 = vld [vmem:[%s961_s0 + $0x1a0] sm:$0xff]  ;;  %v67_v9 = vld [vmem:[%s961_s0 + $0x1a8] sm:$0xff] }
  0x1f   :  { %316 = vst.msk [vmem:[%s964_s3 + $0xf8] sm:$0xff] %vm284_vm0, %v251_v14  ;;  %v190_v23 = vadd.f32 %v386_v2, %v119_v16  ;;  %v191_v24 = vadd.f32 %v386_v2, %v120_v17  ;;  %v124_v25 = vmul.f32 %v381_v1, %v53_v13  ;;  %v252_v27 = vmax.f32 %v188_v18, 0.0  ;;  %v68_v10 = vld [vmem:[%s961_s0 + $0x1b0] sm:$0xff]  ;;  %v69_v15 = vld [vmem:[%s961_s0 + $0x1b8] sm:$0xff] }
  0x20   :  { %v192_v28 = vadd.f32 %v386_v2, %v121_v19  ;;  %v193_v29 = vadd.f32 %v386_v2, %v122_v20  ;;  %v194_v30 = vadd.f32 %v386_v2, %v123_v21  ;;  %v253_v34 = vmax.f32 %v189_v22, 0.0 }
  0x21   :  { %v254_v35 = vmax.f32 %v190_v23, 0.0  ;;  %v255_v36 = vmax.f32 %v191_v24, 0.0  ;;  %v195_v37 = vadd.f32 %v386_v2, %v124_v25  ;;  %317 = vst.msk [vmem:[%s964_s3 + $0x100] sm:$0xff] %vm284_vm0, %v252_v27  ;;  %v125_v44 = vmul.f32 %v381_v1, %v54_v26 }
  0x22   :  { %v256_v41 = vmax.f32 %v192_v28, 0.0  ;;  %v257_v42 = vmax.f32 %v193_v29, 0.0  ;;  %v258_v43 = vmax.f32 %v194_v30, 0.0  ;;  %318 = vst.msk [vmem:[%s964_s3 + $0x108] sm:$0xff] %vm284_vm0, %v253_v34  ;;  %v126_v47 = vmul.f32 %v381_v1, %v55_v31  ;;  %v70_v28 = vld [vmem:[%s961_s0 + $0x1c0] sm:$0xff]  ;;  %v72_v34 = vld [vmem:[%s961_s0 + $0x1d0] sm:$0xff] }
  0x23   :  { %319 = vst.msk [vmem:[%s964_s3 + $0x110] sm:$0xff] %vm284_vm0, %v254_v35  ;;  %320 = vst.msk [vmem:[%s964_s3 + $0x118] sm:$0xff] %vm284_vm0, %v255_v36  ;;  %v259_v46 = vmax.f32 %v195_v37, 0.0  ;;  %v127_v48 = vmul.f32 %v381_v1, %v56_v32  ;;  %v128_v49 = vmul.f32 %v381_v1, %v57_v33  ;;  %v196_v50 = vadd.f32 %v386_v2, %v125_v44  ;;  %v71_v33 = vld [vmem:[%s961_s0 + $0x1c8] sm:$0xff]  ;;  %v73_v35 = vld [vmem:[%s961_s0 + $0x1d8] sm:$0xff] }
  0x24   :  { %321 = vst.msk [vmem:[%s964_s3 + $0x120] sm:$0xff] %vm284_vm0, %v256_v41  ;;  %322 = vst.msk [vmem:[%s964_s3 + $0x128] sm:$0xff] %vm284_vm0, %v257_v42  ;;  %v129_v51 = vmul.f32 %v381_v1, %v58_v38  ;;  %v130_v52 = vmul.f32 %v381_v1, %v59_v39  ;;  %v131_v53 = vmul.f32 %v381_v1, %v60_v40  ;;  %v74_v40 = vld [vmem:[%s961_s0 + $0x1e0] sm:$0xff]  ;;  %v75_v41 = vld [vmem:[%s961_s0 + $0x1e8] sm:$0xff] }
  0x25   :  { %323 = vst.msk [vmem:[%s964_s3 + $0x130] sm:$0xff] %vm284_vm0, %v258_v43  ;;  %324 = vst.msk [vmem:[%s964_s3 + $0x138] sm:$0xff] %vm284_vm0, %v259_v46  ;;  %v197_v54 = vadd.f32 %v386_v2, %v126_v47  ;;  %v198_v55 = vadd.f32 %v386_v2, %v127_v48  ;;  %v199_v56 = vadd.f32 %v386_v2, %v128_v49  ;;  %v260_v59 = vmax.f32 %v196_v50, 0.0  ;;  %v76_v42 = vld [vmem:[%s961_s0 + $0x1f0] sm:$0xff]  ;;  %v77_v47 = vld [vmem:[%s961_s0 + $0x1f8] sm:$0xff] }
  0x26   :  { %v132_v57 = vmul.f32 %v381_v1, %v61_v45  ;;  %v200_v60 = vadd.f32 %v386_v2, %v129_v51  ;;  %v201_v61 = vadd.f32 %v386_v2, %v130_v52  ;;  %v202_v62 = vadd.f32 %v386_v2, %v131_v53 }
  0x27   :  { %v261_v4 = vmax.f32 %v197_v54, 0.0  ;;  %v262_v5 = vmax.f32 %v198_v55, 0.0  ;;  %v263_v6 = vmax.f32 %v199_v56, 0.0  ;;  %325 = vst.msk [vmem:[%s964_s3 + $0x140] sm:$0xff] %vm284_vm0, %v260_v59  ;;  %v133_v14 = vmul.f32 %v381_v1, %v62_v58 }
  0x28   :  { %v203_v7 = vadd.f32 %v386_v2, %v132_v57  ;;  %v264_v11 = vmax.f32 %v200_v60, 0.0  ;;  %v265_v12 = vmax.f32 %v201_v61, 0.0  ;;  %v266_v13 = vmax.f32 %v202_v62, 0.0 }
  0x29   :  { %326 = vst.msk [vmem:[%s964_s3 + $0x148] sm:$0xff] %vm284_vm0, %v261_v4  ;;  %327 = vst.msk [vmem:[%s964_s3 + $0x150] sm:$0xff] %vm284_vm0, %v262_v5  ;;  %v134_v17 = vmul.f32 %v381_v1, %v63_v63  ;;  %v135_v18 = vmul.f32 %v381_v1, %v64_v0  ;;  %v136_v19 = vmul.f32 %v381_v1, %v65_v3 }
  0x2a   :  { %328 = vst.msk [vmem:[%s964_s3 + $0x158] sm:$0xff] %vm284_vm0, %v263_v6  ;;  %v267_v16 = vmax.f32 %v203_v7, 0.0  ;;  %329 = vst.msk [vmem:[%s964_s3 + $0x160] sm:$0xff] %vm284_vm0, %v264_v11  ;;  %v204_v20 = vadd.f32 %v386_v2, %v133_v14  ;;  %v137_v21 = vmul.f32 %v381_v1, %v66_v8  ;;  %v138_v22 = vmul.f32 %v381_v1, %v67_v9 }
  0x2b   :  { %330 = vst.msk [vmem:[%s964_s3 + $0x168] sm:$0xff] %vm284_vm0, %v265_v12  ;;  %331 = vst.msk [vmem:[%s964_s3 + $0x170] sm:$0xff] %vm284_vm0, %v266_v13  ;;  %v139_v23 = vmul.f32 %v381_v1, %v68_v10  ;;  %v205_v24 = vadd.f32 %v386_v2, %v134_v17  ;;  %v206_v25 = vadd.f32 %v386_v2, %v135_v18 }
  0x2c   :  { %332 = vst.msk [vmem:[%s964_s3 + $0x178] sm:$0xff] %vm284_vm0, %v267_v16  ;;  %v207_v26 = vadd.f32 %v386_v2, %v136_v19  ;;  %v140_v27 = vmul.f32 %v381_v1, %v69_v15  ;;  %v268_v29 = vmax.f32 %v204_v20, 0.0  ;;  %v208_v30 = vadd.f32 %v386_v2, %v137_v21 }
  0x2d   :  { %v209_v31 = vadd.f32 %v386_v2, %v138_v22  ;;  %v210_v32 = vadd.f32 %v386_v2, %v139_v23  ;;  %v269_v36 = vmax.f32 %v205_v24, 0.0  ;;  %v270_v37 = vmax.f32 %v206_v25, 0.0 }
  0x2e   :  { %v271_v38 = vmax.f32 %v207_v26, 0.0  ;;  %v211_v39 = vadd.f32 %v386_v2, %v140_v27  ;;  %333 = vst.msk [vmem:[%s964_s3 + $0x180] sm:$0xff] %vm284_vm0, %v268_v29  ;;  %v272_v43 = vmax.f32 %v208_v30, 0.0  ;;  %v141_v46 = vmul.f32 %v381_v1, %v70_v28 }
  0x2f   :  { %v273_v44 = vmax.f32 %v209_v31, 0.0  ;;  %v274_v45 = vmax.f32 %v210_v32, 0.0  ;;  %334 = vst.msk [vmem:[%s964_s3 + $0x188] sm:$0xff] %vm284_vm0, %v269_v36  ;;  %335 = vst.msk [vmem:[%s964_s3 + $0x190] sm:$0xff] %vm284_vm0, %v270_v37  ;;  %v142_v49 = vmul.f32 %v381_v1, %v71_v33  ;;  %v143_v50 = vmul.f32 %v381_v1, %v72_v34 }
  0x30   :  { %336 = vst.msk [vmem:[%s964_s3 + $0x198] sm:$0xff] %vm284_vm0, %v271_v38  ;;  %v275_v48 = vmax.f32 %v211_v39, 0.0  ;;  %v144_v51 = vmul.f32 %v381_v1, %v73_v35  ;;  %337 = vst.msk [vmem:[%s964_s3 + $0x1a0] sm:$0xff] %vm284_vm0, %v272_v43  ;;  %v212_v52 = vadd.f32 %v386_v2, %v141_v46  ;;  %v145_v53 = vmul.f32 %v381_v1, %v74_v40 }
  0x31   :  { %338 = vst.msk [vmem:[%s964_s3 + $0x1a8] sm:$0xff] %vm284_vm0, %v273_v44  ;;  %339 = vst.msk [vmem:[%s964_s3 + $0x1b0] sm:$0xff] %vm284_vm0, %v274_v45  ;;  %v146_v54 = vmul.f32 %v381_v1, %v75_v41  ;;  %v147_v55 = vmul.f32 %v381_v1, %v76_v42  ;;  %v213_v56 = vadd.f32 %v386_v2, %v142_v49 }
  0x32   :  { %340 = vst.msk [vmem:[%s964_s3 + $0x1b8] sm:$0xff] %vm284_vm0, %v275_v48  ;;  %v214_v57 = vadd.f32 %v386_v2, %v143_v50  ;;  %v215_v58 = vadd.f32 %v386_v2, %v144_v51  ;;  %v148_v59 = vmul.f32 %v381_v1, %v77_v47  ;;  %v276_v60 = vmax.f32 %v212_v52, 0.0 }
  0x33   :  { %v216_v61 = vadd.f32 %v386_v2, %v145_v53  ;;  %v217_v62 = vadd.f32 %v386_v2, %v146_v54  ;;  %v218_v63 = vadd.f32 %v386_v2, %v147_v55  ;;  %v277_v0 = vmax.f32 %v213_v56, 0.0 }
  0x34   :  { %v278_v3 = vmax.f32 %v214_v57, 0.0  ;;  %v279_v4 = vmax.f32 %v215_v58, 0.0  ;;  %v219_v5 = vadd.f32 %v386_v2, %v148_v59  ;;  %341 = vst.msk [vmem:[%s964_s3 + $0x1c0] sm:$0xff] %vm284_vm0, %v276_v60 }
  0x35   :  { %v280_v6 = vmax.f32 %v216_v61, 0.0  ;;  %v281_v7 = vmax.f32 %v217_v62, 0.0  ;;  %v282_v1 = vmax.f32 %v218_v63, 0.0  ;;  %342 = vst.msk [vmem:[%s964_s3 + $0x1c8] sm:$0xff] %vm284_vm0, %v277_v0 }
  0x36   :  { %343 = vst.msk [vmem:[%s964_s3 + $0x1d0] sm:$0xff] %vm284_vm0, %v278_v3  ;;  %344 = vst.msk [vmem:[%s964_s3 + $0x1d8] sm:$0xff] %vm284_vm0, %v279_v4  ;;  %v283_v2 = vmax.f32 %v219_v5, 0.0 }
  0x37   :  { %345 = vst.msk [vmem:[%s964_s3 + $0x1e0] sm:$0xff] %vm284_vm0, %v280_v6  ;;  %346 = vst.msk [vmem:[%s964_s3 + $0x1e8] sm:$0xff] %vm284_vm0, %v281_v7 }
  0x38   :  { %347 = vst.msk [vmem:[%s964_s3 + $0x1f0] sm:$0xff] %vm284_vm0, %v282_v1  ;;  %348 = vst.msk [vmem:[%s964_s3 + $0x1f8] sm:$0xff] %vm284_vm0, %v283_v2 }

// kernel: decoder_traversability.36
= control target key start
LH: loop header
LB: loop body
LE: loop exit
PB: predicated region body
PF: predicated region fallthrough
CT: control target
= control target key end

     0   :  { %vm415_vm0 = vcmask 130048   ;;  %s1289_s0 = inlined_call_operand.vmem [shape: f32[512,16], index: 0, kind: input, shape index: {}]   ;;  %s1290_s1 = inlined_call_operand.vmem [shape: f32[1,16], index: 1, kind: input, shape index: {}]   ;;  %s1291_s2 = inlined_call_operand.vmem [shape: f32[1,16], index: 2, kind: input, shape index: {}]   ;;  %s1292_s3 = inlined_call_operand.vmem [shape: f32[512,16], index: 3, kind: input, shape index: {}]   ;;  %s1293_s4 = inlined_call_operand.vmem [shape: f32[512,16], index: 4, kind: output, shape index: {}]  }
   0x1   :  { %v17_v0 = vld [vmem:[%s1289_s0] sm:$0xff]  ;;  %v18_v4 = vld [vmem:[%s1289_s0 + $0x8] sm:$0xff]  ;;  %v19_v7 = vld [vmem:[%s1289_s0 + $0x10] sm:$0xff] }
   0x2   :  { %v517_v1 = vld [vmem:[%s1290_s1] ss:$0 sm:$0xff]  ;;  %v20_v8 = vld [vmem:[%s1289_s0 + $0x18] sm:$0xff]  ;;  %v224_v10 = vld [vmem:[%s1292_s3 + $0x8] sm:$0xff] }
   0x3   :  { %v522_v2 = vld [vmem:[%s1291_s2] ss:$0 sm:$0xff]  ;;  %v88_v3 = vmul.f32 %v517_v1, %v17_v0  ;;  %v89_v6 = vmul.f32 %v517_v1, %v18_v4  ;;  %v90_v11 = vmul.f32 %v517_v1, %v19_v7  ;;  %v225_v12 = vld [vmem:[%s1292_s3 + $0x10] sm:$0xff]  ;;  %v91_v13 = vmul.f32 %v517_v1, %v20_v8  ;;  %v226_v16 = vld [vmem:[%s1292_s3 + $0x18] sm:$0xff] }
   0x4   :  { %v223_v5 = vld [vmem:[%s1292_s3] sm:$0xff]  ;;  %v22_v18 = vld [vmem:[%s1289_s0 + $0x28] sm:$0xff]  ;;  %v23_v19 = vld [vmem:[%s1289_s0 + $0x30] sm:$0xff] }
   0x5   :  { %v159_v9 = vadd.f32 %v522_v2, %v88_v3  ;;  %v21_v14 = vld [vmem:[%s1289_s0 + $0x20] sm:$0xff]  ;;  %v160_v15 = vadd.f32 %v522_v2, %v89_v6  ;;  %v161_v21 = vadd.f32 %v522_v2, %v90_v11  ;;  %v162_v22 = vadd.f32 %v522_v2, %v91_v13  ;;  %v24_v25 = vld [vmem:[%s1289_s0 + $0x38] sm:$0xff]  ;;  %v228_v28 = vld [vmem:[%s1292_s3 + $0x28] sm:$0xff] }
   0x6   :  { %v92_v17 = vmul.f32 %v517_v1, %v21_v14  ;;  %v227_v23 = vld [vmem:[%s1292_s3 + $0x20] sm:$0xff]  ;;  %v93_v24 = vmul.f32 %v517_v1, %v22_v18  ;;  %v94_v29 = vmul.f32 %v517_v1, %v23_v19  ;;  %v95_v30 = vmul.f32 %v517_v1, %v24_v25  ;;  %v229_v36 = vld [vmem:[%s1292_s3 + $0x30] sm:$0xff]  ;;  %v230_v37 = vld [vmem:[%s1292_s3 + $0x38] sm:$0xff] }
   0x7   :  { %v287_v20 = vadd.f32 %v223_v5, %v159_v9  ;;  %v288_v26 = vadd.f32 %v224_v10, %v160_v15  ;;  %v25_v31 = vld [vmem:[%s1289_s0 + $0x40] sm:$0xff]  ;;  %v289_v33 = vadd.f32 %v225_v12, %v161_v21  ;;  %v290_v34 = vadd.f32 %v226_v16, %v162_v22  ;;  %v26_v38 = vld [vmem:[%s1289_s0 + $0x48] sm:$0xff]  ;;  %v27_v43 = vld [vmem:[%s1289_s0 + $0x50] sm:$0xff] }
   0x8   :  { %v163_v27 = vadd.f32 %v522_v2, %v92_v17  ;;  %v164_v35 = vadd.f32 %v522_v2, %v93_v24  ;;  %v165_v41 = vadd.f32 %v522_v2, %v94_v29  ;;  %v166_v42 = vadd.f32 %v522_v2, %v95_v30  ;;  %v28_v44 = vld [vmem:[%s1289_s0 + $0x58] sm:$0xff]  ;;  %v29_v49 = vld [vmem:[%s1289_s0 + $0x60] sm:$0xff]  ;;  %v30_v55 = vld [vmem:[%s1289_s0 + $0x68] sm:$0xff] }
   0x9   :  { %v351_v32 = vmax.f32 %v287_v20, 0.0  ;;  %v352_v39 = vmax.f32 %v288_v26, 0.0  ;;  %v353_v45 = vmax.f32 %v289_v33, 0.0  ;;  %v354_v46 = vmax.f32 %v290_v34, 0.0  ;;  %v231_v53 = vld [vmem:[%s1292_s3 + $0x40] sm:$0xff]  ;;  %v232_v58 = vld [vmem:[%s1292_s3 + $0x48] sm:$0xff] }
   0xa   :  { %v291_v40 = vadd.f32 %v227_v23, %v163_v27  ;;  %v292_v47 = vadd.f32 %v228_v28, %v164_v35  ;;  %v96_v48 = vmul.f32 %v517_v1, %v25_v31  ;;  %v293_v51 = vadd.f32 %v229_v36, %v165_v41  ;;  %v31_v61 = vld [vmem:[%s1289_s0 + $0x70] sm:$0xff]  ;;  %v32_v62 = vld [vmem:[%s1289_s0 + $0x78] sm:$0xff]  ;;  %v235_v10 = vld [vmem:[%s1292_s3 + $0x60] sm:$0xff] }
   0xb   :  { %416 = vst.msk [vmem:[%s1293_s4] sm:$0xff] %vm415_vm0, %v351_v32  ;;  %417 = vst.msk [vmem:[%s1293_s4 + $0x8] sm:$0xff] %vm415_vm0, %v352_v39  ;;  %v294_v52 = vadd.f32 %v230_v37, %v166_v42  ;;  %v97_v54 = vmul.f32 %v517_v1, %v26_v38  ;;  %v98_v59 = vmul.f32 %v517_v1, %v27_v43  ;;  %v233_v4 = vld [vmem:[%s1292_s3 + $0x50] sm:$0xff]  ;;  %v234_v5 = vld [vmem:[%s1292_s3 + $0x58] sm:$0xff] }
   0xc   :  { %v355_v50 = vmax.f32 %v291_v40, 0.0  ;;  %418 = vst.msk [vmem:[%s1293_s4 + $0x10] sm:$0xff] %vm415_vm0, %v353_v45  ;;  %419 = vst.msk [vmem:[%s1293_s4 + $0x18] sm:$0xff] %vm415_vm0, %v354_v46  ;;  %v356_v56 = vmax.f32 %v292_v47, 0.0  ;;  %v167_v57 = vadd.f32 %v522_v2, %v96_v48  ;;  %v99_v60 = vmul.f32 %v517_v1, %v28_v44  ;;  %v236_v14 = vld [vmem:[%s1292_s3 + $0x68] sm:$0xff]  ;;  %v33_v17 = vld [vmem:[%s1289_s0 + $0x80] sm:$0xff] }
   0xd   :  { %v357_v63 = vmax.f32 %v293_v51, 0.0  ;;  %v358_v0 = vmax.f32 %v294_v52, 0.0  ;;  %v168_v3 = vadd.f32 %v522_v2, %v97_v54  ;;  %v100_v6 = vmul.f32 %v517_v1, %v29_v49  ;;  %v237_v22 = vld [vmem:[%s1292_s3 + $0x70] sm:$0xff]  ;;  %v238_v23 = vld [vmem:[%s1292_s3 + $0x78] sm:$0xff]  ;;  %v34_v24 = vld [vmem:[%s1289_s0 + $0x88] sm:$0xff] }
   0xe   :  { %420 = vst.msk [vmem:[%s1293_s4 + $0x20] sm:$0xff] %vm415_vm0, %v355_v50  ;;  %421 = vst.msk [vmem:[%s1293_s4 + $0x28] sm:$0xff] %vm415_vm0, %v356_v56  ;;  %v295_v7 = vadd.f32 %v231_v53, %v167_v57  ;;  %v169_v8 = vadd.f32 %v522_v2, %v98_v59  ;;  %v170_v9 = vadd.f32 %v522_v2, %v99_v60  ;;  %v35_v29 = vld [vmem:[%s1289_s0 + $0x90] sm:$0xff]  ;;  %v36_v30 = vld [vmem:[%s1289_s0 + $0x98] sm:$0xff] }
   0xf   :  { %v101_v11 = vmul.f32 %v517_v1, %v30_v55  ;;  %422 = vst.msk [vmem:[%s1293_s4 + $0x30] sm:$0xff] %vm415_vm0, %v357_v63  ;;  %423 = vst.msk [vmem:[%s1293_s4 + $0x38] sm:$0xff] %vm415_vm0, %v358_v0  ;;  %v296_v12 = vadd.f32 %v232_v58, %v168_v3  ;;  %v171_v13 = vadd.f32 %v522_v2, %v100_v6  ;;  %v37_v35 = vld [vmem:[%s1289_s0 + $0xa0] sm:$0xff]  ;;  %v38_v41 = vld [vmem:[%s1289_s0 + $0xa8] sm:$0xff] }
  0x10   :  { %v102_v15 = vmul.f32 %v517_v1, %v31_v61  ;;  %v103_v16 = vmul.f32 %v517_v1, %v32_v62  ;;  %v359_v18 = vmax.f32 %v295_v7, 0.0  ;;  %v297_v19 = vadd.f32 %v233_v4, %v169_v8  ;;  %v239_v39 = vld [vmem:[%s1292_s3 + $0x80] sm:$0xff]  ;;  %v240_v44 = vld [vmem:[%s1292_s3 + $0x88] sm:$0xff]  ;;  %v39_v47 = vld [vmem:[%s1289_s0 + $0xb0] sm:$0xff] }
  0x11   :  { %v298_v20 = vadd.f32 %v234_v5, %v170_v9  ;;  %v172_v21 = vadd.f32 %v522_v2, %v101_v11  ;;  %v360_v25 = vmax.f32 %v296_v12, 0.0  ;;  %v299_v26 = vadd.f32 %v235_v10, %v171_v13  ;;  %v40_v48 = vld [vmem:[%s1289_s0 + $0xb8] sm:$0xff]  ;;  %v241_v52 = vld [vmem:[%s1292_s3 + $0x90] sm:$0xff]  ;;  %v243_v58 = vld [vmem:[%s1292_s3 + $0xa0] sm:$0xff] }
  0x12   :  { %v173_v27 = vadd.f32 %v522_v2, %v102_v15  ;;  %v174_v28 = vadd.f32 %v522_v2, %v103_v16  ;;  %424 = vst.msk [vmem:[%s1293_s4 + $0x40] sm:$0xff] %vm415_vm0, %v359_v18  ;;  %v361_v31 = vmax.f32 %v297_v19, 0.0  ;;  %v104_v34 = vmul.f32 %v517_v1, %v33_v17  ;;  %v242_v53 = vld [vmem:[%s1292_s3 + $0x98] sm:$0xff]  ;;  %v244_v62 = vld [vmem:[%s1292_s3 + $0xa8] sm:$0xff]  ;;  %v41_v3 = vld [vmem:[%s1289_s0 + $0xc0] sm:$0xff] }
  0x13   :  { %v362_v32 = vmax.f32 %v298_v20, 0.0  ;;  %v300_v33 = vadd.f32 %v236_v14, %v172_v21  ;;  %425 = vst.msk [vmem:[%s1293_s4 + $0x48] sm:$0xff] %vm415_vm0, %v360_v25  ;;  %v363_v36 = vmax.f32 %v299_v26, 0.0  ;;  %v105_v40 = vmul.f32 %v517_v1, %v34_v24  ;;  %v245_v8 = vld [vmem:[%s1292_s3 + $0xb0] sm:$0xff]  ;;  %v246_v9 = vld [vmem:[%s1292_s3 + $0xb8] sm:$0xff]  ;;  %v42_v10 = vld [vmem:[%s1289_s0 + $0xc8] sm:$0xff] }
  0x14   :  { %v301_v37 = vadd.f32 %v237_v22, %v173_v27  ;;  %v302_v38 = vadd.f32 %v238_v23, %v174_v28  ;;  %426 = vst.msk [vmem:[%s1293_s4 + $0x50] sm:$0xff] %vm415_vm0, %v361_v31  ;;  %v175_v43 = vadd.f32 %v522_v2, %v104_v34  ;;  %v106_v45 = vmul.f32 %v517_v1, %v35_v29  ;;  %v43_v15 = vld [vmem:[%s1289_s0 + $0xd0] sm:$0xff]  ;;  %v44_v16 = vld [vmem:[%s1289_s0 + $0xd8] sm:$0xff]  ;;  %v45_v21 = vld [vmem:[%s1289_s0 + $0xe0] sm:$0xff] }
  0x15   :  { %427 = vst.msk [vmem:[%s1293_s4 + $0x58] sm:$0xff] %vm415_vm0, %v362_v32  ;;  %v364_v42 = vmax.f32 %v300_v33, 0.0  ;;  %v107_v46 = vmul.f32 %v517_v1, %v36_v30  ;;  %428 = vst.msk [vmem:[%s1293_s4 + $0x60] sm:$0xff] %vm415_vm0, %v363_v36  ;;  %v176_v51 = vadd.f32 %v522_v2, %v105_v40  ;;  %v108_v54 = vmul.f32 %v517_v1, %v37_v35  ;;  %v247_v25 = vld [vmem:[%s1292_s3 + $0xc0] sm:$0xff]  ;;  %v46_v27 = vld [vmem:[%s1289_s0 + $0xe8] sm:$0xff] }
  0x16   :  { %v365_v49 = vmax.f32 %v301_v37, 0.0  ;;  %v366_v50 = vmax.f32 %v302_v38, 0.0  ;;  %v303_v55 = vadd.f32 %v239_v39, %v175_v43  ;;  %v177_v56 = vadd.f32 %v522_v2, %v106_v45  ;;  %v248_v30 = vld [vmem:[%s1292_s3 + $0xc8] sm:$0xff]  ;;  %v47_v33 = vld [vmem:[%s1289_s0 + $0xf0] sm:$0xff]  ;;  %v48_v34 = vld [vmem:[%s1289_s0 + $0xf8] sm:$0xff] }
  0x17   :  { %429 = vst.msk [vmem:[%s1293_s4 + $0x68] sm:$0xff] %vm415_vm0, %v364_v42  ;;  %v178_v57 = vadd.f32 %v522_v2, %v107_v46  ;;  %v109_v59 = vmul.f32 %v517_v1, %v38_v41  ;;  %v304_v60 = vadd.f32 %v240_v44, %v176_v51  ;;  %v179_v61 = vadd.f32 %v522_v2, %v108_v54  ;;  %v249_v38 = vld [vmem:[%s1292_s3 + $0xd0] sm:$0xff]  ;;  %v250_v39 = vld [vmem:[%s1292_s3 + $0xd8] sm:$0xff]  ;;  %v251_v44 = vld [vmem:[%s1292_s3 + $0xe0] sm:$0xff] }
  0x18   :  { %430 = vst.msk [vmem:[%s1293_s4 + $0x70] sm:$0xff] %vm415_vm0, %v365_v49  ;;  %431 = vst.msk [vmem:[%s1293_s4 + $0x78] sm:$0xff] %vm415_vm0, %v366_v50  ;;  %v110_v63 = vmul.f32 %v517_v1, %v39_v47  ;;  %v111_v0 = vmul.f32 %v517_v1, %v40_v48  ;;  %v367_v4 = vmax.f32 %v303_v55, 0.0  ;;  %v305_v5 = vadd.f32 %v241_v52, %v177_v56  ;;  %v252_v48 = vld [vmem:[%s1292_s3 + $0xe8] sm:$0xff]  ;;  %v49_v51 = vld [vmem:[%s1289_s0 + $0x100] sm:$0xff] }
  0x19   :  { %v306_v6 = vadd.f32 %v242_v53, %v178_v57  ;;  %v180_v7 = vadd.f32 %v522_v2, %v109_v59  ;;  %v368_v11 = vmax.f32 %v304_v60, 0.0  ;;  %v307_v12 = vadd.f32 %v243_v58, %v179_v61  ;;  %v253_v56 = vld [vmem:[%s1292_s3 + $0xf0] sm:$0xff]  ;;  %v254_v57 = vld [vmem:[%s1292_s3 + $0xf8] sm:$0xff]  ;;  %v50_v58 = vld [vmem:[%s1289_s0 + $0x108] sm:$0xff] }
  0x1a   :  { %v181_v13 = vadd.f32 %v522_v2, %v110_v63  ;;  %v182_v14 = vadd.f32 %v522_v2, %v111_v0  ;;  %432 = vst.msk [vmem:[%s1293_s4 + $0x80] sm:$0xff] %vm415_vm0, %v367_v4  ;;  %v369_v17 = vmax.f32 %v305_v5, 0.0  ;;  %v112_v20 = vmul.f32 %v517_v1, %v41_v3  ;;  %v51_v63 = vld [vmem:[%s1289_s0 + $0x110] sm:$0xff]  ;;  %v52_v0 = vld [vmem:[%s1289_s0 + $0x118] sm:$0xff] }
  0x1b   :  { %v370_v18 = vmax.f32 %v306_v6, 0.0  ;;  %v308_v19 = vadd.f32 %v244_v62, %v180_v7  ;;  %433 = vst.msk [vmem:[%s1293_s4 + $0x88] sm:$0xff] %vm415_vm0, %v368_v11  ;;  %v371_v22 = vmax.f32 %v307_v12, 0.0  ;;  %v113_v26 = vmul.f32 %v517_v1, %v42_v10  ;;  %v53_v7 = vld [vmem:[%s1289_s0 + $0x120] sm:$0xff] }
  0x1c   :  { %v309_v23 = vadd.f32 %v245_v8, %v181_v13  ;;  %v310_v24 = vadd.f32 %v246_v9, %v182_v14  ;;  %434 = vst.msk [vmem:[%s1293_s4 + $0x90] sm:$0xff] %vm415_vm0, %v369_v17  ;;  %v183_v29 = vadd.f32 %v522_v2, %v112_v20  ;;  %v114_v31 = vmul.f32 %v517_v1, %v43_v15  ;;  %v255_v11 = vld [vmem:[%s1292_s3 + $0x100] sm:$0xff]  ;;  %v54_v13 = vld [vmem:[%s1289_s0 + $0x128] sm:$0xff]  ;;  %v56_v20 = vld [vmem:[%s1289_s0 + $0x138] sm:$0xff] }
  0x1d   :  { %435 = vst.msk [vmem:[%s1293_s4 + $0x98] sm:$0xff] %vm415_vm0, %v370_v18  ;;  %v372_v28 = vmax.f32 %v308_v19, 0.0  ;;  %v115_v32 = vmul.f32 %v517_v1, %v44_v16  ;;  %436 = vst.msk [vmem:[%s1293_s4 + $0xa0] sm:$0xff] %vm415_vm0, %v371_v22  ;;  %v184_v37 = vadd.f32 %v522_v2, %v113_v26  ;;  %v116_v40 = vmul.f32 %v517_v1, %v45_v21  ;;  %v256_v16 = vld [vmem:[%s1292_s3 + $0x108] sm:$0xff]  ;;  %v55_v19 = vld [vmem:[%s1289_s0 + $0x130] sm:$0xff] }
  0x1e   :  { %v373_v35 = vmax.f32 %v309_v23, 0.0  ;;  %v374_v36 = vmax.f32 %v310_v24, 0.0  ;;  %v311_v41 = vadd.f32 %v247_v25, %v183_v29  ;;  %v185_v42 = vadd.f32 %v522_v2, %v114_v31  ;;  %v257_v24 = vld [vmem:[%s1292_s3 + $0x110] sm:$0xff]  ;;  %v258_v25 = vld [vmem:[%s1292_s3 + $0x118] sm:$0xff] }
  0x1f   :  { %437 = vst.msk [vmem:[%s1293_s4 + $0xa8] sm:$0xff] %vm415_vm0, %v372_v28  ;;  %v186_v43 = vadd.f32 %v522_v2, %v115_v32  ;;  %v117_v45 = vmul.f32 %v517_v1, %v46_v27  ;;  %v312_v46 = vadd.f32 %v248_v30, %v184_v37  ;;  %v187_v47 = vadd.f32 %v522_v2, %v116_v40  ;;  %v259_v30 = vld [vmem:[%s1292_s3 + $0x120] sm:$0xff] }
  0x20   :  { %438 = vst.msk [vmem:[%s1293_s4 + $0xb0] sm:$0xff] %vm415_vm0, %v373_v35  ;;  %439 = vst.msk [vmem:[%s1293_s4 + $0xb8] sm:$0xff] %vm415_vm0, %v374_v36  ;;  %v118_v49 = vmul.f32 %v517_v1, %v47_v33  ;;  %v119_v50 = vmul.f32 %v517_v1, %v48_v34  ;;  %v375_v52 = vmax.f32 %v311_v41, 0.0  ;;  %v313_v53 = vadd.f32 %v249_v38, %v185_v42  ;;  %v260_v34 = vld [vmem:[%s1292_s3 + $0x128] sm:$0xff]  ;;  %v57_v37 = vld [vmem:[%s1289_s0 + $0x140] sm:$0xff] }
  0x21   :  { %v314_v54 = vadd.f32 %v250_v39, %v186_v43  ;;  %v188_v55 = vadd.f32 %v522_v2, %v117_v45  ;;  %v376_v59 = vmax.f32 %v312_v46, 0.0  ;;  %v315_v60 = vadd.f32 %v251_v44, %v187_v47  ;;  %v261_v42 = vld [vmem:[%s1292_s3 + $0x130] sm:$0xff]  ;;  %v262_v43 = vld [vmem:[%s1292_s3 + $0x138] sm:$0xff]  ;;  %v58_v44 = vld [vmem:[%s1289_s0 + $0x148] sm:$0xff] }
  0x22   :  { %v189_v61 = vadd.f32 %v522_v2, %v118_v49  ;;  %v190_v62 = vadd.f32 %v522_v2, %v119_v50  ;;  %440 = vst.msk [vmem:[%s1293_s4 + $0xc0] sm:$0xff] %vm415_vm0, %v375_v52  ;;  %v377_v3 = vmax.f32 %v313_v53, 0.0  ;;  %v120_v6 = vmul.f32 %v517_v1, %v49_v51  ;;  %v59_v49 = vld [vmem:[%s1289_s0 + $0x150] sm:$0xff]  ;;  %v60_v50 = vld [vmem:[%s1289_s0 + $0x158] sm:$0xff] }
  0x23   :  { %v378_v4 = vmax.f32 %v314_v54, 0.0  ;;  %v316_v5 = vadd.f32 %v252_v48, %v188_v55  ;;  %441 = vst.msk [vmem:[%s1293_s4 + $0xc8] sm:$0xff] %vm415_vm0, %v376_v59  ;;  %v379_v8 = vmax.f32 %v315_v60, 0.0  ;;  %v121_v12 = vmul.f32 %v517_v1, %v50_v58  ;;  %v61_v55 = vld [vmem:[%s1289_s0 + $0x160] sm:$0xff] }
  0x24   :  { %v317_v9 = vadd.f32 %v253_v56, %v189_v61  ;;  %v318_v10 = vadd.f32 %v254_v57, %v190_v62  ;;  %442 = vst.msk [vmem:[%s1293_s4 + $0xd0] sm:$0xff] %vm415_vm0, %v377_v3  ;;  %v191_v15 = vadd.f32 %v522_v2, %v120_v6  ;;  %v122_v17 = vmul.f32 %v517_v1, %v51_v63  ;;  %v263_v59 = vld [vmem:[%s1292_s3 + $0x140] sm:$0xff]  ;;  %v62_v61 = vld [vmem:[%s1289_s0 + $0x168] sm:$0xff]  ;;  %v64_v6 = vld [vmem:[%s1289_s0 + $0x178] sm:$0xff] }
  0x25   :  { %443 = vst.msk [vmem:[%s1293_s4 + $0xd8] sm:$0xff] %vm415_vm0, %v378_v4  ;;  %v380_v14 = vmax.f32 %v316_v5, 0.0  ;;  %v123_v18 = vmul.f32 %v517_v1, %v52_v0  ;;  %444 = vst.msk [vmem:[%s1293_s4 + $0xe0] sm:$0xff] %vm415_vm0, %v379_v8  ;;  %v192_v23 = vadd.f32 %v522_v2, %v121_v12  ;;  %v124_v26 = vmul.f32 %v517_v1, %v53_v7  ;;  %v264_v0 = vld [vmem:[%s1292_s3 + $0x148] sm:$0xff]  ;;  %v63_v5 = vld [vmem:[%s1289_s0 + $0x170] sm:$0xff] }
  0x26   :  { %v381_v21 = vmax.f32 %v317_v9, 0.0  ;;  %v382_v22 = vmax.f32 %v318_v10, 0.0  ;;  %v319_v27 = vadd.f32 %v255_v11, %v191_v15  ;;  %v193_v28 = vadd.f32 %v522_v2, %v122_v17  ;;  %v265_v10 = vld [vmem:[%s1292_s3 + $0x150] sm:$0xff]  ;;  %v266_v11 = vld [vmem:[%s1292_s3 + $0x158] sm:$0xff] }
  0x27   :  { %445 = vst.msk [vmem:[%s1293_s4 + $0xe8] sm:$0xff] %vm415_vm0, %v380_v14  ;;  %v194_v29 = vadd.f32 %v522_v2, %v123_v18  ;;  %v125_v31 = vmul.f32 %v517_v1, %v54_v13  ;;  %v320_v32 = vadd.f32 %v256_v16, %v192_v23  ;;  %v195_v33 = vadd.f32 %v522_v2, %v124_v26  ;;  %v267_v16 = vld [vmem:[%s1292_s3 + $0x160] sm:$0xff] }
  0x28   :  { %446 = vst.msk [vmem:[%s1293_s4 + $0xf0] sm:$0xff] %vm415_vm0, %v381_v21  ;;  %447 = vst.msk [vmem:[%s1293_s4 + $0xf8] sm:$0xff] %vm415_vm0, %v382_v22  ;;  %v126_v35 = vmul.f32 %v517_v1, %v55_v19  ;;  %v127_v36 = vmul.f32 %v517_v1, %v56_v20  ;;  %v383_v38 = vmax.f32 %v319_v27, 0.0  ;;  %v321_v39 = vadd.f32 %v257_v24, %v193_v28  ;;  %v268_v20 = vld [vmem:[%s1292_s3 + $0x168] sm:$0xff]  ;;  %v65_v23 = vld [vmem:[%s1289_s0 + $0x180] sm:$0xff] }
  0x29   :  { %v322_v40 = vadd.f32 %v258_v25, %v194_v29  ;;  %v196_v41 = vadd.f32 %v522_v2, %v125_v31  ;;  %v384_v45 = vmax.f32 %v320_v32, 0.0  ;;  %v323_v46 = vadd.f32 %v259_v30, %v195_v33  ;;  %v269_v28 = vld [vmem:[%s1292_s3 + $0x170] sm:$0xff]  ;;  %v270_v29 = vld [vmem:[%s1292_s3 + $0x178] sm:$0xff]  ;;  %v66_v30 = vld [vmem:[%s1289_s0 + $0x188] sm:$0xff] }
  0x2a   :  { %v197_v47 = vadd.f32 %v522_v2, %v126_v35  ;;  %v198_v48 = vadd.f32 %v522_v2, %v127_v36  ;;  %448 = vst.msk [vmem:[%s1293_s4 + $0x100] sm:$0xff] %vm415_vm0, %v383_v38  ;;  %v385_v51 = vmax.f32 %v321_v39, 0.0  ;;  %v128_v54 = vmul.f32 %v517_v1, %v57_v37  ;;  %v67_v35 = vld [vmem:[%s1289_s0 + $0x190] sm:$0xff]  ;;  %v68_v36 = vld [vmem:[%s1289_s0 + $0x198] sm:$0xff] }
  0x2b   :  { %v386_v52 = vmax.f32 %v322_v40, 0.0  ;;  %v324_v53 = vadd.f32 %v260_v34, %v196_v41  ;;  %449 = vst.msk [vmem:[%s1293_s4 + $0x108] sm:$0xff] %vm415_vm0, %v384_v45  ;;  %v387_v56 = vmax.f32 %v323_v46, 0.0  ;;  %v129_v60 = vmul.f32 %v517_v1, %v58_v44  ;;  %v69_v41 = vld [vmem:[%s1289_s0 + $0x1a0] sm:$0xff] }
  0x2c   :  { %v325_v57 = vadd.f32 %v261_v42, %v197_v47  ;;  %v326_v58 = vadd.f32 %v262_v43, %v198_v48  ;;  %450 = vst.msk [vmem:[%s1293_s4 + $0x110] sm:$0xff] %vm415_vm0, %v385_v51  ;;  %v199_v63 = vadd.f32 %v522_v2, %v128_v54  ;;  %v130_v3 = vmul.f32 %v517_v1, %v59_v49  ;;  %v271_v45 = vld [vmem:[%s1292_s3 + $0x180] sm:$0xff]  ;;  %v70_v47 = vld [vmem:[%s1289_s0 + $0x1a8] sm:$0xff]  ;;  %v72_v54 = vld [vmem:[%s1289_s0 + $0x1b8] sm:$0xff] }
  0x2d   :  { %451 = vst.msk [vmem:[%s1293_s4 + $0x118] sm:$0xff] %vm415_vm0, %v386_v52  ;;  %v388_v62 = vmax.f32 %v324_v53, 0.0  ;;  %v131_v4 = vmul.f32 %v517_v1, %v60_v50  ;;  %452 = vst.msk [vmem:[%s1293_s4 + $0x120] sm:$0xff] %vm415_vm0, %v387_v56  ;;  %v200_v9 = vadd.f32 %v522_v2, %v129_v60  ;;  %v132_v12 = vmul.f32 %v517_v1, %v61_v55  ;;  %v272_v50 = vld [vmem:[%s1292_s3 + $0x188] sm:$0xff]  ;;  %v71_v53 = vld [vmem:[%s1289_s0 + $0x1b0] sm:$0xff] }
  0x2e   :  { %v389_v7 = vmax.f32 %v325_v57, 0.0  ;;  %v390_v8 = vmax.f32 %v326_v58, 0.0  ;;  %v327_v13 = vadd.f32 %v263_v59, %v199_v63  ;;  %v201_v14 = vadd.f32 %v522_v2, %v130_v3  ;;  %v273_v58 = vld [vmem:[%s1292_s3 + $0x190] sm:$0xff]  ;;  %v274_v59 = vld [vmem:[%s1292_s3 + $0x198] sm:$0xff] }
  0x2f   :  { %453 = vst.msk [vmem:[%s1293_s4 + $0x128] sm:$0xff] %vm415_vm0, %v388_v62  ;;  %v202_v15 = vadd.f32 %v522_v2, %v131_v4  ;;  %v133_v17 = vmul.f32 %v517_v1, %v62_v61  ;;  %v328_v18 = vadd.f32 %v264_v0, %v200_v9  ;;  %v203_v19 = vadd.f32 %v522_v2, %v132_v12  ;;  %v275_v0 = vld [vmem:[%s1292_s3 + $0x1a0] sm:$0xff] }
  0x30   :  { %454 = vst.msk [vmem:[%s1293_s4 + $0x130] sm:$0xff] %vm415_vm0, %v389_v7  ;;  %455 = vst.msk [vmem:[%s1293_s4 + $0x138] sm:$0xff] %vm415_vm0, %v390_v8  ;;  %v134_v21 = vmul.f32 %v517_v1, %v63_v5  ;;  %v135_v22 = vmul.f32 %v517_v1, %v64_v6  ;;  %v391_v24 = vmax.f32 %v327_v13, 0.0  ;;  %v329_v25 = vadd.f32 %v265_v10, %v201_v14  ;;  %v276_v6 = vld [vmem:[%s1292_s3 + $0x1a8] sm:$0xff]  ;;  %v73_v9 = vld [vmem:[%s1289_s0 + $0x1c0] sm:$0xff] }
  0x31   :  { %v330_v26 = vadd.f32 %v266_v11, %v202_v15  ;;  %v204_v27 = vadd.f32 %v522_v2, %v133_v17  ;;  %v392_v31 = vmax.f32 %v328_v18, 0.0  ;;  %v331_v32 = vadd.f32 %v267_v16, %v203_v19  ;;  %v277_v14 = vld [vmem:[%s1292_s3 + $0x1b0] sm:$0xff]  ;;  %v278_v15 = vld [vmem:[%s1292_s3 + $0x1b8] sm:$0xff]  ;;  %v74_v16 = vld [vmem:[%s1289_s0 + $0x1c8] sm:$0xff] }
  0x32   :  { %v205_v33 = vadd.f32 %v522_v2, %v134_v21  ;;  %v206_v34 = vadd.f32 %v522_v2, %v135_v22  ;;  %456 = vst.msk [vmem:[%s1293_s4 + $0x140] sm:$0xff] %vm415_vm0, %v391_v24  ;;  %v393_v37 = vmax.f32 %v329_v25, 0.0  ;;  %v136_v40 = vmul.f32 %v517_v1, %v65_v23  ;;  %v75_v21 = vld [vmem:[%s1289_s0 + $0x1d0] sm:$0xff]  ;;  %v76_v22 = vld [vmem:[%s1289_s0 + $0x1d8] sm:$0xff] }
  0x33   :  { %v394_v38 = vmax.f32 %v330_v26, 0.0  ;;  %v332_v39 = vadd.f32 %v268_v20, %v204_v27  ;;  %457 = vst.msk [vmem:[%s1293_s4 + $0x148] sm:$0xff] %vm415_vm0, %v392_v31  ;;  %v395_v42 = vmax.f32 %v331_v32, 0.0  ;;  %v137_v46 = vmul.f32 %v517_v1, %v66_v30  ;;  %v77_v27 = vld [vmem:[%s1289_s0 + $0x1e0] sm:$0xff] }
  0x34   :  { %v333_v43 = vadd.f32 %v269_v28, %v205_v33  ;;  %v334_v44 = vadd.f32 %v270_v29, %v206_v34  ;;  %458 = vst.msk [vmem:[%s1293_s4 + $0x150] sm:$0xff] %vm415_vm0, %v393_v37  ;;  %v207_v49 = vadd.f32 %v522_v2, %v136_v40  ;;  %v138_v51 = vmul.f32 %v517_v1, %v67_v35  ;;  %v279_v31 = vld [vmem:[%s1292_s3 + $0x1c0] sm:$0xff]  ;;  %v78_v33 = vld [vmem:[%s1289_s0 + $0x1e8] sm:$0xff]  ;;  %v80_v40 = vld [vmem:[%s1289_s0 + $0x1f8] sm:$0xff] }
  0x35   :  { %459 = vst.msk [vmem:[%s1293_s4 + $0x158] sm:$0xff] %vm415_vm0, %v394_v38  ;;  %v396_v48 = vmax.f32 %v332_v39, 0.0  ;;  %v139_v52 = vmul.f32 %v517_v1, %v68_v36  ;;  %460 = vst.msk [vmem:[%s1293_s4 + $0x160] sm:$0xff] %vm415_vm0, %v395_v42  ;;  %v208_v57 = vadd.f32 %v522_v2, %v137_v46  ;;  %v140_v60 = vmul.f32 %v517_v1, %v69_v41  ;;  %v280_v36 = vld [vmem:[%s1292_s3 + $0x1c8] sm:$0xff]  ;;  %v79_v39 = vld [vmem:[%s1289_s0 + $0x1f0] sm:$0xff] }
  0x36   :  { %v397_v55 = vmax.f32 %v333_v43, 0.0  ;;  %v398_v56 = vmax.f32 %v334_v44, 0.0  ;;  %v335_v61 = vadd.f32 %v271_v45, %v207_v49  ;;  %v209_v62 = vadd.f32 %v522_v2, %v138_v51  ;;  %v281_v44 = vld [vmem:[%s1292_s3 + $0x1d0] sm:$0xff]  ;;  %v282_v45 = vld [vmem:[%s1292_s3 + $0x1d8] sm:$0xff] }
  0x37   :  { %461 = vst.msk [vmem:[%s1293_s4 + $0x168] sm:$0xff] %vm415_vm0, %v396_v48  ;;  %v210_v63 = vadd.f32 %v522_v2, %v139_v52  ;;  %v141_v3 = vmul.f32 %v517_v1, %v70_v47  ;;  %v336_v4 = vadd.f32 %v272_v50, %v208_v57  ;;  %v211_v5 = vadd.f32 %v522_v2, %v140_v60  ;;  %v283_v50 = vld [vmem:[%s1292_s3 + $0x1e0] sm:$0xff] }
  0x38   :  { %462 = vst.msk [vmem:[%s1293_s4 + $0x170] sm:$0xff] %vm415_vm0, %v397_v55  ;;  %463 = vst.msk [vmem:[%s1293_s4 + $0x178] sm:$0xff] %vm415_vm0, %v398_v56  ;;  %v142_v7 = vmul.f32 %v517_v1, %v71_v53  ;;  %v143_v8 = vmul.f32 %v517_v1, %v72_v54  ;;  %v399_v10 = vmax.f32 %v335_v61, 0.0  ;;  %v337_v11 = vadd.f32 %v273_v58, %v209_v62  ;;  %v284_v54 = vld [vmem:[%s1292_s3 + $0x1e8] sm:$0xff]  ;;  %v285_v61 = vld [vmem:[%s1292_s3 + $0x1f0] sm:$0xff] }
  0x39   :  { %v338_v12 = vadd.f32 %v274_v59, %v210_v63  ;;  %v212_v13 = vadd.f32 %v522_v2, %v141_v3  ;;  %v400_v17 = vmax.f32 %v336_v4, 0.0  ;;  %v339_v18 = vadd.f32 %v275_v0, %v211_v5  ;;  %v286_v62 = vld [vmem:[%s1292_s3 + $0x1f8] sm:$0xff] }
  0x3a   :  { %v213_v19 = vadd.f32 %v522_v2, %v142_v7  ;;  %v214_v20 = vadd.f32 %v522_v2, %v143_v8  ;;  %464 = vst.msk [vmem:[%s1293_s4 + $0x180] sm:$0xff] %vm415_vm0, %v399_v10  ;;  %v401_v23 = vmax.f32 %v337_v11, 0.0  ;;  %v144_v26 = vmul.f32 %v517_v1, %v73_v9 }
  0x3b   :  { %v402_v24 = vmax.f32 %v338_v12, 0.0  ;;  %v340_v25 = vadd.f32 %v276_v6, %v212_v13  ;;  %465 = vst.msk [vmem:[%s1293_s4 + $0x188] sm:$0xff] %vm415_vm0, %v400_v17  ;;  %v403_v28 = vmax.f32 %v339_v18, 0.0  ;;  %v145_v32 = vmul.f32 %v517_v1, %v74_v16 }
  0x3c   :  { %v341_v29 = vadd.f32 %v277_v14, %v213_v19  ;;  %v342_v30 = vadd.f32 %v278_v15, %v214_v20  ;;  %466 = vst.msk [vmem:[%s1293_s4 + $0x190] sm:$0xff] %vm415_vm0, %v401_v23  ;;  %v215_v35 = vadd.f32 %v522_v2, %v144_v26  ;;  %v146_v37 = vmul.f32 %v517_v1, %v75_v21 }
  0x3d   :  { %467 = vst.msk [vmem:[%s1293_s4 + $0x198] sm:$0xff] %vm415_vm0, %v402_v24  ;;  %v404_v34 = vmax.f32 %v340_v25, 0.0  ;;  %v147_v38 = vmul.f32 %v517_v1, %v76_v22  ;;  %468 = vst.msk [vmem:[%s1293_s4 + $0x1a0] sm:$0xff] %vm415_vm0, %v403_v28  ;;  %v216_v43 = vadd.f32 %v522_v2, %v145_v32  ;;  %v148_v46 = vmul.f32 %v517_v1, %v77_v27 }
  0x3e   :  { %v405_v41 = vmax.f32 %v341_v29, 0.0  ;;  %v406_v42 = vmax.f32 %v342_v30, 0.0  ;;  %v343_v47 = vadd.f32 %v279_v31, %v215_v35  ;;  %v217_v48 = vadd.f32 %v522_v2, %v146_v37 }
  0x3f   :  { %469 = vst.msk [vmem:[%s1293_s4 + $0x1a8] sm:$0xff] %vm415_vm0, %v404_v34  ;;  %v218_v49 = vadd.f32 %v522_v2, %v147_v38  ;;  %v149_v51 = vmul.f32 %v517_v1, %v78_v33  ;;  %v344_v52 = vadd.f32 %v280_v36, %v216_v43  ;;  %v219_v53 = vadd.f32 %v522_v2, %v148_v46 }
  0x40   :  { %470 = vst.msk [vmem:[%s1293_s4 + $0x1b0] sm:$0xff] %vm415_vm0, %v405_v41  ;;  %471 = vst.msk [vmem:[%s1293_s4 + $0x1b8] sm:$0xff] %vm415_vm0, %v406_v42  ;;  %v150_v55 = vmul.f32 %v517_v1, %v79_v39  ;;  %v151_v56 = vmul.f32 %v517_v1, %v80_v40  ;;  %v407_v57 = vmax.f32 %v343_v47, 0.0  ;;  %v345_v58 = vadd.f32 %v281_v44, %v217_v48 }
  0x41   :  { %v346_v59 = vadd.f32 %v282_v45, %v218_v49  ;;  %v220_v60 = vadd.f32 %v522_v2, %v149_v51  ;;  %v408_v63 = vmax.f32 %v344_v52, 0.0  ;;  %v347_v0 = vadd.f32 %v283_v50, %v219_v53 }
  0x42   :  { %v221_v3 = vadd.f32 %v522_v2, %v150_v55  ;;  %v222_v4 = vadd.f32 %v522_v2, %v151_v56  ;;  %472 = vst.msk [vmem:[%s1293_s4 + $0x1c0] sm:$0xff] %vm415_vm0, %v407_v57  ;;  %v409_v1 = vmax.f32 %v345_v58, 0.0 }
  0x43   :  { %v410_v5 = vmax.f32 %v346_v59, 0.0  ;;  %v348_v6 = vadd.f32 %v284_v54, %v220_v60  ;;  %473 = vst.msk [vmem:[%s1293_s4 + $0x1c8] sm:$0xff] %vm415_vm0, %v408_v63  ;;  %v411_v7 = vmax.f32 %v347_v0, 0.0 }
  0x44   :  { %v349_v8 = vadd.f32 %v285_v61, %v221_v3  ;;  %v350_v9 = vadd.f32 %v286_v62, %v222_v4  ;;  %474 = vst.msk [vmem:[%s1293_s4 + $0x1d0] sm:$0xff] %vm415_vm0, %v409_v1 }
  0x45   :  { %475 = vst.msk [vmem:[%s1293_s4 + $0x1d8] sm:$0xff] %vm415_vm0, %v410_v5  ;;  %v412_v2 = vmax.f32 %v348_v6, 0.0  ;;  %476 = vst.msk [vmem:[%s1293_s4 + $0x1e0] sm:$0xff] %vm415_vm0, %v411_v7 }
  0x46   :  { %v413_v10 = vmax.f32 %v349_v8, 0.0  ;;  %v414_v11 = vmax.f32 %v350_v9, 0.0 }
  0x47   :  { %477 = vst.msk [vmem:[%s1293_s4 + $0x1e8] sm:$0xff] %vm415_vm0, %v412_v2 }
  0x48   :  { %478 = vst.msk [vmem:[%s1293_s4 + $0x1f0] sm:$0xff] %vm415_vm0, %v413_v10  ;;  %479 = vst.msk [vmem:[%s1293_s4 + $0x1f8] sm:$0xff] %vm415_vm0, %v414_v11 }

// kernel: decoder_traversability.33
= control target key start
LH: loop header
LB: loop body
LE: loop exit
PB: predicated region body
PF: predicated region fallthrough
CT: control target
= control target key end

     0   :  { %s3983_s21 = smov 0   ;;  %s5401_s0 = inlined_call_operand.vmem [shape: f32[2,288,16], index: 0, kind: input, shape index: {}]   ;;  %s5402_s1 = inlined_call_operand.vmem [shape: bf16[3,16,16], index: 1, kind: input, shape index: {}]   ;;  %s5403_s2 = inlined_call_operand.vmem [shape: f32[1,16], index: 2, kind: input, shape index: {}]   ;;  %s5404_s3 = inlined_call_operand.vmem [shape: bf16[3,16,16], index: 3, kind: input, shape index: {}]   ;;  %s5405_s4 = inlined_call_operand.vmem [shape: f32[2,256,16], index: 4, kind: output, shape index: {0}]   ;;  %s5406_s5 = inlined_call_operand.vmem [shape: f32[1,16], index: 5, kind: output, shape index: {1}]   ;;  %s5407_s6 = inlined_call_operand.vmem [shape: f32[1,16], index: 6, kind: output, shape index: {2}]  }
   0x1 LB: > { %s3989_s22 = sadd.s32 4294967295, %s3945_s21   ;;  %p3349_p0 = scmp.ge.s32.totalorder %s3945_s21, 1  ;;  %s3945_s21 = sphi %s3983_s21, %s17_s21  }
   0x2   : > { %p207_p1 = scmp.lt.s32.totalorder %s3945_s21, 3 }
   0x4   : > { %p208_p2 = pnand %p3349_p0, %p207_p1 }
   0x6   : > { %211 = sbr.rel (%p208_p2) target bundleno = 813 (0x32d), region = 36 }
   0xb   : > { %v3912_v0 = vld [vmem:[%s5402_s1 + $0x8] sm:$0xff]   ;;  %p237_p3 = scmp.lt.s32.totalorder %s3989_s22, 1  ;;  %v3913_v1 = vld [vmem:[%s5402_s1] sm:$0xff]   ;;  %v3914_v2 = vld [vmem:[%s5402_s1 + $0x10] sm:$0xff]   ;;  %vm313_vm0 = vcmask 130048   ;;  %vm1388_vm1 = vcmask 125952  }
   0xc   : > { %3698 = vmatprep.subr.bf16.mxu0 %v3912_v0  ;;  %3732 = vmatprep.subr.bf16.mxu1 %v3913_v1  ;;  %v3915_v54 = vld [vmem:[%s5404_s3 + $0x8] sm:$0xff]   ;;  %v3916_v58 = vld [vmem:[%s5404_s3] sm:$0xff]   ;;  %vm1389_vm2 = vsmask.f32 7938  ;;  %vm1065_vm3 = vsmask.f32 256 }
   0xd   : > { %s4001_s27 = scalar_select %p237_p3, %s3989_s22, 1  ;;  %3699 = vmatpush3.bf16.msra.mxu0 %v3912_v0  ;;  %3733 = vmatpush3.bf16.msra.mxu1 %v3913_v1  ;;  %vm1396_vm4 = vcmask 122880   ;;  %vm1066_vm5 = vsmask.f32 4368  ;;  %vm4190_vm6 = vmand %vm1388_vm1, %vm1389_vm2  ;;  %vm1653_vm10 = vsmask.f32 3328 }
   0xe   : > { %3766 = vmatprep.subr.bf16.mxu0 %v3914_v2  ;;  %3800 = vmatprep.subr.bf16.mxu1 %v3915_v54  ;;  %vm4199_vm7 = vmand %vm1396_vm4, %vm1065_vm3  ;;  %vm1654_vm11 = vsmask.f32 7440  ;;  %vm2649_vm13 = vcmask 1042432   ;;  %vm2650_vm14 = vcmask 1046532   ;;  %p3560_p4 = scmp.ne.s32.totalorder %s3989_s22, 0 }
   0xf   : > { %s3902_s30 = smul.u32 288, %s4001_s27  ;;  %vm4207_vm8 = vmor %vm1065_vm3, %vm1066_vm5  ;;  %s3563_s24 = sshll.u32 %s4001_s27, 8 }
  0x10   : > { %vm4245_vm9 = vmand %vm1396_vm4, %vm1389_vm2  ;;  %s5017_s28 = scalar_lea.vmem %s5405_s4, %s3563_s24 }
  0x11   : > { %s4010_s9 = scalar_lea.vmem %s5401_s0, %s3902_s30  ;;  %vm4437_vm12 = vmor %vm1653_vm10, %vm1654_vm11 }
  0x12   : > { %v250_v3 = vld [vmem:[%s4010_s9 + $0x10] sm:$0xff]  ;;  %v251_v4 = vld [vmem:[%s4010_s9 + $0x18] sm:$0xff]  ;;  %v248_v5 = vld [vmem:[%s4010_s9] sm:$0xff] }
  0x13   : > { %v285_v6 = vpack.c.bf16 %v251_v4, %v250_v3  ;;  %v249_v7 = vld [vmem:[%s4010_s9 + $0x8] sm:$0xff]  ;;  %v252_v8 = vld [vmem:[%s4010_s9 + $0x20] sm:$0xff]  ;;  %v254_v12 = vld [vmem:[%s4010_s9 + $0x30] sm:$0xff] }
  0x14   : > { %v253_v9 = vld [vmem:[%s4010_s9 + $0x28] sm:$0xff]  ;;  %v284_v10 = vpack.c.bf16 %v249_v7, %v248_v5  ;;  %v255_v13 = vld [vmem:[%s4010_s9 + $0x38] sm:$0xff]  ;;  %v256_v15 = vld [vmem:[%s4010_s9 + $0x40] sm:$0xff] }
  0x15   : > { %v4018_v11 = vpack.c.bf16 %v253_v9, %v252_v8  ;;  %3700 = vmatprep.mubr.msk.bf16.mxu0 %vm313_vm0, %v285_v6  ;;  %v4023_v14 = vpack.c.bf16 %v255_v13, %v254_v12  ;;  %v257_v16 = vld [vmem:[%s4010_s9 + $0x48] sm:$0xff]  ;;  %v258_v17 = vld [vmem:[%s4010_s9 + $0x50] sm:$0xff]  ;;  %v259_v18 = vld [vmem:[%s4010_s9 + $0x58] sm:$0xff] }
  0x16   : > { %3734 = vmatprep.mubr.msk.bf16.mxu1 %vm313_vm0, %v284_v10  ;;  %v4037_v19 = vpack.c.bf16 %v257_v16, %v256_v15  ;;  %v4039_v20 = vpack.c.bf16 %v259_v18, %v258_v17  ;;  %v260_v21 = vld [vmem:[%s4010_s9 + $0x60] sm:$0xff]  ;;  %v261_v22 = vld [vmem:[%s4010_s9 + $0x68] sm:$0xff]  ;;  %v262_v23 = vld [vmem:[%s4010_s9 + $0x70] sm:$0xff] }
  0x17   : > { %3701 = vmatmul.mubr.msk.bf16.vlgmr.msra.gmra.mxu0 %vm313_vm0, %v4018_v11  ;;  %3735 = vmatmul.mubr.msk.bf16.vlgmr.msra.gmra.mxu1 %vm313_vm0, %v285_v6  ;;  %v263_v24 = vld [vmem:[%s4010_s9 + $0x78] sm:$0xff]  ;;  %v290_v25 = vpack.c.bf16 %v261_v22, %v260_v21  ;;  %v264_v27 = vld [vmem:[%s4010_s9 + $0x80] sm:$0xff]  ;;  %v265_v28 = vld [vmem:[%s4010_s9 + $0x88] sm:$0xff] }
  0x18   : > { %3767 = vmatpush3.bf16.msra.mxu0 %v3914_v2  ;;  %3704 = vmatprep.mubr.msk.bf16.mxu0 %vm313_vm0, %v4023_v14  ;;  %v291_v26 = vpack.c.bf16 %v263_v24, %v262_v23  ;;  %v266_v29 = vld [vmem:[%s4010_s9 + $0x90] sm:$0xff]  ;;  %v267_v30 = vld [vmem:[%s4010_s9 + $0x98] sm:$0xff]  ;;  %v292_v31 = vpack.c.bf16 %v265_v28, %v264_v27  ;;  %v268_v33 = vld [vmem:[%s4010_s9 + $0xa0] sm:$0xff] }
  0x19   : > { %3738 = vmatprep.mubr.msk.bf16.mxu1 %vm313_vm0, %v4018_v11  ;;  %v293_v32 = vpack.c.bf16 %v267_v30, %v266_v29  ;;  %v269_v34 = vld [vmem:[%s4010_s9 + $0xa8] sm:$0xff]  ;;  %v270_v35 = vld [vmem:[%s4010_s9 + $0xb0] sm:$0xff]  ;;  %v271_v36 = vld [vmem:[%s4010_s9 + $0xb8] sm:$0xff]  ;;  %3801 = vmatpush3.bf16.msra.mxu1 %v3915_v54 }
  0x1a   : > { %v294_v37 = vpack.c.bf16 %v269_v34, %v268_v33  ;;  %v295_v38 = vpack.c.bf16 %v271_v36, %v270_v35  ;;  %v272_v39 = vld [vmem:[%s4010_s9 + $0xc0] sm:$0xff]  ;;  %v273_v40 = vld [vmem:[%s4010_s9 + $0xc8] sm:$0xff]  ;;  %v274_v41 = vld [vmem:[%s4010_s9 + $0xd0] sm:$0xff]  ;;  %3834 = vmatprep.subr.bf16.mxu0 %v3916_v58 }
  0x1b   : > { %v275_v42 = vld [vmem:[%s4010_s9 + $0xd8] sm:$0xff]  ;;  %v296_v43 = vpack.c.bf16 %v273_v40, %v272_v39  ;;  %v276_v45 = vld [vmem:[%s4010_s9 + $0xe0] sm:$0xff]  ;;  %v277_v46 = vld [vmem:[%s4010_s9 + $0xe8] sm:$0xff] }
  0x1c   : > { %v297_v44 = vpack.c.bf16 %v275_v42, %v274_v41  ;;  %v278_v47 = vld [vmem:[%s4010_s9 + $0xf0] sm:$0xff]  ;;  %v279_v48 = vld [vmem:[%s4010_s9 + $0xf8] sm:$0xff]  ;;  %v298_v49 = vpack.c.bf16 %v277_v46, %v276_v45  ;;  %v280_v51 = vld [vmem:[%s4010_s9 + $0x100] sm:$0xff] }
  0x1d   : > { %v299_v50 = vpack.c.bf16 %v279_v48, %v278_v47  ;;  %v281_v52 = vld [vmem:[%s4010_s9 + $0x108] sm:$0xff]  ;;  %v282_v55 = vld [vmem:[%s4010_s9 + $0x110] sm:$0xff]  ;;  %v283_v56 = vld [vmem:[%s4010_s9 + $0x118] sm:$0xff] }
  0x1e   : > { %v300_v53 = vpack.c.bf16 %v281_v52, %v280_v51  ;;  %v301_v57 = vpack.c.bf16 %v283_v56, %v282_v55  ;;  %vm4785_vm15 = vmor %vm2649_vm13, %vm2650_vm14 }
  0x1f   : > { %3705 = vmatmul.mubr.msk.bf16.gmra.mxu0 %vm313_vm0, %v4037_v19  ;;  %3739 = vmatmul.mubr.msk.bf16.gmra.mxu1 %vm313_vm0, %v4023_v14 }
  0x20   : > { %3708 = vmatprep.mubr.msk.bf16.mxu0 %vm313_vm0, %v4039_v20  ;;  %3742 = vmatprep.mubr.msk.bf16.mxu1 %vm313_vm0, %v4037_v19 }
  0x27   : > { %3709 = vmatmul.mubr.msk.bf16.gmra.mxu0 %vm313_vm0, %v290_v25  ;;  %3743 = vmatmul.mubr.msk.bf16.gmra.mxu1 %vm313_vm0, %v4039_v20 }
  0x28   : > { %3712 = vmatprep.mubr.msk.bf16.mxu0 %vm313_vm0, %v291_v26  ;;  %3746 = vmatprep.mubr.msk.bf16.mxu1 %vm313_vm0, %v290_v25 }
  0x2f   : > { %3713 = vmatmul.mubr.msk.bf16.gmra.mxu0 %vm313_vm0, %v292_v31  ;;  %3747 = vmatmul.mubr.msk.bf16.gmra.mxu1 %vm313_vm0, %v291_v26 }
  0x30   : > { %3716 = vmatprep.mubr.msk.bf16.mxu0 %vm313_vm0, %v293_v32  ;;  %3750 = vmatprep.mubr.msk.bf16.mxu1 %vm313_vm0, %v292_v31 }
  0x37   : > { %3717 = vmatmul.mubr.msk.bf16.gmra.mxu0 %vm313_vm0, %v294_v37  ;;  %3751 = vmatmul.mubr.msk.bf16.gmra.mxu1 %vm313_vm0, %v293_v32 }
  0x38   : > { %3720 = vmatprep.mubr.msk.bf16.mxu0 %vm313_vm0, %v295_v38  ;;  %3754 = vmatprep.mubr.msk.bf16.mxu1 %vm313_vm0, %v294_v37 }
  0x3f   : > { %3721 = vmatmul.mubr.msk.bf16.gmra.mxu0 %vm313_vm0, %v296_v43  ;;  %3755 = vmatmul.mubr.msk.bf16.gmra.mxu1 %vm313_vm0, %v295_v38 }
  0x40   : > { %3724 = vmatprep.mubr.msk.bf16.mxu0 %vm313_vm0, %v297_v44  ;;  %3758 = vmatprep.mubr.msk.bf16.mxu1 %vm313_vm0, %v296_v43 }
  0x47   : > { %3725 = vmatmul.mubr.msk.bf16.gmra.mxu0 %vm313_vm0, %v298_v49  ;;  %3759 = vmatmul.mubr.msk.bf16.gmra.mxu1 %vm313_vm0, %v297_v44 }
  0x48   : > { %3728 = vmatprep.mubr.msk.bf16.mxu0 %vm313_vm0, %v299_v50  ;;  %3762 = vmatprep.mubr.msk.bf16.mxu1 %vm313_vm0, %v298_v49 }
  0x4f   : > { %3729 = vmatmul.mubr.msk.bf16.gmra.mxu0 %vm313_vm0, %v300_v53  ;;  %3763 = vmatmul.mubr.msk.bf16.gmra.mxu1 %vm313_vm0, %v299_v50 }
  0x50   : > { %3768 = vmatprep.mubr.msk.bf16.mxu0 %vm313_vm0, %v4018_v11 }
  0x57   : > { %3769 = vmatmul.mubr.msk.bf16.vlgmr.msra.gmra.mxu0 %vm313_vm0, %v4023_v14 }
  0x58   : > { %3772 = vmatprep.mubr.msk.bf16.mxu0 %vm313_vm0, %v4037_v19  ;;  %3835 = vmatpush3.bf16.msra.mxu0 %v3916_v58 }
  0x5f   : > { %3773 = vmatmul.mubr.msk.bf16.gmra.mxu0 %vm313_vm0, %v4039_v20 }
  0x60   : > { %3776 = vmatprep.mubr.msk.bf16.mxu0 %vm313_vm0, %v290_v25  ;;  %v3921_v25 = vld [vmem:[%s5404_s3 + $0x10] sm:$0xff]  }
  0x61   : > { %3868 = vmatprep.subr.bf16.mxu1 %v3921_v25 }
  0x67   : > { %3777 = vmatmul.mubr.msk.bf16.gmra.mxu0 %vm313_vm0, %v291_v26 }
  0x68   : > { %3780 = vmatprep.mubr.msk.bf16.mxu0 %vm313_vm0, %v292_v31 }
  0x6f   : > { %3781 = vmatmul.mubr.msk.bf16.gmra.mxu0 %vm313_vm0, %v293_v32 }
  0x70   : > { %3784 = vmatprep.mubr.msk.bf16.mxu0 %vm313_vm0, %v294_v37 }
  0x77   : > { %3785 = vmatmul.mubr.msk.bf16.gmra.mxu0 %vm313_vm0, %v295_v38 }
  0x78   : > { %3788 = vmatprep.mubr.msk.bf16.mxu0 %vm313_vm0, %v296_v43 }
  0x7f   : > { %3789 = vmatmul.mubr.msk.bf16.gmra.mxu0 %vm313_vm0, %v297_v44 }
  0x80   : > { %3792 = vmatprep.mubr.msk.bf16.mxu0 %vm313_vm0, %v298_v49 }
  0x87   : > { %3793 = vmatmul.mubr.msk.bf16.gmra.mxu0 %vm313_vm0, %v299_v50 }
  0x88   : > { %3796 = vmatprep.mubr.msk.bf16.mxu0 %vm313_vm0, %v300_v53 }
  0x8f   : > { %3797 = vmatmul.mubr.msk.bf16.gmra.mxu0 %vm313_vm0, %v301_v57 }
  0xd7   : > { %v3702_v59 = vpop.f32.mrf.mxu0  ;;  %v3736_v60 = vpop.f32.mrf.mxu1 }
  0xd8   : > { %v575_v56 = vadd.f32 %v3736_v60, %v3702_v59 }
  0xd9   : > { %v396_v61 = vpop.f32.mrf.mxu0  ;;  %v566_v62 = vpop.f32.mrf.mxu1 }
  0xda   : > { %v567_v57 = vadd.f32 %v566_v62, %v396_v61  ;;  %v4132_v62 = vld [vmem:[%s5403_s2] ss:$0 sm:$0xff] }
  0xdb   : > { %v3703_v63 = vpop.f32.mrf.mxu0  ;;  %v3737_v0 = vpop.f32.mrf.mxu1  ;;  %5411 = vst [vmem:[#allocation5_spill] sm:$0xff] %v4132_v62 }
  0xdc   : > { %v578_v25 = vadd.f32 %v3737_v0, %v3703_v63 }
  0xdd   : > { %v399_v1 = vpop.f32.mrf.mxu0  ;;  %v569_v2 = vpop.f32.mrf.mxu1 }
  0xdf   : > { %v3706_v3 = vpop.f32.mrf.mxu0  ;;  %v3740_v4 = vpop.f32.mrf.mxu1 }
  0xe0   : > { %v591_v59 = vadd.f32 %v3740_v4, %v3706_v3 }
  0xe1   : > { %v412_v5 = vpop.f32.mrf.mxu0  ;;  %v582_v6 = vpop.f32.mrf.mxu1 }
  0xe2   : > { %v4127_v60 = vadd.f32 %v582_v6, %v412_v5 }
  0xe3   : > { %v3707_v7 = vpop.f32.mrf.mxu0  ;;  %v3741_v8 = vpop.f32.mrf.mxu1 }
  0xe4   : > { %5410 = vst [vmem:[#allocation4_spill] sm:$0xff] %v4127_v60  ;;  %v4134_v0 = vadd.f32 %v3741_v8, %v3707_v7 }
  0xe5   : > { %v415_v9 = vpop.f32.mrf.mxu0  ;;  %v585_v10 = vpop.f32.mrf.mxu1 }
  0xe6   : > { %v4136_v63 = vadd.f32 %v585_v10, %v415_v9  ;;  %v5412_v9 = vld [vmem:[#allocation5_spill] sm:$0xff] }
  0xe7   : > { %v3710_v11 = vpop.f32.mrf.mxu0  ;;  %v3744_v12 = vpop.f32.mrf.mxu1 }
  0xe9   : > { %v428_v13 = vpop.f32.mrf.mxu0  ;;  %v598_v14 = vpop.f32.mrf.mxu1 }
  0xea   : > { %v4140_v3 = vadd.f32 %v598_v14, %v428_v13 }
  0xeb   : > { %v3711_v15 = vpop.f32.mrf.mxu0  ;;  %v3745_v16 = vpop.f32.mrf.mxu1 }
  0xec   : > { %v4142_v4 = vadd.f32 %v3745_v16, %v3711_v15 }
  0xed   : > { %v431_v17 = vpop.f32.mrf.mxu0  ;;  %v601_v18 = vpop.f32.mrf.mxu1 }
  0xee   : > { %v4144_v5 = vadd.f32 %v601_v18, %v431_v17 }
  0xef   : > { %v3714_v19 = vpop.f32.mrf.mxu0  ;;  %v3748_v20 = vpop.f32.mrf.mxu1 }
  0xf0   : > { %v4146_v6 = vadd.f32 %v3748_v20, %v3714_v19 }
  0xf1   : > { %v444_v21 = vpop.f32.mrf.mxu0  ;;  %v614_v22 = vpop.f32.mrf.mxu1 }
  0xf2   : > { %v4148_v62 = vadd.f32 %v614_v22, %v444_v21 }
  0xf3   : > { %v3715_v23 = vpop.f32.mrf.mxu0  ;;  %v3749_v24 = vpop.f32.mrf.mxu1 }
  0xf4   : > { %v4150_v7 = vadd.f32 %v3749_v24, %v3715_v23 }
  0xf5   : > { %v447_v26 = vpop.f32.mrf.mxu0  ;;  %v617_v27 = vpop.f32.mrf.mxu1 }
  0xf7   : > { %v3718_v28 = vpop.f32.mrf.mxu0  ;;  %v3752_v29 = vpop.f32.mrf.mxu1 }
  0xf9   : > { %v460_v30 = vpop.f32.mrf.mxu0  ;;  %v630_v31 = vpop.f32.mrf.mxu1 }
  0xfa   : > { %v4157_v13 = vadd.f32 %v630_v31, %v460_v30 }
  0xfb   : > { %v3719_v32 = vpop.f32.mrf.mxu0  ;;  %v3753_v33 = vpop.f32.mrf.mxu1 }
  0xfc   : > { %v4159_v14 = vadd.f32 %v3753_v33, %v3719_v32 }
  0xfd   : > { %v463_v34 = vpop.f32.mrf.mxu0  ;;  %v633_v35 = vpop.f32.mrf.mxu1 }
  0xfe   : > { %v4161_v16 = vadd.f32 %v633_v35, %v463_v34 }
  0xff   : > { %v3722_v36 = vpop.f32.mrf.mxu0  ;;  %v3756_v37 = vpop.f32.mrf.mxu1 }
 0x100   : > { %v4164_v20 = vadd.f32 %v3756_v37, %v3722_v36 }
 0x101   : > { %v476_v38 = vpop.f32.mrf.mxu0  ;;  %v646_v39 = vpop.f32.mrf.mxu1 }
 0x102   : > { %v4166_v21 = vadd.f32 %v646_v39, %v476_v38 }
 0x103   : > { %v3723_v40 = vpop.f32.mrf.mxu0  ;;  %v3757_v41 = vpop.f32.mrf.mxu1 }
 0x104   : > { %v4168_v22 = vadd.f32 %v3757_v41, %v3723_v40 }
 0x105   : > { %v479_v42 = vpop.f32.mrf.mxu0  ;;  %v649_v43 = vpop.f32.mrf.mxu1 }
 0x106   : > { %v4170_v23 = vadd.f32 %v649_v43, %v479_v42 }
 0x107   : > { %v3726_v44 = vpop.f32.mrf.mxu0  ;;  %v3760_v45 = vpop.f32.mrf.mxu1 }
 0x108   : > { %v4173_v31 = vadd.f32 %v3760_v45, %v3726_v44 }
 0x109   : > { %v492_v46 = vpop.f32.mrf.mxu0  ;;  %v662_v47 = vpop.f32.mrf.mxu1 }
 0x10a   : > { %v4175_v32 = vadd.f32 %v662_v47, %v492_v46 }
 0x10b   : > { %v3727_v48 = vpop.f32.mrf.mxu0  ;;  %v3761_v50 = vpop.f32.mrf.mxu1 }
 0x10c   : > { %v4177_v33 = vadd.f32 %v3761_v50, %v3727_v48  ;;  %v1401_v50 = vld [vmem:[#allocation2 + $0xc] sm:$0xf] }
 0x10d   : > { %v495_v49 = vpop.f32.mrf.mxu0  ;;  %v665_v53 = vpop.f32.mrf.mxu1 }
 0x10e   : > { %v4179_v34 = vadd.f32 %v665_v53, %v495_v49 }
 0x10f   : > { %v3730_v51 = vpop.f32.mrf.mxu0  ;;  %v3764_v58 = vpop.f32.mrf.mxu1 }
 0x110   : > { %v4181_v36 = vadd.f32 %v3764_v58, %v3730_v51 }
 0x111   : > { %v508_v52 = vpop.f32.mrf.mxu0  ;;  %v678_v8 = vpop.f32.mrf.mxu1 }
 0x112   : > { %v4183_v40 = vadd.f32 %v678_v8, %v508_v52 }
 0x113   : > { %v3731_v54 = vpop.f32.mrf.mxu0 }
 0x115   : > { %v4125_v55 = vpop.f32.mrf.mxu0 }
 0x116   : > { %5409 = vst [vmem:[#allocation3_spill] sm:$0xff] %v4125_v55  ;;  %v570_v55 = vadd.f32 %v569_v2, %v399_v1  ;;  %v4138_v1 = vadd.f32 %v3744_v12, %v3710_v11  ;;  %v4153_v12 = vadd.f32 %v617_v27, %v447_v26  ;;  %v3765_v26 = vpop.f32.mrf.mxu1 }
 0x117   : > { %v3770_v61 = vpop.f32.mrf.mxu0  ;;  %v4185_v41 = vadd.f32 %v3765_v26, %v3731_v54  ;;  %v5415_v54 = vld [vmem:[#allocation4_spill] sm:$0xff] }
 0x118   : > { %v868_v2 = vadd.f32 %v3770_v61, %v575_v56  ;;  %v4155_v56 = vadd.f32 %v3752_v29, %v3718_v28  ;;  %v1391_v61 = vld [vmem:[#allocation2] sm:$0xf] }
 0x119   : > { %v739_v60 = vpop.f32.mrf.mxu0 }
 0x11a   : > { %v907_v10 = vadd.f32 %v5412_v9, %v868_v2  ;;  %v866_v11 = vadd.f32 %v739_v60, %v567_v57 }
 0x11b   : > { %v3771_v15 = vpop.f32.mrf.mxu0 }
 0x11c   : > { %v939_v17 = vmax.f32 %v907_v10, 0.0  ;;  %v905_v18 = vadd.f32 %v5412_v9, %v866_v11  ;;  %v869_v19 = vadd.f32 %v3771_v15, %v578_v25 }
 0x11d   : > { %v742_v24 = vpop.f32.mrf.mxu0 }
 0x11e   : > { %v3566_v27 = vpack.c.bf16 %v939_v17, %v939_v17  ;;  %v937_v28 = vmax.f32 %v905_v18, 0.0  ;;  %v908_v29 = vadd.f32 %v5412_v9, %v869_v19  ;;  %v867_v30 = vadd.f32 %v742_v24, %v570_v55 }
 0x11f   : > { %v3774_v35 = vpop.f32.mrf.mxu0 }
 0x120   : > { %v1086_v37 = vshrl.u32 %v3566_v27, 16  ;;  %v3564_v38 = vpack.c.bf16 %v937_v28, %v937_v28  ;;  %v940_v39 = vmax.f32 %v908_v29, 0.0  ;;  %v906_v42 = vadd.f32 %v5412_v9, %v867_v30  ;;  %v1405_v28 = vld [vmem:[#allocation2 + $0x14] sm:$0x1] }
 0x121   : > { %v872_v43 = vadd.f32 %v3774_v35, %v591_v59  ;;  %v755_v44 = vpop.f32.mrf.mxu0  ;;  %v1089_v46 = vshll.u32 %v3566_v27, 16 }
 0x122   : > { %v1088_v45 = vrot.slane %v1086_v37, 7  ;;  %v1069_v47 = vshrl.u32 %v3564_v38, 16  ;;  %v3567_v48 = vpack.c.bf16 %v940_v39, %v940_v39  ;;  %v1072_v51 = vshll.u32 %v3564_v38, 16 }
 0x123   : > { %v938_v52 = vmax.f32 %v906_v42, 0.0  ;;  %v911_v53 = vadd.f32 %v5412_v9, %v872_v43  ;;  %v870_v55 = vadd.f32 %v755_v44, %v5415_v54  ;;  %v3775_v57 = vpop.f32.mrf.mxu0 }
 0x124   : > { %v1091_v58 = vor.u32 %v1089_v46, %v1088_v45  ;;  %v1092_v25 = vrot.slane %v1088_v45, 4  ;;  %v1071_v59 = vrot.slane %v1069_v47, 7  ;;  %v1094_v60 = vshrl.u32 %v3567_v48, 16 }
 0x125   : > { %v1097_v2 = vshll.u32 %v3567_v48, 16  ;;  %v3565_v8 = vpack.c.bf16 %v938_v52, %v938_v52  ;;  %v943_v10 = vmax.f32 %v911_v53, 0.0  ;;  %v909_v11 = vadd.f32 %v5412_v9, %v870_v55  ;;  %v758_v15 = vpop.f32.mrf.mxu0  ;;  %v1398_v53 = vld [vmem:[#allocation2 + $0x8] sm:$0x1] }
 0x126   : > { %v1402_v18 = vsel %vm4190_vm6, %v1091_v58, %v1401_v50  ;;  %v1074_v19 = vor.u32 %v1072_v51, %v1071_v59  ;;  %v1075_v24 = vrot.slane %v1071_v59, 4  ;;  %v1096_v26 = vrot.slane %v1094_v60, 7 }
 0x127   : > { %1403 = vst [vmem:[#allocation2 + $0xc] sm:$0xf] %v1402_v18  ;;  %v1077_v29 = vshrl.u32 %v3565_v8, 16  ;;  %v1080_v30 = vshll.u32 %v3565_v8, 16  ;;  %v3570_v35 = vpack.c.bf16 %v943_v10, %v943_v10  ;;  %v941_v37 = vmax.f32 %v909_v11, 0.0  ;;  %v3778_v38 = vpop.f32.mrf.mxu0 }
 0x128   : > { %v1392_v39 = vsel %vm4190_vm6, %v1074_v19, %v1391_v61  ;;  %v1099_v42 = vor.u32 %v1097_v2, %v1096_v26  ;;  %v1101_v43 = vrot.slane %v1096_v26, 4  ;;  %v873_v44 = vadd.f32 %v3775_v57, %v4134_v0  ;;  %v1415_v61 = vld [vmem:[#allocation2 + $0x24] sm:$0xf] }
 0x129   : > { %1393 = vst [vmem:[#allocation2] sm:$0xf] %v1392_v39  ;;  %v1079_v45 = vrot.slane %v1077_v29, 7  ;;  %v1120_v46 = vshrl.u32 %v3570_v35, 16  ;;  %v1123_v47 = vshll.u32 %v3570_v35, 16  ;;  %v3568_v48 = vpack.c.bf16 %v941_v37, %v941_v37  ;;  %v771_v50 = vpop.f32.mrf.mxu0 }
 0x12a   : > { %v1100_v51 = vsel %vm4207_vm8, %v1092_v25, %v1099_v42  ;;  %v1406_v52 = vsel %vm4199_vm7, %v1101_v43, %v1405_v28  ;;  %v912_v54 = vadd.f32 %v5412_v9, %v873_v44  ;;  %v871_v55 = vadd.f32 %v758_v15, %v4136_v63  ;;  %v1408_v37 = vld [vmem:[#allocation2 + $0x18] sm:$0xf] }
 0x12b   : > { %1404 = vst.msk [vmem:[#allocation2 + $0x10] sm:$0xf] %vm1388_vm1, %v1100_v51  ;;  %1407 = vst [vmem:[#allocation2 + $0x14] sm:$0x1] %v1406_v52  ;;  %v1082_v0 = vor.u32 %v1080_v30, %v1079_v45  ;;  %v1084_v57 = vrot.slane %v1079_v45, 4  ;;  %v4221_v58 = vrot.slane %v1120_v46, 7  ;;  %v3779_v60 = vpop.f32.mrf.mxu0  ;;  %v876_v10 = vadd.f32 %v3778_v38, %v4138_v1 }
 0x12c   : > { %v1103_v59 = vshrl.u32 %v3568_v48, 16  ;;  %v1106_v2 = vshll.u32 %v3568_v48, 16  ;;  %v944_v25 = vmax.f32 %v912_v54, 0.0  ;;  %v910_v8 = vadd.f32 %v5412_v9, %v871_v55 }
 0x12d   : > { %v1083_v11 = vsel %vm4207_vm8, %v1075_v24, %v1082_v0  ;;  %v1399_v63 = vsel %vm4199_vm7, %v1084_v57, %v1398_v53  ;;  %v1125_v15 = vor.u32 %v1123_v47, %v4221_v58  ;;  %v1126_v18 = vrot.slane %v4221_v58, 4  ;;  %v774_v19 = vpop.f32.mrf.mxu0 }
 0x12e   : > { %v1509_v26 = vld [vmem:[#allocation2 + $0xc] sm:$0x1]  ;;  %1395 = vst.msk [vmem:[#allocation2 + $0x4] sm:$0xf] %vm1388_vm1, %v1083_v11  ;;  %1400 = vst [vmem:[#allocation2 + $0x8] sm:$0x1] %v1399_v63  ;;  %v3571_v29 = vpack.c.bf16 %v944_v25, %v944_v25  ;;  %v915_v1 = vadd.f32 %v5412_v9, %v876_v10  ;;  %v874_v38 = vadd.f32 %v771_v50, %v4140_v3 }
 0x12f   : > { %v4232_v28 = vrot.slane %v1103_v59, 7  ;;  %v942_v30 = vmax.f32 %v910_v8, 0.0  ;;  %v1510_v24 = vsel %vm4199_vm7, 0, %v1509_v26  ;;  %v1416_v35 = vsel %vm4190_vm6, %v1125_v15, %v1415_v61  ;;  %v4241_v42 = vpop.f32.mrf.mxu0  ;;  %v1419_v59 = vld [vmem:[#allocation2 + $0x2c] sm:$0x1] }
 0x130   : > { %v877_v39 = vadd.f32 %v3779_v60, %v4142_v4  ;;  %1511 = vst [vmem:[#allocation2 + $0xc] sm:$0x1] %v1510_v24  ;;  %v1506_v44 = vld [vmem:[#allocation2] sm:$0x1]  ;;  %1417 = vst [vmem:[#allocation2 + $0x24] sm:$0xf] %v1416_v35  ;;  %v913_v51 = vadd.f32 %v5412_v9, %v874_v38  ;;  %v875_v57 = vadd.f32 %v774_v19, %v4144_v5 }
 0x131   : > { %v1108_v45 = vor.u32 %v1106_v2, %v4232_v28  ;;  %v1109_v46 = vrot.slane %v4232_v28, 4  ;;  %v1128_v47 = vshrl.u32 %v3571_v29, 16  ;;  %v1131_v48 = vshll.u32 %v3571_v29, 16  ;;  %v787_v52 = vpop.f32.mrf.mxu0  ;;  %v1412_v24 = vld [vmem:[#allocation2 + $0x20] sm:$0x1] }
 0x132   : > { %v1507_v3 = vsel %vm4199_vm7, 0, %v1506_v44  ;;  %v3569_v4 = vpack.c.bf16 %v942_v30, %v942_v30  ;;  %v947_v50 = vmax.f32 %v915_v1, 0.0  ;;  %v1558_v53 = vld [vmem:[#allocation2 + $0x14] sm:$0x1]  ;;  %v916_v0 = vadd.f32 %v5412_v9, %v877_v39 }
 0x133   : > { %1508 = vst [vmem:[#allocation2] sm:$0x1] %v1507_v3  ;;  %v1409_v54 = vsel %vm4190_vm6, %v1108_v45, %v1408_v37  ;;  %v1130_v55 = vrot.slane %v1128_v47, 7  ;;  %v1559_v58 = vsel %vm4245_vm9, 0, %v1558_v53  ;;  %v3783_v25 = vpop.f32.mrf.mxu0  ;;  %v945_v11 = vmax.f32 %v913_v51, 0.0 }
 0x134   : > { %1410 = vst [vmem:[#allocation2 + $0x18] sm:$0xf] %v1409_v54  ;;  %v1111_v60 = vshrl.u32 %v3569_v4, 16  ;;  %v1114_v61 = vshll.u32 %v3569_v4, 16  ;;  %v3574_v2 = vpack.c.bf16 %v947_v50, %v947_v50  ;;  %1560 = vst [vmem:[#allocation2 + $0x14] sm:$0x1] %v1559_v58  ;;  %v914_v5 = vadd.f32 %v5412_v9, %v875_v57 }
 0x135   : > { %v1133_v8 = vor.u32 %v1131_v48, %v1130_v55  ;;  %v1135_v10 = vrot.slane %v1130_v55, 4  ;;  %v948_v63 = vmax.f32 %v916_v0, 0.0  ;;  %v1555_v15 = vld [vmem:[#allocation2 + $0x8] sm:$0x1]  ;;  %v3572_v35 = vpack.c.bf16 %v945_v11, %v945_v11  ;;  %v790_v47 = vpop.f32.mrf.mxu0  ;;  %v1429_v3 = vld [vmem:[#allocation2 + $0x3c] sm:$0xf] }
 0x136   : > { %v1113_v26 = vrot.slane %v1111_v60, 7  ;;  %v1154_v28 = vshrl.u32 %v3574_v2, 16  ;;  %v1157_v29 = vshll.u32 %v3574_v2, 16  ;;  %v1556_v19 = vsel %vm4245_vm9, 0, %v1555_v15 }
 0x137   : > { %v1134_v30 = vsel %vm4207_vm8, %v1126_v18, %v1133_v8  ;;  %v1420_v1 = vsel %vm4199_vm7, %v1135_v10, %v1419_v59  ;;  %1557 = vst [vmem:[#allocation2 + $0x8] sm:$0x1] %v1556_v19  ;;  %v1515_v37 = vld [vmem:[#allocation2 + $0x24] sm:$0x1]  ;;  %v3575_v45 = vpack.c.bf16 %v948_v63, %v948_v63  ;;  %v1137_v18 = vshrl.u32 %v3572_v35, 16  ;;  %v3786_v11 = vpop.f32.mrf.mxu0 }
 0x138   : > { %1418 = vst.msk [vmem:[#allocation2 + $0x28] sm:$0xf] %vm1388_vm1, %v1134_v30  ;;  %1421 = vst [vmem:[#allocation2 + $0x2c] sm:$0x1] %v1420_v1  ;;  %v1116_v38 = vor.u32 %v1114_v61, %v1113_v26  ;;  %v1118_v39 = vrot.slane %v1113_v26, 4  ;;  %v1156_v44 = vrot.slane %v1154_v28, 7  ;;  %v880_v8 = vadd.f32 %v4241_v42, %v4146_v6 }
 0x139   : > { %v1516_v48 = vsel %vm4199_vm7, 0, %v1515_v37  ;;  %v1140_v4 = vshll.u32 %v3572_v35, 16  ;;  %v946_v50 = vmax.f32 %v914_v5, 0.0  ;;  %v1139_v57 = vrot.slane %v1137_v18, 7  ;;  %v1426_v37 = vld [vmem:[#allocation2 + $0x38] sm:$0x1] }
 0x13a   : > { %1517 = vst [vmem:[#allocation2 + $0x24] sm:$0x1] %v1516_v48  ;;  %v1117_v51 = vsel %vm4207_vm8, %v1109_v46, %v1116_v38  ;;  %v1413_v53 = vsel %vm4199_vm7, %v1118_v39, %v1412_v24  ;;  %v1159_v54 = vor.u32 %v1157_v29, %v1156_v44  ;;  %v1160_v55 = vrot.slane %v1156_v44, 4  ;;  %v1422_v46 = vld [vmem:[#allocation2 + $0x30] sm:$0xf]  ;;  %v681_v48 = vpop.f32.mrf.mxu1 }
 0x13b   : > { %v1512_v0 = vld [vmem:[#allocation2 + $0x18] sm:$0x1]  ;;  %1411 = vst.msk [vmem:[#allocation2 + $0x1c] sm:$0xf] %vm1388_vm1, %v1117_v51  ;;  %1414 = vst [vmem:[#allocation2 + $0x20] sm:$0x1] %v1413_v53  ;;  %v3573_v60 = vpack.c.bf16 %v946_v50, %v946_v50  ;;  %v878_v10 = vadd.f32 %v787_v52, %v4148_v62  ;;  %v1142_v63 = vor.u32 %v1140_v4, %v1139_v57 }
 0x13c   : > { %v1162_v58 = vshrl.u32 %v3575_v45, 16  ;;  %v1165_v59 = vshll.u32 %v3575_v45, 16  ;;  %v1513_v61 = vsel %vm4199_vm7, 0, %v1512_v0  ;;  %v1430_v2 = vsel %vm4190_vm6, %v1159_v54, %v1429_v3  ;;  %v1433_v29 = vld [vmem:[#allocation2 + $0x44] sm:$0x1]  ;;  %v803_v45 = vpop.f32.mrf.mxu0 }
 0x13d   : > { %1514 = vst [vmem:[#allocation2 + $0x18] sm:$0x1] %v1513_v61  ;;  %1431 = vst [vmem:[#allocation2 + $0x3c] sm:$0xf] %v1430_v2  ;;  %v1143_v15 = vrot.slane %v1139_v57, 4  ;;  %v1145_v28 = vshrl.u32 %v3573_v60, 16  ;;  %v919_v19 = vadd.f32 %v5412_v9, %v880_v8  ;;  %v917_v30 = vadd.f32 %v5412_v9, %v878_v10 }
 0x13e   : > { %v1164_v26 = vrot.slane %v1162_v58, 7  ;;  %v1148_v5 = vshll.u32 %v3573_v60, 16  ;;  %v881_v1 = vadd.f32 %v3783_v25, %v4150_v7  ;;  %v1423_v6 = vsel %vm4190_vm6, %v1142_v63, %v1422_v46  ;;  %v3787_v46 = vpop.f32.mrf.mxu0  ;;  %v1443_v10 = vld [vmem:[#allocation2 + $0x54] sm:$0xf] }
 0x13f   : > { %v1564_v24 = vld [vmem:[#allocation2 + $0x2c] sm:$0x1]  ;;  %v1147_v52 = vrot.slane %v1145_v28, 7  ;;  %1424 = vst [vmem:[#allocation2 + $0x30] sm:$0xf] %v1423_v6  ;;  %v951_v38 = vmax.f32 %v919_v19, 0.0  ;;  %v879_v54 = vadd.f32 %v790_v47, %v4153_v12  ;;  %v884_v58 = vadd.f32 %v3786_v11, %v4155_v56 }
 0x140   : > { %v1167_v62 = vor.u32 %v1165_v59, %v1164_v26  ;;  %v1169_v42 = vrot.slane %v1164_v26, 4  ;;  %v1565_v35 = vsel %vm4245_vm9, 0, %v1564_v24  ;;  %v949_v39 = vmax.f32 %v917_v30, 0.0  ;;  %v5422_v59 = vld [vmem:[#allocation3_spill] sm:$0xff] }
 0x141   : > { %v920_v44 = vadd.f32 %v5412_v9, %v881_v1  ;;  %1566 = vst [vmem:[#allocation2 + $0x2c] sm:$0x1] %v1565_v35  ;;  %v1150_v3 = vor.u32 %v1148_v5, %v1147_v52  ;;  %v1152_v18 = vrot.slane %v1147_v52, 4  ;;  %v3578_v50 = vpack.c.bf16 %v951_v38, %v951_v38 }
 0x142   : > { %v1168_v7 = vsel %vm4207_vm8, %v1160_v55, %v1167_v62  ;;  %v1434_v25 = vsel %vm4199_vm7, %v1169_v42, %v1433_v29  ;;  %v1561_v4 = vld [vmem:[#allocation2 + $0x20] sm:$0x1]  ;;  %v3576_v51 = vpack.c.bf16 %v949_v39, %v949_v39  ;;  %v4304_v60 = vadd.f32 %v681_v48, %v5422_v59  ;;  %v1436_v29 = vld [vmem:[#allocation2 + $0x48] sm:$0xf] }
 0x143   : > { %1432 = vst.msk [vmem:[#allocation2 + $0x40] sm:$0xf] %vm1388_vm1, %v1168_v7  ;;  %1435 = vst [vmem:[#allocation2 + $0x44] sm:$0x1] %v1434_v25  ;;  %v952_v53 = vmax.f32 %v920_v44, 0.0  ;;  %v1562_v0 = vsel %vm4245_vm9, 0, %v1561_v4  ;;  %v1151_v55 = vsel %vm4207_vm8, %v1143_v15, %v1150_v3  ;;  %v1427_v57 = vsel %vm4199_vm7, %v1152_v18, %v1426_v37 }
 0x144   : > { %1563 = vst [vmem:[#allocation2 + $0x20] sm:$0x1] %v1562_v0  ;;  %v1521_v61 = vld [vmem:[#allocation2 + $0x3c] sm:$0x1]  ;;  %1425 = vst.msk [vmem:[#allocation2 + $0x34] sm:$0xf] %vm1388_vm1, %v1151_v55  ;;  %v918_v15 = vadd.f32 %v5412_v9, %v879_v54  ;;  %v923_v56 = vadd.f32 %v5412_v9, %v884_v58  ;;  %v882_v5 = vadd.f32 %v803_v45, %v4157_v13  ;;  %v4318_v13 = vpop.f32.mrf.mxu0 }
 0x145   : > { %1428 = vst [vmem:[#allocation2 + $0x38] sm:$0x1] %v1427_v57  ;;  %v1188_v12 = vshrl.u32 %v3578_v50, 16  ;;  %v1191_v47 = vshll.u32 %v3578_v50, 16  ;;  %v1171_v2 = vshrl.u32 %v3576_v51, 16  ;;  %v1522_v8 = vsel %vm4199_vm7, 0, %v1521_v61 }
 0x146   : > { %v3579_v63 = vpack.c.bf16 %v952_v53, %v952_v53  ;;  %1523 = vst [vmem:[#allocation2 + $0x3c] sm:$0x1] %v1522_v8  ;;  %v1174_v28 = vshll.u32 %v3576_v51, 16  ;;  %v1518_v19 = vld [vmem:[#allocation2 + $0x30] sm:$0x1]  ;;  %v950_v1 = vmax.f32 %v918_v15, 0.0  ;;  %v885_v6 = vadd.f32 %v3787_v46, %v4159_v14  ;;  %v4337_v46 = vpop.f32.mrf.mxu0 }
 0x147   : > { %v1190_v11 = vrot.slane %v1188_v12, 7  ;;  %v4311_v26 = vrot.slane %v1171_v2, 7  ;;  %v955_v24 = vmax.f32 %v923_v56, 0.0  ;;  %v1519_v62 = vsel %vm4199_vm7, 0, %v1518_v19  ;;  %v1447_v25 = vld [vmem:[#allocation2 + $0x5c] sm:$0x1] }
 0x148   : > { %v1196_v30 = vshrl.u32 %v3579_v63, 16  ;;  %v1199_v35 = vshll.u32 %v3579_v63, 16  ;;  %1520 = vst [vmem:[#allocation2 + $0x30] sm:$0x1] %v1519_v62  ;;  %v3577_v44 = vpack.c.bf16 %v950_v1, %v950_v1  ;;  %v921_v3 = vadd.f32 %v5412_v9, %v882_v5  ;;  %v1603_v18 = vld [vmem:[#allocation2] sm:$0xf] }
 0x149   : > { %v1193_v42 = vor.u32 %v1191_v47, %v1190_v11  ;;  %v1176_v52 = vor.u32 %v1174_v28, %v4311_v26  ;;  %v1194_v38 = vrot.slane %v1190_v11, 4  ;;  %v3582_v48 = vpack.c.bf16 %v955_v24, %v955_v24  ;;  %v4335_v2 = vld [vmem:[#allocation2 + $0x4] sm:$0xf]  ;;  %v1440_v8 = vld [vmem:[#allocation2 + $0x50] sm:$0x1] }
 0x14a   : > { %v1570_v37 = vld [vmem:[#allocation2 + $0x44] sm:$0x1]  ;;  %v1198_v39 = vrot.slane %v1196_v30, 7  ;;  %v1177_v50 = vrot.slane %v4311_v26, 4  ;;  %v1179_v54 = vshrl.u32 %v3577_v44, 16  ;;  %v1182_v55 = vshll.u32 %v3577_v44, 16 }
 0x14b   : > { %v1571_v45 = vsel %vm4245_vm9, 0, %v1570_v37  ;;  %v1444_v14 = vsel %vm4190_vm6, %v1193_v42, %v1443_v10  ;;  %v1437_v7 = vsel %vm4190_vm6, %v1176_v52, %v1436_v29  ;;  %v1222_v57 = vshrl.u32 %v3582_v48, 16  ;;  %v1457_v28 = vld [vmem:[#allocation2 + $0x6c] sm:$0xf]  ;;  %v1450_v52 = vld [vmem:[#allocation2 + $0x60] sm:$0xf] }
 0x14c   : > { %1572 = vst [vmem:[#allocation2 + $0x44] sm:$0x1] %v1571_v45  ;;  %v1567_v4 = vld [vmem:[#allocation2 + $0x38] sm:$0x1]  ;;  %1445 = vst [vmem:[#allocation2 + $0x54] sm:$0xf] %v1444_v14  ;;  %v1201_v51 = vor.u32 %v1199_v35, %v1198_v39  ;;  %v924_v47 = vadd.f32 %v5412_v9, %v885_v6 }
 0x14d   : > { %1438 = vst [vmem:[#allocation2 + $0x48] sm:$0xf] %v1437_v7  ;;  %v1203_v53 = vrot.slane %v1198_v39, 4  ;;  %v1568_v0 = vsel %vm4245_vm9, 0, %v1567_v4  ;;  %v953_v58 = vmax.f32 %v921_v3, 0.0  ;;  %v1181_v12 = vrot.slane %v1179_v54, 7 }
 0x14e   : > { %1569 = vst [vmem:[#allocation2 + $0x38] sm:$0x1] %v1568_v0  ;;  %v1202_v59 = vsel %vm4207_vm8, %v1194_v38, %v1201_v51  ;;  %v4340_v10 = vrot.slane %v1222_v57, 7  ;;  %v1225_v63 = vshll.u32 %v3582_v48, 16  ;;  %v1657_v56 = vshrl.u32 %v1603_v18, 16  ;;  %v819_v38 = vpop.f32.mrf.mxu0 }
 0x14f   : > { %v1448_v61 = vsel %vm4199_vm7, %v1203_v53, %v1447_v25  ;;  %1446 = vst.msk [vmem:[#allocation2 + $0x58] sm:$0xf] %vm1388_vm1, %v1202_v59  ;;  %v3580_v15 = vpack.c.bf16 %v953_v58, %v953_v58  ;;  %v1184_v11 = vor.u32 %v1182_v55, %v1181_v12  ;;  %v1186_v26 = vrot.slane %v1181_v12, 4  ;;  %v1605_v37 = vld [vmem:[#allocation2 + $0xc] sm:$0xf] }
 0x150   : > { %1449 = vst [vmem:[#allocation2 + $0x5c] sm:$0x1] %v1448_v61  ;;  %v956_v29 = vmax.f32 %v924_v47, 0.0  ;;  %v1660_v5 = vshll.u32 %v1603_v18, 16  ;;  %v1227_v19 = vor.u32 %v1225_v63, %v4340_v10  ;;  %v1228_v30 = vrot.slane %v4340_v10, 4  ;;  %v3791_v47 = vpop.f32.mrf.mxu0 }
 0x151   : > { %v1205_v1 = vshrl.u32 %v3580_v15, 16  ;;  %v1670_v24 = vshrl.u32 %v4335_v2, 16  ;;  %v1185_v6 = vsel %vm4207_vm8, %v1177_v50, %v1184_v11  ;;  %v1441_v62 = vsel %vm4199_vm7, %v1186_v26, %v1440_v8  ;;  %v4363_v51 = vld [vmem:[#allocation2 + $0x10] sm:$0xf]  ;;  %v1607_v55 = vld [vmem:[#allocation2 + $0x18] sm:$0xf] }
 0x152   : > { %v1208_v42 = vshll.u32 %v3580_v15, 16  ;;  %v3583_v35 = vpack.c.bf16 %v956_v29, %v956_v29  ;;  %1439 = vst.msk [vmem:[#allocation2 + $0x4c] sm:$0xf] %vm1388_vm1, %v1185_v6  ;;  %1442 = vst [vmem:[#allocation2 + $0x50] sm:$0x1] %v1441_v62  ;;  %v1458_v48 = vsel %vm4190_vm6, %v1227_v19, %v1457_v28  ;;  %v4354_v14 = vrot.slane %v1657_v56, 4 }
 0x153   : > { %v1527_v39 = vld [vmem:[#allocation2 + $0x54] sm:$0x1]  ;;  %v4352_v45 = vrot.slane %v1205_v1, 7  ;;  %v3476_v7 = vcombine.low %v1603_v18, %v4335_v2  ;;  %1459 = vst [vmem:[#allocation2 + $0x6c] sm:$0xf] %v1458_v48  ;;  %v4361_v50 = vrot.slane %v1660_v5, 5  ;;  %v883_v18 = vadd.f32 %v4318_v13, %v4161_v16 }
 0x154   : > { %v1524_v44 = vld [vmem:[#allocation2 + $0x48] sm:$0x1]  ;;  %v1528_v25 = vsel %vm4199_vm7, 0, %v1527_v39  ;;  %v1230_v4 = vshrl.u32 %v3583_v35, 16  ;;  %v1233_v54 = vshll.u32 %v3583_v35, 16  ;;  %v1681_v0 = vshrl.u32 %v1605_v37, 16 }
 0x155   : > { %v1525_v3 = vsel %vm4199_vm7, 0, %v1524_v44  ;;  %1529 = vst [vmem:[#allocation2 + $0x54] sm:$0x1] %v1528_v25  ;;  %v1210_v53 = vor.u32 %v1208_v42, %v4352_v45  ;;  %3836 = vmatprep.mubr.msk.bf16.mxu0 %vm313_vm0, %v3476_v7  ;;  %v1211_v58 = vrot.slane %v4352_v45, 4  ;;  %v1684_v61 = vshll.u32 %v1605_v37, 16 }
 0x156   : > { %1526 = vst [vmem:[#allocation2 + $0x48] sm:$0x1] %v1525_v3  ;;  %v1232_v59 = vrot.slane %v1230_v4, 7  ;;  %v3477_v12 = vcombine.low %v1605_v37, %v4363_v51  ;;  %v1461_v63 = vld [vmem:[#allocation2 + $0x74] sm:$0x1]  ;;  %v922_v15 = vadd.f32 %v5412_v9, %v883_v18  ;;  %v1694_v16 = vshrl.u32 %v4363_v51, 16  ;;  %v822_v37 = vpop.f32.mrf.mxu0 }
 0x157   : > { %v1576_v57 = vld [vmem:[#allocation2 + $0x5c] sm:$0x1]  ;;  %v1451_v10 = vsel %vm4190_vm6, %v1210_v53, %v1450_v52  ;;  %v4377_v11 = vrot.slane %v1681_v0, 4  ;;  %v888_v26 = vadd.f32 %v4337_v46, %v4164_v20  ;;  %v886_v29 = vadd.f32 %v819_v38, %v4166_v21 }
 0x158   : > { %v1577_v8 = vsel %vm4245_vm9, 0, %v1576_v57  ;;  %1452 = vst [vmem:[#allocation2 + $0x60] sm:$0xf] %v1451_v10  ;;  %v1235_v13 = vor.u32 %v1233_v54, %v1232_v59  ;;  %v1237_v56 = vrot.slane %v1232_v59, 4  ;;  %3837 = vmatmul.mubr.msk.bf16.vlgmr.msra.gmra.mxu0 %vm313_vm0, %v3477_v12  ;;  %v954_v28 = vmax.f32 %v922_v15, 0.0 }
 0x159   : > { %1578 = vst [vmem:[#allocation2 + $0x5c] sm:$0x1] %v1577_v8  ;;  %v889_v5 = vadd.f32 %v3791_v47, %v4168_v22  ;;  %v1705_v19 = vshrl.u32 %v1607_v55, 16  ;;  %v1573_v1 = vld [vmem:[#allocation2 + $0x50] sm:$0x1]  ;;  %v927_v42 = vadd.f32 %v5412_v9, %v888_v26  ;;  %v1708_v52 = vshll.u32 %v1607_v55, 16 }
 0x15a   : > { %v1236_v6 = vsel %vm4207_vm8, %v1228_v30, %v1235_v13  ;;  %v1462_v62 = vsel %vm4199_vm7, %v1237_v56, %v1461_v63  ;;  %v1574_v35 = vsel %vm4245_vm9, 0, %v1573_v1  ;;  %v1533_v20 = vld [vmem:[#allocation2 + $0x6c] sm:$0x1]  ;;  %v3581_v21 = vpack.c.bf16 %v954_v28, %v954_v28  ;;  %v4398_v44 = vld [vmem:[#allocation2 + $0x1c] sm:$0xf] }
 0x15b   : > { %1460 = vst.msk [vmem:[#allocation2 + $0x70] sm:$0xf] %vm1388_vm1, %v1236_v6  ;;  %1463 = vst [vmem:[#allocation2 + $0x74] sm:$0x1] %v1462_v62  ;;  %v925_v22 = vadd.f32 %v5412_v9, %v886_v29  ;;  %v928_v46 = vadd.f32 %v5412_v9, %v889_v5  ;;  %v1534_v30 = vsel %vm4199_vm7, 0, %v1533_v20  ;;  %v4396_v38 = vrot.slane %v1684_v61, 5 }
 0x15c   : > { %1575 = vst [vmem:[#allocation2 + $0x50] sm:$0x1] %v1574_v35  ;;  %v959_v39 = vmax.f32 %v927_v42, 0.0  ;;  %v4400_v48 = vrot.slane %v1705_v19, 4  ;;  %1535 = vst [vmem:[#allocation2 + $0x6c] sm:$0x1] %v1534_v30  ;;  %v3478_v18 = vcombine.low %v1607_v55, %v4398_v44  ;;  %v887_v0 = vadd.f32 %v822_v37, %v4170_v23  ;;  %v3794_v37 = vpop.f32.mrf.mxu0 }
 0x15d   : > { %v1213_v7 = vshrl.u32 %v3581_v21, 16  ;;  %v957_v25 = vmax.f32 %v925_v22, 0.0  ;;  %v960_v3 = vmax.f32 %v928_v46, 0.0  ;;  %v4402_v4 = vrot.slane %v1708_v52, 5  ;;  %v1454_v10 = vld [vmem:[#allocation2 + $0x68] sm:$0x1] }
 0x15e   : > { %v1216_v53 = vshll.u32 %v3581_v21, 16  ;;  %v3586_v54 = vpack.c.bf16 %v959_v39, %v959_v39  ;;  %v1718_v47 = vshrl.u32 %v4398_v44, 16  ;;  %3840 = vmatprep.mubr.msk.bf16.mxu0 %vm313_vm0, %v3478_v18  ;;  %v926_v15 = vadd.f32 %v5412_v9, %v887_v0  ;;  %v1464_v35 = vld [vmem:[#allocation2 + $0x78] sm:$0xf]  ;;  %v1475_v22 = vld [vmem:[#allocation2 + $0x8c] sm:$0x1] }
 0x15f   : > { %v1530_v57 = vld [vmem:[#allocation2 + $0x60] sm:$0x1]  ;;  %v1215_v59 = vrot.slane %v1213_v7, 7  ;;  %v3584_v61 = vpack.c.bf16 %v957_v25, %v957_v25  ;;  %v3587_v12 = vpack.c.bf16 %v960_v3, %v960_v3  ;;  %v1663_v55 = vor.u32 %v4361_v50, %v4354_v14  ;;  %v1471_v50 = vld [vmem:[#allocation2 + $0x84] sm:$0xf] }
 0x160   : > { %v1531_v8 = vsel %vm4199_vm7, 0, %v1530_v57  ;;  %v1256_v63 = vshrl.u32 %v3586_v54, 16  ;;  %v1259_v56 = vshll.u32 %v3586_v54, 16  ;;  %v958_v1 = vmax.f32 %v926_v15, 0.0  ;;  %v4422_v39 = vld [vmem:[#allocation2 + $0x8] sm:$0x1] }
 0x161   : > { %1532 = vst [vmem:[#allocation2 + $0x60] sm:$0x1] %v1531_v8  ;;  %v1218_v23 = vor.u32 %v1216_v53, %v1215_v59  ;;  %v1220_v13 = vrot.slane %v1215_v59, 4  ;;  %v1239_v26 = vshrl.u32 %v3584_v61, 16  ;;  %v1242_v5 = vshll.u32 %v3584_v61, 16 }
 0x162   : > { %v1582_v28 = vld [vmem:[#allocation2 + $0x74] sm:$0x1]  ;;  %v1258_v29 = vrot.slane %v1256_v63, 7  ;;  %v1264_v19 = vshrl.u32 %v3587_v12, 16  ;;  %v1267_v21 = vshll.u32 %v3587_v12, 16  ;;  %v3585_v46 = vpack.c.bf16 %v958_v1, %v958_v1 }
 0x163   : > { %v1583_v6 = vsel %vm4245_vm9, 0, %v1582_v28  ;;  %v1219_v62 = vsel %vm4207_vm8, %v1211_v58, %v1218_v23  ;;  %v1455_v14 = vsel %vm4199_vm7, %v1220_v13, %v1454_v10  ;;  %v1241_v42 = vrot.slane %v1239_v26, 7  ;;  %v1609_v18 = vld [vmem:[#allocation2 + $0x24] sm:$0xf]  ;;  %v1468_v23 = vld [vmem:[#allocation2 + $0x80] sm:$0x1] }
 0x164   : > { %1584 = vst [vmem:[#allocation2 + $0x74] sm:$0x1] %v1583_v6  ;;  %1453 = vst.msk [vmem:[#allocation2 + $0x64] sm:$0xf] %vm1388_vm1, %v1219_v62  ;;  %v1261_v52 = vor.u32 %v1259_v56, %v1258_v29  ;;  %v1266_v20 = vrot.slane %v1264_v19, 7  ;;  %v1262_v45 = vrot.slane %v1258_v29, 4 }
 0x165   : > { %1456 = vst [vmem:[#allocation2 + $0x68] sm:$0x1] %v1455_v14  ;;  %v1244_v30 = vor.u32 %v1242_v5, %v1241_v42  ;;  %v1664_v58 = vrot.slane %v1663_v55, 4  ;;  %v1666_v7 = vshll.u32 %v4335_v2, 16  ;;  %v1247_v54 = vshrl.u32 %v3585_v46, 16  ;;  %v835_v2 = vpop.f32.mrf.mxu0 }
 0x166   : > { %v1472_v25 = vsel %vm4190_vm6, %v1261_v52, %v1471_v50  ;;  %v1269_v3 = vor.u32 %v1267_v21, %v1266_v20  ;;  %v1271_v53 = vrot.slane %v1266_v20, 4  ;;  %v1250_v57 = vshll.u32 %v3585_v46, 16  ;;  %v4442_v55 = vld [vmem:[#allocation2 + $0x28] sm:$0xf]  ;;  %v4447_v1 = vld [vmem:[#allocation2 + $0x14] sm:$0x1] }
 0x167   : > { %1473 = vst [vmem:[#allocation2 + $0x84] sm:$0xf] %v1472_v25  ;;  %v1465_v0 = vsel %vm4190_vm6, %v1244_v30, %v1464_v35  ;;  %v1668_v59 = vrot.slane %v1666_v7, 5  ;;  %v1672_v61 = vrot.slane %v1670_v24, 4  ;;  %v1249_v10 = vrot.slane %v1247_v54, 7 }
 0x168   : > { %1466 = vst [vmem:[#allocation2 + $0x78] sm:$0xf] %v1465_v0  ;;  %v1270_v12 = vsel %vm4207_vm8, %v1262_v45, %v1269_v3  ;;  %v1476_v8 = vsel %vm4199_vm7, %v1271_v53, %v1475_v22  ;;  %v1676_v15 = vshll.u32 %v4422_v39, 16  ;;  %v1245_v24 = vrot.slane %v1241_v42, 4  ;;  %v3795_v22 = vpop.f32.mrf.mxu0  ;;  %v1611_v7 = vld [vmem:[#allocation2 + $0x30] sm:$0xf] }
 0x169   : > { %1474 = vst.msk [vmem:[#allocation2 + $0x88] sm:$0xf] %vm1388_vm1, %v1270_v12  ;;  %1477 = vst [vmem:[#allocation2 + $0x8c] sm:$0x1] %v1476_v8  ;;  %v1669_v13 = vsel %vm4437_vm12, %v1664_v58, %v1668_v59  ;;  %v1673_v56 = vor.u32 %v1672_v61, %v1668_v59  ;;  %v1729_v26 = vshrl.u32 %v1609_v18, 16  ;;  %v1252_v28 = vor.u32 %v1250_v57, %v1249_v10 }
 0x16a   : > { %v1254_v29 = vrot.slane %v1249_v10, 4  ;;  %v1678_v5 = vrot.slane %v1676_v15, 5  ;;  %v1732_v19 = vshll.u32 %v1609_v18, 16  ;;  %v1742_v50 = vshrl.u32 %v4442_v55, 16  ;;  %v4489_v15 = vld [vmem:[#allocation2 + $0x34] sm:$0xf] }
 0x16b   : > { %v1674_v62 = vrot.slane %v1673_v56, 4  ;;  %v4449_v14 = vrot.slane %v1729_v26, 4  ;;  %v3479_v42 = vcombine.low %v1609_v18, %v4442_v55  ;;  %v1253_v35 = vsel %vm4207_vm8, %v1245_v24, %v1252_v28 }
 0x16c   : > { %v1579_v6 = vld [vmem:[#allocation2 + $0x68] sm:$0x1]  ;;  %v1469_v20 = vsel %vm4199_vm7, %v1254_v29, %v1468_v23  ;;  %v1687_v21 = vor.u32 %v4396_v38, %v4377_v11  ;;  %1467 = vst.msk [vmem:[#allocation2 + $0x7c] sm:$0xf] %vm1388_vm1, %v1253_v35  ;;  %v1690_v45 = vshll.u32 %v4363_v51, 16  ;;  %v1696_v30 = vrot.slane %v1694_v16, 4 }
 0x16d   : > { %v1580_v52 = vsel %vm4245_vm9, 0, %v1579_v6  ;;  %1470 = vst [vmem:[#allocation2 + $0x80] sm:$0x1] %v1469_v20  ;;  %v1679_v46 = vsel %vm4437_vm12, %v1674_v62, %v1678_v5  ;;  %3841 = vmatmul.mubr.msk.bf16.gmra.mxu0 %vm313_vm0, %v3479_v42  ;;  %v1700_v58 = vshll.u32 %v4447_v1, 16  ;;  %v892_v3 = vadd.f32 %v3794_v37, %v4173_v31 }
 0x16e   : > { %1581 = vst [vmem:[#allocation2 + $0x68] sm:$0x1] %v1580_v52  ;;  %v1539_v25 = vld [vmem:[#allocation2 + $0x84] sm:$0x1]  ;;  %v3443_v11 = vcombine.low %v1669_v13, %v1679_v46  ;;  %v1688_v38 = vrot.slane %v1687_v21, 4  ;;  %v890_v53 = vadd.f32 %v835_v2, %v4175_v32  ;;  %v4473_v0 = vrot.slane %v1732_v19, 5  ;;  %v838_v2 = vpop.f32.mrf.mxu0 }
 0x16f   : > { %v1540_v54 = vsel %vm4199_vm7, 0, %v1539_v25  ;;  %v1536_v18 = vld [vmem:[#allocation2 + $0x78] sm:$0x1]  ;;  %v1692_v57 = vrot.slane %v1690_v45, 5  ;;  %v893_v51 = vadd.f32 %v3795_v22, %v4177_v33  ;;  %v931_v31 = vadd.f32 %v5412_v9, %v892_v3  ;;  %v4486_v33 = vld [vmem:[%s5403_s2] ss:$0 sm:$0xff] }
 0x170   : > { %1541 = vst [vmem:[#allocation2 + $0x84] sm:$0x1] %v1540_v54  ;;  %v1537_v16 = vsel %vm4199_vm7, 0, %v1536_v18  ;;  %v1588_v59 = vld [vmem:[#allocation2 + $0x8c] sm:$0x1]  ;;  %3802 = vmatprep.mubr.msk.bf16.mxu1 %vm313_vm0, %v3443_v11  ;;  %v929_v32 = vadd.f32 %v5412_v9, %v890_v53  ;;  %v1753_v37 = vshrl.u32 %v1611_v7, 16  ;;  %v3480_v29 = vcombine.low %v1611_v7, %v4489_v15 }
 0x171   : > { %1538 = vst [vmem:[#allocation2 + $0x78] sm:$0x1] %v1537_v16  ;;  %v1589_v61 = vsel %vm4245_vm9, 0, %v1588_v59  ;;  %v1697_v12 = vor.u32 %v1696_v30, %v1692_v57  ;;  %v1702_v8 = vrot.slane %v1700_v58, 5  ;;  %v932_v10 = vadd.f32 %v4486_v33, %v893_v51  ;;  %v4507_v58 = vld [vmem:[#allocation2 + $0x20] sm:$0x1] }
 0x172   : > { %1590 = vst [vmem:[#allocation2 + $0x8c] sm:$0x1] %v1589_v61  ;;  %v1693_v9 = vsel %vm4437_vm12, %v1688_v38, %v1692_v57  ;;  %v963_v24 = vmax.f32 %v931_v31, 0.0  ;;  %v961_v23 = vmax.f32 %v929_v32, 0.0  ;;  %v1756_v13 = vshll.u32 %v1611_v7, 16  ;;  %3844 = vmatprep.mubr.msk.bf16.mxu0 %vm313_vm0, %v3480_v29  ;;  %v3935_v18 = vld [vmem:[%s5404_s3 + $0x10] sm:$0xff]  }
 0x173   : > { %v1698_v56 = vrot.slane %v1697_v12, 4  ;;  %v964_v26 = vmax.f32 %v932_v10, 0.0  ;;  %v4493_v28 = vrot.slane %v1753_v37, 4  ;;  %v1766_v62 = vshrl.u32 %v4489_v15, 16  ;;  %v1485_v7 = vld [vmem:[#allocation2 + $0x9c] sm:$0xf]  ;;  %v3798_v10 = vpop.f32.mrf.mxu0 }
 0x174   : > { %v1585_v5 = vld [vmem:[#allocation2 + $0x80] sm:$0x1]  ;;  %v3590_v19 = vpack.c.bf16 %v963_v24, %v963_v24  ;;  %v3588_v6 = vpack.c.bf16 %v961_v23, %v961_v23  ;;  %v891_v42 = vadd.f32 %v838_v2, %v4179_v34  ;;  %v1711_v21 = vor.u32 %v4402_v4, %v4400_v48  ;;  %v1478_v54 = vld [vmem:[#allocation2 + $0x90] sm:$0xf]  ;;  %v4516_v31 = vld [vmem:[#allocation2 + $0x3c] sm:$0xf] }
 0x175   : > { %v1586_v52 = vsel %vm4245_vm9, 0, %v1585_v5  ;;  %v1703_v35 = vsel %vm4437_vm12, %v1698_v56, %v1702_v8  ;;  %v3591_v20 = vpack.c.bf16 %v964_v26, %v964_v26  ;;  %v4505_v30 = vrot.slane %v1756_v13, 5  ;;  %v1489_v12 = vld [vmem:[#allocation2 + $0xa4] sm:$0x1] }
 0x176   : > { %1587 = vst [vmem:[#allocation2 + $0x80] sm:$0x1] %v1586_v52  ;;  %v3444_v22 = vcombine.low %v1693_v9, %v1703_v35  ;;  %v1290_v46 = vshrl.u32 %v3590_v19, 16  ;;  %v1273_v45 = vshrl.u32 %v3588_v6, 16  ;;  %v1293_v34 = vshll.u32 %v3590_v19, 16 }
 0x177   : > { %v1276_v25 = vshll.u32 %v3588_v6, 16  ;;  %v1298_v11 = vshrl.u32 %v3591_v20, 16  ;;  %v930_v38 = vadd.f32 %v4486_v33, %v891_v42  ;;  %v1301_v48 = vshll.u32 %v3591_v20, 16  ;;  %v4529_v6 = vld [vmem:[#allocation2 + $0x40] sm:$0xf] }
 0x178   : > { %3803 = vmatmul.mubr.msk.bf16.vlgmr.msra.gmra.mxu1 %vm313_vm0, %v3444_v22  ;;  %v1292_v3 = vrot.slane %v1290_v46, 7  ;;  %v1275_v53 = vrot.slane %v1273_v45, 7  ;;  %v1714_v4 = vshll.u32 %v4398_v44, 16  ;;  %v1712_v16 = vrot.slane %v1711_v21, 4  ;;  %v4536_v21 = vld [vmem:[#allocation2 + $0x2c] sm:$0x1]  ;;  %v851_v22 = vpop.f32.mrf.mxu0 }
 0x179   : > { %3869 = vmatpush3.bf16.msra.mxu1 %v3935_v18  ;;  %v1300_v57 = vrot.slane %v1298_v11, 7  ;;  %v962_v51 = vmax.f32 %v930_v38, 0.0  ;;  %v1724_v59 = vshll.u32 %v4507_v58, 16  ;;  %v1720_v8 = vrot.slane %v1718_v47, 4 }
 0x17a   : > { %v1295_v32 = vor.u32 %v1293_v34, %v1292_v3  ;;  %v1296_v37 = vrot.slane %v1292_v3, 4  ;;  %v1278_v61 = vor.u32 %v1276_v25, %v1275_v53  ;;  %v1716_v23 = vrot.slane %v1714_v4, 5  ;;  %v1482_v25 = vld [vmem:[#allocation2 + $0x98] sm:$0x1] }
 0x17b   : > { %v1303_v2 = vor.u32 %v1301_v48, %v1300_v57  ;;  %v1305_v9 = vrot.slane %v1300_v57, 4  ;;  %v3589_v24 = vpack.c.bf16 %v962_v51, %v962_v51  ;;  %v1279_v56 = vrot.slane %v1275_v53, 4 }
 0x17c   : > { %v1486_v13 = vsel %vm4190_vm6, %v1295_v32, %v1485_v7  ;;  %v1479_v26 = vsel %vm4190_vm6, %v1278_v61, %v1478_v54  ;;  %v1777_v29 = vshrl.u32 %v4516_v31, 16  ;;  %v1726_v19 = vrot.slane %v1724_v59, 5  ;;  %v1615_v59 = vld [vmem:[#allocation2 + $0x48] sm:$0xf] }
 0x17d   : > { %1487 = vst [vmem:[#allocation2 + $0x9c] sm:$0xf] %v1486_v13  ;;  %1480 = vst [vmem:[#allocation2 + $0x90] sm:$0xf] %v1479_v26  ;;  %v1304_v44 = vsel %vm4207_vm8, %v1296_v37, %v1303_v2  ;;  %v1490_v47 = vsel %vm4199_vm7, %v1305_v9, %v1489_v12  ;;  %v1281_v5 = vshrl.u32 %v3589_v24, 16  ;;  %v1284_v42 = vshll.u32 %v3589_v24, 16 }
 0x17e   : > { %1488 = vst.msk [vmem:[#allocation2 + $0xa0] sm:$0xf] %vm1388_vm1, %v1304_v44  ;;  %1491 = vst [vmem:[#allocation2 + $0xa4] sm:$0x1] %v1490_v47  ;;  %v1717_v52 = vsel %vm4437_vm12, %v1712_v16, %v1716_v23  ;;  %v1721_v35 = vor.u32 %v1720_v8, %v1716_v23  ;;  %v4534_v20 = vrot.slane %v1777_v29, 4  ;;  %v1780_v45 = vshll.u32 %v4516_v31, 16  ;;  %v3799_v16 = vpop.f32.mrf.mxu0 }
 0x17f   : > { %v1283_v46 = vrot.slane %v1281_v5, 7  ;;  %v3481_v34 = vcombine.low %v4516_v31, %v4529_v6  ;;  %v1735_v7 = vor.u32 %v4473_v0, %v4449_v14  ;;  %v1790_v38 = vshrl.u32 %v4529_v6, 16  ;;  %v4570_v47 = vld [vmem:[#allocation2 + $0x4c] sm:$0xf] }
 0x180   : > { %v1722_v11 = vrot.slane %v1721_v35, 4  ;;  %v1738_v3 = vshll.u32 %v4442_v55, 16  ;;  %v1744_v53 = vrot.slane %v1742_v50, 4  ;;  %v1748_v18 = vshll.u32 %v4536_v21, 16  ;;  %v854_v5 = vpop.f32.mrf.mxu0 }
 0x181   : > { %v1286_v54 = vor.u32 %v1284_v42, %v1283_v46  ;;  %v1288_v48 = vrot.slane %v1283_v46, 4  ;;  %3845 = vmatmul.mubr.msk.bf16.gmra.mxu0 %vm313_vm0, %v3481_v34  ;;  %v1736_v4 = vrot.slane %v1735_v7, 4  ;;  %v896_v0 = vadd.f32 %v3798_v10, %v4181_v36 }
 0x182   : > { %v1727_v57 = vsel %vm4437_vm12, %v1722_v11, %v1726_v19  ;;  %v1740_v14 = vrot.slane %v1738_v3, 5  ;;  %v894_v51 = vadd.f32 %v851_v22, %v4183_v40  ;;  %v1750_v37 = vrot.slane %v1748_v18, 5  ;;  %v1499_v18 = vld [vmem:[#allocation2 + $0xb4] sm:$0xf] }
 0x183   : > { %v1287_v50 = vsel %vm4207_vm8, %v1279_v56, %v1286_v54  ;;  %v1483_v31 = vsel %vm4199_vm7, %v1288_v48, %v1482_v25  ;;  %v3445_v32 = vcombine.low %v1717_v52, %v1727_v57  ;;  %v935_v40 = vadd.f32 %v4486_v33, %v896_v0  ;;  %v1492_v57 = vld [vmem:[#allocation2 + $0xa8] sm:$0xf] }
 0x184   : > { %v1545_v61 = vld [vmem:[#allocation2 + $0x9c] sm:$0x1]  ;;  %v1542_v12 = vld [vmem:[#allocation2 + $0x90] sm:$0x1]  ;;  %1481 = vst.msk [vmem:[#allocation2 + $0x94] sm:$0xf] %vm1388_vm1, %v1287_v50  ;;  %v1741_v36 = vsel %vm4437_vm12, %v1736_v4, %v1740_v14  ;;  %v1745_v8 = vor.u32 %v1744_v53, %v1740_v14  ;;  %v933_v10 = vadd.f32 %v4486_v33, %v894_v51  ;;  %v897_v23 = vadd.f32 %v3799_v16, %v4185_v41 }
 0x185   : > { %1484 = vst [vmem:[#allocation2 + $0x98] sm:$0x1] %v1483_v31  ;;  %v1546_v2 = vsel %vm4199_vm7, 0, %v1545_v61  ;;  %v1543_v9 = vsel %vm4199_vm7, 0, %v1542_v12  ;;  %v1594_v24 = vld [vmem:[#allocation2 + $0xa4] sm:$0x1]  ;;  %3806 = vmatprep.mubr.msk.bf16.mxu1 %vm313_vm0, %v3445_v32  ;;  %v3482_v34 = vcombine.low %v1615_v59, %v4570_v47  ;;  %v895_v3 = vadd.f32 %v854_v5, %v4304_v60 }
 0x186   : > { %v1801_v13 = vshrl.u32 %v1615_v59, 16  ;;  %1547 = vst [vmem:[#allocation2 + $0x9c] sm:$0x1] %v1546_v2  ;;  %1544 = vst [vmem:[#allocation2 + $0x90] sm:$0x1] %v1543_v9  ;;  %v1595_v56 = vsel %vm4245_vm9, 0, %v1594_v24  ;;  %v936_v42 = vadd.f32 %v4486_v33, %v897_v23  ;;  %v1759_v51 = vor.u32 %v4505_v30, %v4493_v28 }
 0x187   : > { %v1746_v26 = vrot.slane %v1745_v8, 4  ;;  %v967_v29 = vmax.f32 %v935_v40, 0.0  ;;  %v965_v44 = vmax.f32 %v933_v10, 0.0  ;;  %1596 = vst [vmem:[#allocation2 + $0xa4] sm:$0x1] %v1595_v56  ;;  %v4572_v19 = vrot.slane %v1780_v45, 5  ;;  %3848 = vmatprep.mubr.msk.bf16.mxu0 %vm313_vm0, %v3482_v34 }
 0x188   : > { %v4575_v52 = vrot.slane %v1801_v13, 4  ;;  %v1804_v41 = vshll.u32 %v1615_v59, 16  ;;  %v968_v25 = vmax.f32 %v936_v42, 0.0  ;;  %v1814_v11 = vshrl.u32 %v4570_v47, 16  ;;  %v4592_v32 = vld [vmem:[#allocation2 + $0x38] sm:$0x1] }
 0x189   : > { %v1751_v35 = vsel %vm4437_vm12, %v1746_v26, %v1750_v37  ;;  %v3594_v22 = vpack.c.bf16 %v967_v29, %v967_v29  ;;  %v3592_v46 = vpack.c.bf16 %v965_v44, %v965_v44  ;;  %v934_v0 = vadd.f32 %v4486_v33, %v895_v3  ;;  %v1503_v56 = vld [vmem:[#allocation2 + $0xbc] sm:$0x1]  ;;  %v4603_v34 = vld [vmem:[#allocation2 + $0x44] sm:$0x1]  ;;  %v4609_v3 = vld [vmem:[#allocation2 + $0x58] sm:$0xf] }
 0x18a   : > { %v3446_v7 = vcombine.low %v1741_v36, %v1751_v35  ;;  %v4582_v48 = vrot.slane %v1804_v41, 5  ;;  %v3595_v14 = vpack.c.bf16 %v968_v25, %v968_v25  ;;  %v1762_v60 = vshll.u32 %v4489_v15, 16  ;;  %v1617_v36 = vld [vmem:[#allocation2 + $0x54] sm:$0xf] }
 0x18b   : > { %v1324_v45 = vshrl.u32 %v3594_v22, 16  ;;  %v1327_v53 = vshll.u32 %v3594_v22, 16  ;;  %v1307_v54 = vshrl.u32 %v3592_v46, 16  ;;  %v1310_v31 = vshll.u32 %v3592_v46, 16 }
 0x18c   : > { %v1591_v4 = vld [vmem:[#allocation2 + $0x98] sm:$0x1]  ;;  %3807 = vmatmul.mubr.msk.bf16.gmra.mxu1 %vm313_vm0, %v3446_v7  ;;  %v1332_v37 = vshrl.u32 %v3595_v14, 16  ;;  %v1335_v61 = vshll.u32 %v3595_v14, 16  ;;  %v966_v12 = vmax.f32 %v934_v0, 0.0  ;;  %v1768_v33 = vrot.slane %v1766_v62, 4 }
 0x18d   : > { %v1592_v16 = vsel %vm4245_vm9, 0, %v1591_v4  ;;  %v1326_v59 = vrot.slane %v1324_v45, 7  ;;  %v1309_v50 = vrot.slane %v1307_v54, 7  ;;  %v1760_v40 = vrot.slane %v1759_v51, 4  ;;  %v1496_v54 = vld [vmem:[#allocation2 + $0xb0] sm:$0x1] }
 0x18e   : > { %1593 = vst [vmem:[#allocation2 + $0x98] sm:$0x1] %v1592_v16  ;;  %v1334_v10 = vrot.slane %v1332_v37, 7  ;;  %v3593_v2 = vpack.c.bf16 %v966_v12, %v966_v12  ;;  %v1764_v9 = vrot.slane %v1762_v60, 5  ;;  %v1772_v24 = vshll.u32 %v4592_v32, 16 }
 0x18f   : > { %v1329_v8 = vor.u32 %v1327_v53, %v1326_v59  ;;  %v1330_v28 = vrot.slane %v1326_v59, 4  ;;  %v1312_v30 = vor.u32 %v1310_v31, %v1309_v50  ;;  %v1825_v26 = vshrl.u32 %v1617_v36, 16  ;;  %v1619_v53 = vld [vmem:[#allocation2 + $0x60] sm:$0xf] }
 0x190   : > { %v1828_v29 = vshll.u32 %v1617_v36, 16  ;;  %v1313_v62 = vrot.slane %v1309_v50, 4  ;;  %v1337_v44 = vor.u32 %v1335_v61, %v1334_v10  ;;  %v1339_v5 = vrot.slane %v1334_v10, 4  ;;  %v4626_v61 = vld [vmem:[#allocation2 + $0x50] sm:$0x1] }
 0x191   : > { %v1500_v23 = vsel %vm4190_vm6, %v1329_v8, %v1499_v18  ;;  %v1493_v13 = vsel %vm4190_vm6, %v1312_v30, %v1492_v57  ;;  %v1315_v42 = vshrl.u32 %v3593_v2, 16  ;;  %v1318_v41 = vshll.u32 %v3593_v2, 16 }
 0x192   : > { %1501 = vst [vmem:[#allocation2 + $0xb4] sm:$0xf] %v1500_v23  ;;  %1494 = vst [vmem:[#allocation2 + $0xa8] sm:$0xf] %v1493_v13  ;;  %v1765_v35 = vsel %vm4437_vm12, %v1760_v40, %v1764_v9  ;;  %v1769_v22 = vor.u32 %v1768_v33, %v1764_v9  ;;  %v1774_v46 = vrot.slane %v1772_v24, 5  ;;  %v1338_v49 = vsel %vm4207_vm8, %v1330_v28, %v1337_v44 }
 0x193   : > { %v1504_v7 = vsel %vm4199_vm7, %v1339_v5, %v1503_v56  ;;  %v1317_v25 = vrot.slane %v1315_v42, 7  ;;  %v4611_v45 = vrot.slane %v1825_v26, 4  ;;  %1502 = vst.msk [vmem:[#allocation2 + $0xb8] sm:$0xf] %vm1388_vm1, %v1338_v49  ;;  %v4614_v18 = vrot.slane %v1828_v29, 5 }
 0x194   : > { %1505 = vst [vmem:[#allocation2 + $0xbc] sm:$0x1] %v1504_v7  ;;  %v1770_v4 = vrot.slane %v1769_v22, 4  ;;  %v3483_v57 = vcombine.low %v1617_v36, %v4609_v3  ;;  %v1783_v14 = vor.u32 %v4572_v19, %v4534_v20  ;;  %v1786_v60 = vshll.u32 %v4529_v6, 16  ;;  %v1621_v36 = vld [vmem:[#allocation2 + $0x6c] sm:$0xf] }
 0x195   : > { %v1320_v0 = vor.u32 %v1318_v41, %v1317_v25  ;;  %v1322_v51 = vrot.slane %v1317_v25, 4  ;;  %v1792_v16 = vrot.slane %v1790_v38, 4  ;;  %v1796_v31 = vshll.u32 %v4603_v34, 16  ;;  %v4632_v38 = vld [vmem:[#allocation2 + $0x64] sm:$0xf] }
 0x196   : > { %v1775_v59 = vsel %vm4437_vm12, %v1770_v4, %v1774_v46  ;;  %3849 = vmatmul.mubr.msk.bf16.gmra.mxu0 %vm313_vm0, %v3483_v57  ;;  %v1784_v50 = vrot.slane %v1783_v14, 4  ;;  %v1849_v37 = vshrl.u32 %v1619_v53, 16  ;;  %v1788_v33 = vrot.slane %v1786_v60, 5  ;;  %v4650_v26 = vld [vmem:[#allocation2 + $0x70] sm:$0xf] }
 0x197   : > { %v1321_v20 = vsel %vm4207_vm8, %v1313_v62, %v1320_v0  ;;  %v1497_v19 = vsel %vm4199_vm7, %v1322_v51, %v1496_v54  ;;  %v3447_v12 = vcombine.low %v1765_v35, %v1775_v59  ;;  %v1838_v30 = vshrl.u32 %v4609_v3, 16  ;;  %v4658_v46 = vld [vmem:[#allocation2 + $0x5c] sm:$0x1] }
 0x198   : > { %1495 = vst.msk [vmem:[#allocation2 + $0xac] sm:$0xf] %vm1388_vm1, %v1321_v20  ;;  %1498 = vst [vmem:[#allocation2 + $0xb0] sm:$0x1] %v1497_v19  ;;  %v1798_v40 = vrot.slane %v1796_v31, 5  ;;  %v3484_v10 = vcombine.low %v1619_v53, %v4632_v38  ;;  %v1807_v27 = vor.u32 %v4582_v48, %v4575_v52  ;;  %v1793_v24 = vor.u32 %v1792_v16, %v1788_v33 }
 0x199   : > { %v1551_v8 = vld [vmem:[#allocation2 + $0xb4] sm:$0x1]  ;;  %v1548_v28 = vld [vmem:[#allocation2 + $0xa8] sm:$0x1]  ;;  %3810 = vmatprep.mubr.msk.bf16.mxu1 %vm313_vm0, %v3447_v12  ;;  %v4644_v23 = vrot.slane %v1849_v37, 4  ;;  %v1789_v13 = vsel %vm4437_vm12, %v1784_v50, %v1788_v33  ;;  %v1852_v56 = vshll.u32 %v1619_v53, 16  ;;  %v3485_v51 = vcombine.low %v1621_v36, %v4650_v26 }
 0x19a   : > { %v1552_v2 = vsel %vm4199_vm7, 0, %v1551_v8  ;;  %v1549_v9 = vsel %vm4199_vm7, 0, %v1548_v28  ;;  %3852 = vmatprep.mubr.msk.bf16.mxu0 %vm313_vm0, %v3484_v10  ;;  %v1808_v52 = vrot.slane %v1807_v27, 4  ;;  %v1810_v48 = vshll.u32 %v4570_v47, 16  ;;  %v4669_v50 = vld [vmem:[#allocation2 + $0x7c] sm:$0xf] }
 0x19b   : > { %1553 = vst [vmem:[#allocation2 + $0xb4] sm:$0x1] %v1552_v2  ;;  %1550 = vst [vmem:[#allocation2 + $0xa8] sm:$0x1] %v1549_v9  ;;  %v1600_v17 = vld [vmem:[#allocation2 + $0xbc] sm:$0x1]  ;;  %v1831_v60 = vor.u32 %v4614_v18, %v4611_v45 }
 0x19c   : > { %v1794_v29 = vrot.slane %v1793_v24, 4  ;;  %v1816_v62 = vrot.slane %v1814_v11, 4  ;;  %v1820_v44 = vshll.u32 %v4626_v61, 16  ;;  %v1873_v5 = vshrl.u32 %v1621_v36, 16  ;;  %v1623_v11 = vld [vmem:[#allocation2 + $0x78] sm:$0xf] }
 0x19d   : > { %v1601_v42 = vsel %vm4245_vm9, 0, %v1600_v17  ;;  %v1854_v41 = vrot.slane %v1852_v56, 5  ;;  %v1862_v35 = vshrl.u32 %v4632_v38, 16  ;;  %v1812_v22 = vrot.slane %v1810_v48, 5  ;;  %v4684_v24 = vld [vmem:[#allocation2 + $0x88] sm:$0xf] }
 0x19e   : > { %1602 = vst [vmem:[#allocation2 + $0xbc] sm:$0x1] %v1601_v42  ;;  %v1799_v49 = vsel %vm4437_vm12, %v1794_v29, %v1798_v40  ;;  %v1822_v7 = vrot.slane %v1820_v44, 5  ;;  %v1875_v25 = vrot.slane %v1873_v5, 4  ;;  %v1876_v53 = vshll.u32 %v1621_v36, 16  ;;  %3853 = vmatmul.mubr.msk.bf16.gmra.mxu0 %vm313_vm0, %v3485_v51 }
 0x19f   : > { %v3448_v54 = vcombine.low %v1789_v13, %v1799_v49  ;;  %v1813_v4 = vsel %vm4437_vm12, %v1808_v52, %v1812_v22  ;;  %v1817_v57 = vor.u32 %v1816_v62, %v1812_v22  ;;  %v1886_v14 = vshrl.u32 %v4650_v26, 16  ;;  %v1597_v0 = vld [vmem:[#allocation2 + $0xb0] sm:$0x1]  ;;  %v4676_v36 = vld [vmem:[#allocation2 + $0x68] sm:$0x1] }
 0x1a0   : > { %v1834_v16 = vshll.u32 %v4609_v3, 16  ;;  %v1840_v59 = vrot.slane %v1838_v30, 4  ;;  %v1598_v31 = vsel %vm4245_vm9, 0, %v1597_v0  ;;  %v1844_v20 = vshll.u32 %v4658_v46, 16  ;;  %v1625_v40 = vld [vmem:[#allocation2 + $0x84] sm:$0xf] }
 0x1a1   : > { %3811 = vmatmul.mubr.msk.bf16.gmra.mxu1 %vm313_vm0, %v3448_v54  ;;  %v1818_v37 = vrot.slane %v1817_v57, 4  ;;  %v1897_v19 = vshrl.u32 %v1623_v11, 16  ;;  %1599 = vst [vmem:[#allocation2 + $0xb0] sm:$0x1] %v1598_v31  ;;  %v1878_v12 = vrot.slane %v1876_v53, 5  ;;  %v1832_v33 = vrot.slane %v1831_v60, 4 }
 0x1a2   : > { %v1836_v45 = vrot.slane %v1834_v16, 5  ;;  %v1900_v18 = vshll.u32 %v1623_v11, 16  ;;  %v1846_v43 = vrot.slane %v1844_v20, 5  ;;  %v1910_v28 = vshrl.u32 %v4669_v50, 16  ;;  %v4691_v5 = vld [vmem:[#allocation2 + $0x74] sm:$0x1] }
 0x1a3   : > { %v1823_v8 = vsel %vm4437_vm12, %v1818_v37, %v1822_v7  ;;  %v3486_v30 = vcombine.low %v1623_v11, %v4669_v50  ;;  %v1899_v9 = vrot.slane %v1897_v19, 4  ;;  %v1855_v13 = vor.u32 %v1854_v41, %v4644_v23  ;;  %v1627_v53 = vld [vmem:[#allocation2 + $0x90] sm:$0xf]  ;;  %v4698_v51 = vld [vmem:[#allocation2 + $0x94] sm:$0xf] }
 0x1a4   : > { %v3449_v10 = vcombine.low %v1813_v4, %v1823_v8  ;;  %v1837_v27 = vsel %vm4437_vm12, %v1832_v33, %v1836_v45  ;;  %v1841_v2 = vor.u32 %v1840_v59, %v1836_v45  ;;  %v1858_v56 = vshll.u32 %v4632_v38, 16 }
 0x1a5   : > { %3856 = vmatprep.mubr.msk.bf16.mxu0 %vm313_vm0, %v3486_v30  ;;  %v1864_v52 = vrot.slane %v1862_v35, 4  ;;  %v1868_v48 = vshll.u32 %v4676_v36, 16  ;;  %v1902_v29 = vrot.slane %v1900_v18, 5  ;;  %v1921_v62 = vshrl.u32 %v1625_v40, 16  ;;  %v4707_v18 = vld [vmem:[#allocation2 + $0x80] sm:$0x1] }
 0x1a6   : > { %3814 = vmatprep.mubr.msk.bf16.mxu1 %vm313_vm0, %v3449_v10  ;;  %v1842_v17 = vrot.slane %v1841_v2, 4  ;;  %v1924_v44 = vshll.u32 %v1625_v40, 16  ;;  %v1856_v42 = vrot.slane %v1855_v13, 4  ;;  %v1860_v22 = vrot.slane %v1858_v56, 5 }
 0x1a7   : > { %v1870_v49 = vrot.slane %v1868_v48, 5  ;;  %v1934_v7 = vshrl.u32 %v4684_v24, 16  ;;  %v1923_v41 = vrot.slane %v1921_v62, 4  ;;  %v3487_v35 = vcombine.low %v1625_v40, %v4684_v24 }
 0x1a8   : > { %v1847_v23 = vsel %vm4437_vm12, %v1842_v17, %v1846_v43  ;;  %v1879_v11 = vor.u32 %v1878_v12, %v1875_v25  ;;  %v1865_v4 = vor.u32 %v1864_v52, %v1860_v22  ;;  %v1926_v57 = vrot.slane %v1924_v44, 5  ;;  %v4715_v52 = vld [vmem:[#allocation2 + $0xa0] sm:$0xf] }
 0x1a9   : > { %v3450_v54 = vcombine.low %v1837_v27, %v1847_v23  ;;  %v1882_v0 = vshll.u32 %v4650_v26, 16  ;;  %3857 = vmatmul.mubr.msk.bf16.gmra.mxu0 %vm313_vm0, %v3487_v35  ;;  %v1888_v16 = vrot.slane %v1886_v14, 4  ;;  %v1892_v59 = vshll.u32 %v4691_v5, 16  ;;  %v1629_v14 = vld [vmem:[#allocation2 + $0x9c] sm:$0xf] }
 0x1aa   : > { %v1880_v60 = vrot.slane %v1879_v11, 4  ;;  %v1945_v31 = vshrl.u32 %v1627_v53, 16  ;;  %v1861_v37 = vsel %vm4437_vm12, %v1856_v42, %v1860_v22  ;;  %v1866_v25 = vrot.slane %v1865_v4, 4  ;;  %v4720_v22 = vld [vmem:[#allocation2 + $0x8c] sm:$0x1] }
 0x1ab   : > { %3815 = vmatmul.mubr.msk.bf16.gmra.mxu1 %vm313_vm0, %v3450_v54  ;;  %v1884_v20 = vrot.slane %v1882_v0, 5  ;;  %v1948_v19 = vshll.u32 %v1627_v53, 16  ;;  %v1894_v12 = vrot.slane %v1892_v59, 5  ;;  %v1958_v33 = vshrl.u32 %v4698_v51, 16 }
 0x1ac   : > { %v3488_v45 = vcombine.low %v1627_v53, %v4698_v51  ;;  %v1903_v8 = vor.u32 %v1902_v29, %v1899_v9  ;;  %v1871_v43 = vsel %vm4437_vm12, %v1866_v25, %v1870_v49  ;;  %v1947_v10 = vrot.slane %v1945_v31, 4  ;;  %v1631_v53 = vld [vmem:[#allocation2 + $0xa8] sm:$0xf] }
 0x1ad   : > { %v1885_v30 = vsel %vm4437_vm12, %v1880_v60, %v1884_v20  ;;  %v1889_v40 = vor.u32 %v1888_v16, %v1884_v20  ;;  %v3451_v27 = vcombine.low %v1861_v37, %v1871_v43  ;;  %v1906_v13 = vshll.u32 %v4669_v50, 16  ;;  %v4728_v16 = vld [vmem:[#allocation2 + $0xac] sm:$0xf] }
 0x1ae   : > { %3860 = vmatprep.mubr.msk.bf16.mxu0 %vm313_vm0, %v3488_v45  ;;  %v1904_v2 = vrot.slane %v1903_v8, 4  ;;  %v1912_v56 = vrot.slane %v1910_v28, 4  ;;  %v1916_v9 = vshll.u32 %v4707_v18, 16  ;;  %v1969_v17 = vshrl.u32 %v1629_v14, 16 }
 0x1af   : > { %v1890_v48 = vrot.slane %v1889_v40, 4  ;;  %v1972_v29 = vshll.u32 %v1629_v14, 16  ;;  %3818 = vmatprep.mubr.msk.bf16.mxu1 %vm313_vm0, %v3451_v27  ;;  %v1950_v62 = vrot.slane %v1948_v19, 5  ;;  %v1908_v44 = vrot.slane %v1906_v13, 5 }
 0x1b0   : > { %v3489_v42 = vcombine.low %v1629_v14, %v4715_v52  ;;  %v1927_v49 = vor.u32 %v1926_v57, %v1923_v41  ;;  %v1918_v23 = vrot.slane %v1916_v9, 5  ;;  %v1971_v35 = vrot.slane %v1969_v17, 4  ;;  %v4741_v17 = vld [vmem:[#allocation2 + $0xb8] sm:$0xf] }
 0x1b1   : > { %v1895_v28 = vsel %vm4437_vm12, %v1890_v48, %v1894_v12  ;;  %v1982_v11 = vshrl.u32 %v4715_v52, 16  ;;  %v1909_v4 = vsel %vm4437_vm12, %v1904_v2, %v1908_v44  ;;  %v1913_v0 = vor.u32 %v1912_v56, %v1908_v44  ;;  %v4734_v12 = vld [vmem:[#allocation2 + $0x98] sm:$0x1] }
 0x1b2   : > { %v3452_v54 = vcombine.low %v1885_v30, %v1895_v28  ;;  %v1974_v60 = vrot.slane %v1972_v29, 5  ;;  %3861 = vmatmul.mubr.msk.bf16.gmra.mxu0 %vm313_vm0, %v3489_v42  ;;  %v1930_v41 = vshll.u32 %v4684_v24, 16  ;;  %v1936_v57 = vrot.slane %v1934_v7, 4  ;;  %v1633_v30 = vld [vmem:[#allocation2 + $0xb4] sm:$0xf] }
 0x1b3   : > { %v1940_v59 = vshll.u32 %v4720_v22, 16  ;;  %v1993_v31 = vshrl.u32 %v1631_v53, 16  ;;  %v1914_v37 = vrot.slane %v1913_v0, 4  ;;  %v1928_v25 = vrot.slane %v1927_v49, 4 }
 0x1b4   : > { %3819 = vmatmul.mubr.msk.bf16.gmra.mxu1 %vm313_vm0, %v3452_v54  ;;  %v1996_v20 = vshll.u32 %v1631_v53, 16  ;;  %v3490_v19 = vcombine.low %v1631_v53, %v4728_v16  ;;  %v1932_v45 = vrot.slane %v1930_v41, 5  ;;  %v2006_v14 = vshrl.u32 %v4728_v16, 16 }
 0x1b5   : > { %v1942_v8 = vrot.slane %v1940_v59, 5  ;;  %v1951_v43 = vor.u32 %v1950_v62, %v1947_v10  ;;  %v1919_v7 = vsel %vm4437_vm12, %v1914_v37, %v1918_v23  ;;  %v1995_v40 = vrot.slane %v1993_v31, 4  ;;  %v4757_v37 = vld [vmem:[#allocation2 + $0xb0] sm:$0x1] }
 0x1b6   : > { %3864 = vmatprep.mubr.msk.bf16.mxu0 %vm313_vm0, %v3490_v19  ;;  %v1954_v27 = vshll.u32 %v4698_v51, 16  ;;  %v1960_v2 = vrot.slane %v1958_v33, 4  ;;  %v3453_v13 = vcombine.low %v1909_v4, %v1919_v7  ;;  %v1937_v56 = vor.u32 %v1936_v57, %v1932_v45  ;;  %v4748_v33 = vld [vmem:[#allocation2 + $0xa4] sm:$0x1] }
 0x1b7   : > { %v1998_v48 = vrot.slane %v1996_v20, 5  ;;  %v1952_v9 = vrot.slane %v1951_v43, 4  ;;  %v1964_v44 = vshll.u32 %v4734_v12, 16  ;;  %v2017_v10 = vshrl.u32 %v1633_v30, 16 }
 0x1b8   : > { %v1956_v29 = vrot.slane %v1954_v27, 5  ;;  %v2020_v62 = vshll.u32 %v1633_v30, 16  ;;  %3822 = vmatprep.mubr.msk.bf16.mxu1 %vm313_vm0, %v3453_v13  ;;  %v1933_v42 = vsel %vm4437_vm12, %v1928_v25, %v1932_v45  ;;  %v1938_v49 = vrot.slane %v1937_v56, 4  ;;  %v4765_v13 = vld [vmem:[#allocation2 + $0xbc] sm:$0x1] }
 0x1b9   : > { %v3491_v53 = vcombine.low %v1633_v30, %v4741_v17  ;;  %v1975_v28 = vor.u32 %v1974_v60, %v1971_v35  ;;  %v1966_v4 = vrot.slane %v1964_v44, 5  ;;  %v2030_v0 = vshrl.u32 %v4741_v17, 16 }
 0x1ba   : > { %v1957_v23 = vsel %vm4437_vm12, %v1952_v9, %v1956_v29  ;;  %v1961_v54 = vor.u32 %v1960_v2, %v1956_v29  ;;  %v1943_v41 = vsel %vm4437_vm12, %v1938_v49, %v1942_v8  ;;  %v2019_v57 = vrot.slane %v2017_v10, 4 }
 0x1bb   : > { %v2022_v59 = vrot.slane %v2020_v62, 5  ;;  %3865 = vmatmul.mubr.msk.bf16.gmra.mxu0 %vm313_vm0, %v3491_v53  ;;  %v1978_v31 = vshll.u32 %v4715_v52, 16  ;;  %v3454_v25 = vcombine.low %v1933_v42, %v1943_v41  ;;  %v1984_v60 = vrot.slane %v1982_v11, 4 }
 0x1bc   : > { %v1962_v35 = vrot.slane %v1961_v54, 4  ;;  %v1988_v20 = vshll.u32 %v4748_v33, 16  ;;  %v1976_v19 = vrot.slane %v1975_v28, 4  ;;  %v1999_v43 = vor.u32 %v1998_v48, %v1995_v40 }
 0x1bd   : > { %v1980_v45 = vrot.slane %v1978_v31, 5  ;;  %v2002_v30 = vshll.u32 %v4728_v16, 16  ;;  %3823 = vmatmul.mubr.msk.bf16.gmra.mxu1 %vm313_vm0, %v3454_v25  ;;  %v2008_v27 = vrot.slane %v2006_v14, 4  ;;  %v2012_v2 = vshll.u32 %v4757_v37, 16 }
 0x1be   : > { %v1967_v8 = vsel %vm4437_vm12, %v1962_v35, %v1966_v4  ;;  %v1990_v7 = vrot.slane %v1988_v20, 5  ;;  %v2000_v9 = vrot.slane %v1999_v43, 4  ;;  %v2023_v29 = vor.u32 %v2022_v59, %v2019_v57  ;;  %v3936_v4 = vld [vmem:[#allocation2 + $0x4] sm:$0xf]  ;;  %v2601_v35 = vld [vmem:[#allocation2] sm:$0xe] }
 0x1bf   : > { %v3455_v56 = vcombine.low %v1957_v23, %v1967_v8  ;;  %v1985_v11 = vor.u32 %v1984_v60, %v1980_v45  ;;  %v2004_v44 = vrot.slane %v2002_v30, 5  ;;  %v2026_v40 = vshll.u32 %v4741_v17, 16  ;;  %v3938_v30 = vld [vmem:[#allocation2 + $0x1c] sm:$0xf] }
 0x1c0   : > { %v1981_v48 = vsel %vm4437_vm12, %v1976_v19, %v1980_v45  ;;  %v2032_v62 = vrot.slane %v2030_v0, 4  ;;  %v2036_v14 = vshll.u32 %v4765_v13, 16  ;;  %v2014_v49 = vrot.slane %v2012_v2, 5  ;;  %v2602_v19 = vld [vmem:[#allocation2 + $0xc] sm:$0xe] }
 0x1c1   : > { %3826 = vmatprep.mubr.msk.bf16.mxu1 %vm313_vm0, %v3455_v56  ;;  %v1986_v10 = vrot.slane %v1985_v11, 4  ;;  %v2009_v42 = vor.u32 %v2008_v27, %v2004_v44  ;;  %v2028_v53 = vrot.slane %v2026_v40, 5  ;;  %v2005_v23 = vsel %vm4437_vm12, %v2000_v9, %v2004_v44  ;;  %v3937_v45 = vld [vmem:[#allocation2 + $0x10] sm:$0xf]  ;;  %v2603_v9 = vld [vmem:[#allocation2 + $0x18] sm:$0xe] }
 0x1c2   : > { %v2024_v54 = vrot.slane %v2023_v29, 4  ;;  %v2654_v41 = vrot.slane %v3936_v4, 5  ;;  %v2038_v25 = vrot.slane %v2036_v14, 5  ;;  %v2657_v0 = vrot.slane %v4422_v39, 5 }
 0x1c3   : > { %v1991_v28 = vsel %vm4437_vm12, %v1986_v10, %v1990_v7  ;;  %v2010_v59 = vrot.slane %v2009_v42, 4  ;;  %v2033_v31 = vor.u32 %v2032_v62, %v2028_v53  ;;  %v2661_v43 = vrot.slane %v3937_v45, 5  ;;  %v2604_v62 = vld [vmem:[#allocation2 + $0x24] sm:$0xe] }
 0x1c4   : > { %v3456_v57 = vcombine.low %v1981_v48, %v1991_v28  ;;  %v2668_v8 = vrot.slane %v3938_v30, 5  ;;  %v2656_v27 = vrot.slane %v2654_v41, 4  ;;  %v2029_v2 = vsel %vm4437_vm12, %v2024_v54, %v2028_v53  ;;  %v2605_v28 = vld [vmem:[#allocation2 + $0x30] sm:$0xe]  ;;  %v2609_v30 = vld [vmem:[#allocation2 + $0x60] sm:$0xe] }
 0x1c5   : > { %v2015_v60 = vsel %vm4437_vm12, %v2010_v59, %v2014_v49  ;;  %v2034_v20 = vrot.slane %v2033_v31, 4  ;;  %v2664_v11 = vrot.slane %v4447_v1, 5  ;;  %v3509_v29 = vrot.slane %v2601_v35, 9 }
 0x1c6   : > { %3827 = vmatmul.mubr.msk.bf16.gmra.mxu1 %vm313_vm0, %v3456_v57  ;;  %v3457_v7 = vcombine.low %v2005_v23, %v2015_v60  ;;  %v2658_v44 = vsel %vm4785_vm15, %v2656_v27, %v2657_v0  ;;  %v3510_v40 = vrot.slane %v2602_v19, 9  ;;  %v2671_v48 = vrot.slane %v4507_v58, 5  ;;  %v2608_v60 = vld [vmem:[#allocation2 + $0x54] sm:$0xe] }
 0x1c7   : > { %v2039_v56 = vsel %vm4437_vm12, %v2034_v20, %v2038_v25  ;;  %v2663_v10 = vrot.slane %v2661_v43, 4  ;;  %v2670_v63 = vrot.slane %v2668_v8, 4  ;;  %v2675_v14 = vrot.slane %v4442_v55, 5 }
 0x1c8   : > { %3830 = vmatprep.mubr.msk.bf16.mxu1 %vm313_vm0, %v3457_v7  ;;  %v2678_v42 = vrot.slane %v4536_v21, 5  ;;  %v3458_v49 = vcombine.low %v2029_v2, %v2039_v56  ;;  %v2655_v1 = vsel %vm4785_vm15, %v3509_v29, %v2654_v41  ;;  %v3511_v53 = vrot.slane %v2603_v9, 9  ;;  %v2610_v56 = vld [vmem:[#allocation2 + $0x6c] sm:$0xe] }
 0x1c9   : > { %v2682_v23 = vrot.slane %v4489_v15, 5  ;;  %v2665_v54 = vsel %vm4785_vm15, %v2663_v10, %v2664_v11  ;;  %v2672_v58 = vsel %vm4785_vm15, %v2670_v63, %v2671_v48  ;;  %v2677_v4 = vrot.slane %v2675_v14, 4 }
 0x1ca   : > { %v2685_v57 = vrot.slane %v4592_v32, 5  ;;  %v3527_v55 = vcombine.low %v2655_v1, %v2658_v44  ;;  %v2662_v21 = vsel %vm4785_vm15, %v3510_v40, %v2661_v43  ;;  %v3512_v59 = vrot.slane %v2604_v62, 9  ;;  %v2611_v62 = vld [vmem:[#allocation2 + $0x78] sm:$0xe]  ;;  %v2612_v1 = vld [vmem:[#allocation2 + $0x84] sm:$0xe] }
 0x1cb   : > { %v2669_v41 = vsel %vm4785_vm15, %v3511_v53, %v2668_v8  ;;  %v4811_v15 = vsel %vm4785_vm15, %v2677_v4, %v2678_v42  ;;  %v3513_v31 = vrot.slane %v2605_v28, 9  ;;  %v2684_v25 = vrot.slane %v2682_v23, 4 }
 0x1cc   : > { %v3528_v35 = vcombine.low %v2662_v21, %v2665_v54  ;;  %v3529_v32 = vcombine.low %v2669_v41, %v2672_v58  ;;  %v4816_v0 = vsel %vm4785_vm15, %v3512_v59, %v2675_v14  ;;  %v2689_v45 = vrot.slane %v4529_v6, 5  ;;  %v2614_v41 = vld [vmem:[#allocation2 + $0x9c] sm:$0xe] }
 0x1cd   : > { %v4820_v20 = vsel %vm4785_vm15, %v3513_v31, %v2682_v23  ;;  %v4824_v19 = vsel %vm4785_vm15, %v2684_v25, %v2685_v57  ;;  %v2692_v43 = vrot.slane %v4603_v34, 5  ;;  %v3530_v8 = vcombine.low %v4816_v0, %v4811_v15  ;;  %v2613_v57 = vld [vmem:[#allocation2 + $0x90] sm:$0xe] }
 0x1ce   : > { %3831 = vmatmul.mubr.msk.bf16.gmra.mxu1 %vm313_vm0, %v3458_v49  ;;  %v2696_v7 = vrot.slane %v4570_v47, 5  ;;  %v2703_v27 = vrot.slane %v4609_v3, 5  ;;  %v2706_v2 = vrot.slane %v4658_v46, 5  ;;  %v2699_v11 = vrot.slane %v4626_v61, 5 }
 0x1cf   : > { %3870 = vmatprep.mubr.msk.bf16.mxu1 %vm313_vm0, %v3527_v55  ;;  %v3516_v9 = vrot.slane %v2608_v60, 9  ;;  %v2710_v29 = vrot.slane %v4632_v38, 5  ;;  %v2713_v44 = vrot.slane %v4676_v36, 5  ;;  %v3531_v40 = vcombine.low %v4820_v20, %v4824_v19  ;;  %v2615_v19 = vld [vmem:[#allocation2 + $0xa8] sm:$0xe] }
 0x1d0   : > { %v2705_v48 = vrot.slane %v2703_v27, 4  ;;  %v3517_v10 = vrot.slane %v2609_v30, 9  ;;  %v2717_v63 = vrot.slane %v4650_v26, 5  ;;  %v3518_v14 = vrot.slane %v2610_v56, 9 }
 0x1d1   : > { %v4841_v3 = vsel %vm4785_vm15, %v3516_v9, %v2703_v27  ;;  %v2712_v46 = vrot.slane %v2710_v29, 4  ;;  %v2720_v42 = vrot.slane %v4691_v5, 5  ;;  %v2724_v26 = vrot.slane %v4669_v50, 5  ;;  %v2606_v9 = vld [vmem:[#allocation2 + $0x3c] sm:$0xe] }
 0x1d2   : > { %v4846_v38 = vsel %vm4785_vm15, %v2705_v48, %v2706_v2  ;;  %v4850_v36 = vsel %vm4785_vm15, %v3517_v10, %v2710_v29  ;;  %v2719_v49 = vrot.slane %v2717_v63, 4  ;;  %v3519_v28 = vrot.slane %v2611_v62, 9 }
 0x1d3   : > { %v3534_v53 = vcombine.low %v4841_v3, %v4846_v38  ;;  %v4858_v5 = vsel %vm4785_vm15, %v2712_v46, %v2713_v44  ;;  %v2727_v23 = vrot.slane %v4707_v18, 5  ;;  %v4866_v50 = vsel %vm4785_vm15, %v3518_v14, %v2717_v63  ;;  %v2616_v46 = vld [vmem:[#allocation2 + $0xb4] sm:$0xe]  ;;  %v2607_v14 = vld [vmem:[#allocation2 + $0x48] sm:$0xe] }
 0x1d4   : > { %v3535_v54 = vcombine.low %v4850_v36, %v4858_v5  ;;  %v4870_v58 = vsel %vm4785_vm15, %v2719_v49, %v2720_v42  ;;  %v2726_v4 = vrot.slane %v2724_v26, 4  ;;  %v3520_v21 = vrot.slane %v2612_v1, 9 }
 0x1d5   : > { %v3536_v55 = vcombine.low %v4866_v50, %v4870_v58  ;;  %v2731_v18 = vrot.slane %v4684_v24, 5  ;;  %v2734_v59 = vrot.slane %v4720_v22, 5  ;;  %v2725_v15 = vsel %vm4785_vm15, %v3519_v28, %v2724_v26 }
 0x1d6   : > { %3871 = vmatmul.mubr.msk.bf16.vlgmr.msra.gmra.mxu1 %vm313_vm0, %v3528_v35  ;;  %v2728_v31 = vsel %vm4785_vm15, %v2726_v4, %v2727_v23  ;;  %v2738_v25 = vrot.slane %v4698_v51, 5  ;;  %v2741_v35 = vrot.slane %v4734_v12, 5  ;;  %v3521_v60 = vrot.slane %v2613_v57, 9 }
 0x1d7   : > { %3874 = vmatprep.mubr.msk.bf16.mxu1 %vm313_vm0, %v3529_v32  ;;  %v3537_v32 = vcombine.low %v2725_v15, %v2728_v31  ;;  %v2733_v0 = vrot.slane %v2731_v18, 4  ;;  %v2745_v20 = vrot.slane %v4715_v52, 5  ;;  %v2732_v24 = vsel %vm4785_vm15, %v3520_v21, %v2731_v18 }
 0x1d8   : > { %v2740_v22 = vrot.slane %v2738_v25, 4  ;;  %v3522_v30 = vrot.slane %v2614_v41, 9  ;;  %v2748_v27 = vrot.slane %v4748_v33, 5  ;;  %v2739_v51 = vsel %vm4785_vm15, %v3521_v60, %v2738_v25 }
 0x1d9   : > { %v2735_v2 = vsel %vm4785_vm15, %v2733_v0, %v2734_v59  ;;  %v2747_v12 = vrot.slane %v2745_v20, 4  ;;  %v2752_v56 = vrot.slane %v4728_v16, 5  ;;  %v3523_v44 = vrot.slane %v2615_v19, 9 }
 0x1da   : > { %v3538_v29 = vcombine.low %v2732_v24, %v2735_v2  ;;  %v2742_v52 = vsel %vm4785_vm15, %v2740_v22, %v2741_v35  ;;  %v2755_v48 = vrot.slane %v4757_v37, 5  ;;  %v2746_v10 = vsel %vm4785_vm15, %v3522_v30, %v2745_v20 }
 0x1db   : > { %v3539_v33 = vcombine.low %v2739_v51, %v2742_v52  ;;  %v2749_v63 = vsel %vm4785_vm15, %v2747_v12, %v2748_v27  ;;  %v2754_v62 = vrot.slane %v2752_v56, 4  ;;  %v2691_v16 = vrot.slane %v2689_v45, 4 }
 0x1dc   : > { %v3540_v42 = vcombine.low %v2746_v10, %v2749_v63  ;;  %v2759_v37 = vrot.slane %v4741_v17, 5  ;;  %v3514_v49 = vrot.slane %v2606_v9, 9  ;;  %v2698_v26 = vrot.slane %v2696_v7, 4 }
 0x1dd   : > { %v2753_v1 = vsel %vm4785_vm15, %v3523_v44, %v2752_v56  ;;  %v2756_v28 = vsel %vm4785_vm15, %v2754_v62, %v2755_v48  ;;  %v3524_v50 = vrot.slane %v2616_v46, 9  ;;  %v3515_v58 = vrot.slane %v2607_v14, 9 }
 0x1de   : > { %3875 = vmatmul.mubr.msk.bf16.gmra.mxu1 %vm313_vm0, %v3530_v8  ;;  %v2762_v8 = vrot.slane %v4765_v13, 5  ;;  %v3541_v23 = vcombine.low %v2753_v1, %v2756_v28  ;;  %v2761_v17 = vrot.slane %v2759_v37, 4  ;;  %v2700_v13 = vsel %vm4785_vm15, %v2698_v26, %v2699_v11 }
 0x1df   : > { %3878 = vmatprep.mubr.msk.bf16.mxu1 %vm313_vm0, %v3531_v40  ;;  %v2693_v40 = vsel %vm4785_vm15, %v2691_v16, %v2692_v43  ;;  %v2690_v4 = vsel %vm4785_vm15, %v3514_v49, %v2689_v45  ;;  %v2760_v34 = vsel %vm4785_vm15, %v3524_v50, %v2759_v37  ;;  %v2697_v61 = vsel %vm4785_vm15, %v3515_v58, %v2696_v7 }
 0x1e0   : > { %v2763_v43 = vsel %vm4785_vm15, %v2761_v17, %v2762_v8  ;;  %v3532_v57 = vcombine.low %v2690_v4, %v2693_v40  ;;  %v3533_v18 = vcombine.low %v2697_v61, %v2700_v13 }
 0x1e1   : > { %v3542_v21 = vcombine.low %v2760_v34, %v2763_v43 }
 0x1e6   : > { %3879 = vmatmul.mubr.msk.bf16.gmra.mxu1 %vm313_vm0, %v3532_v57 }
 0x1e7   : > { %3882 = vmatprep.mubr.msk.bf16.mxu1 %vm313_vm0, %v3533_v18 }
 0x1ee   : > { %3883 = vmatmul.mubr.msk.bf16.gmra.mxu1 %vm313_vm0, %v3534_v53 }
 0x1ef   : > { %3886 = vmatprep.mubr.msk.bf16.mxu1 %vm313_vm0, %v3535_v54 }
 0x1f6   : > { %3887 = vmatmul.mubr.msk.bf16.gmra.mxu1 %vm313_vm0, %v3536_v55 }
 0x1f7   : > { %3890 = vmatprep.mubr.msk.bf16.mxu1 %vm313_vm0, %v3537_v32 }
 0x1fe   : > { %3891 = vmatmul.mubr.msk.bf16.gmra.mxu1 %vm313_vm0, %v3538_v29 }
 0x1ff   : > { %3894 = vmatprep.mubr.msk.bf16.mxu1 %vm313_vm0, %v3539_v33 }
 0x206   : > { %3895 = vmatmul.mubr.msk.bf16.gmra.mxu1 %vm313_vm0, %v3540_v42 }
 0x207   : > { %3898 = vmatprep.mubr.msk.bf16.mxu1 %vm313_vm0, %v3541_v23 }
 0x20e   : > { %3899 = vmatmul.mubr.msk.bf16.gmra.mxu1 %vm313_vm0, %v3542_v21 }
 0x218   : > { %v3838_v3 = vpop.f32.mrf.mxu0 }
 0x21a   : > { %v2474_v36 = vpop.f32.mrf.mxu0 }
 0x21c   : > { %v3839_v5 = vpop.f32.mrf.mxu0 }
 0x21e   : > { %v2477_v55 = vpop.f32.mrf.mxu0 }
 0x22d   : > { %v3842_v15 = vpop.f32.mrf.mxu0 }
 0x22f   : > { %v2490_v25 = vpop.f32.mrf.mxu0 }
 0x231   : > { %v3843_v0 = vpop.f32.mrf.mxu0 }
 0x233   : > { %v2493_v19 = vpop.f32.mrf.mxu0 }
 0x238   : > { %v3804_v6 = vpop.f32.mrf.mxu1 }
 0x239   : > { %v2483_v26 = vadd.f32 %v3838_v3, %v3804_v6 }
 0x23a   : > { %v2179_v47 = vpop.f32.mrf.mxu1 }
 0x23b   : > { %v2475_v40 = vadd.f32 %v2474_v36, %v2179_v47 }
 0x23c   : > { %v3805_v39 = vpop.f32.mrf.mxu1 }
 0x23d   : > { %v2486_v17 = vadd.f32 %v3839_v5, %v3805_v39 }
 0x23e   : > { %v2182_v45 = vpop.f32.mrf.mxu1 }
 0x23f   : > { %v2478_v34 = vadd.f32 %v2477_v55, %v2182_v45 }
 0x241   : > { %v3846_v22 = vpop.f32.mrf.mxu0 }
 0x243   : > { %v2506_v2 = vpop.f32.mrf.mxu0 }
 0x245   : > { %v3847_v12 = vpop.f32.mrf.mxu0 }
 0x247   : > { %v4981_v29 = vpop.f32.mrf.mxu0 }
 0x24c   : > { %v3808_v7 = vpop.f32.mrf.mxu1 }
 0x24d   : > { %v2499_v61 = vadd.f32 %v3842_v15, %v3808_v7 }
 0x24e   : > { %v4947_v11 = vpop.f32.mrf.mxu1 }
 0x24f   : > { %v2491_v47 = vadd.f32 %v2490_v25, %v4947_v11 }
 0x250   : > { %v4949_v38 = vpop.f32.mrf.mxu1 }
 0x251   : > { %v2502_v3 = vadd.f32 %v3843_v0, %v4949_v38 }
 0x252   : > { %v4951_v53 = vpop.f32.mrf.mxu1 }
 0x253   : > { %v2494_v55 = vadd.f32 %v2493_v19, %v4951_v53 }
 0x256   : > { %v4987_v48 = vpop.f32.mrf.mxu0 }
 0x258   : > { %v4993_v63 = vpop.f32.mrf.mxu0 }
 0x25a   : > { %v4999_v16 = vpop.f32.mrf.mxu0 }
 0x25c   : > { %v5005_v37 = vpop.f32.mrf.mxu0 }
 0x25e   : > { %v5012_v1 = vpop.f32.mrf.mxu0 }
 0x260   : > { %v5026_v13 = vpop.f32.mrf.mxu0 }
 0x261   : > { %v4953_v54 = vpop.f32.mrf.mxu1 }
 0x262   : > { %v3855_v18 = vpop.f32.mrf.mxu0  ;;  %v2515_v25 = vadd.f32 %v3846_v22, %v4953_v54 }
 0x263   : > { %v4955_v59 = vpop.f32.mrf.mxu1 }
 0x264   : > { %v2541_v36 = vpop.f32.mrf.mxu0 }
 0x265   : > { %v4957_v41 = vpop.f32.mrf.mxu1 }
 0x267   : > { %v4959_v31 = vpop.f32.mrf.mxu1 }
 0x269   : > { %v3858_v0 = vpop.f32.mrf.mxu0 }
 0x26b   : > { %v4961_v35 = vpop.f32.mrf.mxu1  ;;  %v2554_v22 = vpop.f32.mrf.mxu0 }
 0x26d   : > { %v4963_v32 = vpop.f32.mrf.mxu1 }
 0x26f   : > { %v4965_v60 = vpop.f32.mrf.mxu1 }
 0x271   : > { %v4967_v20 = vpop.f32.mrf.mxu1 }
 0x274   : > { %v4969_v24 = vpop.f32.mrf.mxu1 }
 0x276   : > { %v4971_v30 = vpop.f32.mrf.mxu1 }
 0x278   : > { %v4973_v27 = vpop.f32.mrf.mxu1 }
 0x27a   : > { %v4975_v51 = vpop.f32.mrf.mxu1 }
 0x27d   : > { %v4977_v56 = vpop.f32.mrf.mxu1 }
 0x27f   : > { %v4979_v9 = vpop.f32.mrf.mxu1 }
 0x281   : > { %v4983_v52 = vpop.f32.mrf.mxu1 }
 0x283   : > { %v4985_v44 = vpop.f32.mrf.mxu1 }
 0x286   : > { %v4989_v33 = vpop.f32.mrf.mxu1 }
 0x288   : > { %v4991_v10 = vpop.f32.mrf.mxu1 }
 0x28a   : > { %v4995_v62 = vpop.f32.mrf.mxu1 }
 0x28c   : > { %v4997_v46 = vpop.f32.mrf.mxu1 }
 0x28e   : > { %v5001_v14 = vpop.f32.mrf.mxu1 }
 0x290   : > { %v5003_v42 = vpop.f32.mrf.mxu1 }
 0x292   : > { %v5007_v8 = vpop.f32.mrf.mxu1 }
 0x294   : > { %v5010_v49 = vpop.f32.mrf.mxu1 }
 0x296   : > { %v3872_v28 = vpop.f32.mrf.mxu1 }
 0x297   : > { %v5019_v23 = vadd.f32 %v3872_v28, %v2483_v26  ;;  %v2507_v28 = vadd.f32 %v2506_v2, %v4955_v59  ;;  %v2510_v59 = vadd.f32 %v4981_v29, %v4959_v31  ;;  %v2523_v31 = vadd.f32 %v4993_v63, %v4963_v32 }
 0x298   : > { %v2903_v50 = vpop.f32.mrf.mxu1  ;;  %v2526_v32 = vadd.f32 %v5005_v37, %v4967_v20  ;;  %v2539_v20 = vadd.f32 %v5026_v13, %v4971_v30 }
 0x299   : > { %3064 = vst.msk [vmem:[%s5017_s28 + $0x10] sm:$0xff] %vm313_vm0, %v5019_v23  ;;  %v5024_v58 = vadd.f32 %v2903_v50, %v2475_v40  ;;  %v2518_v40 = vadd.f32 %v3847_v12, %v4957_v41  ;;  %v2531_v41 = vadd.f32 %v4987_v48, %v4961_v35  ;;  %v2534_v35 = vadd.f32 %v4999_v16, %v4965_v60 }
 0x29a   : > { %v3873_v4 = vpop.f32.mrf.mxu1  ;;  %v2547_v60 = vadd.f32 %v5012_v1, %v4969_v24  ;;  %v2550_v24 = vadd.f32 %v3855_v18, %v4973_v27 }
 0x29b   : > { %3062 = vst.msk [vmem:[%s5017_s28] sm:$0xff] %vm313_vm0, %v5024_v58  ;;  %v5031_v43 = vadd.f32 %v3873_v4, %v2486_v17  ;;  %v3859_v4 = vpop.f32.mrf.mxu0 }
 0x29c   : > { %v2906_v57 = vpop.f32.mrf.mxu1 }
 0x29d   : > { %3065 = vst.msk [vmem:[%s5017_s28 + $0x18] sm:$0xff] %vm313_vm0, %v5031_v43  ;;  %v5036_v21 = vadd.f32 %v2906_v57, %v2478_v34 }
 0x29e   : > { %v3876_v6 = vpop.f32.mrf.mxu1 }
 0x29f   : > { %3063 = vst.msk [vmem:[%s5017_s28 + $0x8] sm:$0xff] %vm313_vm0, %v5036_v21  ;;  %v5042_v39 = vadd.f32 %v3876_v6, %v2499_v61  ;;  %v2557_v61 = vpop.f32.mrf.mxu0 }
 0x2a0   : > { %v2919_v45 = vpop.f32.mrf.mxu1 }
 0x2a1   : > { %3068 = vst.msk [vmem:[%s5017_s28 + $0x30] sm:$0xff] %vm313_vm0, %v5042_v39  ;;  %v5048_v7 = vadd.f32 %v2919_v45, %v2491_v47  ;;  %v3862_v45 = vpop.f32.mrf.mxu0 }
 0x2a2   : > { %v3877_v5 = vpop.f32.mrf.mxu1 }
 0x2a3   : > { %3066 = vst.msk [vmem:[%s5017_s28 + $0x20] sm:$0xff] %vm313_vm0, %v5048_v7  ;;  %v5054_v11 = vadd.f32 %v3877_v5, %v2502_v3 }
 0x2a4   : > { %v2922_v15 = vpop.f32.mrf.mxu1 }
 0x2a5   : > { %3069 = vst.msk [vmem:[%s5017_s28 + $0x38] sm:$0xff] %vm313_vm0, %v5054_v11  ;;  %v5060_v38 = vadd.f32 %v2922_v15, %v2494_v55  ;;  %v2570_v55 = vpop.f32.mrf.mxu0 }
 0x2a6   : > { %v3880_v26 = vpop.f32.mrf.mxu1 }
 0x2a7   : > { %3067 = vst.msk [vmem:[%s5017_s28 + $0x28] sm:$0xff] %vm313_vm0, %v5060_v38  ;;  %v5066_v53 = vadd.f32 %v3880_v26, %v2515_v25  ;;  %v2542_v25 = vadd.f32 %v2541_v36, %v4975_v51  ;;  %v2563_v26 = vadd.f32 %v3858_v0, %v4977_v56  ;;  %v3863_v18 = vpop.f32.mrf.mxu0 }
 0x2a8   : > { %v2935_v19 = vpop.f32.mrf.mxu1 }
 0x2a9   : > { %3072 = vst.msk [vmem:[%s5017_s28 + $0x50] sm:$0xff] %vm313_vm0, %v5066_v53  ;;  %v5072_v54 = vadd.f32 %v2935_v19, %v2507_v28  ;;  %v2555_v19 = vadd.f32 %v2554_v22, %v4979_v9  ;;  %v2573_v0 = vpop.f32.mrf.mxu0 }
 0x2aa   : > { %v3881_v50 = vpop.f32.mrf.mxu1 }
 0x2ab   : > { %3070 = vst.msk [vmem:[%s5017_s28 + $0x40] sm:$0xff] %vm313_vm0, %v5072_v54  ;;  %v5079_v2 = vadd.f32 %v3881_v50, %v2518_v40  ;;  %v2566_v40 = vadd.f32 %v3859_v4, %v4983_v52 }
 0x2ac   : > { %v2938_v17 = vpop.f32.mrf.mxu1 }
 0x2ad   : > { %3073 = vst.msk [vmem:[%s5017_s28 + $0x58] sm:$0xff] %vm313_vm0, %v5079_v2  ;;  %v5086_v12 = vadd.f32 %v2938_v17, %v2510_v59  ;;  %v2558_v59 = vadd.f32 %v2557_v61, %v4985_v44  ;;  %v2579_v17 = vadd.f32 %v3862_v45, %v4989_v33 }
 0x2ae   : > { %v3884_v34 = vpop.f32.mrf.mxu1 }
 0x2af   : > { %3071 = vst.msk [vmem:[%s5017_s28 + $0x48] sm:$0xff] %vm313_vm0, %v5086_v12  ;;  %v5093_v29 = vadd.f32 %v3884_v34, %v2531_v41  ;;  %v3866_v41 = vpop.f32.mrf.mxu0  ;;  %v2571_v34 = vadd.f32 %v2570_v55, %v4991_v10 }
 0x2b0   : > { %v2951_v57 = vpop.f32.mrf.mxu1 }
 0x2b1   : > { %3076 = vst.msk [vmem:[%s5017_s28 + $0x70] sm:$0xff] %vm313_vm0, %v5093_v29  ;;  %v5100_v48 = vadd.f32 %v2951_v57, %v2523_v31  ;;  %v2582_v57 = vadd.f32 %v3863_v18, %v4995_v62 }
 0x2b2   : > { %v3885_v6 = vpop.f32.mrf.mxu1 }
 0x2b3   : > { %3074 = vst.msk [vmem:[%s5017_s28 + $0x60] sm:$0xff] %vm313_vm0, %v5100_v48  ;;  %v5107_v63 = vadd.f32 %v3885_v6, %v2534_v35  ;;  %v2586_v35 = vpop.f32.mrf.mxu0  ;;  %v2574_v6 = vadd.f32 %v2573_v0, %v4997_v46 }
 0x2b4   : > { %v2954_v47 = vpop.f32.mrf.mxu1  ;;  %v2587_v46 = vadd.f32 %v2586_v35, %v5003_v42 }
 0x2b5   : > { %3077 = vst.msk [vmem:[%s5017_s28 + $0x78] sm:$0xff] %vm313_vm0, %v5107_v63  ;;  %v5114_v16 = vadd.f32 %v2954_v47, %v2526_v32  ;;  %v2595_v47 = vadd.f32 %v3866_v41, %v5001_v14 }
 0x2b6   : > { %v3888_v3 = vpop.f32.mrf.mxu1 }
 0x2b7   : > { %3075 = vst.msk [vmem:[%s5017_s28 + $0x68] sm:$0xff] %vm313_vm0, %v5114_v16  ;;  %v5121_v37 = vadd.f32 %v3888_v3, %v2547_v60  ;;  %v3867_v60 = vpop.f32.mrf.mxu0 }
 0x2b8   : > { %v2967_v5 = vpop.f32.mrf.mxu1 }
 0x2b9   : > { %3080 = vst.msk [vmem:[%s5017_s28 + $0x90] sm:$0xff] %vm313_vm0, %v5121_v37  ;;  %v5127_v1 = vadd.f32 %v2967_v5, %v2539_v20  ;;  %v2598_v5 = vadd.f32 %v3867_v60, %v5007_v8 }
 0x2ba   : > { %v3889_v15 = vpop.f32.mrf.mxu1 }
 0x2bb   : > { %3078 = vst.msk [vmem:[%s5017_s28 + $0x80] sm:$0xff] %vm313_vm0, %v5127_v1  ;;  %v5133_v30 = vadd.f32 %v3889_v15, %v2550_v24  ;;  %v2589_v24 = vpop.f32.mrf.mxu0 }
 0x2bc   : > { %v2970_v13 = vpop.f32.mrf.mxu1  ;;  %v2590_v15 = vadd.f32 %v2589_v24, %v5010_v49 }
 0x2bd   : > { %3081 = vst.msk [vmem:[%s5017_s28 + $0x98] sm:$0xff] %vm313_vm0, %v5133_v30  ;;  %v5139_v27 = vadd.f32 %v2970_v13, %v2542_v25 }
 0x2be   : > { %v3892_v28 = vpop.f32.mrf.mxu1 }
 0x2bf   : > { %3079 = vst.msk [vmem:[%s5017_s28 + $0x88] sm:$0xff] %vm313_vm0, %v5139_v27  ;;  %v5145_v51 = vadd.f32 %v3892_v28, %v2563_v26 }
 0x2c0   : > { %v2983_v36 = vpop.f32.mrf.mxu1 }
 0x2c1   : > { %3084 = vst.msk [vmem:[%s5017_s28 + $0xb0] sm:$0xff] %vm313_vm0, %v5145_v51  ;;  %v5151_v56 = vadd.f32 %v2983_v36, %v2555_v19 }
 0x2c2   : > { %v3893_v50 = vpop.f32.mrf.mxu1 }
 0x2c3   : > { %3082 = vst.msk [vmem:[%s5017_s28 + $0xa0] sm:$0xff] %vm313_vm0, %v5151_v56  ;;  %v5157_v9 = vadd.f32 %v3893_v50, %v2566_v40 }
 0x2c4   : > { %v2986_v22 = vpop.f32.mrf.mxu1 }
 0x2c5   : > { %3085 = vst.msk [vmem:[%s5017_s28 + $0xb8] sm:$0xff] %vm313_vm0, %v5157_v9  ;;  %v5163_v52 = vadd.f32 %v2986_v22, %v2558_v59 }
 0x2c6   : > { %v3896_v4 = vpop.f32.mrf.mxu1 }
 0x2c7   : > { %3083 = vst.msk [vmem:[%s5017_s28 + $0xa8] sm:$0xff] %vm313_vm0, %v5163_v52  ;;  %v5169_v44 = vadd.f32 %v3896_v4, %v2579_v17 }
 0x2c8   : > { %v2999_v31 = vpop.f32.mrf.mxu1 }
 0x2c9   : > { %3088 = vst.msk [vmem:[%s5017_s28 + $0xd0] sm:$0xff] %vm313_vm0, %v5169_v44  ;;  %v5175_v33 = vadd.f32 %v2999_v31, %v2571_v34 }
 0x2ca   : > { %v3897_v61 = vpop.f32.mrf.mxu1 }
 0x2cb   : > { %3086 = vst.msk [vmem:[%s5017_s28 + $0xc0] sm:$0xff] %vm313_vm0, %v5175_v33  ;;  %v5181_v10 = vadd.f32 %v3897_v61, %v2582_v57 }
 0x2cc   : > { %v3002_v32 = vpop.f32.mrf.mxu1 }
 0x2cd   : > { %3089 = vst.msk [vmem:[%s5017_s28 + $0xd8] sm:$0xff] %vm313_vm0, %v5181_v10  ;;  %v5187_v62 = vadd.f32 %v3002_v32, %v2574_v6 }
 0x2ce   : > { %v3900_v45 = vpop.f32.mrf.mxu1 }
 0x2cf   : > { %3087 = vst.msk [vmem:[%s5017_s28 + $0xc8] sm:$0xff] %vm313_vm0, %v5187_v62  ;;  %v5193_v3 = vadd.f32 %v3900_v45, %v2595_v47 }
 0x2d0   : > { %v3015_v20 = vpop.f32.mrf.mxu1 }
 0x2d1   : > { %3092 = vst.msk [vmem:[%s5017_s28 + $0xf0] sm:$0xff] %vm313_vm0, %v5193_v3  ;;  %v5199_v14 = vadd.f32 %v3015_v20, %v2587_v46 }
 0x2d2   : > { %v3901_v55 = vpop.f32.mrf.mxu1 }
 0x2d3   : > { %3090 = vst.msk [vmem:[%s5017_s28 + $0xe0] sm:$0xff] %vm313_vm0, %v5199_v14  ;;  %v5205_v42 = vadd.f32 %v3901_v55, %v2598_v5  ;;  %3097 = sbr.rel (%p3560_p4) target bundleno = 730 (0x2da), region = 40 }
 0x2d4   : > { %v3018_v25 = vpop.f32.mrf.mxu1 }
 0x2d5   : > { %3093 = vst.msk [vmem:[%s5017_s28 + $0xf8] sm:$0xff] %vm313_vm0, %v5205_v42  ;;  %v5210_v13 = vadd.f32 %v3018_v25, %v2590_v15 }
 0x2d7   : > { %3091 = vst.msk [vmem:[%s5017_s28 + $0xe8] sm:$0xff] %vm313_vm0, %v5210_v13 }
 0x2d8   : > { %v3947_v8 = vmov 0.0  }
 0x2d9   : > { %3099 = vst.msk [vmem:[%s5406_s5] sm:$0x1] %vm1396_vm4, %v3947_v8  ;;  %3100 = vst.msk [vmem:[%s5407_s6] sm:$0x1] %vm1396_vm4, %v3947_v8 }
 0x2da PF: > { %v3102_v49 = vsel %vm313_vm0, %v5024_v58, 0.0  ;;  %v3103_v26 = vsel %vm313_vm0, %v5036_v21, 0.0  ;;  %v3105_v18 = vsel %vm313_vm0, %v5019_v23, 0.0  ;;  %v3107_v19 = vsel %vm313_vm0, %v5031_v43, 0.0 }
 0x2db   : > { %v3104_v28 = vadd.f32 %v3103_v26, %v3102_v49  ;;  %v3109_v40 = vsel %vm313_vm0, %v5048_v7, 0.0  ;;  %v3111_v50 = vsel %vm313_vm0, %v5060_v38, 0.0  ;;  %v3113_v22 = vsel %vm313_vm0, %v5042_v39, 0.0 }
 0x2dc   : > { %v3115_v41 = vsel %vm313_vm0, %v5054_v11, 0.0  ;;  %v3117_v34 = vsel %vm313_vm0, %v5072_v54, 0.0  ;;  %v3119_v57 = vsel %vm313_vm0, %v5086_v12, 0.0  ;;  %v3175_v35 = vmul.f32 %v5024_v58, %v5024_v58 }
 0x2dd   : > { %v3106_v36 = vadd.f32 %v3105_v18, %v3104_v28  ;;  %v3176_v61 = vmul.f32 %v5036_v21, %v5036_v21  ;;  %v3177_v6 = vmul.f32 %v5019_v23, %v5019_v23  ;;  %v3121_v47 = vsel %vm313_vm0, %v5066_v53, 0.0 }
 0x2de   : > { %v3178_v60 = vmul.f32 %v5031_v43, %v5031_v43  ;;  %v3123_v46 = vsel %vm313_vm0, %v5079_v2, 0.0  ;;  %v3179_v58 = vmul.f32 %v5048_v7, %v5048_v7  ;;  %v3207_v20 = vsel %vm313_vm0, %v3175_v35, 0.0 }
 0x2df   : > { %v3108_v0 = vadd.f32 %v3107_v19, %v3106_v36  ;;  %v3208_v21 = vsel %vm313_vm0, %v3176_v61, 0.0  ;;  %v3210_v23 = vsel %vm313_vm0, %v3177_v6, 0.0  ;;  %v3125_v55 = vsel %vm313_vm0, %v5100_v48, 0.0 }
 0x2e0   : > { %v3209_v24 = vadd.f32 %v3208_v21, %v3207_v20  ;;  %v3180_v43 = vmul.f32 %v5060_v38, %v5060_v38  ;;  %v3212_v15 = vsel %vm313_vm0, %v3178_v60, 0.0  ;;  %v3127_v7 = vsel %vm313_vm0, %v5114_v16, 0.0 }
 0x2e1   : > { %v3110_v59 = vadd.f32 %v3109_v40, %v3108_v0  ;;  %v3181_v49 = vmul.f32 %v5042_v39, %v5042_v39  ;;  %v3214_v26 = vsel %vm313_vm0, %v3179_v58, 0.0  ;;  %v3129_v19 = vsel %vm313_vm0, %v5093_v29, 0.0 }
 0x2e2   : > { %v3211_v8 = vadd.f32 %v3210_v23, %v3209_v24  ;;  %v3182_v38 = vmul.f32 %v5054_v11, %v5054_v11  ;;  %v3216_v36 = vsel %vm313_vm0, %v3180_v43, 0.0  ;;  %v3183_v39 = vmul.f32 %v5072_v54, %v5072_v54 }
 0x2e3   : > { %v3112_v17 = vadd.f32 %v3111_v50, %v3110_v59  ;;  %v3131_v50 = vsel %vm313_vm0, %v5107_v63, 0.0  ;;  %v3218_v59 = vsel %vm313_vm0, %v3181_v49, 0.0  ;;  %v3184_v11 = vmul.f32 %v5086_v12, %v5086_v12 }
 0x2e4   : > { %v3213_v28 = vadd.f32 %v3212_v15, %v3211_v8  ;;  %v3185_v54 = vmul.f32 %v5066_v53, %v5066_v53  ;;  %v3222_v35 = vsel %vm313_vm0, %v3183_v39, 0.0  ;;  %v3186_v12 = vmul.f32 %v5079_v2, %v5079_v2 }
 0x2e5   : > { %v3114_v4 = vadd.f32 %v3113_v22, %v3112_v17  ;;  %v3187_v53 = vmul.f32 %v5100_v48, %v5100_v48  ;;  %v3141_v23 = vsel %vm313_vm0, %v5151_v56, 0.0  ;;  %v3188_v2 = vmul.f32 %v5114_v16, %v5114_v16 }
 0x2e6   : > { %v3215_v0 = vadd.f32 %v3214_v26, %v3213_v28  ;;  %v3226_v58 = vsel %vm313_vm0, %v3185_v54, 0.0  ;;  %v3143_v43 = vsel %vm313_vm0, %v5163_v52, 0.0  ;;  %v3189_v48 = vmul.f32 %v5093_v29, %v5093_v29 }
 0x2e7   : > { %v3116_v31 = vadd.f32 %v3115_v41, %v3114_v4  ;;  %v3133_v41 = vsel %vm313_vm0, %v5127_v1, 0.0  ;;  %v3220_v4 = vsel %vm313_vm0, %v3182_v38, 0.0  ;;  %v3230_v15 = vsel %vm313_vm0, %v3187_v53, 0.0 }
 0x2e8   : > { %v3217_v17 = vadd.f32 %v3216_v36, %v3215_v0  ;;  %v3190_v16 = vmul.f32 %v5107_v63, %v5107_v63  ;;  %v3232_v49 = vsel %vm313_vm0, %v3188_v2, 0.0  ;;  %v3147_v28 = vsel %vm313_vm0, %v5157_v9, 0.0 }
 0x2e9   : > { %v3118_v32 = vadd.f32 %v3117_v34, %v3116_v31  ;;  %v3191_v29 = vmul.f32 %v5127_v1, %v5127_v1  ;;  %v3192_v63 = vmul.f32 %v5139_v27, %v5139_v27  ;;  %v3193_v1 = vmul.f32 %v5121_v37, %v5121_v37 }
 0x2ea   : > { %v3219_v31 = vadd.f32 %v3218_v59, %v3217_v17  ;;  %v3236_v0 = vsel %vm313_vm0, %v3190_v16, 0.0  ;;  %v3151_v59 = vsel %vm313_vm0, %v5187_v62, 0.0  ;;  %v3163_v2 = vsel %vm313_vm0, %v5205_v42, 0.0 }
 0x2eb   : > { %v3120_v45 = vadd.f32 %v3119_v57, %v3118_v32  ;;  %v3135_v57 = vsel %vm313_vm0, %v5139_v27, 0.0  ;;  %v3137_v32 = vsel %vm313_vm0, %v5121_v37, 0.0  ;;  %v3194_v27 = vmul.f32 %v5133_v30, %v5133_v30 }
 0x2ec   : > { %v3221_v6 = vadd.f32 %v3220_v4, %v3219_v31  ;;  %v3240_v4 = vsel %vm313_vm0, %v3192_v63, 0.0  ;;  %v3195_v37 = vmul.f32 %v5151_v56, %v5151_v56  ;;  %v3242_v54 = vsel %vm313_vm0, %v3193_v1, 0.0 }
 0x2ed   : > { %v3122_v5 = vadd.f32 %v3121_v47, %v3120_v45  ;;  %v3224_v47 = vsel %vm313_vm0, %v3184_v11, 0.0  ;;  %v3153_v11 = vsel %vm313_vm0, %v5169_v44, 0.0  ;;  %v3197_v56 = vmul.f32 %v5145_v51, %v5145_v51 }
 0x2ee   : > { %v3223_v45 = vadd.f32 %v3222_v35, %v3221_v6  ;;  %v3157_v6 = vsel %vm313_vm0, %v5199_v14, 0.0 }
 0x2ef   : > { %v3124_v25 = vadd.f32 %v3123_v46, %v3122_v5  ;;  %v3139_v46 = vsel %vm313_vm0, %v5133_v30, 0.0  ;;  %v3228_v5 = vsel %vm313_vm0, %v3186_v12, 0.0  ;;  %v3196_v30 = vmul.f32 %v5163_v52, %v5163_v52 }
 0x2f0   : > { %v3225_v21 = vadd.f32 %v3224_v47, %v3223_v45  ;;  %v3246_v45 = vsel %vm313_vm0, %v3195_v37, 0.0  ;;  %v3198_v52 = vmul.f32 %v5157_v9, %v5157_v9  ;;  %v3174_v37 = vld [vmem:[%s5407_s6] sm:$0x1] }
 0x2f1   : > { %v3126_v18 = vadd.f32 %v3125_v55, %v3124_v25 }
 0x2f2   : > { %v3227_v55 = vadd.f32 %v3226_v58, %v3225_v21  ;;  %v3161_v58 = vsel %vm313_vm0, %v5193_v3, 0.0 }
 0x2f3   : > { %v3128_v40 = vadd.f32 %v3127_v7, %v3126_v18  ;;  %v3145_v7 = vsel %vm313_vm0, %v5145_v51, 0.0  ;;  %v3199_v51 = vmul.f32 %v5175_v33, %v5175_v33 }
 0x2f4   : > { %v3229_v8 = vadd.f32 %v3228_v5, %v3227_v55  ;;  %v3250_v5 = vsel %vm313_vm0, %v3197_v56, 0.0 }
 0x2f5   : > { %v3130_v22 = vadd.f32 %v3129_v19, %v3128_v40  ;;  %v3234_v19 = vsel %vm313_vm0, %v3189_v48, 0.0  ;;  %v3149_v40 = vsel %vm313_vm0, %v5175_v33, 0.0  ;;  %v3252_v48 = vsel %vm313_vm0, %v3198_v52, 0.0 }
 0x2f6   : > { %v3231_v18 = vadd.f32 %v3230_v15, %v3229_v8  ;;  %v3254_v8 = vsel %vm313_vm0, %v3199_v51, 0.0  ;;  %v3202_v33 = vmul.f32 %v5181_v10, %v5181_v10 }
 0x2f7   : > { %v3132_v34 = vadd.f32 %v3131_v50, %v3130_v22  ;;  %v3238_v22 = vsel %vm313_vm0, %v3191_v29, 0.0 }
 0x2f8   : > { %v3233_v36 = vadd.f32 %v3232_v49, %v3231_v18 }
 0x2f9   : > { %v3134_v61 = vadd.f32 %v3133_v41, %v3132_v34 }
 0x2fa   : > { %v3235_v39 = vadd.f32 %v3234_v19, %v3233_v36 }
 0x2fb   : > { %v3136_v60 = vadd.f32 %v3135_v57, %v3134_v61  ;;  %v3155_v57 = vsel %vm313_vm0, %v5181_v10, 0.0  ;;  %v3205_v10 = vmul.f32 %v5193_v3, %v5193_v3 }
 0x2fc   : > { %v3237_v41 = vadd.f32 %v3236_v0, %v3235_v39  ;;  %v3206_v39 = vmul.f32 %v5205_v42, %v5205_v42 }
 0x2fd   : > { %v3138_v20 = vadd.f32 %v3137_v32, %v3136_v60  ;;  %v3244_v32 = vsel %vm313_vm0, %v3194_v27, 0.0  ;;  %v3159_v60 = vsel %vm313_vm0, %v5210_v13, 0.0 }
 0x2fe   : > { %v3239_v31 = vadd.f32 %v3238_v22, %v3237_v41  ;;  %v3266_v22 = vsel %vm313_vm0, %v3205_v10, 0.0  ;;  %v3268_v3 = vsel %vm313_vm0, %v3206_v39, 0.0 }
 0x2ff   : > { %v3140_v24 = vadd.f32 %v3139_v46, %v3138_v20  ;;  %v3248_v20 = vsel %vm313_vm0, %v3196_v30, 0.0 }
 0x300   : > { %v3241_v61 = vadd.f32 %v3240_v4, %v3239_v31 }
 0x301   : > { %v3142_v25 = vadd.f32 %v3141_v23, %v3140_v24 }
 0x302   : > { %v3243_v47 = vadd.f32 %v3242_v54, %v3241_v61 }
 0x303   : > { %v3144_v26 = vadd.f32 %v3143_v43, %v3142_v25  ;;  %v3200_v43 = vmul.f32 %v5187_v62, %v5187_v62  ;;  %v3201_v25 = vmul.f32 %v5169_v44, %v5169_v44  ;;  %v3203_v62 = vmul.f32 %v5199_v14, %v5199_v14  ;;  %v3101_v14 = vld [vmem:[%s5406_s5] sm:$0x1] }
 0x304   : > { %v3245_v53 = vadd.f32 %v3244_v32, %v3243_v47  ;;  %v3204_v44 = vmul.f32 %v5210_v13, %v5210_v13 }
 0x305   : > { %v3146_v38 = vadd.f32 %v3145_v7, %v3144_v26  ;;  %v3256_v49 = vsel %vm313_vm0, %v3200_v43, 0.0  ;;  %v3262_v63 = vsel %vm313_vm0, %v3203_v62, 0.0 }
 0x306   : > { %v3247_v23 = vadd.f32 %v3246_v45, %v3245_v53  ;;  %v3264_v13 = vsel %vm313_vm0, %v3204_v44, 0.0 }
 0x307   : > { %v3148_v50 = vadd.f32 %v3147_v28, %v3146_v38  ;;  %v3258_v28 = vsel %vm313_vm0, %v3201_v25, 0.0  ;;  %v3260_v38 = vsel %vm313_vm0, %v3202_v33, 0.0 }
 0x308   : > { %v3249_v55 = vadd.f32 %v3248_v20, %v3247_v23 }
 0x309   : > { %v3150_v17 = vadd.f32 %v3149_v40, %v3148_v50 }
 0x30a   : > { %v3251_v15 = vadd.f32 %v3250_v5, %v3249_v55 }
 0x30b   : > { %v3152_v34 = vadd.f32 %v3151_v59, %v3150_v17 }
 0x30c   : > { %v3253_v16 = vadd.f32 %v3252_v48, %v3251_v15 }
 0x30d   : > { %v3154_v35 = vadd.f32 %v3153_v11, %v3152_v34 }
 0x30e   : > { %v3255_v18 = vadd.f32 %v3254_v8, %v3253_v16 }
 0x30f   : > { %v3156_v12 = vadd.f32 %v3155_v57, %v3154_v35 }
 0x310   : > { %v3257_v19 = vadd.f32 %v3256_v49, %v3255_v18 }
 0x311   : > { %v3158_v46 = vadd.f32 %v3157_v6, %v3156_v12 }
 0x312   : > { %v3259_v40 = vadd.f32 %v3258_v28, %v3257_v19 }
 0x313   : > { %v3160_v21 = vadd.f32 %v3159_v60, %v3158_v46 }
 0x314   : > { %v3261_v50 = vadd.f32 %v3260_v38, %v3259_v40 }
 0x315   : > { %v3162_v24 = vadd.f32 %v3161_v58, %v3160_v21 }
 0x316   : > { %v3263_v1 = vadd.f32 %v3262_v63, %v3261_v50 }
 0x317   : > { %v3164_v9 = vadd.f32 %v3163_v2, %v3162_v24 }
 0x318   : > { %v3265_v41 = vadd.f32 %v3264_v13, %v3263_v1 }
 0x319   : > { %v3165_v7 = vrot.slane %v3164_v9, 4 }
 0x31a   : > { %v3267_v11 = vadd.f32 %v3266_v22, %v3265_v41 }
 0x31b   : > { %v3166_v26 = vadd.f32 %v3165_v7, %v3164_v9 }
 0x31c   : > { %v3269_v27 = vadd.f32 %v3268_v3, %v3267_v11 }
 0x31d   : > { %v3167_v29 = vrot.slane %v3166_v26, 2 }
 0x31e   : > { %v3270_v4 = vrot.slane %v3269_v27, 4 }
 0x31f   : > { %v3168_v36 = vadd.f32 %v3167_v29, %v3166_v26 }
 0x320   : > { %v3271_v34 = vadd.f32 %v3270_v4, %v3269_v27 }
 0x321   : > { %v3169_v0 = vrot.slane %v3168_v36, 1 }
 0x322   : > { %v3272_v42 = vrot.slane %v3271_v34, 2 }
 0x323   : > { %v3170_v59 = vadd.f32 %v3169_v0, %v3168_v36 }
 0x324   : > { %v3273_v31 = vadd.f32 %v3272_v42, %v3271_v34 }
 0x325   : > { %v3171_v17 = vadd.f32 %v3170_v59, %v3101_v14 }
 0x326   : > { %v3274_v57 = vrot.slane %v3273_v31, 1 }
 0x327   : > { %3173 = vst.msk [vmem:[%s5406_s5] sm:$0x1] %vm1396_vm4, %v3171_v17 }
 0x328   : > { %v3275_v54 = vadd.f32 %v3274_v57, %v3273_v31 }
 0x32a   : > { %v3276_v35 = vadd.f32 %v3275_v54, %v3174_v37 }
 0x32c   : > { %3277 = vst.msk [vmem:[%s5407_s6] sm:$0x1] %vm1396_vm4, %v3276_v35 }
 0x32d PF: > { %s17_s21 = sadd.s32 1, %s3945_s21  }
 0x32e   : > { %p14_p5 = scmp.ge.s32.totalorder %s17_s21, 4  }
 0x330   :  { %16 = sbr.rel (!%p14_p5) target bundleno = 1 (0x1), region = 90 }

// kernel: decoder_traversability.41
= control target key start
LH: loop header
LB: loop body
LE: loop exit
PB: predicated region body
PF: predicated region fallthrough
CT: control target
= control target key end

     0   :  { %vm134_vm0 = vcmask 261120   ;;  %vm520_vm1 = vcmask 31744   ;;  %s1307_s1 = inlined_call_operand.vmem [shape: bf16[32,4], index: 1, kind: input, shape index: {}]   ;;  %s1308_s0 = inlined_call_operand.vmem [shape: f32[512,32], index: 0, kind: input, shape index: {}]   ;;  %s1309_s2 = inlined_call_operand.vmem [shape: f32[1,4], index: 2, kind: input, shape index: {}]   ;;  %s1310_s3 = inlined_call_operand.vmem [shape: f32[512,4], index: 3, kind: output, shape index: {}]  }
   0x1   :  { %v730_v0 = vld [vmem:[%s1307_s1 + $0x8] sm:$0xff]   ;;  %v731_v1 = vld [vmem:[%s1307_s1] sm:$0xff]   ;;  %v17_v7 = vld [vmem:[%s1308_s0 + $0x10] sm:$0xff] }
   0x2   :  { %658 = vmatprep.subr.bf16.mxu0 %v730_v0  ;;  %726 = vmatprep.subr.bf16.mxu1 %v730_v0  ;;  %v15_v2 = vld [vmem:[%s1308_s0] sm:$0xff]  ;;  %v16_v3 = vld [vmem:[%s1308_s0 + $0x8] sm:$0xff]  ;;  %v18_v8 = vld [vmem:[%s1308_s0 + $0x18] sm:$0xff] }
   0x3   :  { %v47_v4 = vld [vmem:[%s1308_s0 + $0x100] sm:$0xff]  ;;  %659 = vmatpush3.bf16.msra.mxu0 %v730_v0  ;;  %728 = vmatpush3.bf16.msra.mxu1 %v730_v0  ;;  %v79_v5 = vpack.c.bf16 %v16_v3, %v15_v2  ;;  %v48_v6 = vld [vmem:[%s1308_s0 + $0x108] sm:$0xff]  ;;  %v49_v10 = vld [vmem:[%s1308_s0 + $0x110] sm:$0xff]  ;;  %v80_v16 = vpack.c.bf16 %v18_v8, %v17_v7 }
   0x4   :  { %660 = vmatprep.subr.bf16.mxu0 %v731_v1  ;;  %727 = vmatprep.subr.bf16.mxu1 %v731_v1  ;;  %v95_v9 = vpack.c.bf16 %v48_v6, %v47_v4  ;;  %v50_v11 = vld [vmem:[%s1308_s0 + $0x118] sm:$0xff]  ;;  %v19_v12 = vld [vmem:[%s1308_s0 + $0x20] sm:$0xff]  ;;  %v20_v13 = vld [vmem:[%s1308_s0 + $0x28] sm:$0xff] }
   0x5   :  { %662 = vmatprep.mubr.msk.bf16.mxu0 %vm134_vm0, %v79_v5  ;;  %v51_v14 = vld [vmem:[%s1308_s0 + $0x120] sm:$0xff]  ;;  %v52_v15 = vld [vmem:[%s1308_s0 + $0x128] sm:$0xff]  ;;  %v96_v17 = vpack.c.bf16 %v50_v11, %v49_v10  ;;  %v81_v18 = vpack.c.bf16 %v20_v13, %v19_v12  ;;  %v21_v20 = vld [vmem:[%s1308_s0 + $0x30] sm:$0xff] }
   0x6   :  { %694 = vmatprep.mubr.msk.bf16.mxu1 %vm134_vm0, %v95_v9  ;;  %v97_v19 = vpack.c.bf16 %v52_v15, %v51_v14  ;;  %v22_v21 = vld [vmem:[%s1308_s0 + $0x38] sm:$0xff]  ;;  %v53_v22 = vld [vmem:[%s1308_s0 + $0x130] sm:$0xff]  ;;  %v23_v24 = vld [vmem:[%s1308_s0 + $0x40] sm:$0xff] }
   0x7   :  { %661 = vmatpush3.bf16.msra.mxu0 %v731_v1  ;;  %729 = vmatpush3.bf16.msra.mxu1 %v731_v1  ;;  %v54_v23 = vld [vmem:[%s1308_s0 + $0x138] sm:$0xff]  ;;  %v24_v25 = vld [vmem:[%s1308_s0 + $0x48] sm:$0xff]  ;;  %v55_v26 = vld [vmem:[%s1308_s0 + $0x140] sm:$0xff]  ;;  %v82_v28 = vpack.c.bf16 %v22_v21, %v21_v20 }
   0x8   :  { %v56_v27 = vld [vmem:[%s1308_s0 + $0x148] sm:$0xff]  ;;  %v98_v29 = vpack.c.bf16 %v54_v23, %v53_v22  ;;  %v83_v30 = vpack.c.bf16 %v24_v25, %v23_v24  ;;  %v25_v32 = vld [vmem:[%s1308_s0 + $0x50] sm:$0xff]  ;;  %v26_v33 = vld [vmem:[%s1308_s0 + $0x58] sm:$0xff] }
   0x9   :  { %v99_v31 = vpack.c.bf16 %v56_v27, %v55_v26  ;;  %v57_v34 = vld [vmem:[%s1308_s0 + $0x150] sm:$0xff]  ;;  %v58_v35 = vld [vmem:[%s1308_s0 + $0x158] sm:$0xff]  ;;  %v27_v36 = vld [vmem:[%s1308_s0 + $0x60] sm:$0xff]  ;;  %v84_v40 = vpack.c.bf16 %v26_v33, %v25_v32 }
   0xa   :  { %663 = vmatmul.mubr.msk.bf16.vlgmr.msra.gmra.mxu0 %vm134_vm0, %v80_v16  ;;  %695 = vmatmul.mubr.msk.bf16.vlgmr.msra.gmra.mxu1 %vm134_vm0, %v96_v17  ;;  %v28_v37 = vld [vmem:[%s1308_s0 + $0x68] sm:$0xff]  ;;  %v59_v38 = vld [vmem:[%s1308_s0 + $0x160] sm:$0xff]  ;;  %v100_v41 = vpack.c.bf16 %v58_v35, %v57_v34  ;;  %v29_v44 = vld [vmem:[%s1308_s0 + $0x70] sm:$0xff] }
   0xb   :  { %666 = vmatprep.mubr.msk.bf16.mxu0 %vm134_vm0, %v81_v18  ;;  %698 = vmatprep.mubr.msk.bf16.mxu1 %vm134_vm0, %v97_v19  ;;  %v60_v39 = vld [vmem:[%s1308_s0 + $0x168] sm:$0xff]  ;;  %v85_v42 = vpack.c.bf16 %v28_v37, %v27_v36  ;;  %v30_v45 = vld [vmem:[%s1308_s0 + $0x78] sm:$0xff]  ;;  %v61_v46 = vld [vmem:[%s1308_s0 + $0x170] sm:$0xff] }
   0xc   :  { %v101_v43 = vpack.c.bf16 %v60_v39, %v59_v38  ;;  %v62_v47 = vld [vmem:[%s1308_s0 + $0x178] sm:$0xff]  ;;  %v31_v48 = vld [vmem:[%s1308_s0 + $0x80] sm:$0xff]  ;;  %v32_v49 = vld [vmem:[%s1308_s0 + $0x88] sm:$0xff]  ;;  %v86_v52 = vpack.c.bf16 %v30_v45, %v29_v44 }
   0xd   :  { %v63_v50 = vld [vmem:[%s1308_s0 + $0x180] sm:$0xff]  ;;  %v64_v51 = vld [vmem:[%s1308_s0 + $0x188] sm:$0xff]  ;;  %v102_v53 = vpack.c.bf16 %v62_v47, %v61_v46  ;;  %v87_v54 = vpack.c.bf16 %v32_v49, %v31_v48  ;;  %v33_v56 = vld [vmem:[%s1308_s0 + $0x90] sm:$0xff] }
   0xe   :  { %v103_v55 = vpack.c.bf16 %v64_v51, %v63_v50  ;;  %v34_v57 = vld [vmem:[%s1308_s0 + $0x98] sm:$0xff]  ;;  %v65_v58 = vld [vmem:[%s1308_s0 + $0x190] sm:$0xff]  ;;  %v35_v60 = vld [vmem:[%s1308_s0 + $0xa0] sm:$0xff] }
   0xf   :  { %v66_v59 = vld [vmem:[%s1308_s0 + $0x198] sm:$0xff]  ;;  %v36_v61 = vld [vmem:[%s1308_s0 + $0xa8] sm:$0xff]  ;;  %v67_v62 = vld [vmem:[%s1308_s0 + $0x1a0] sm:$0xff]  ;;  %v88_v0 = vpack.c.bf16 %v34_v57, %v33_v56 }
  0x10   :  { %v68_v63 = vld [vmem:[%s1308_s0 + $0x1a8] sm:$0xff]  ;;  %v104_v1 = vpack.c.bf16 %v66_v59, %v65_v58  ;;  %v89_v2 = vpack.c.bf16 %v36_v61, %v35_v60  ;;  %v37_v4 = vld [vmem:[%s1308_s0 + $0xb0] sm:$0xff]  ;;  %v38_v5 = vld [vmem:[%s1308_s0 + $0xb8] sm:$0xff] }
  0x11   :  { %v105_v3 = vpack.c.bf16 %v68_v63, %v67_v62  ;;  %v69_v6 = vld [vmem:[%s1308_s0 + $0x1b0] sm:$0xff]  ;;  %v70_v7 = vld [vmem:[%s1308_s0 + $0x1b8] sm:$0xff]  ;;  %v39_v8 = vld [vmem:[%s1308_s0 + $0xc0] sm:$0xff]  ;;  %v90_v12 = vpack.c.bf16 %v38_v5, %v37_v4 }
  0x12   :  { %667 = vmatmul.mubr.msk.bf16.gmra.mxu0 %vm134_vm0, %v82_v28  ;;  %699 = vmatmul.mubr.msk.bf16.gmra.mxu1 %vm134_vm0, %v98_v29  ;;  %v40_v9 = vld [vmem:[%s1308_s0 + $0xc8] sm:$0xff]  ;;  %v71_v10 = vld [vmem:[%s1308_s0 + $0x1c0] sm:$0xff]  ;;  %v106_v13 = vpack.c.bf16 %v70_v7, %v69_v6  ;;  %v41_v16 = vld [vmem:[%s1308_s0 + $0xd0] sm:$0xff] }
  0x13   :  { %670 = vmatprep.mubr.msk.bf16.mxu0 %vm134_vm0, %v83_v30  ;;  %702 = vmatprep.mubr.msk.bf16.mxu1 %vm134_vm0, %v99_v31  ;;  %v72_v11 = vld [vmem:[%s1308_s0 + $0x1c8] sm:$0xff]  ;;  %v91_v14 = vpack.c.bf16 %v40_v9, %v39_v8  ;;  %v42_v17 = vld [vmem:[%s1308_s0 + $0xd8] sm:$0xff]  ;;  %v73_v18 = vld [vmem:[%s1308_s0 + $0x1d0] sm:$0xff] }
  0x14   :  { %v107_v15 = vpack.c.bf16 %v72_v11, %v71_v10  ;;  %v74_v19 = vld [vmem:[%s1308_s0 + $0x1d8] sm:$0xff]  ;;  %v43_v20 = vld [vmem:[%s1308_s0 + $0xe0] sm:$0xff]  ;;  %v44_v21 = vld [vmem:[%s1308_s0 + $0xe8] sm:$0xff]  ;;  %v92_v24 = vpack.c.bf16 %v42_v17, %v41_v16 }
  0x15   :  { %v75_v22 = vld [vmem:[%s1308_s0 + $0x1e0] sm:$0xff]  ;;  %v76_v23 = vld [vmem:[%s1308_s0 + $0x1e8] sm:$0xff]  ;;  %v108_v25 = vpack.c.bf16 %v74_v19, %v73_v18  ;;  %v93_v26 = vpack.c.bf16 %v44_v21, %v43_v20  ;;  %v45_v28 = vld [vmem:[%s1308_s0 + $0xf0] sm:$0xff] }
  0x16   :  { %v109_v27 = vpack.c.bf16 %v76_v23, %v75_v22  ;;  %v46_v29 = vld [vmem:[%s1308_s0 + $0xf8] sm:$0xff]  ;;  %v77_v30 = vld [vmem:[%s1308_s0 + $0x1f0] sm:$0xff]  ;;  %v985_v34 = vld [vmem:[%s1309_s2] ss:$0 sm:$0xff] }
  0x17   :  { %v78_v31 = vld [vmem:[%s1308_s0 + $0x1f8] sm:$0xff]  ;;  %v94_v32 = vpack.c.bf16 %v46_v29, %v45_v28 }
  0x18   :  { %v110_v33 = vpack.c.bf16 %v78_v31, %v77_v30 }
  0x1a   :  { %671 = vmatmul.mubr.msk.bf16.gmra.mxu0 %vm134_vm0, %v84_v40  ;;  %703 = vmatmul.mubr.msk.bf16.gmra.mxu1 %vm134_vm0, %v100_v41 }
  0x1b   :  { %674 = vmatprep.mubr.msk.bf16.mxu0 %vm134_vm0, %v85_v42  ;;  %706 = vmatprep.mubr.msk.bf16.mxu1 %vm134_vm0, %v101_v43 }
  0x22   :  { %675 = vmatmul.mubr.msk.bf16.gmra.mxu0 %vm134_vm0, %v86_v52  ;;  %707 = vmatmul.mubr.msk.bf16.gmra.mxu1 %vm134_vm0, %v102_v53 }
  0x23   :  { %678 = vmatprep.mubr.msk.bf16.mxu0 %vm134_vm0, %v87_v54  ;;  %710 = vmatprep.mubr.msk.bf16.mxu1 %vm134_vm0, %v103_v55 }
  0x2a   :  { %679 = vmatmul.mubr.msk.bf16.gmra.mxu0 %vm134_vm0, %v88_v0  ;;  %711 = vmatmul.mubr.msk.bf16.gmra.mxu1 %vm134_vm0, %v104_v1 }
  0x2b   :  { %682 = vmatprep.mubr.msk.bf16.mxu0 %vm134_vm0, %v89_v2  ;;  %714 = vmatprep.mubr.msk.bf16.mxu1 %vm134_vm0, %v105_v3 }
  0x32   :  { %683 = vmatmul.mubr.msk.bf16.gmra.mxu0 %vm134_vm0, %v90_v12  ;;  %715 = vmatmul.mubr.msk.bf16.gmra.mxu1 %vm134_vm0, %v106_v13 }
  0x33   :  { %686 = vmatprep.mubr.msk.bf16.mxu0 %vm134_vm0, %v91_v14  ;;  %718 = vmatprep.mubr.msk.bf16.mxu1 %vm134_vm0, %v107_v15 }
  0x3a   :  { %687 = vmatmul.mubr.msk.bf16.gmra.mxu0 %vm134_vm0, %v92_v24  ;;  %719 = vmatmul.mubr.msk.bf16.gmra.mxu1 %vm134_vm0, %v108_v25 }
  0x3b   :  { %690 = vmatprep.mubr.msk.bf16.mxu0 %vm134_vm0, %v93_v26  ;;  %722 = vmatprep.mubr.msk.bf16.mxu1 %vm134_vm0, %v109_v27 }
  0x42   :  { %691 = vmatmul.mubr.msk.bf16.gmra.mxu0 %vm134_vm0, %v94_v32  ;;  %723 = vmatmul.mubr.msk.bf16.gmra.mxu1 %vm134_vm0, %v110_v33 }
  0xca   :  { %v664_v35 = vpop.f32.mrf.mxu0  ;;  %v696_v36 = vpop.f32.mrf.mxu1 }
  0xcb   :  { %v274_v37 = vadd.f32 %v664_v35, %v985_v34  ;;  %v402_v38 = vadd.f32 %v696_v36, %v985_v34 }
  0xcc   :  { %v265_v39 = vpop.f32.mrf.mxu0  ;;  %v393_v40 = vpop.f32.mrf.mxu1 }
  0xcd   :  { %523 = vst.msk [vmem:[%s1310_s3 + $0x10] sm:$0xff] %vm520_vm1, %v274_v37  ;;  %555 = vst.msk [vmem:[%s1310_s3 + $0x110] sm:$0xff] %vm520_vm1, %v402_v38  ;;  %v266_v41 = vadd.f32 %v985_v34, %v265_v39  ;;  %v394_v42 = vadd.f32 %v985_v34, %v393_v40 }
  0xce   :  { %v665_v43 = vpop.f32.mrf.mxu0  ;;  %v697_v44 = vpop.f32.mrf.mxu1 }
  0xcf   :  { %521 = vst.msk [vmem:[%s1310_s3] sm:$0xff] %vm520_vm1, %v266_v41  ;;  %553 = vst.msk [vmem:[%s1310_s3 + $0x100] sm:$0xff] %vm520_vm1, %v394_v42  ;;  %v277_v45 = vadd.f32 %v665_v43, %v985_v34  ;;  %v405_v46 = vadd.f32 %v697_v44, %v985_v34 }
  0xd0   :  { %v268_v47 = vpop.f32.mrf.mxu0  ;;  %v396_v48 = vpop.f32.mrf.mxu1 }
  0xd1   :  { %524 = vst.msk [vmem:[%s1310_s3 + $0x18] sm:$0xff] %vm520_vm1, %v277_v45  ;;  %556 = vst.msk [vmem:[%s1310_s3 + $0x118] sm:$0xff] %vm520_vm1, %v405_v46  ;;  %v269_v49 = vadd.f32 %v985_v34, %v268_v47  ;;  %v397_v50 = vadd.f32 %v985_v34, %v396_v48 }
  0xd2   :  { %v668_v51 = vpop.f32.mrf.mxu0  ;;  %v700_v52 = vpop.f32.mrf.mxu1 }
  0xd3   :  { %522 = vst.msk [vmem:[%s1310_s3 + $0x8] sm:$0xff] %vm520_vm1, %v269_v49  ;;  %554 = vst.msk [vmem:[%s1310_s3 + $0x108] sm:$0xff] %vm520_vm1, %v397_v50  ;;  %v290_v53 = vadd.f32 %v668_v51, %v985_v34  ;;  %v418_v54 = vadd.f32 %v700_v52, %v985_v34 }
  0xd4   :  { %v281_v55 = vpop.f32.mrf.mxu0  ;;  %v409_v56 = vpop.f32.mrf.mxu1 }
  0xd5   :  { %527 = vst.msk [vmem:[%s1310_s3 + $0x30] sm:$0xff] %vm520_vm1, %v290_v53  ;;  %559 = vst.msk [vmem:[%s1310_s3 + $0x130] sm:$0xff] %vm520_vm1, %v418_v54  ;;  %v282_v57 = vadd.f32 %v985_v34, %v281_v55  ;;  %v410_v58 = vadd.f32 %v985_v34, %v409_v56 }
  0xd6   :  { %v669_v59 = vpop.f32.mrf.mxu0  ;;  %v701_v60 = vpop.f32.mrf.mxu1 }
  0xd7   :  { %525 = vst.msk [vmem:[%s1310_s3 + $0x20] sm:$0xff] %vm520_vm1, %v282_v57  ;;  %557 = vst.msk [vmem:[%s1310_s3 + $0x120] sm:$0xff] %vm520_vm1, %v410_v58  ;;  %v293_v61 = vadd.f32 %v669_v59, %v985_v34  ;;  %v421_v62 = vadd.f32 %v701_v60, %v985_v34 }
  0xd8   :  { %v284_v63 = vpop.f32.mrf.mxu0  ;;  %v412_v0 = vpop.f32.mrf.mxu1 }
  0xd9   :  { %528 = vst.msk [vmem:[%s1310_s3 + $0x38] sm:$0xff] %vm520_vm1, %v293_v61  ;;  %560 = vst.msk [vmem:[%s1310_s3 + $0x138] sm:$0xff] %vm520_vm1, %v421_v62  ;;  %v285_v1 = vadd.f32 %v985_v34, %v284_v63  ;;  %v413_v2 = vadd.f32 %v985_v34, %v412_v0 }
  0xda   :  { %v672_v3 = vpop.f32.mrf.mxu0  ;;  %v704_v4 = vpop.f32.mrf.mxu1 }
  0xdb   :  { %526 = vst.msk [vmem:[%s1310_s3 + $0x28] sm:$0xff] %vm520_vm1, %v285_v1  ;;  %558 = vst.msk [vmem:[%s1310_s3 + $0x128] sm:$0xff] %vm520_vm1, %v413_v2  ;;  %v306_v5 = vadd.f32 %v672_v3, %v985_v34  ;;  %v434_v6 = vadd.f32 %v704_v4, %v985_v34 }
  0xdc   :  { %v297_v7 = vpop.f32.mrf.mxu0  ;;  %v425_v8 = vpop.f32.mrf.mxu1 }
  0xdd   :  { %531 = vst.msk [vmem:[%s1310_s3 + $0x50] sm:$0xff] %vm520_vm1, %v306_v5  ;;  %563 = vst.msk [vmem:[%s1310_s3 + $0x150] sm:$0xff] %vm520_vm1, %v434_v6  ;;  %v298_v9 = vadd.f32 %v985_v34, %v297_v7  ;;  %v426_v10 = vadd.f32 %v985_v34, %v425_v8 }
  0xde   :  { %v673_v11 = vpop.f32.mrf.mxu0  ;;  %v705_v12 = vpop.f32.mrf.mxu1 }
  0xdf   :  { %529 = vst.msk [vmem:[%s1310_s3 + $0x40] sm:$0xff] %vm520_vm1, %v298_v9  ;;  %561 = vst.msk [vmem:[%s1310_s3 + $0x140] sm:$0xff] %vm520_vm1, %v426_v10  ;;  %v309_v13 = vadd.f32 %v673_v11, %v985_v34  ;;  %v437_v14 = vadd.f32 %v705_v12, %v985_v34 }
  0xe0   :  { %v300_v15 = vpop.f32.mrf.mxu0  ;;  %v428_v16 = vpop.f32.mrf.mxu1 }
  0xe1   :  { %532 = vst.msk [vmem:[%s1310_s3 + $0x58] sm:$0xff] %vm520_vm1, %v309_v13  ;;  %564 = vst.msk [vmem:[%s1310_s3 + $0x158] sm:$0xff] %vm520_vm1, %v437_v14  ;;  %v301_v17 = vadd.f32 %v985_v34, %v300_v15  ;;  %v429_v18 = vadd.f32 %v985_v34, %v428_v16 }
  0xe2   :  { %v676_v19 = vpop.f32.mrf.mxu0  ;;  %v708_v20 = vpop.f32.mrf.mxu1 }
  0xe3   :  { %530 = vst.msk [vmem:[%s1310_s3 + $0x48] sm:$0xff] %vm520_vm1, %v301_v17  ;;  %562 = vst.msk [vmem:[%s1310_s3 + $0x148] sm:$0xff] %vm520_vm1, %v429_v18  ;;  %v322_v21 = vadd.f32 %v676_v19, %v985_v34  ;;  %v450_v22 = vadd.f32 %v708_v20, %v985_v34 }
  0xe4   :  { %v313_v23 = vpop.f32.mrf.mxu0  ;;  %v441_v24 = vpop.f32.mrf.mxu1 }
  0xe5   :  { %535 = vst.msk [vmem:[%s1310_s3 + $0x70] sm:$0xff] %vm520_vm1, %v322_v21  ;;  %567 = vst.msk [vmem:[%s1310_s3 + $0x170] sm:$0xff] %vm520_vm1, %v450_v22  ;;  %v314_v25 = vadd.f32 %v985_v34, %v313_v23  ;;  %v442_v26 = vadd.f32 %v985_v34, %v441_v24 }
  0xe6   :  { %v677_v27 = vpop.f32.mrf.mxu0  ;;  %v709_v28 = vpop.f32.mrf.mxu1 }
  0xe7   :  { %533 = vst.msk [vmem:[%s1310_s3 + $0x60] sm:$0xff] %vm520_vm1, %v314_v25  ;;  %565 = vst.msk [vmem:[%s1310_s3 + $0x160] sm:$0xff] %vm520_vm1, %v442_v26  ;;  %v325_v29 = vadd.f32 %v677_v27, %v985_v34  ;;  %v453_v30 = vadd.f32 %v709_v28, %v985_v34 }
  0xe8   :  { %v316_v31 = vpop.f32.mrf.mxu0  ;;  %v444_v32 = vpop.f32.mrf.mxu1 }
  0xe9   :  { %536 = vst.msk [vmem:[%s1310_s3 + $0x78] sm:$0xff] %vm520_vm1, %v325_v29  ;;  %568 = vst.msk [vmem:[%s1310_s3 + $0x178] sm:$0xff] %vm520_vm1, %v453_v30  ;;  %v317_v33 = vadd.f32 %v985_v34, %v316_v31  ;;  %v445_v35 = vadd.f32 %v985_v34, %v444_v32 }
  0xea   :  { %v680_v36 = vpop.f32.mrf.mxu0  ;;  %v712_v37 = vpop.f32.mrf.mxu1 }
  0xeb   :  { %534 = vst.msk [vmem:[%s1310_s3 + $0x68] sm:$0xff] %vm520_vm1, %v317_v33  ;;  %566 = vst.msk [vmem:[%s1310_s3 + $0x168] sm:$0xff] %vm520_vm1, %v445_v35  ;;  %v338_v38 = vadd.f32 %v680_v36, %v985_v34  ;;  %v466_v39 = vadd.f32 %v712_v37, %v985_v34 }
  0xec   :  { %v329_v40 = vpop.f32.mrf.mxu0  ;;  %v457_v41 = vpop.f32.mrf.mxu1 }
  0xed   :  { %539 = vst.msk [vmem:[%s1310_s3 + $0x90] sm:$0xff] %vm520_vm1, %v338_v38  ;;  %571 = vst.msk [vmem:[%s1310_s3 + $0x190] sm:$0xff] %vm520_vm1, %v466_v39  ;;  %v330_v42 = vadd.f32 %v985_v34, %v329_v40  ;;  %v458_v43 = vadd.f32 %v985_v34, %v457_v41 }
  0xee   :  { %v681_v44 = vpop.f32.mrf.mxu0  ;;  %v713_v45 = vpop.f32.mrf.mxu1 }
  0xef   :  { %537 = vst.msk [vmem:[%s1310_s3 + $0x80] sm:$0xff] %vm520_vm1, %v330_v42  ;;  %569 = vst.msk [vmem:[%s1310_s3 + $0x180] sm:$0xff] %vm520_vm1, %v458_v43  ;;  %v341_v46 = vadd.f32 %v681_v44, %v985_v34  ;;  %v469_v47 = vadd.f32 %v713_v45, %v985_v34 }
  0xf0   :  { %v332_v48 = vpop.f32.mrf.mxu0  ;;  %v460_v49 = vpop.f32.mrf.mxu1 }
  0xf1   :  { %540 = vst.msk [vmem:[%s1310_s3 + $0x98] sm:$0xff] %vm520_vm1, %v341_v46  ;;  %572 = vst.msk [vmem:[%s1310_s3 + $0x198] sm:$0xff] %vm520_vm1, %v469_v47  ;;  %v333_v50 = vadd.f32 %v985_v34, %v332_v48  ;;  %v461_v51 = vadd.f32 %v985_v34, %v460_v49 }
  0xf2   :  { %v684_v52 = vpop.f32.mrf.mxu0  ;;  %v716_v53 = vpop.f32.mrf.mxu1 }
  0xf3   :  { %538 = vst.msk [vmem:[%s1310_s3 + $0x88] sm:$0xff] %vm520_vm1, %v333_v50  ;;  %570 = vst.msk [vmem:[%s1310_s3 + $0x188] sm:$0xff] %vm520_vm1, %v461_v51  ;;  %v354_v54 = vadd.f32 %v684_v52, %v985_v34  ;;  %v482_v55 = vadd.f32 %v716_v53, %v985_v34 }
  0xf4   :  { %v345_v56 = vpop.f32.mrf.mxu0  ;;  %v473_v57 = vpop.f32.mrf.mxu1 }
  0xf5   :  { %543 = vst.msk [vmem:[%s1310_s3 + $0xb0] sm:$0xff] %vm520_vm1, %v354_v54  ;;  %575 = vst.msk [vmem:[%s1310_s3 + $0x1b0] sm:$0xff] %vm520_vm1, %v482_v55  ;;  %v346_v58 = vadd.f32 %v985_v34, %v345_v56  ;;  %v474_v59 = vadd.f32 %v985_v34, %v473_v57 }
  0xf6   :  { %v685_v60 = vpop.f32.mrf.mxu0  ;;  %v717_v61 = vpop.f32.mrf.mxu1 }
  0xf7   :  { %541 = vst.msk [vmem:[%s1310_s3 + $0xa0] sm:$0xff] %vm520_vm1, %v346_v58  ;;  %573 = vst.msk [vmem:[%s1310_s3 + $0x1a0] sm:$0xff] %vm520_vm1, %v474_v59  ;;  %v357_v62 = vadd.f32 %v685_v60, %v985_v34  ;;  %v485_v63 = vadd.f32 %v717_v61, %v985_v34 }
  0xf8   :  { %v348_v0 = vpop.f32.mrf.mxu0  ;;  %v476_v1 = vpop.f32.mrf.mxu1 }
  0xf9   :  { %544 = vst.msk [vmem:[%s1310_s3 + $0xb8] sm:$0xff] %vm520_vm1, %v357_v62  ;;  %576 = vst.msk [vmem:[%s1310_s3 + $0x1b8] sm:$0xff] %vm520_vm1, %v485_v63  ;;  %v349_v2 = vadd.f32 %v985_v34, %v348_v0  ;;  %v477_v3 = vadd.f32 %v985_v34, %v476_v1 }
  0xfa   :  { %v688_v4 = vpop.f32.mrf.mxu0  ;;  %v720_v5 = vpop.f32.mrf.mxu1 }
  0xfb   :  { %542 = vst.msk [vmem:[%s1310_s3 + $0xa8] sm:$0xff] %vm520_vm1, %v349_v2  ;;  %574 = vst.msk [vmem:[%s1310_s3 + $0x1a8] sm:$0xff] %vm520_vm1, %v477_v3  ;;  %v370_v6 = vadd.f32 %v688_v4, %v985_v34  ;;  %v498_v7 = vadd.f32 %v720_v5, %v985_v34 }
  0xfc   :  { %v361_v8 = vpop.f32.mrf.mxu0  ;;  %v489_v9 = vpop.f32.mrf.mxu1 }
  0xfd   :  { %547 = vst.msk [vmem:[%s1310_s3 + $0xd0] sm:$0xff] %vm520_vm1, %v370_v6  ;;  %579 = vst.msk [vmem:[%s1310_s3 + $0x1d0] sm:$0xff] %vm520_vm1, %v498_v7  ;;  %v362_v10 = vadd.f32 %v985_v34, %v361_v8  ;;  %v490_v11 = vadd.f32 %v985_v34, %v489_v9 }
  0xfe   :  { %v689_v12 = vpop.f32.mrf.mxu0  ;;  %v721_v13 = vpop.f32.mrf.mxu1 }
  0xff   :  { %545 = vst.msk [vmem:[%s1310_s3 + $0xc0] sm:$0xff] %vm520_vm1, %v362_v10  ;;  %577 = vst.msk [vmem:[%s1310_s3 + $0x1c0] sm:$0xff] %vm520_vm1, %v490_v11  ;;  %v373_v14 = vadd.f32 %v689_v12, %v985_v34  ;;  %v501_v15 = vadd.f32 %v721_v13, %v985_v34 }
 0x100   :  { %v364_v16 = vpop.f32.mrf.mxu0  ;;  %v492_v17 = vpop.f32.mrf.mxu1 }
 0x101   :  { %548 = vst.msk [vmem:[%s1310_s3 + $0xd8] sm:$0xff] %vm520_vm1, %v373_v14  ;;  %580 = vst.msk [vmem:[%s1310_s3 + $0x1d8] sm:$0xff] %vm520_vm1, %v501_v15  ;;  %v365_v18 = vadd.f32 %v985_v34, %v364_v16  ;;  %v493_v19 = vadd.f32 %v985_v34, %v492_v17 }
 0x102   :  { %v692_v20 = vpop.f32.mrf.mxu0  ;;  %v724_v21 = vpop.f32.mrf.mxu1 }
 0x103   :  { %546 = vst.msk [vmem:[%s1310_s3 + $0xc8] sm:$0xff] %vm520_vm1, %v365_v18  ;;  %578 = vst.msk [vmem:[%s1310_s3 + $0x1c8] sm:$0xff] %vm520_vm1, %v493_v19  ;;  %v386_v22 = vadd.f32 %v692_v20, %v985_v34  ;;  %v514_v23 = vadd.f32 %v724_v21, %v985_v34 }
 0x104   :  { %v377_v24 = vpop.f32.mrf.mxu0  ;;  %v505_v25 = vpop.f32.mrf.mxu1 }
 0x105   :  { %551 = vst.msk [vmem:[%s1310_s3 + $0xf0] sm:$0xff] %vm520_vm1, %v386_v22  ;;  %583 = vst.msk [vmem:[%s1310_s3 + $0x1f0] sm:$0xff] %vm520_vm1, %v514_v23  ;;  %v378_v26 = vadd.f32 %v985_v34, %v377_v24  ;;  %v506_v27 = vadd.f32 %v985_v34, %v505_v25 }
 0x106   :  { %v693_v28 = vpop.f32.mrf.mxu0  ;;  %v725_v29 = vpop.f32.mrf.mxu1 }
 0x107   :  { %549 = vst.msk [vmem:[%s1310_s3 + $0xe0] sm:$0xff] %vm520_vm1, %v378_v26  ;;  %581 = vst.msk [vmem:[%s1310_s3 + $0x1e0] sm:$0xff] %vm520_vm1, %v506_v27  ;;  %v389_v30 = vadd.f32 %v693_v28, %v985_v34  ;;  %v517_v31 = vadd.f32 %v725_v29, %v985_v34 }
 0x108   :  { %v380_v32 = vpop.f32.mrf.mxu0  ;;  %v508_v33 = vpop.f32.mrf.mxu1 }
 0x109   :  { %552 = vst.msk [vmem:[%s1310_s3 + $0xf8] sm:$0xff] %vm520_vm1, %v389_v30  ;;  %584 = vst.msk [vmem:[%s1310_s3 + $0x1f8] sm:$0xff] %vm520_vm1, %v517_v31  ;;  %v381_v35 = vadd.f32 %v985_v34, %v380_v32  ;;  %v509_v36 = vadd.f32 %v985_v34, %v508_v33 }
 0x10b   :  { %550 = vst.msk [vmem:[%s1310_s3 + $0xe8] sm:$0xff] %vm520_vm1, %v381_v35  ;;  %582 = vst.msk [vmem:[%s1310_s3 + $0x1e8] sm:$0xff] %vm520_vm1, %v509_v36 }

</bundles_post_ra>
